<compile_context>
chip_gen: v5e
topology: v5e:2x2
jax: 0.10.0
libtpu: 0.0.40
codegen_flags: <defaults>
</compile_context>

<pallas_src>
import jax
import jax.numpy as jnp
import numpy as np
from jax import lax
from jax.experimental import pallas as pl
from jax.experimental.pallas import tpu as pltpu


def _encoder_gru_kernel(emb_ref, wih0_ref, whh0_ref, bih0_ref, bhh0_ref,
                        wcat_ref, bcat_ref, out_ref, hfin_ref, xp_ref):
    T, H = out_ref.shape           # (T, H)
    L = hfin_ref.shape[0]          # num layers

    # ---- Phase 1 (batched, off the serial dependency chain) -----------------
    # Layer-0 input projections for all timesteps at once (bf16 operands,
    # f32 accumulation):  (T, H) @ (H, 3H) + b_ih[0]  ->  (T, 3H)
    xp_ref[...] = (
        jnp.dot(emb_ref[...], wih0_ref[...], preferred_element_type=jnp.float32)
        + bih0_ref[...]
    )

    def gru0(gi, h_prev):
        # Layer 0: input path precomputed, only h @ W_hh on the serial chain.
        gh = jnp.dot(h_prev.astype(jnp.bfloat16), whh0_ref[...],
                     preferred_element_type=jnp.float32) + bhh0_ref[...]
        r = jax.nn.sigmoid(gi[:, 0:H] + gh[:, 0:H])
        z = jax.nn.sigmoid(gi[:, H:2 * H] + gh[:, H:2 * H])
        n = jnp.tanh(gi[:, 2 * H:3 * H] + r * gh[:, 2 * H:3 * H])
        return (1.0 - z) * n + z * h_prev

    def gru_upper(l, x, h_prev):
        # Layers >= 1: single fused (1,2H)@(2H,4H) matmul.
        # g = [gi_r+gh_r | gi_z+gh_z | gi_n | gh_n]
        lhs = jnp.concatenate([x, h_prev], axis=1).astype(jnp.bfloat16)
        g = (jnp.dot(lhs, wcat_ref[l - 1], preferred_element_type=jnp.float32)
             + bcat_ref[l - 1])
        r = jax.nn.sigmoid(g[:, 0:H])
        z = jax.nn.sigmoid(g[:, H:2 * H])
        n = jnp.tanh(g[:, 2 * H:3 * H] + r * g[:, 3 * H:4 * H])
        return (1.0 - z) * n + z * h_prev

    # ---- Phase 2: skewed serial recurrence (hidden state carried in vregs) --
    # Carry entering iteration i: hs[0] = h0(i) (already advanced one step),
    # hs[l>=1] = h_l(i-1).
    zero_h = jnp.zeros((1, H), jnp.float32)
    h0_first = gru0(xp_ref[pl.ds(0, 1), :], zero_h)        # layer-0, t = 0
    carry0 = (h0_first,) + tuple(zero_h for _ in range(L - 1))

    def step(i, carry):
        hs = list(carry)
        x = hs[0]                                           # layer-0 output @ t=i
        for l in range(1, L):                               # static unroll, L small
            hs[l] = gru_upper(l, x, hs[l])
            x = hs[l]
        # Top-layer output for this timestep (lane-dense (1, H) row write).
        out_ref[pl.ds(i, 1), :] = x.astype(out_ref.dtype)
        # Layer-0 for t = i+1, overlapped under the layer>=1 work of step i.
        t_next = jnp.minimum(i + 1, T - 1)
        h0_next = gru0(xp_ref[pl.ds(t_next, 1), :], hs[0])
        hs[0] = jnp.where(i + 1 < T, h0_next, hs[0])        # discard bogus last step
        return tuple(hs)

    hs_final = lax.fori_loop(0, T, step, carry0, unroll=min(T, 8))

    # Final hidden written exactly once.
    for l in range(L):
        hfin_ref[l] = hs_final[l].astype(hfin_ref.dtype)


def encoder_rnn_forward(word_inputs, emb_table, wih, whh, bih, bhh):
    """Equivalent of EncoderRNN.forward(word_inputs, init_hidden()).

    word_inputs: int32 (T,) token ids.
    wih, whh:    (L, H, 3H) gate-fused GRU weights (gate order r, z, n),
                 pre-transposed so the kernel computes x @ W.
    bih, bhh:    (L, 1, 3H) gate-fused biases.
    Returns (output (T, 1, H), hidden (L, 1, H)), float32.
    """
    T = int(word_inputs.shape[0])
    H = int(emb_table.shape[1])
    L = int(wih.shape[0])

    # Embedding lookup (gather) is glue; done in plain JAX. bf16 for the MXU.
    embedded = jnp.take(emb_table, word_inputs, axis=0).astype(jnp.bfloat16)  # (T, H)

    # Layer-0 weights: bf16 MXU operands; biases stay f32.
    wih0 = wih[0].astype(jnp.bfloat16)     # (H, 3H)
    whh0 = whh[0].astype(jnp.bfloat16)     # (H, 3H)
    bih0 = bih[0]                          # (1, 3H) f32
    bhh0 = bhh[0]                          # (1, 3H) f32

    # Layers >= 1: pack both per-layer matmuls into one (2H, 4H) RHS.
    #   rows 0:H   (from x): [Wih_r | Wih_z | Wih_n | 0    ]
    #   rows H:2H  (from h): [Whh_r | Whh_z | 0     | Whh_n]
    #   bias:                [bih_r+bhh_r | bih_z+bhh_z | bih_n | bhh_n]
    if L > 1:
        zeros_blk = jnp.zeros((L - 1, H, H), jnp.float32)
        top = jnp.concatenate([wih[1:, :, 0:H], wih[1:, :, H:2 * H],
                               wih[1:, :, 2 * H:3 * H], zeros_blk], axis=2)
        bot = jnp.concatenate([whh[1:, :, 0:H], whh[1:, :, H:2 * H],
                               zeros_blk, whh[1:, :, 2 * H:3 * H]], axis=2)
        wcat = jnp.concatenate([top, bot], axis=1).astype(jnp.bfloat16)  # (L-1, 2H, 4H)
        bcat = jnp.concatenate([bih[1:, :, 0:H] + bhh[1:, :, 0:H],
                                bih[1:, :, H:2 * H] + bhh[1:, :, H:2 * H],
                                bih[1:, :, 2 * H:3 * H],
                                bhh[1:, :, 2 * H:3 * H]], axis=2)        # (L-1, 1, 4H)
    else:
        wcat = jnp.zeros((1, 2 * H, 4 * H), jnp.bfloat16)  # dummy, unused
        bcat = jnp.zeros((1, 1, 4 * H), jnp.float32)
    Lc = int(wcat.shape[0])

    grid_spec = pltpu.PrefetchScalarGridSpec(
        num_scalar_prefetch=0,
        grid=(1,),  # whole recurrence in a single kernel invocation
        in_specs=[
            pl.BlockSpec((T, H), lambda i: (0, 0)),                 # embedded (resident)
            pl.BlockSpec((H, 3 * H), lambda i: (0, 0)),             # W_ih layer 0 (bf16)
            pl.BlockSpec((H, 3 * H), lambda i: (0, 0)),             # W_hh layer 0 (bf16)
            pl.BlockSpec((1, 3 * H), lambda i: (0, 0)),             # b_ih layer 0
            pl.BlockSpec((1, 3 * H), lambda i: (0, 0)),             # b_hh layer 0
            pl.BlockSpec((Lc, 2 * H, 4 * H), lambda i: (0, 0, 0)),  # fused upper weights
            pl.BlockSpec((Lc, 1, 4 * H), lambda i: (0, 0, 0)),      # fused upper biases
        ],
        out_specs=[
            pl.BlockSpec((T, H), lambda i: (0, 0)),                 # all outputs at once
            pl.BlockSpec((L, 1, H), lambda i: (0, 0, 0)),           # final hidden
        ],
        scratch_shapes=[
            pltpu.VMEM((T, 3 * H), jnp.float32),                    # layer-0 projections
        ],
    )

    out, h_fin = pl.pallas_call(
        _encoder_gru_kernel,
        out_shape=(
            jax.ShapeDtypeStruct((T, H), jnp.float32),
            jax.ShapeDtypeStruct((L, 1, H), jnp.float32),
        ),
        grid_spec=grid_spec,
        compiler_params=pltpu.CompilerParams(
            dimension_semantics=("arbitrary",),
        ),
    )(embedded, wih0, whh0, bih0, bhh0, wcat, bcat)
    return out.reshape(T, 1, H), h_fin


def _ref_forward(word_inputs, emb_table, wih, whh, bih, bhh):
    """Pure-JAX f32 reference (PyTorch GRU semantics, same fused weight layout)."""
    T = int(word_inputs.shape[0])
    H = int(emb_table.shape[1])
    L = int(wih.shape[0])
    embedded = jnp.take(emb_table, word_inputs, axis=0)  # (T, H)
    hs = [jnp.zeros((1, H), jnp.float32) for _ in range(L)]
    outs = []
    for t in range(T):
        x = embedded[t][None, :]
        for l in range(L):
            gi = x @ wih[l] + bih[l]
            gh = hs[l] @ whh[l] + bhh[l]
            r = jax.nn.sigmoid(gi[:, 0:H] + gh[:, 0:H])
            z = jax.nn.sigmoid(gi[:, H:2 * H] + gh[:, H:2 * H])
            n = jnp.tanh(gi[:, 2 * H:3 * H] + r * gh[:, 2 * H:3 * H])
            hn = (1.0 - z) * n + z * hs[l]
            hs[l] = hn
            x = hn
        outs.append(x)
    return jnp.stack(outs), jnp.stack(hs)  # (T,1,H), (L,1,H)


if __name__ == "__main__":
    # Small deterministic config consistent with the module defaults
    # (hidden_size=128, encoder_layers=2, batch=1, rnn_type='GRU').
    VOCAB = 100     # input_size (vocab+1) kept small
    H = 128         # hidden_size
    L = 2           # encoder_layers
    T = 8           # sequence length

    key = jax.random.PRNGKey(0)
    k_emb, k_ids, k_wih, k_whh, k_bih, k_bhh = jax.random.split(key, 6)

    # nn.Embedding default init: N(0, 1)
    emb_table = jax.random.normal(k_emb, (VOCAB, H), dtype=jnp.float32)

    # nn.GRU default init: U(-1/sqrt(H), 1/sqrt(H)); gate order (r, z, n);
    # stored gate-fused and pre-transposed so the kernel computes x @ W.
    stdv = 1.0 / np.sqrt(H)
    wih = jax.random.uniform(k_wih, (L, H, 3 * H), jnp.float32, -stdv, stdv)
    whh = jax.random.uniform(k_whh, (L, H, 3 * H), jnp.float32, -stdv, stdv)
    bih = jax.random.uniform(k_bih, (L, 1, 3 * H), jnp.float32, -stdv, stdv)
    bhh = jax.random.uniform(k_bhh, (L, 1, 3 * H), jnp.float32, -stdv, stdv)

    word_inputs = jax.random.randint(k_ids, (T,), 0, VOCAB, dtype=jnp.int32)

    out, hidden = encoder_rnn_forward(word_inputs, emb_table, wih, whh, bih, bhh)
    out = jax.block_until_ready(out)
    hidden = jax.block_until_ready(hidden)

    # Verify against pure-JAX f32 reference of the PyTorch GRU semantics.
    # Tolerance relaxed (bf16 MXU operands in the kernel, f32 accumulation).
    ref_out, ref_hidden = _ref_forward(word_inputs, emb_table, wih, whh, bih, bhh)
    np.testing.assert_allclose(np.asarray(out), np.asarray(ref_out),
                               rtol=5e-2, atol=5e-2)
    np.testing.assert_allclose(np.asarray(hidden), np.asarray(ref_hidden),
                               rtol=5e-2, atol=5e-2)

    assert out.shape == (T, 1, H) and hidden.shape == (L, 1, H)
    print("KERNEL_OK")
</pallas_src>

<mosaic_0001>
module attributes {stable_mosaic.version = 11 : i64} {
  func.func @_encoder_gru_kernel(%arg0: i32, %arg1: memref<8x128xbf16, #tpu.memory_space<vmem>>, %arg2: memref<128x384xbf16, #tpu.memory_space<vmem>>, %arg3: memref<128x384xbf16, #tpu.memory_space<vmem>>, %arg4: memref<1x384xf32, #tpu.memory_space<vmem>>, %arg5: memref<1x384xf32, #tpu.memory_space<vmem>>, %arg6: memref<1x256x512xbf16, #tpu.memory_space<vmem>>, %arg7: memref<1x1x512xf32, #tpu.memory_space<vmem>>, %arg8: memref<8x128xf32, #tpu.memory_space<vmem>>, %arg9: memref<2x1x128xf32, #tpu.memory_space<vmem>>, %arg10: memref<8x384xf32, #tpu.memory_space<vmem>>) attributes {dimension_semantics = [#tpu.dimension_semantics<arbitrary>], iteration_bounds = array<i64: 1>, scalar_prefetch = 0 : i64, scratch_operands = 1 : i64, tpu.core_type = #tpu.core_type<tc>, window_params = [{pipeline_mode = #tpu.pipeline_mode<synchronous>, transform_indices = @transform_0, window_bounds = array<i64: 8, 128>}, {pipeline_mode = #tpu.pipeline_mode<synchronous>, transform_indices = @transform_1, window_bounds = array<i64: 128, 384>}, {pipeline_mode = #tpu.pipeline_mode<synchronous>, transform_indices = @transform_2, window_bounds = array<i64: 128, 384>}, {pipeline_mode = #tpu.pipeline_mode<synchronous>, transform_indices = @transform_3, window_bounds = array<i64: 1, 384>}, {pipeline_mode = #tpu.pipeline_mode<synchronous>, transform_indices = @transform_4, window_bounds = array<i64: 1, 384>}, {pipeline_mode = #tpu.pipeline_mode<synchronous>, transform_indices = @transform_5, window_bounds = array<i64: 1, 256, 512>}, {pipeline_mode = #tpu.pipeline_mode<synchronous>, transform_indices = @transform_6, window_bounds = array<i64: 1, 1, 512>}, {pipeline_mode = #tpu.pipeline_mode<synchronous>, transform_indices = @transform_7, window_bounds = array<i64: 8, 128>}, {pipeline_mode = #tpu.pipeline_mode<synchronous>, transform_indices = @transform_8, window_bounds = array<i64: 2, 1, 128>}]} {
    %c0 = arith.constant 0 : index
    %c0_0 = arith.constant 0 : index
    %0 = vector.load %arg1[%c0, %c0_0] : memref<8x128xbf16, #tpu.memory_space<vmem>>, vector<8x128xbf16>
    %c0_1 = arith.constant 0 : index
    %c0_2 = arith.constant 0 : index
    %1 = vector.load %arg2[%c0_1, %c0_2] : memref<128x384xbf16, #tpu.memory_space<vmem>>, vector<128x384xbf16>
    %cst = arith.constant dense<0.000000e+00> : vector<8x384xf32>
    %2 = tpu.matmul %0, %1, %cst {dimension_numbers = #tpu.dot_dimension_numbers<[1], [0], [0], [1], [0, 0, 1, 1], [], []>} : vector<8x128xbf16>, vector<128x384xbf16>, vector<8x384xf32> -> vector<8x384xf32>
    %c0_3 = arith.constant 0 : index
    %c0_4 = arith.constant 0 : index
    %3 = vector.load %arg4[%c0_3, %c0_4] : memref<1x384xf32, #tpu.memory_space<vmem>>, vector<1x384xf32>
    %4 = vector.broadcast %3 : vector<1x384xf32> to vector<8x384xf32>
    %5 = arith.addf %2, %4 : vector<8x384xf32>
    %c0_5 = arith.constant 0 : index
    %c0_6 = arith.constant 0 : index
    %6 = vector.load %arg10[%c0_5, %c0_6] : memref<8x384xf32, #tpu.memory_space<vmem>>, vector<8x384xf32>
    tpu.vector_store %arg10[%c0_5, %c0_6], %5 {strides = array<i32>} : memref<8x384xf32, #tpu.memory_space<vmem>>, vector<8x384xf32>,
    %cst_7 = arith.constant 0.000000e+00 : f32
    %7 = vector.broadcast %cst_7 : f32 to vector<1x128xf32>
    %c0_8 = arith.constant 0 : index
    %c0_9 = arith.constant 0 : index
    %8 = vector.load %arg10[%c0_8, %c0_9] : memref<8x384xf32, #tpu.memory_space<vmem>>, vector<1x384xf32>
    %9 = arith.truncf %7 : vector<1x128xf32> to vector<1x128xbf16>
    %c0_10 = arith.constant 0 : index
    %c0_11 = arith.constant 0 : index
    %10 = vector.load %arg3[%c0_10, %c0_11] : memref<128x384xbf16, #tpu.memory_space<vmem>>, vector<128x384xbf16>
    %cst_12 = arith.constant dense<0.000000e+00> : vector<1x384xf32>
    %11 = tpu.matmul %9, %10, %cst_12 {dimension_numbers = #tpu.dot_dimension_numbers<[1], [0], [0], [1], [0, 0, 1, 1], [], []>} : vector<1x128xbf16>, vector<128x384xbf16>, vector<1x384xf32> -> vector<1x384xf32>
    %c0_13 = arith.constant 0 : index
    %c0_14 = arith.constant 0 : index
    %12 = vector.load %arg5[%c0_13, %c0_14] : memref<1x384xf32, #tpu.memory_space<vmem>>, vector<1x384xf32>
    %13 = arith.addf %11, %12 : vector<1x384xf32>
    %14 = vector.extract_strided_slice %8 {offsets = [0, 0], sizes = [1, 128], strides = [1, 1]} : vector<1x384xf32> to vector<1x128xf32>
    %15 = vector.extract_strided_slice %13 {offsets = [0, 0], sizes = [1, 128], strides = [1, 1]} : vector<1x384xf32> to vector<1x128xf32>
    %16 = arith.addf %14, %15 : vector<1x128xf32>
    %17 = arith.negf %16 : vector<1x128xf32>
    %18 = math.exp %17 : vector<1x128xf32>
    %cst_15 = arith.constant 1.000000e+00 : f32
    %19 = vector.broadcast %cst_15 : f32 to vector<1x128xf32>
    %20 = arith.addf %19, %18 : vector<1x128xf32>
    %21 = arith.divf %19, %20 : vector<1x128xf32>
    %22 = vector.extract_strided_slice %8 {offsets = [0, 128], sizes = [1, 128], strides = [1, 1]} : vector<1x384xf32> to vector<1x128xf32>
    %23 = vector.extract_strided_slice %13 {offsets = [0, 128], sizes = [1, 128], strides = [1, 1]} : vector<1x384xf32> to vector<1x128xf32>
    %24 = arith.addf %22, %23 : vector<1x128xf32>
    %25 = arith.negf %24 : vector<1x128xf32>
    %26 = math.exp %25 : vector<1x128xf32>
    %cst_16 = arith.constant 1.000000e+00 : f32
    %27 = vector.broadcast %cst_16 : f32 to vector<1x128xf32>
    %28 = arith.addf %27, %26 : vector<1x128xf32>
    %29 = arith.divf %27, %28 : vector<1x128xf32>
    %30 = vector.extract_strided_slice %8 {offsets = [0, 256], sizes = [1, 128], strides = [1, 1]} : vector<1x384xf32> to vector<1x128xf32>
    %31 = vector.extract_strided_slice %13 {offsets = [0, 256], sizes = [1, 128], strides = [1, 1]} : vector<1x384xf32> to vector<1x128xf32>
    %32 = arith.mulf %21, %31 : vector<1x128xf32>
    %33 = arith.addf %30, %32 : vector<1x128xf32>
    %34 = math.tanh %33 : vector<1x128xf32>
    %cst_17 = arith.constant 1.000000e+00 : f32
    %35 = vector.broadcast %cst_17 : f32 to vector<1x128xf32>
    %36 = arith.subf %35, %29 : vector<1x128xf32>
    %37 = arith.mulf %36, %34 : vector<1x128xf32>
    %38 = arith.mulf %29, %7 : vector<1x128xf32>
    %39 = arith.addf %37, %38 : vector<1x128xf32>
    %c0_i32 = arith.constant 0 : i32
    %40 = tpu.concatenate %39, %7 in 1 : vector<1x128xf32>, vector<1x128xf32> -> vector<1x256xf32>
    %41 = arith.truncf %40 : vector<1x256xf32> to vector<1x256xbf16>
    %c0_18 = arith.constant 0 : index
    %c0_19 = arith.constant 0 : index
    %c0_20 = arith.constant 0 : index
    %42 = vector.load %arg6[%c0_18, %c0_19, %c0_20] : memref<1x256x512xbf16, #tpu.memory_space<vmem>>, vector<1x256x512xbf16>
    %43 = vector.shape_cast %42 : vector<1x256x512xbf16> to vector<256x512xbf16>
    %cst_21 = arith.constant dense<0.000000e+00> : vector<1x512xf32>
    %44 = tpu.matmul %41, %43, %cst_21 {dimension_numbers = #tpu.dot_dimension_numbers<[1], [0], [0], [1], [0, 0, 1, 1], [], []>} : vector<1x256xbf16>, vector<256x512xbf16>, vector<1x512xf32> -> vector<1x512xf32>
    %c0_22 = arith.constant 0 : index
    %c0_23 = arith.constant 0 : index
    %c0_24 = arith.constant 0 : index
    %45 = vector.load %arg7[%c0_22, %c0_23, %c0_24] : memref<1x1x512xf32, #tpu.memory_space<vmem>>, vector<1x1x512xf32>
    %46 = vector.shape_cast %45 : vector<1x1x512xf32> to vector<1x512xf32>
    %47 = arith.addf %44, %46 : vector<1x512xf32>
    %48 = vector.extract_strided_slice %47 {offsets = [0, 0], sizes = [1, 128], strides = [1, 1]} : vector<1x512xf32> to vector<1x128xf32>
    %49 = arith.negf %48 : vector<1x128xf32>
    %50 = math.exp %49 : vector<1x128xf32>
    %cst_25 = arith.constant 1.000000e+00 : f32
    %51 = vector.broadcast %cst_25 : f32 to vector<1x128xf32>
    %52 = arith.addf %51, %50 : vector<1x128xf32>
    %53 = arith.divf %51, %52 : vector<1x128xf32>
    %54 = vector.extract_strided_slice %47 {offsets = [0, 128], sizes = [1, 128], strides = [1, 1]} : vector<1x512xf32> to vector<1x128xf32>
    %55 = arith.negf %54 : vector<1x128xf32>
    %56 = math.exp %55 : vector<1x128xf32>
    %cst_26 = arith.constant 1.000000e+00 : f32
    %57 = vector.broadcast %cst_26 : f32 to vector<1x128xf32>
    %58 = arith.addf %57, %56 : vector<1x128xf32>
    %59 = arith.divf %57, %58 : vector<1x128xf32>
    %60 = vector.extract_strided_slice %47 {offsets = [0, 256], sizes = [1, 128], strides = [1, 1]} : vector<1x512xf32> to vector<1x128xf32>
    %61 = vector.extract_strided_slice %47 {offsets = [0, 384], sizes = [1, 128], strides = [1, 1]} : vector<1x512xf32> to vector<1x128xf32>
    %62 = arith.mulf %53, %61 : vector<1x128xf32>
    %63 = arith.addf %60, %62 : vector<1x128xf32>
    %64 = math.tanh %63 : vector<1x128xf32>
    %cst_27 = arith.constant 1.000000e+00 : f32
    %65 = vector.broadcast %cst_27 : f32 to vector<1x128xf32>
    %66 = arith.subf %65, %59 : vector<1x128xf32>
    %67 = arith.mulf %66, %64 : vector<1x128xf32>
    %68 = arith.mulf %59, %7 : vector<1x128xf32>
    %69 = arith.addf %67, %68 : vector<1x128xf32>
    %70 = arith.index_cast %c0_i32 : i32 to index
    %c0_28 = arith.constant 0 : index
    %71 = vector.load %arg8[%70, %c0_28] : memref<8x128xf32, #tpu.memory_space<vmem>>, vector<1x128xf32>
    tpu.vector_store %arg8[%70, %c0_28], %69 {strides = array<i32>} : memref<8x128xf32, #tpu.memory_space<vmem>>, vector<1x128xf32>,
    %c1_i32 = arith.constant 1 : i32
    %72 = arith.addi %c0_i32, %c1_i32 : i32
    %c7_i32 = arith.constant 7 : i32
    %73 = arith.minsi %72, %c7_i32 : i32
    %74 = arith.index_cast %73 : i32 to index
    %c0_29 = arith.constant 0 : index
    %75 = vector.load %arg10[%74, %c0_29] : memref<8x384xf32, #tpu.memory_space<vmem>>, vector<1x384xf32>
    %76 = arith.truncf %39 : vector<1x128xf32> to vector<1x128xbf16>
    %c0_30 = arith.constant 0 : index
    %c0_31 = arith.constant 0 : index
    %77 = vector.load %arg3[%c0_30, %c0_31] : memref<128x384xbf16, #tpu.memory_space<vmem>>, vector<128x384xbf16>
    %cst_32 = arith.constant dense<0.000000e+00> : vector<1x384xf32>
    %78 = tpu.matmul %76, %77, %cst_32 {dimension_numbers = #tpu.dot_dimension_numbers<[1], [0], [0], [1], [0, 0, 1, 1], [], []>} : vector<1x128xbf16>, vector<128x384xbf16>, vector<1x384xf32> -> vector<1x384xf32>
    %c0_33 = arith.constant 0 : index
    %c0_34 = arith.constant 0 : index
    %79 = vector.load %arg5[%c0_33, %c0_34] : memref<1x384xf32, #tpu.memory_space<vmem>>, vector<1x384xf32>
    %80 = arith.addf %78, %79 : vector<1x384xf32>
    %81 = vector.extract_strided_slice %75 {offsets = [0, 0], sizes = [1, 128], strides = [1, 1]} : vector<1x384xf32> to vector<1x128xf32>
    %82 = vector.extract_strided_slice %80 {offsets = [0, 0], sizes = [1, 128], strides = [1, 1]} : vector<1x384xf32> to vector<1x128xf32>
    %83 = arith.addf %81, %82 : vector<1x128xf32>
    %84 = arith.negf %83 : vector<1x128xf32>
    %85 = math.exp %84 : vector<1x128xf32>
    %cst_35 = arith.constant 1.000000e+00 : f32
    %86 = vector.broadcast %cst_35 : f32 to vector<1x128xf32>
    %87 = arith.addf %86, %85 : vector<1x128xf32>
    %88 = arith.divf %86, %87 : vector<1x128xf32>
    %89 = vector.extract_strided_slice %75 {offsets = [0, 128], sizes = [1, 128], strides = [1, 1]} : vector<1x384xf32> to vector<1x128xf32>
    %90 = vector.extract_strided_slice %80 {offsets = [0, 128], sizes = [1, 128], strides = [1, 1]} : vector<1x384xf32> to vector<1x128xf32>
    %91 = arith.addf %89, %90 : vector<1x128xf32>
    %92 = arith.negf %91 : vector<1x128xf32>
    %93 = math.exp %92 : vector<1x128xf32>
    %cst_36 = arith.constant 1.000000e+00 : f32
    %94 = vector.broadcast %cst_36 : f32 to vector<1x128xf32>
    %95 = arith.addf %94, %93 : vector<1x128xf32>
    %96 = arith.divf %94, %95 : vector<1x128xf32>
    %97 = vector.extract_strided_slice %75 {offsets = [0, 256], sizes = [1, 128], strides = [1, 1]} : vector<1x384xf32> to vector<1x128xf32>
    %98 = vector.extract_strided_slice %80 {offsets = [0, 256], sizes = [1, 128], strides = [1, 1]} : vector<1x384xf32> to vector<1x128xf32>
    %99 = arith.mulf %88, %98 : vector<1x128xf32>
    %100 = arith.addf %97, %99 : vector<1x128xf32>
    %101 = math.tanh %100 : vector<1x128xf32>
    %cst_37 = arith.constant 1.000000e+00 : f32
    %102 = vector.broadcast %cst_37 : f32 to vector<1x128xf32>
    %103 = arith.subf %102, %96 : vector<1x128xf32>
    %104 = arith.mulf %103, %101 : vector<1x128xf32>
    %105 = arith.mulf %96, %39 : vector<1x128xf32>
    %106 = arith.addf %104, %105 : vector<1x128xf32>
    %c1_i32_38 = arith.constant 1 : i32
    %107 = arith.addi %c0_i32, %c1_i32_38 : i32
    %c8_i32 = arith.constant 8 : i32
    %108 = arith.cmpi slt, %107, %c8_i32 : i32
    %109 = arith.select %108, %106, %39 : vector<1x128xf32>
    %c1_i32_39 = arith.constant 1 : i32
    %110 = tpu.concatenate %109, %69 in 1 : vector<1x128xf32>, vector<1x128xf32> -> vector<1x256xf32>
    %111 = arith.truncf %110 : vector<1x256xf32> to vector<1x256xbf16>
    %c0_40 = arith.constant 0 : index
    %c0_41 = arith.constant 0 : index
    %c0_42 = arith.constant 0 : index
    %112 = vector.load %arg6[%c0_40, %c0_41, %c0_42] : memref<1x256x512xbf16, #tpu.memory_space<vmem>>, vector<1x256x512xbf16>
    %113 = vector.shape_cast %112 : vector<1x256x512xbf16> to vector<256x512xbf16>
    %cst_43 = arith.constant dense<0.000000e+00> : vector<1x512xf32>
    %114 = tpu.matmul %111, %113, %cst_43 {dimension_numbers = #tpu.dot_dimension_numbers<[1], [0], [0], [1], [0, 0, 1, 1], [], []>} : vector<1x256xbf16>, vector<256x512xbf16>, vector<1x512xf32> -> vector<1x512xf32>
    %c0_44 = arith.constant 0 : index
    %c0_45 = arith.constant 0 : index
    %c0_46 = arith.constant 0 : index
    %115 = vector.load %arg7[%c0_44, %c0_45, %c0_46] : memref<1x1x512xf32, #tpu.memory_space<vmem>>, vector<1x1x512xf32>
    %116 = vector.shape_cast %115 : vector<1x1x512xf32> to vector<1x512xf32>
    %117 = arith.addf %114, %116 : vector<1x512xf32>
    %118 = vector.extract_strided_slice %117 {offsets = [0, 0], sizes = [1, 128], strides = [1, 1]} : vector<1x512xf32> to vector<1x128xf32>
    %119 = arith.negf %118 : vector<1x128xf32>
    %120 = math.exp %119 : vector<1x128xf32>
    %cst_47 = arith.constant 1.000000e+00 : f32
    %121 = vector.broadcast %cst_47 : f32 to vector<1x128xf32>
    %122 = arith.addf %121, %120 : vector<1x128xf32>
    %123 = arith.divf %121, %122 : vector<1x128xf32>
    %124 = vector.extract_strided_slice %117 {offsets = [0, 128], sizes = [1, 128], strides = [1, 1]} : vector<1x512xf32> to vector<1x128xf32>
    %125 = arith.negf %124 : vector<1x128xf32>
    %126 = math.exp %125 : vector<1x128xf32>
    %cst_48 = arith.constant 1.000000e+00 : f32
    %127 = vector.broadcast %cst_48 : f32 to vector<1x128xf32>
    %128 = arith.addf %127, %126 : vector<1x128xf32>
    %129 = arith.divf %127, %128 : vector<1x128xf32>
    %130 = vector.extract_strided_slice %117 {offsets = [0, 256], sizes = [1, 128], strides = [1, 1]} : vector<1x512xf32> to vector<1x128xf32>
    %131 = vector.extract_strided_slice %117 {offsets = [0, 384], sizes = [1, 128], strides = [1, 1]} : vector<1x512xf32> to vector<1x128xf32>
    %132 = arith.mulf %123, %131 : vector<1x128xf32>
    %133 = arith.addf %130, %132 : vector<1x128xf32>
    %134 = math.tanh %133 : vector<1x128xf32>
    %cst_49 = arith.constant 1.000000e+00 : f32
    %135 = vector.broadcast %cst_49 : f32 to vector<1x128xf32>
    %136 = arith.subf %135, %129 : vector<1x128xf32>
    %137 = arith.mulf %136, %134 : vector<1x128xf32>
    %138 = arith.mulf %129, %69 : vector<1x128xf32>
    %139 = arith.addf %137, %138 : vector<1x128xf32>
    %140 = arith.index_cast %c1_i32_39 : i32 to index
    %c0_50 = arith.constant 0 : index
    %141 = vector.load %arg8[%140, %c0_50] : memref<8x128xf32, #tpu.memory_space<vmem>>, vector<1x128xf32>
    tpu.vector_store %arg8[%140, %c0_50], %139 {strides = array<i32>} : memref<8x128xf32, #tpu.memory_space<vmem>>, vector<1x128xf32>,
    %c1_i32_51 = arith.constant 1 : i32
    %142 = arith.addi %c1_i32_39, %c1_i32_51 : i32
    %c7_i32_52 = arith.constant 7 : i32
    %143 = arith.minsi %142, %c7_i32_52 : i32
    %144 = arith.index_cast %143 : i32 to index
    %c0_53 = arith.constant 0 : index
    %145 = vector.load %arg10[%144, %c0_53] : memref<8x384xf32, #tpu.memory_space<vmem>>, vector<1x384xf32>
    %146 = arith.truncf %109 : vector<1x128xf32> to vector<1x128xbf16>
    %c0_54 = arith.constant 0 : index
    %c0_55 = arith.constant 0 : index
    %147 = vector.load %arg3[%c0_54, %c0_55] : memref<128x384xbf16, #tpu.memory_space<vmem>>, vector<128x384xbf16>
    %cst_56 = arith.constant dense<0.000000e+00> : vector<1x384xf32>
    %148 = tpu.matmul %146, %147, %cst_56 {dimension_numbers = #tpu.dot_dimension_numbers<[1], [0], [0], [1], [0, 0, 1, 1], [], []>} : vector<1x128xbf16>, vector<128x384xbf16>, vector<1x384xf32> -> vector<1x384xf32>
    %c0_57 = arith.constant 0 : index
    %c0_58 = arith.constant 0 : index
    %149 = vector.load %arg5[%c0_57, %c0_58] : memref<1x384xf32, #tpu.memory_space<vmem>>, vector<1x384xf32>
    %150 = arith.addf %148, %149 : vector<1x384xf32>
    %151 = vector.extract_strided_slice %145 {offsets = [0, 0], sizes = [1, 128], strides = [1, 1]} : vector<1x384xf32> to vector<1x128xf32>
    %152 = vector.extract_strided_slice %150 {offsets = [0, 0], sizes = [1, 128], strides = [1, 1]} : vector<1x384xf32> to vector<1x128xf32>
    %153 = arith.addf %151, %152 : vector<1x128xf32>
    %154 = arith.negf %153 : vector<1x128xf32>
    %155 = math.exp %154 : vector<1x128xf32>
    %cst_59 = arith.constant 1.000000e+00 : f32
    %156 = vector.broadcast %cst_59 : f32 to vector<1x128xf32>
    %157 = arith.addf %156, %155 : vector<1x128xf32>
    %158 = arith.divf %156, %157 : vector<1x128xf32>
    %159 = vector.extract_strided_slice %145 {offsets = [0, 128], sizes = [1, 128], strides = [1, 1]} : vector<1x384xf32> to vector<1x128xf32>
    %160 = vector.extract_strided_slice %150 {offsets = [0, 128], sizes = [1, 128], strides = [1, 1]} : vector<1x384xf32> to vector<1x128xf32>
    %161 = arith.addf %159, %160 : vector<1x128xf32>
    %162 = arith.negf %161 : vector<1x128xf32>
    %163 = math.exp %162 : vector<1x128xf32>
    %cst_60 = arith.constant 1.000000e+00 : f32
    %164 = vector.broadcast %cst_60 : f32 to vector<1x128xf32>
    %165 = arith.addf %164, %163 : vector<1x128xf32>
    %166 = arith.divf %164, %165 : vector<1x128xf32>
    %167 = vector.extract_strided_slice %145 {offsets = [0, 256], sizes = [1, 128], strides = [1, 1]} : vector<1x384xf32> to vector<1x128xf32>
    %168 = vector.extract_strided_slice %150 {offsets = [0, 256], sizes = [1, 128], strides = [1, 1]} : vector<1x384xf32> to vector<1x128xf32>
    %169 = arith.mulf %158, %168 : vector<1x128xf32>
    %170 = arith.addf %167, %169 : vector<1x128xf32>
    %171 = math.tanh %170 : vector<1x128xf32>
    %cst_61 = arith.constant 1.000000e+00 : f32
    %172 = vector.broadcast %cst_61 : f32 to vector<1x128xf32>
    %173 = arith.subf %172, %166 : vector<1x128xf32>
    %174 = arith.mulf %173, %171 : vector<1x128xf32>
    %175 = arith.mulf %166, %109 : vector<1x128xf32>
    %176 = arith.addf %174, %175 : vector<1x128xf32>
    %c1_i32_62 = arith.constant 1 : i32
    %177 = arith.addi %c1_i32_39, %c1_i32_62 : i32
    %c8_i32_63 = arith.constant 8 : i32
    %178 = arith.cmpi slt, %177, %c8_i32_63 : i32
    %179 = arith.select %178, %176, %109 : vector<1x128xf32>
    %c2_i32 = arith.constant 2 : i32
    %180 = tpu.concatenate %179, %139 in 1 : vector<1x128xf32>, vector<1x128xf32> -> vector<1x256xf32>
    %181 = arith.truncf %180 : vector<1x256xf32> to vector<1x256xbf16>
    %c0_64 = arith.constant 0 : index
    %c0_65 = arith.constant 0 : index
    %c0_66 = arith.constant 0 : index
    %182 = vector.load %arg6[%c0_64, %c0_65, %c0_66] : memref<1x256x512xbf16, #tpu.memory_space<vmem>>, vector<1x256x512xbf16>
    %183 = vector.shape_cast %182 : vector<1x256x512xbf16> to vector<256x512xbf16>
    %cst_67 = arith.constant dense<0.000000e+00> : vector<1x512xf32>
    %184 = tpu.matmul %181, %183, %cst_67 {dimension_numbers = #tpu.dot_dimension_numbers<[1], [0], [0], [1], [0, 0, 1, 1], [], []>} : vector<1x256xbf16>, vector<256x512xbf16>, vector<1x512xf32> -> vector<1x512xf32>
    %c0_68 = arith.constant 0 : index
    %c0_69 = arith.constant 0 : index
    %c0_70 = arith.constant 0 : index
    %185 = vector.load %arg7[%c0_68, %c0_69, %c0_70] : memref<1x1x512xf32, #tpu.memory_space<vmem>>, vector<1x1x512xf32>
    %186 = vector.shape_cast %185 : vector<1x1x512xf32> to vector<1x512xf32>
    %187 = arith.addf %184, %186 : vector<1x512xf32>
    %188 = vector.extract_strided_slice %187 {offsets = [0, 0], sizes = [1, 128], strides = [1, 1]} : vector<1x512xf32> to vector<1x128xf32>
    %189 = arith.negf %188 : vector<1x128xf32>
    %190 = math.exp %189 : vector<1x128xf32>
    %cst_71 = arith.constant 1.000000e+00 : f32
    %191 = vector.broadcast %cst_71 : f32 to vector<1x128xf32>
    %192 = arith.addf %191, %190 : vector<1x128xf32>
    %193 = arith.divf %191, %192 : vector<1x128xf32>
    %194 = vector.extract_strided_slice %187 {offsets = [0, 128], sizes = [1, 128], strides = [1, 1]} : vector<1x512xf32> to vector<1x128xf32>
    %195 = arith.negf %194 : vector<1x128xf32>
    %196 = math.exp %195 : vector<1x128xf32>
    %cst_72 = arith.constant 1.000000e+00 : f32
    %197 = vector.broadcast %cst_72 : f32 to vector<1x128xf32>
    %198 = arith.addf %197, %196 : vector<1x128xf32>
    %199 = arith.divf %197, %198 : vector<1x128xf32>
    %200 = vector.extract_strided_slice %187 {offsets = [0, 256], sizes = [1, 128], strides = [1, 1]} : vector<1x512xf32> to vector<1x128xf32>
    %201 = vector.extract_strided_slice %187 {offsets = [0, 384], sizes = [1, 128], strides = [1, 1]} : vector<1x512xf32> to vector<1x128xf32>
    %202 = arith.mulf %193, %201 : vector<1x128xf32>
    %203 = arith.addf %200, %202 : vector<1x128xf32>
    %204 = math.tanh %203 : vector<1x128xf32>
    %cst_73 = arith.constant 1.000000e+00 : f32
    %205 = vector.broadcast %cst_73 : f32 to vector<1x128xf32>
    %206 = arith.subf %205, %199 : vector<1x128xf32>
    %207 = arith.mulf %206, %204 : vector<1x128xf32>
    %208 = arith.mulf %199, %139 : vector<1x128xf32>
    %209 = arith.addf %207, %208 : vector<1x128xf32>
    %210 = arith.index_cast %c2_i32 : i32 to index
    %c0_74 = arith.constant 0 : index
    %211 = vector.load %arg8[%210, %c0_74] : memref<8x128xf32, #tpu.memory_space<vmem>>, vector<1x128xf32>
    tpu.vector_store %arg8[%210, %c0_74], %209 {strides = array<i32>} : memref<8x128xf32, #tpu.memory_space<vmem>>, vector<1x128xf32>,
    %c1_i32_75 = arith.constant 1 : i32
    %212 = arith.addi %c2_i32, %c1_i32_75 : i32
    %c7_i32_76 = arith.constant 7 : i32
    %213 = arith.minsi %212, %c7_i32_76 : i32
    %214 = arith.index_cast %213 : i32 to index
    %c0_77 = arith.constant 0 : index
    %215 = vector.load %arg10[%214, %c0_77] : memref<8x384xf32, #tpu.memory_space<vmem>>, vector<1x384xf32>
    %216 = arith.truncf %179 : vector<1x128xf32> to vector<1x128xbf16>
    %c0_78 = arith.constant 0 : index
    %c0_79 = arith.constant 0 : index
    %217 = vector.load %arg3[%c0_78, %c0_79] : memref<128x384xbf16, #tpu.memory_space<vmem>>, vector<128x384xbf16>
    %cst_80 = arith.constant dense<0.000000e+00> : vector<1x384xf32>
    %218 = tpu.matmul %216, %217, %cst_80 {dimension_numbers = #tpu.dot_dimension_numbers<[1], [0], [0], [1], [0, 0, 1, 1], [], []>} : vector<1x128xbf16>, vector<128x384xbf16>, vector<1x384xf32> -> vector<1x384xf32>
    %c0_81 = arith.constant 0 : index
    %c0_82 = arith.constant 0 : index
    %219 = vector.load %arg5[%c0_81, %c0_82] : memref<1x384xf32, #tpu.memory_space<vmem>>, vector<1x384xf32>
    %220 = arith.addf %218, %219 : vector<1x384xf32>
    %221 = vector.extract_strided_slice %215 {offsets = [0, 0], sizes = [1, 128], strides = [1, 1]} : vector<1x384xf32> to vector<1x128xf32>
    %222 = vector.extract_strided_slice %220 {offsets = [0, 0], sizes = [1, 128], strides = [1, 1]} : vector<1x384xf32> to vector<1x128xf32>
    %223 = arith.addf %221, %222 : vector<1x128xf32>
    %224 = arith.negf %223 : vector<1x128xf32>
    %225 = math.exp %224 : vector<1x128xf32>
    %cst_83 = arith.constant 1.000000e+00 : f32
    %226 = vector.broadcast %cst_83 : f32 to vector<1x128xf32>
    %227 = arith.addf %226, %225 : vector<1x128xf32>
    %228 = arith.divf %226, %227 : vector<1x128xf32>
    %229 = vector.extract_strided_slice %215 {offsets = [0, 128], sizes = [1, 128], strides = [1, 1]} : vector<1x384xf32> to vector<1x128xf32>
    %230 = vector.extract_strided_slice %220 {offsets = [0, 128], sizes = [1, 128], strides = [1, 1]} : vector<1x384xf32> to vector<1x128xf32>
    %231 = arith.addf %229, %230 : vector<1x128xf32>
    %232 = arith.negf %231 : vector<1x128xf32>
    %233 = math.exp %232 : vector<1x128xf32>
    %cst_84 = arith.constant 1.000000e+00 : f32
    %234 = vector.broadcast %cst_84 : f32 to vector<1x128xf32>
    %235 = arith.addf %234, %233 : vector<1x128xf32>
    %236 = arith.divf %234, %235 : vector<1x128xf32>
    %237 = vector.extract_strided_slice %215 {offsets = [0, 256], sizes = [1, 128], strides = [1, 1]} : vector<1x384xf32> to vector<1x128xf32>
    %238 = vector.extract_strided_slice %220 {offsets = [0, 256], sizes = [1, 128], strides = [1, 1]} : vector<1x384xf32> to vector<1x128xf32>
    %239 = arith.mulf %228, %238 : vector<1x128xf32>
    %240 = arith.addf %237, %239 : vector<1x128xf32>
    %241 = math.tanh %240 : vector<1x128xf32>
    %cst_85 = arith.constant 1.000000e+00 : f32
    %242 = vector.broadcast %cst_85 : f32 to vector<1x128xf32>
    %243 = arith.subf %242, %236 : vector<1x128xf32>
    %244 = arith.mulf %243, %241 : vector<1x128xf32>
    %245 = arith.mulf %236, %179 : vector<1x128xf32>
    %246 = arith.addf %244, %245 : vector<1x128xf32>
    %c1_i32_86 = arith.constant 1 : i32
    %247 = arith.addi %c2_i32, %c1_i32_86 : i32
    %c8_i32_87 = arith.constant 8 : i32
    %248 = arith.cmpi slt, %247, %c8_i32_87 : i32
    %249 = arith.select %248, %246, %179 : vector<1x128xf32>
    %c3_i32 = arith.constant 3 : i32
    %250 = tpu.concatenate %249, %209 in 1 : vector<1x128xf32>, vector<1x128xf32> -> vector<1x256xf32>
    %251 = arith.truncf %250 : vector<1x256xf32> to vector<1x256xbf16>
    %c0_88 = arith.constant 0 : index
    %c0_89 = arith.constant 0 : index
    %c0_90 = arith.constant 0 : index
    %252 = vector.load %arg6[%c0_88, %c0_89, %c0_90] : memref<1x256x512xbf16, #tpu.memory_space<vmem>>, vector<1x256x512xbf16>
    %253 = vector.shape_cast %252 : vector<1x256x512xbf16> to vector<256x512xbf16>
    %cst_91 = arith.constant dense<0.000000e+00> : vector<1x512xf32>
    %254 = tpu.matmul %251, %253, %cst_91 {dimension_numbers = #tpu.dot_dimension_numbers<[1], [0], [0], [1], [0, 0, 1, 1], [], []>} : vector<1x256xbf16>, vector<256x512xbf16>, vector<1x512xf32> -> vector<1x512xf32>
    %c0_92 = arith.constant 0 : index
    %c0_93 = arith.constant 0 : index
    %c0_94 = arith.constant 0 : index
    %255 = vector.load %arg7[%c0_92, %c0_93, %c0_94] : memref<1x1x512xf32, #tpu.memory_space<vmem>>, vector<1x1x512xf32>
    %256 = vector.shape_cast %255 : vector<1x1x512xf32> to vector<1x512xf32>
    %257 = arith.addf %254, %256 : vector<1x512xf32>
    %258 = vector.extract_strided_slice %257 {offsets = [0, 0], sizes = [1, 128], strides = [1, 1]} : vector<1x512xf32> to vector<1x128xf32>
    %259 = arith.negf %258 : vector<1x128xf32>
    %260 = math.exp %259 : vector<1x128xf32>
    %cst_95 = arith.constant 1.000000e+00 : f32
    %261 = vector.broadcast %cst_95 : f32 to vector<1x128xf32>
    %262 = arith.addf %261, %260 : vector<1x128xf32>
    %263 = arith.divf %261, %262 : vector<1x128xf32>
    %264 = vector.extract_strided_slice %257 {offsets = [0, 128], sizes = [1, 128], strides = [1, 1]} : vector<1x512xf32> to vector<1x128xf32>
    %265 = arith.negf %264 : vector<1x128xf32>
    %266 = math.exp %265 : vector<1x128xf32>
    %cst_96 = arith.constant 1.000000e+00 : f32
    %267 = vector.broadcast %cst_96 : f32 to vector<1x128xf32>
    %268 = arith.addf %267, %266 : vector<1x128xf32>
    %269 = arith.divf %267, %268 : vector<1x128xf32>
    %270 = vector.extract_strided_slice %257 {offsets = [0, 256], sizes = [1, 128], strides = [1, 1]} : vector<1x512xf32> to vector<1x128xf32>
    %271 = vector.extract_strided_slice %257 {offsets = [0, 384], sizes = [1, 128], strides = [1, 1]} : vector<1x512xf32> to vector<1x128xf32>
    %272 = arith.mulf %263, %271 : vector<1x128xf32>
    %273 = arith.addf %270, %272 : vector<1x128xf32>
    %274 = math.tanh %273 : vector<1x128xf32>
    %cst_97 = arith.constant 1.000000e+00 : f32
    %275 = vector.broadcast %cst_97 : f32 to vector<1x128xf32>
    %276 = arith.subf %275, %269 : vector<1x128xf32>
    %277 = arith.mulf %276, %274 : vector<1x128xf32>
    %278 = arith.mulf %269, %209 : vector<1x128xf32>
    %279 = arith.addf %277, %278 : vector<1x128xf32>
    %280 = arith.index_cast %c3_i32 : i32 to index
    %c0_98 = arith.constant 0 : index
    %281 = vector.load %arg8[%280, %c0_98] : memref<8x128xf32, #tpu.memory_space<vmem>>, vector<1x128xf32>
    tpu.vector_store %arg8[%280, %c0_98], %279 {strides = array<i32>} : memref<8x128xf32, #tpu.memory_space<vmem>>, vector<1x128xf32>,
    %c1_i32_99 = arith.constant 1 : i32
    %282 = arith.addi %c3_i32, %c1_i32_99 : i32
    %c7_i32_100 = arith.constant 7 : i32
    %283 = arith.minsi %282, %c7_i32_100 : i32
    %284 = arith.index_cast %283 : i32 to index
    %c0_101 = arith.constant 0 : index
    %285 = vector.load %arg10[%284, %c0_101] : memref<8x384xf32, #tpu.memory_space<vmem>>, vector<1x384xf32>
    %286 = arith.truncf %249 : vector<1x128xf32> to vector<1x128xbf16>
    %c0_102 = arith.constant 0 : index
    %c0_103 = arith.constant 0 : index
    %287 = vector.load %arg3[%c0_102, %c0_103] : memref<128x384xbf16, #tpu.memory_space<vmem>>, vector<128x384xbf16>
    %cst_104 = arith.constant dense<0.000000e+00> : vector<1x384xf32>
    %288 = tpu.matmul %286, %287, %cst_104 {dimension_numbers = #tpu.dot_dimension_numbers<[1], [0], [0], [1], [0, 0, 1, 1], [], []>} : vector<1x128xbf16>, vector<128x384xbf16>, vector<1x384xf32> -> vector<1x384xf32>
    %c0_105 = arith.constant 0 : index
    %c0_106 = arith.constant 0 : index
    %289 = vector.load %arg5[%c0_105, %c0_106] : memref<1x384xf32, #tpu.memory_space<vmem>>, vector<1x384xf32>
    %290 = arith.addf %288, %289 : vector<1x384xf32>
    %291 = vector.extract_strided_slice %285 {offsets = [0, 0], sizes = [1, 128], strides = [1, 1]} : vector<1x384xf32> to vector<1x128xf32>
    %292 = vector.extract_strided_slice %290 {offsets = [0, 0], sizes = [1, 128], strides = [1, 1]} : vector<1x384xf32> to vector<1x128xf32>
    %293 = arith.addf %291, %292 : vector<1x128xf32>
    %294 = arith.negf %293 : vector<1x128xf32>
    %295 = math.exp %294 : vector<1x128xf32>
    %cst_107 = arith.constant 1.000000e+00 : f32
    %296 = vector.broadcast %cst_107 : f32 to vector<1x128xf32>
    %297 = arith.addf %296, %295 : vector<1x128xf32>
    %298 = arith.divf %296, %297 : vector<1x128xf32>
    %299 = vector.extract_strided_slice %285 {offsets = [0, 128], sizes = [1, 128], strides = [1, 1]} : vector<1x384xf32> to vector<1x128xf32>
    %300 = vector.extract_strided_slice %290 {offsets = [0, 128], sizes = [1, 128], strides = [1, 1]} : vector<1x384xf32> to vector<1x128xf32>
    %301 = arith.addf %299, %300 : vector<1x128xf32>
    %302 = arith.negf %301 : vector<1x128xf32>
    %303 = math.exp %302 : vector<1x128xf32>
    %cst_108 = arith.constant 1.000000e+00 : f32
    %304 = vector.broadcast %cst_108 : f32 to vector<1x128xf32>
    %305 = arith.addf %304, %303 : vector<1x128xf32>
    %306 = arith.divf %304, %305 : vector<1x128xf32>
    %307 = vector.extract_strided_slice %285 {offsets = [0, 256], sizes = [1, 128], strides = [1, 1]} : vector<1x384xf32> to vector<1x128xf32>
    %308 = vector.extract_strided_slice %290 {offsets = [0, 256], sizes = [1, 128], strides = [1, 1]} : vector<1x384xf32> to vector<1x128xf32>
    %309 = arith.mulf %298, %308 : vector<1x128xf32>
    %310 = arith.addf %307, %309 : vector<1x128xf32>
    %311 = math.tanh %310 : vector<1x128xf32>
    %cst_109 = arith.constant 1.000000e+00 : f32
    %312 = vector.broadcast %cst_109 : f32 to vector<1x128xf32>
    %313 = arith.subf %312, %306 : vector<1x128xf32>
    %314 = arith.mulf %313, %311 : vector<1x128xf32>
    %315 = arith.mulf %306, %249 : vector<1x128xf32>
    %316 = arith.addf %314, %315 : vector<1x128xf32>
    %c1_i32_110 = arith.constant 1 : i32
    %317 = arith.addi %c3_i32, %c1_i32_110 : i32
    %c8_i32_111 = arith.constant 8 : i32
    %318 = arith.cmpi slt, %317, %c8_i32_111 : i32
    %319 = arith.select %318, %316, %249 : vector<1x128xf32>
    %c4_i32 = arith.constant 4 : i32
    %320 = tpu.concatenate %319, %279 in 1 : vector<1x128xf32>, vector<1x128xf32> -> vector<1x256xf32>
    %321 = arith.truncf %320 : vector<1x256xf32> to vector<1x256xbf16>
    %c0_112 = arith.constant 0 : index
    %c0_113 = arith.constant 0 : index
    %c0_114 = arith.constant 0 : index
    %322 = vector.load %arg6[%c0_112, %c0_113, %c0_114] : memref<1x256x512xbf16, #tpu.memory_space<vmem>>, vector<1x256x512xbf16>
    %323 = vector.shape_cast %322 : vector<1x256x512xbf16> to vector<256x512xbf16>
    %cst_115 = arith.constant dense<0.000000e+00> : vector<1x512xf32>
    %324 = tpu.matmul %321, %323, %cst_115 {dimension_numbers = #tpu.dot_dimension_numbers<[1], [0], [0], [1], [0, 0, 1, 1], [], []>} : vector<1x256xbf16>, vector<256x512xbf16>, vector<1x512xf32> -> vector<1x512xf32>
    %c0_116 = arith.constant 0 : index
    %c0_117 = arith.constant 0 : index
    %c0_118 = arith.constant 0 : index
    %325 = vector.load %arg7[%c0_116, %c0_117, %c0_118] : memref<1x1x512xf32, #tpu.memory_space<vmem>>, vector<1x1x512xf32>
    %326 = vector.shape_cast %325 : vector<1x1x512xf32> to vector<1x512xf32>
    %327 = arith.addf %324, %326 : vector<1x512xf32>
    %328 = vector.extract_strided_slice %327 {offsets = [0, 0], sizes = [1, 128], strides = [1, 1]} : vector<1x512xf32> to vector<1x128xf32>
    %329 = arith.negf %328 : vector<1x128xf32>
    %330 = math.exp %329 : vector<1x128xf32>
    %cst_119 = arith.constant 1.000000e+00 : f32
    %331 = vector.broadcast %cst_119 : f32 to vector<1x128xf32>
    %332 = arith.addf %331, %330 : vector<1x128xf32>
    %333 = arith.divf %331, %332 : vector<1x128xf32>
    %334 = vector.extract_strided_slice %327 {offsets = [0, 128], sizes = [1, 128], strides = [1, 1]} : vector<1x512xf32> to vector<1x128xf32>
    %335 = arith.negf %334 : vector<1x128xf32>
    %336 = math.exp %335 : vector<1x128xf32>
    %cst_120 = arith.constant 1.000000e+00 : f32
    %337 = vector.broadcast %cst_120 : f32 to vector<1x128xf32>
    %338 = arith.addf %337, %336 : vector<1x128xf32>
    %339 = arith.divf %337, %338 : vector<1x128xf32>
    %340 = vector.extract_strided_slice %327 {offsets = [0, 256], sizes = [1, 128], strides = [1, 1]} : vector<1x512xf32> to vector<1x128xf32>
    %341 = vector.extract_strided_slice %327 {offsets = [0, 384], sizes = [1, 128], strides = [1, 1]} : vector<1x512xf32> to vector<1x128xf32>
    %342 = arith.mulf %333, %341 : vector<1x128xf32>
    %343 = arith.addf %340, %342 : vector<1x128xf32>
    %344 = math.tanh %343 : vector<1x128xf32>
    %cst_121 = arith.constant 1.000000e+00 : f32
    %345 = vector.broadcast %cst_121 : f32 to vector<1x128xf32>
    %346 = arith.subf %345, %339 : vector<1x128xf32>
    %347 = arith.mulf %346, %344 : vector<1x128xf32>
    %348 = arith.mulf %339, %279 : vector<1x128xf32>
    %349 = arith.addf %347, %348 : vector<1x128xf32>
    %350 = arith.index_cast %c4_i32 : i32 to index
    %c0_122 = arith.constant 0 : index
    %351 = vector.load %arg8[%350, %c0_122] : memref<8x128xf32, #tpu.memory_space<vmem>>, vector<1x128xf32>
    tpu.vector_store %arg8[%350, %c0_122], %349 {strides = array<i32>} : memref<8x128xf32, #tpu.memory_space<vmem>>, vector<1x128xf32>,
    %c1_i32_123 = arith.constant 1 : i32
    %352 = arith.addi %c4_i32, %c1_i32_123 : i32
    %c7_i32_124 = arith.constant 7 : i32
    %353 = arith.minsi %352, %c7_i32_124 : i32
    %354 = arith.index_cast %353 : i32 to index
    %c0_125 = arith.constant 0 : index
    %355 = vector.load %arg10[%354, %c0_125] : memref<8x384xf32, #tpu.memory_space<vmem>>, vector<1x384xf32>
    %356 = arith.truncf %319 : vector<1x128xf32> to vector<1x128xbf16>
    %c0_126 = arith.constant 0 : index
    %c0_127 = arith.constant 0 : index
    %357 = vector.load %arg3[%c0_126, %c0_127] : memref<128x384xbf16, #tpu.memory_space<vmem>>, vector<128x384xbf16>
    %cst_128 = arith.constant dense<0.000000e+00> : vector<1x384xf32>
    %358 = tpu.matmul %356, %357, %cst_128 {dimension_numbers = #tpu.dot_dimension_numbers<[1], [0], [0], [1], [0, 0, 1, 1], [], []>} : vector<1x128xbf16>, vector<128x384xbf16>, vector<1x384xf32> -> vector<1x384xf32>
    %c0_129 = arith.constant 0 : index
    %c0_130 = arith.constant 0 : index
    %359 = vector.load %arg5[%c0_129, %c0_130] : memref<1x384xf32, #tpu.memory_space<vmem>>, vector<1x384xf32>
    %360 = arith.addf %358, %359 : vector<1x384xf32>
    %361 = vector.extract_strided_slice %355 {offsets = [0, 0], sizes = [1, 128], strides = [1, 1]} : vector<1x384xf32> to vector<1x128xf32>
    %362 = vector.extract_strided_slice %360 {offsets = [0, 0], sizes = [1, 128], strides = [1, 1]} : vector<1x384xf32> to vector<1x128xf32>
    %363 = arith.addf %361, %362 : vector<1x128xf32>
    %364 = arith.negf %363 : vector<1x128xf32>
    %365 = math.exp %364 : vector<1x128xf32>
    %cst_131 = arith.constant 1.000000e+00 : f32
    %366 = vector.broadcast %cst_131 : f32 to vector<1x128xf32>
    %367 = arith.addf %366, %365 : vector<1x128xf32>
    %368 = arith.divf %366, %367 : vector<1x128xf32>
    %369 = vector.extract_strided_slice %355 {offsets = [0, 128], sizes = [1, 128], strides = [1, 1]} : vector<1x384xf32> to vector<1x128xf32>
    %370 = vector.extract_strided_slice %360 {offsets = [0, 128], sizes = [1, 128], strides = [1, 1]} : vector<1x384xf32> to vector<1x128xf32>
    %371 = arith.addf %369, %370 : vector<1x128xf32>
    %372 = arith.negf %371 : vector<1x128xf32>
    %373 = math.exp %372 : vector<1x128xf32>
    %cst_132 = arith.constant 1.000000e+00 : f32
    %374 = vector.broadcast %cst_132 : f32 to vector<1x128xf32>
    %375 = arith.addf %374, %373 : vector<1x128xf32>
    %376 = arith.divf %374, %375 : vector<1x128xf32>
    %377 = vector.extract_strided_slice %355 {offsets = [0, 256], sizes = [1, 128], strides = [1, 1]} : vector<1x384xf32> to vector<1x128xf32>
    %378 = vector.extract_strided_slice %360 {offsets = [0, 256], sizes = [1, 128], strides = [1, 1]} : vector<1x384xf32> to vector<1x128xf32>
    %379 = arith.mulf %368, %378 : vector<1x128xf32>
    %380 = arith.addf %377, %379 : vector<1x128xf32>
    %381 = math.tanh %380 : vector<1x128xf32>
    %cst_133 = arith.constant 1.000000e+00 : f32
    %382 = vector.broadcast %cst_133 : f32 to vector<1x128xf32>
    %383 = arith.subf %382, %376 : vector<1x128xf32>
    %384 = arith.mulf %383, %381 : vector<1x128xf32>
    %385 = arith.mulf %376, %319 : vector<1x128xf32>
    %386 = arith.addf %384, %385 : vector<1x128xf32>
    %c1_i32_134 = arith.constant 1 : i32
    %387 = arith.addi %c4_i32, %c1_i32_134 : i32
    %c8_i32_135 = arith.constant 8 : i32
    %388 = arith.cmpi slt, %387, %c8_i32_135 : i32
    %389 = arith.select %388, %386, %319 : vector<1x128xf32>
    %c5_i32 = arith.constant 5 : i32
    %390 = tpu.concatenate %389, %349 in 1 : vector<1x128xf32>, vector<1x128xf32> -> vector<1x256xf32>
    %391 = arith.truncf %390 : vector<1x256xf32> to vector<1x256xbf16>
    %c0_136 = arith.constant 0 : index
    %c0_137 = arith.constant 0 : index
    %c0_138 = arith.constant 0 : index
    %392 = vector.load %arg6[%c0_136, %c0_137, %c0_138] : memref<1x256x512xbf16, #tpu.memory_space<vmem>>, vector<1x256x512xbf16>
    %393 = vector.shape_cast %392 : vector<1x256x512xbf16> to vector<256x512xbf16>
    %cst_139 = arith.constant dense<0.000000e+00> : vector<1x512xf32>
    %394 = tpu.matmul %391, %393, %cst_139 {dimension_numbers = #tpu.dot_dimension_numbers<[1], [0], [0], [1], [0, 0, 1, 1], [], []>} : vector<1x256xbf16>, vector<256x512xbf16>, vector<1x512xf32> -> vector<1x512xf32>
    %c0_140 = arith.constant 0 : index
    %c0_141 = arith.constant 0 : index
    %c0_142 = arith.constant 0 : index
    %395 = vector.load %arg7[%c0_140, %c0_141, %c0_142] : memref<1x1x512xf32, #tpu.memory_space<vmem>>, vector<1x1x512xf32>
    %396 = vector.shape_cast %395 : vector<1x1x512xf32> to vector<1x512xf32>
    %397 = arith.addf %394, %396 : vector<1x512xf32>
    %398 = vector.extract_strided_slice %397 {offsets = [0, 0], sizes = [1, 128], strides = [1, 1]} : vector<1x512xf32> to vector<1x128xf32>
    %399 = arith.negf %398 : vector<1x128xf32>
    %400 = math.exp %399 : vector<1x128xf32>
    %cst_143 = arith.constant 1.000000e+00 : f32
    %401 = vector.broadcast %cst_143 : f32 to vector<1x128xf32>
    %402 = arith.addf %401, %400 : vector<1x128xf32>
    %403 = arith.divf %401, %402 : vector<1x128xf32>
    %404 = vector.extract_strided_slice %397 {offsets = [0, 128], sizes = [1, 128], strides = [1, 1]} : vector<1x512xf32> to vector<1x128xf32>
    %405 = arith.negf %404 : vector<1x128xf32>
    %406 = math.exp %405 : vector<1x128xf32>
    %cst_144 = arith.constant 1.000000e+00 : f32
    %407 = vector.broadcast %cst_144 : f32 to vector<1x128xf32>
    %408 = arith.addf %407, %406 : vector<1x128xf32>
    %409 = arith.divf %407, %408 : vector<1x128xf32>
    %410 = vector.extract_strided_slice %397 {offsets = [0, 256], sizes = [1, 128], strides = [1, 1]} : vector<1x512xf32> to vector<1x128xf32>
    %411 = vector.extract_strided_slice %397 {offsets = [0, 384], sizes = [1, 128], strides = [1, 1]} : vector<1x512xf32> to vector<1x128xf32>
    %412 = arith.mulf %403, %411 : vector<1x128xf32>
    %413 = arith.addf %410, %412 : vector<1x128xf32>
    %414 = math.tanh %413 : vector<1x128xf32>
    %cst_145 = arith.constant 1.000000e+00 : f32
    %415 = vector.broadcast %cst_145 : f32 to vector<1x128xf32>
    %416 = arith.subf %415, %409 : vector<1x128xf32>
    %417 = arith.mulf %416, %414 : vector<1x128xf32>
    %418 = arith.mulf %409, %349 : vector<1x128xf32>
    %419 = arith.addf %417, %418 : vector<1x128xf32>
    %420 = arith.index_cast %c5_i32 : i32 to index
    %c0_146 = arith.constant 0 : index
    %421 = vector.load %arg8[%420, %c0_146] : memref<8x128xf32, #tpu.memory_space<vmem>>, vector<1x128xf32>
    tpu.vector_store %arg8[%420, %c0_146], %419 {strides = array<i32>} : memref<8x128xf32, #tpu.memory_space<vmem>>, vector<1x128xf32>,
    %c1_i32_147 = arith.constant 1 : i32
    %422 = arith.addi %c5_i32, %c1_i32_147 : i32
    %c7_i32_148 = arith.constant 7 : i32
    %423 = arith.minsi %422, %c7_i32_148 : i32
    %424 = arith.index_cast %423 : i32 to index
    %c0_149 = arith.constant 0 : index
    %425 = vector.load %arg10[%424, %c0_149] : memref<8x384xf32, #tpu.memory_space<vmem>>, vector<1x384xf32>
    %426 = arith.truncf %389 : vector<1x128xf32> to vector<1x128xbf16>
    %c0_150 = arith.constant 0 : index
    %c0_151 = arith.constant 0 : index
    %427 = vector.load %arg3[%c0_150, %c0_151] : memref<128x384xbf16, #tpu.memory_space<vmem>>, vector<128x384xbf16>
    %cst_152 = arith.constant dense<0.000000e+00> : vector<1x384xf32>
    %428 = tpu.matmul %426, %427, %cst_152 {dimension_numbers = #tpu.dot_dimension_numbers<[1], [0], [0], [1], [0, 0, 1, 1], [], []>} : vector<1x128xbf16>, vector<128x384xbf16>, vector<1x384xf32> -> vector<1x384xf32>
    %c0_153 = arith.constant 0 : index
    %c0_154 = arith.constant 0 : index
    %429 = vector.load %arg5[%c0_153, %c0_154] : memref<1x384xf32, #tpu.memory_space<vmem>>, vector<1x384xf32>
    %430 = arith.addf %428, %429 : vector<1x384xf32>
    %431 = vector.extract_strided_slice %425 {offsets = [0, 0], sizes = [1, 128], strides = [1, 1]} : vector<1x384xf32> to vector<1x128xf32>
    %432 = vector.extract_strided_slice %430 {offsets = [0, 0], sizes = [1, 128], strides = [1, 1]} : vector<1x384xf32> to vector<1x128xf32>
    %433 = arith.addf %431, %432 : vector<1x128xf32>
    %434 = arith.negf %433 : vector<1x128xf32>
    %435 = math.exp %434 : vector<1x128xf32>
    %cst_155 = arith.constant 1.000000e+00 : f32
    %436 = vector.broadcast %cst_155 : f32 to vector<1x128xf32>
    %437 = arith.addf %436, %435 : vector<1x128xf32>
    %438 = arith.divf %436, %437 : vector<1x128xf32>
    %439 = vector.extract_strided_slice %425 {offsets = [0, 128], sizes = [1, 128], strides = [1, 1]} : vector<1x384xf32> to vector<1x128xf32>
    %440 = vector.extract_strided_slice %430 {offsets = [0, 128], sizes = [1, 128], strides = [1, 1]} : vector<1x384xf32> to vector<1x128xf32>
    %441 = arith.addf %439, %440 : vector<1x128xf32>
    %442 = arith.negf %441 : vector<1x128xf32>
    %443 = math.exp %442 : vector<1x128xf32>
    %cst_156 = arith.constant 1.000000e+00 : f32
    %444 = vector.broadcast %cst_156 : f32 to vector<1x128xf32>
    %445 = arith.addf %444, %443 : vector<1x128xf32>
    %446 = arith.divf %444, %445 : vector<1x128xf32>
    %447 = vector.extract_strided_slice %425 {offsets = [0, 256], sizes = [1, 128], strides = [1, 1]} : vector<1x384xf32> to vector<1x128xf32>
    %448 = vector.extract_strided_slice %430 {offsets = [0, 256], sizes = [1, 128], strides = [1, 1]} : vector<1x384xf32> to vector<1x128xf32>
    %449 = arith.mulf %438, %448 : vector<1x128xf32>
    %450 = arith.addf %447, %449 : vector<1x128xf32>
    %451 = math.tanh %450 : vector<1x128xf32>
    %cst_157 = arith.constant 1.000000e+00 : f32
    %452 = vector.broadcast %cst_157 : f32 to vector<1x128xf32>
    %453 = arith.subf %452, %446 : vector<1x128xf32>
    %454 = arith.mulf %453, %451 : vector<1x128xf32>
    %455 = arith.mulf %446, %389 : vector<1x128xf32>
    %456 = arith.addf %454, %455 : vector<1x128xf32>
    %c1_i32_158 = arith.constant 1 : i32
    %457 = arith.addi %c5_i32, %c1_i32_158 : i32
    %c8_i32_159 = arith.constant 8 : i32
    %458 = arith.cmpi slt, %457, %c8_i32_159 : i32
    %459 = arith.select %458, %456, %389 : vector<1x128xf32>
    %c6_i32 = arith.constant 6 : i32
    %460 = tpu.concatenate %459, %419 in 1 : vector<1x128xf32>, vector<1x128xf32> -> vector<1x256xf32>
    %461 = arith.truncf %460 : vector<1x256xf32> to vector<1x256xbf16>
    %c0_160 = arith.constant 0 : index
    %c0_161 = arith.constant 0 : index
    %c0_162 = arith.constant 0 : index
    %462 = vector.load %arg6[%c0_160, %c0_161, %c0_162] : memref<1x256x512xbf16, #tpu.memory_space<vmem>>, vector<1x256x512xbf16>
    %463 = vector.shape_cast %462 : vector<1x256x512xbf16> to vector<256x512xbf16>
    %cst_163 = arith.constant dense<0.000000e+00> : vector<1x512xf32>
    %464 = tpu.matmul %461, %463, %cst_163 {dimension_numbers = #tpu.dot_dimension_numbers<[1], [0], [0], [1], [0, 0, 1, 1], [], []>} : vector<1x256xbf16>, vector<256x512xbf16>, vector<1x512xf32> -> vector<1x512xf32>
    %c0_164 = arith.constant 0 : index
    %c0_165 = arith.constant 0 : index
    %c0_166 = arith.constant 0 : index
    %465 = vector.load %arg7[%c0_164, %c0_165, %c0_166] : memref<1x1x512xf32, #tpu.memory_space<vmem>>, vector<1x1x512xf32>
    %466 = vector.shape_cast %465 : vector<1x1x512xf32> to vector<1x512xf32>
    %467 = arith.addf %464, %466 : vector<1x512xf32>
    %468 = vector.extract_strided_slice %467 {offsets = [0, 0], sizes = [1, 128], strides = [1, 1]} : vector<1x512xf32> to vector<1x128xf32>
    %469 = arith.negf %468 : vector<1x128xf32>
    %470 = math.exp %469 : vector<1x128xf32>
    %cst_167 = arith.constant 1.000000e+00 : f32
    %471 = vector.broadcast %cst_167 : f32 to vector<1x128xf32>
    %472 = arith.addf %471, %470 : vector<1x128xf32>
    %473 = arith.divf %471, %472 : vector<1x128xf32>
    %474 = vector.extract_strided_slice %467 {offsets = [0, 128], sizes = [1, 128], strides = [1, 1]} : vector<1x512xf32> to vector<1x128xf32>
    %475 = arith.negf %474 : vector<1x128xf32>
    %476 = math.exp %475 : vector<1x128xf32>
    %cst_168 = arith.constant 1.000000e+00 : f32
    %477 = vector.broadcast %cst_168 : f32 to vector<1x128xf32>
    %478 = arith.addf %477, %476 : vector<1x128xf32>
    %479 = arith.divf %477, %478 : vector<1x128xf32>
    %480 = vector.extract_strided_slice %467 {offsets = [0, 256], sizes = [1, 128], strides = [1, 1]} : vector<1x512xf32> to vector<1x128xf32>
    %481 = vector.extract_strided_slice %467 {offsets = [0, 384], sizes = [1, 128], strides = [1, 1]} : vector<1x512xf32> to vector<1x128xf32>
    %482 = arith.mulf %473, %481 : vector<1x128xf32>
    %483 = arith.addf %480, %482 : vector<1x128xf32>
    %484 = math.tanh %483 : vector<1x128xf32>
    %cst_169 = arith.constant 1.000000e+00 : f32
    %485 = vector.broadcast %cst_169 : f32 to vector<1x128xf32>
    %486 = arith.subf %485, %479 : vector<1x128xf32>
    %487 = arith.mulf %486, %484 : vector<1x128xf32>
    %488 = arith.mulf %479, %419 : vector<1x128xf32>
    %489 = arith.addf %487, %488 : vector<1x128xf32>
    %490 = arith.index_cast %c6_i32 : i32 to index
    %c0_170 = arith.constant 0 : index
    %491 = vector.load %arg8[%490, %c0_170] : memref<8x128xf32, #tpu.memory_space<vmem>>, vector<1x128xf32>
    tpu.vector_store %arg8[%490, %c0_170], %489 {strides = array<i32>} : memref<8x128xf32, #tpu.memory_space<vmem>>, vector<1x128xf32>,
    %c1_i32_171 = arith.constant 1 : i32
    %492 = arith.addi %c6_i32, %c1_i32_171 : i32
    %c7_i32_172 = arith.constant 7 : i32
    %493 = arith.minsi %492, %c7_i32_172 : i32
    %494 = arith.index_cast %493 : i32 to index
    %c0_173 = arith.constant 0 : index
    %495 = vector.load %arg10[%494, %c0_173] : memref<8x384xf32, #tpu.memory_space<vmem>>, vector<1x384xf32>
    %496 = arith.truncf %459 : vector<1x128xf32> to vector<1x128xbf16>
    %c0_174 = arith.constant 0 : index
    %c0_175 = arith.constant 0 : index
    %497 = vector.load %arg3[%c0_174, %c0_175] : memref<128x384xbf16, #tpu.memory_space<vmem>>, vector<128x384xbf16>
    %cst_176 = arith.constant dense<0.000000e+00> : vector<1x384xf32>
    %498 = tpu.matmul %496, %497, %cst_176 {dimension_numbers = #tpu.dot_dimension_numbers<[1], [0], [0], [1], [0, 0, 1, 1], [], []>} : vector<1x128xbf16>, vector<128x384xbf16>, vector<1x384xf32> -> vector<1x384xf32>
    %c0_177 = arith.constant 0 : index
    %c0_178 = arith.constant 0 : index
    %499 = vector.load %arg5[%c0_177, %c0_178] : memref<1x384xf32, #tpu.memory_space<vmem>>, vector<1x384xf32>
    %500 = arith.addf %498, %499 : vector<1x384xf32>
    %501 = vector.extract_strided_slice %495 {offsets = [0, 0], sizes = [1, 128], strides = [1, 1]} : vector<1x384xf32> to vector<1x128xf32>
    %502 = vector.extract_strided_slice %500 {offsets = [0, 0], sizes = [1, 128], strides = [1, 1]} : vector<1x384xf32> to vector<1x128xf32>
    %503 = arith.addf %501, %502 : vector<1x128xf32>
    %504 = arith.negf %503 : vector<1x128xf32>
    %505 = math.exp %504 : vector<1x128xf32>
    %cst_179 = arith.constant 1.000000e+00 : f32
    %506 = vector.broadcast %cst_179 : f32 to vector<1x128xf32>
    %507 = arith.addf %506, %505 : vector<1x128xf32>
    %508 = arith.divf %506, %507 : vector<1x128xf32>
    %509 = vector.extract_strided_slice %495 {offsets = [0, 128], sizes = [1, 128], strides = [1, 1]} : vector<1x384xf32> to vector<1x128xf32>
    %510 = vector.extract_strided_slice %500 {offsets = [0, 128], sizes = [1, 128], strides = [1, 1]} : vector<1x384xf32> to vector<1x128xf32>
    %511 = arith.addf %509, %510 : vector<1x128xf32>
    %512 = arith.negf %511 : vector<1x128xf32>
    %513 = math.exp %512 : vector<1x128xf32>
    %cst_180 = arith.constant 1.000000e+00 : f32
    %514 = vector.broadcast %cst_180 : f32 to vector<1x128xf32>
    %515 = arith.addf %514, %513 : vector<1x128xf32>
    %516 = arith.divf %514, %515 : vector<1x128xf32>
    %517 = vector.extract_strided_slice %495 {offsets = [0, 256], sizes = [1, 128], strides = [1, 1]} : vector<1x384xf32> to vector<1x128xf32>
    %518 = vector.extract_strided_slice %500 {offsets = [0, 256], sizes = [1, 128], strides = [1, 1]} : vector<1x384xf32> to vector<1x128xf32>
    %519 = arith.mulf %508, %518 : vector<1x128xf32>
    %520 = arith.addf %517, %519 : vector<1x128xf32>
    %521 = math.tanh %520 : vector<1x128xf32>
    %cst_181 = arith.constant 1.000000e+00 : f32
    %522 = vector.broadcast %cst_181 : f32 to vector<1x128xf32>
    %523 = arith.subf %522, %516 : vector<1x128xf32>
    %524 = arith.mulf %523, %521 : vector<1x128xf32>
    %525 = arith.mulf %516, %459 : vector<1x128xf32>
    %526 = arith.addf %524, %525 : vector<1x128xf32>
    %c1_i32_182 = arith.constant 1 : i32
    %527 = arith.addi %c6_i32, %c1_i32_182 : i32
    %c8_i32_183 = arith.constant 8 : i32
    %528 = arith.cmpi slt, %527, %c8_i32_183 : i32
    %529 = arith.select %528, %526, %459 : vector<1x128xf32>
    %c7_i32_184 = arith.constant 7 : i32
    %530 = tpu.concatenate %529, %489 in 1 : vector<1x128xf32>, vector<1x128xf32> -> vector<1x256xf32>
    %531 = arith.truncf %530 : vector<1x256xf32> to vector<1x256xbf16>
    %c0_185 = arith.constant 0 : index
    %c0_186 = arith.constant 0 : index
    %c0_187 = arith.constant 0 : index
    %532 = vector.load %arg6[%c0_185, %c0_186, %c0_187] : memref<1x256x512xbf16, #tpu.memory_space<vmem>>, vector<1x256x512xbf16>
    %533 = vector.shape_cast %532 : vector<1x256x512xbf16> to vector<256x512xbf16>
    %cst_188 = arith.constant dense<0.000000e+00> : vector<1x512xf32>
    %534 = tpu.matmul %531, %533, %cst_188 {dimension_numbers = #tpu.dot_dimension_numbers<[1], [0], [0], [1], [0, 0, 1, 1], [], []>} : vector<1x256xbf16>, vector<256x512xbf16>, vector<1x512xf32> -> vector<1x512xf32>
    %c0_189 = arith.constant 0 : index
    %c0_190 = arith.constant 0 : index
    %c0_191 = arith.constant 0 : index
    %535 = vector.load %arg7[%c0_189, %c0_190, %c0_191] : memref<1x1x512xf32, #tpu.memory_space<vmem>>, vector<1x1x512xf32>
    %536 = vector.shape_cast %535 : vector<1x1x512xf32> to vector<1x512xf32>
    %537 = arith.addf %534, %536 : vector<1x512xf32>
    %538 = vector.extract_strided_slice %537 {offsets = [0, 0], sizes = [1, 128], strides = [1, 1]} : vector<1x512xf32> to vector<1x128xf32>
    %539 = arith.negf %538 : vector<1x128xf32>
    %540 = math.exp %539 : vector<1x128xf32>
    %cst_192 = arith.constant 1.000000e+00 : f32
    %541 = vector.broadcast %cst_192 : f32 to vector<1x128xf32>
    %542 = arith.addf %541, %540 : vector<1x128xf32>
    %543 = arith.divf %541, %542 : vector<1x128xf32>
    %544 = vector.extract_strided_slice %537 {offsets = [0, 128], sizes = [1, 128], strides = [1, 1]} : vector<1x512xf32> to vector<1x128xf32>
    %545 = arith.negf %544 : vector<1x128xf32>
    %546 = math.exp %545 : vector<1x128xf32>
    %cst_193 = arith.constant 1.000000e+00 : f32
    %547 = vector.broadcast %cst_193 : f32 to vector<1x128xf32>
    %548 = arith.addf %547, %546 : vector<1x128xf32>
    %549 = arith.divf %547, %548 : vector<1x128xf32>
    %550 = vector.extract_strided_slice %537 {offsets = [0, 256], sizes = [1, 128], strides = [1, 1]} : vector<1x512xf32> to vector<1x128xf32>
    %551 = vector.extract_strided_slice %537 {offsets = [0, 384], sizes = [1, 128], strides = [1, 1]} : vector<1x512xf32> to vector<1x128xf32>
    %552 = arith.mulf %543, %551 : vector<1x128xf32>
    %553 = arith.addf %550, %552 : vector<1x128xf32>
    %554 = math.tanh %553 : vector<1x128xf32>
    %cst_194 = arith.constant 1.000000e+00 : f32
    %555 = vector.broadcast %cst_194 : f32 to vector<1x128xf32>
    %556 = arith.subf %555, %549 : vector<1x128xf32>
    %557 = arith.mulf %556, %554 : vector<1x128xf32>
    %558 = arith.mulf %549, %489 : vector<1x128xf32>
    %559 = arith.addf %557, %558 : vector<1x128xf32>
    %560 = arith.index_cast %c7_i32_184 : i32 to index
    %c0_195 = arith.constant 0 : index
    %561 = vector.load %arg8[%560, %c0_195] : memref<8x128xf32, #tpu.memory_space<vmem>>, vector<1x128xf32>
    tpu.vector_store %arg8[%560, %c0_195], %559 {strides = array<i32>} : memref<8x128xf32, #tpu.memory_space<vmem>>, vector<1x128xf32>,
    %c1_i32_196 = arith.constant 1 : i32
    %562 = arith.addi %c7_i32_184, %c1_i32_196 : i32
    %c7_i32_197 = arith.constant 7 : i32
    %563 = arith.minsi %562, %c7_i32_197 : i32
    %564 = arith.index_cast %563 : i32 to index
    %c0_198 = arith.constant 0 : index
    %565 = vector.load %arg10[%564, %c0_198] : memref<8x384xf32, #tpu.memory_space<vmem>>, vector<1x384xf32>
    %566 = arith.truncf %529 : vector<1x128xf32> to vector<1x128xbf16>
    %c0_199 = arith.constant 0 : index
    %c0_200 = arith.constant 0 : index
    %567 = vector.load %arg3[%c0_199, %c0_200] : memref<128x384xbf16, #tpu.memory_space<vmem>>, vector<128x384xbf16>
    %cst_201 = arith.constant dense<0.000000e+00> : vector<1x384xf32>
    %568 = tpu.matmul %566, %567, %cst_201 {dimension_numbers = #tpu.dot_dimension_numbers<[1], [0], [0], [1], [0, 0, 1, 1], [], []>} : vector<1x128xbf16>, vector<128x384xbf16>, vector<1x384xf32> -> vector<1x384xf32>
    %c0_202 = arith.constant 0 : index
    %c0_203 = arith.constant 0 : index
    %569 = vector.load %arg5[%c0_202, %c0_203] : memref<1x384xf32, #tpu.memory_space<vmem>>, vector<1x384xf32>
    %570 = arith.addf %568, %569 : vector<1x384xf32>
    %571 = vector.extract_strided_slice %565 {offsets = [0, 0], sizes = [1, 128], strides = [1, 1]} : vector<1x384xf32> to vector<1x128xf32>
    %572 = vector.extract_strided_slice %570 {offsets = [0, 0], sizes = [1, 128], strides = [1, 1]} : vector<1x384xf32> to vector<1x128xf32>
    %573 = arith.addf %571, %572 : vector<1x128xf32>
    %574 = arith.negf %573 : vector<1x128xf32>
    %575 = math.exp %574 : vector<1x128xf32>
    %cst_204 = arith.constant 1.000000e+00 : f32
    %576 = vector.broadcast %cst_204 : f32 to vector<1x128xf32>
    %577 = arith.addf %576, %575 : vector<1x128xf32>
    %578 = arith.divf %576, %577 : vector<1x128xf32>
    %579 = vector.extract_strided_slice %565 {offsets = [0, 128], sizes = [1, 128], strides = [1, 1]} : vector<1x384xf32> to vector<1x128xf32>
    %580 = vector.extract_strided_slice %570 {offsets = [0, 128], sizes = [1, 128], strides = [1, 1]} : vector<1x384xf32> to vector<1x128xf32>
    %581 = arith.addf %579, %580 : vector<1x128xf32>
    %582 = arith.negf %581 : vector<1x128xf32>
    %583 = math.exp %582 : vector<1x128xf32>
    %cst_205 = arith.constant 1.000000e+00 : f32
    %584 = vector.broadcast %cst_205 : f32 to vector<1x128xf32>
    %585 = arith.addf %584, %583 : vector<1x128xf32>
    %586 = arith.divf %584, %585 : vector<1x128xf32>
    %587 = vector.extract_strided_slice %565 {offsets = [0, 256], sizes = [1, 128], strides = [1, 1]} : vector<1x384xf32> to vector<1x128xf32>
    %588 = vector.extract_strided_slice %570 {offsets = [0, 256], sizes = [1, 128], strides = [1, 1]} : vector<1x384xf32> to vector<1x128xf32>
    %589 = arith.mulf %578, %588 : vector<1x128xf32>
    %590 = arith.addf %587, %589 : vector<1x128xf32>
    %591 = math.tanh %590 : vector<1x128xf32>
    %cst_206 = arith.constant 1.000000e+00 : f32
    %592 = vector.broadcast %cst_206 : f32 to vector<1x128xf32>
    %593 = arith.subf %592, %586 : vector<1x128xf32>
    %594 = arith.mulf %593, %591 : vector<1x128xf32>
    %595 = arith.mulf %586, %529 : vector<1x128xf32>
    %596 = arith.addf %594, %595 : vector<1x128xf32>
    %c1_i32_207 = arith.constant 1 : i32
    %597 = arith.addi %c7_i32_184, %c1_i32_207 : i32
    %c8_i32_208 = arith.constant 8 : i32
    %598 = arith.cmpi slt, %597, %c8_i32_208 : i32
    %599 = arith.select %598, %596, %529 : vector<1x128xf32>
    %c8_i32_209 = arith.constant 8 : i32
    %c0_210 = arith.constant 0 : index
    %c0_211 = arith.constant 0 : index
    %c0_212 = arith.constant 0 : index
    %600 = vector.load %arg9[%c0_210, %c0_211, %c0_212] : memref<2x1x128xf32, #tpu.memory_space<vmem>>, vector<1x1x128xf32>
    %601 = vector.shape_cast %600 : vector<1x1x128xf32> to vector<1x128xf32>
    %602 = vector.shape_cast %599 : vector<1x128xf32> to vector<1x1x128xf32>
    tpu.vector_store %arg9[%c0_210, %c0_211, %c0_212], %602 {strides = array<i32>} : memref<2x1x128xf32, #tpu.memory_space<vmem>>, vector<1x1x128xf32>,
    %c1 = arith.constant 1 : index
    %c0_213 = arith.constant 0 : index
    %c0_214 = arith.constant 0 : index
    %603 = vector.load %arg9[%c1, %c0_213, %c0_214] : memref<2x1x128xf32, #tpu.memory_space<vmem>>, vector<1x1x128xf32>
    %604 = vector.shape_cast %603 : vector<1x1x128xf32> to vector<1x128xf32>
    %605 = vector.shape_cast %559 : vector<1x128xf32> to vector<1x1x128xf32>
    tpu.vector_store %arg9[%c1, %c0_213, %c0_214], %605 {strides = array<i32>} : memref<2x1x128xf32, #tpu.memory_space<vmem>>, vector<1x1x128xf32>,
    return
  }
  func.func @transform_0(%arg0: i32) -> (i32, i32) {
    %c0_i32 = arith.constant 0 : i32
    %c0_i32_0 = arith.constant 0 : i32
    %c0_i32_1 = arith.constant 0 : i32
    return %c0_i32, %c0_i32_0 : i32, i32
  }
  func.func @transform_1(%arg0: i32) -> (i32, i32) {
    %c0_i32 = arith.constant 0 : i32
    %c0_i32_0 = arith.constant 0 : i32
    %c0_i32_1 = arith.constant 0 : i32
    return %c0_i32, %c0_i32_0 : i32, i32
  }
  func.func @transform_2(%arg0: i32) -> (i32, i32) {
    %c0_i32 = arith.constant 0 : i32
    %c0_i32_0 = arith.constant 0 : i32
    %c0_i32_1 = arith.constant 0 : i32
    return %c0_i32, %c0_i32_0 : i32, i32
  }
  func.func @transform_3(%arg0: i32) -> (i32, i32) {
    %c0_i32 = arith.constant 0 : i32
    %c0_i32_0 = arith.constant 0 : i32
    %c0_i32_1 = arith.constant 0 : i32
    return %c0_i32, %c0_i32_0 : i32, i32
  }
  func.func @transform_4(%arg0: i32) -> (i32, i32) {
    %c0_i32 = arith.constant 0 : i32
    %c0_i32_0 = arith.constant 0 : i32
    %c0_i32_1 = arith.constant 0 : i32
    return %c0_i32, %c0_i32_0 : i32, i32
  }
  func.func @transform_5(%arg0: i32) -> (i32, i32, i32) {
    %c0_i32 = arith.constant 0 : i32
    %c0_i32_0 = arith.constant 0 : i32
    %c0_i32_1 = arith.constant 0 : i32
    %c0_i32_2 = arith.constant 0 : i32
    return %c0_i32, %c0_i32_0, %c0_i32_1 : i32, i32, i32
  }
  func.func @transform_6(%arg0: i32) -> (i32, i32, i32) {
    %c0_i32 = arith.constant 0 : i32
    %c0_i32_0 = arith.constant 0 : i32
    %c0_i32_1 = arith.constant 0 : i32
    %c0_i32_2 = arith.constant 0 : i32
    return %c0_i32, %c0_i32_0, %c0_i32_1 : i32, i32, i32
  }
  func.func @transform_7(%arg0: i32) -> (i32, i32) {
    %c0_i32 = arith.constant 0 : i32
    %c0_i32_0 = arith.constant 0 : i32
    %c0_i32_1 = arith.constant 0 : i32
    return %c0_i32, %c0_i32_0 : i32, i32
  }
  func.func @transform_8(%arg0: i32) -> (i32, i32, i32) {
    %c0_i32 = arith.constant 0 : i32
    %c0_i32_0 = arith.constant 0 : i32
    %c0_i32_1 = arith.constant 0 : i32
    %c0_i32_2 = arith.constant 0 : i32
    return %c0_i32, %c0_i32_0, %c0_i32_1 : i32, i32, i32
  }
}

</mosaic_0001>

<bundles_post_ra>
// kernel: tpu_custom_call.1
= control target key start
LH: loop header
LB: loop body
LE: loop exit
PB: predicated region body
PF: predicated region fallthrough
CT: control target
= control target key end

     0   :  { %14 = vsyncpa [#allocation4], 0  ;;  %s11896_s0 = inlined_call_operand.hbm [shape: bf16[8,128], index: 0, kind: input, shape index: {}]   ;;  %s11897_s1 = inlined_call_operand.hbm [shape: bf16[128,384], index: 1, kind: input, shape index: {}]   ;;  %s11898_s2 = inlined_call_operand.hbm [shape: bf16[128,384], index: 2, kind: input, shape index: {}]   ;;  %s11899_s3 = inlined_call_operand.hbm [shape: f32[1,384], index: 3, kind: input, shape index: {}]   ;;  %s11900_s4 = inlined_call_operand.hbm [shape: f32[1,384], index: 4, kind: input, shape index: {}]   ;;  %s11901_s5 = inlined_call_operand.hbm [shape: bf16[1,256,512], index: 5, kind: input, shape index: {}]   ;;  %s11902_s6 = inlined_call_operand.vmem [shape: f32[1,1,512], index: 6, kind: input, shape index: {}]   ;;  %s11903_s7 = inlined_call_operand.hbm [shape: f32[8,128], index: 7, kind: output, shape index: {0}]   ;;  %s11904_s8 = inlined_call_operand.hbm [shape: f32[2,1,128], index: 8, kind: output, shape index: {1}]  }
   0x1   :  { %15 = vsyncpa [#allocation7], 0 }
   0x2   :  { %16 = vsyncpa [#allocation10], 0 }
   0x3   :  { %17 = vsyncpa [#allocation13], 0 }
   0x4   :  { %18 = vsyncpa [#allocation5], 0  ;;  %s35_s29 = sshll.u32 %s11897_s1, 4  ;;  %s36_s29 = int_to_ptr.hbm [resolvable:$true] %s35_s29 }
   0x5   :  { %19 = vsyncpa [#allocation16], 0  ;;  %s10877_s30 = smov [#allocation6]   ;;  %s62_s12 = sshll.u32 %s11899_s3, 4  ;;  %s63_s12 = int_to_ptr.hbm [resolvable:$true] %s62_s12 }
   0x6   :  { %s37_s9 = sshll.u32 %s10877_s30, 4  ;;  %s10878_s13 = smov 192   ;;  %s38_s9 = int_to_ptr.vmem [resolvable:$true] %s37_s9 }
   0x7   :  { %s10879_s14 = smov 12   ;;  %s10880_s15 = smov [#allocation9]  }
   0x8   :  { %43 = dma.hbm_to_vmem [thread:$0]  %s36_s29, 3072, %s38_s9, [#allocation7], %s10878_s13, %s10878_s13, %s10879_s14  }
   0x9   :  { %s64_s16 = sshll.u32 %s10880_s15, 4  ;;  %s25_s19 = sshll.u32 %s11896_s0, 4  ;;  %s65_s16 = int_to_ptr.vmem [resolvable:$true] %s64_s16  ;;  %s26_s19 = int_to_ptr.hbm [resolvable:$true] %s25_s19 }
   0xa   :  { %67 = dma.hbm_to_vmem [thread:$0]  %s63_s12, 48, %s65_s16, [#allocation10]  }
   0xb   :  { %s48_s21 = sshll.u32 %s11898_s2, 4  ;;  %s10881_s22 = smov [#allocation3]   ;;  %s49_s21 = int_to_ptr.hbm [resolvable:$true] %s48_s21 }
   0xc   :  { %s27_s23 = sshll.u32 %s10881_s22, 4  ;;  %s10882_s3 = smov [#allocation8]   ;;  %s28_s23 = int_to_ptr.vmem [resolvable:$true] %s27_s23 }
   0xd   :  { %30 = dma.hbm_to_vmem [thread:$0]  %s26_s19, 64, %s28_s23, [#allocation4]  }
   0xe   :  { %s50_s24 = sshll.u32 %s10882_s3, 4  ;;  %s73_s27 = sshll.u32 %s11900_s4, 4  ;;  %s51_s24 = int_to_ptr.vmem [resolvable:$true] %s50_s24  ;;  %s74_s27 = int_to_ptr.hbm [resolvable:$true] %s73_s27 }
   0xf   :  { %56 = dma.hbm_to_vmem [thread:$0]  %s49_s21, 3072, %s51_s24, [#allocation7], %s10878_s13, %s10878_s13, %s10879_s14  }
  0x10   :  { %s83_s29 = sshll.u32 %s11901_s5, 4  ;;  %s10883_s30 = smov [#allocation11]   ;;  %s84_s29 = int_to_ptr.hbm [resolvable:$true] %s83_s29 }
  0x11   :  { %s75_s2 = sshll.u32 %s10883_s30, 4  ;;  %s10884_s9 = smov [#allocation12]   ;;  %s76_s2 = int_to_ptr.vmem [resolvable:$true] %s75_s2 }
  0x12   :  { %78 = dma.hbm_to_vmem [thread:$0]  %s74_s27, 48, %s76_s2, [#allocation10]  }
  0x13   :  { %s85_s10 = sshll.u32 %s10884_s9, 4  ;;  %s10885_s11 = smov 256   ;;  %s86_s10 = int_to_ptr.vmem [resolvable:$true] %s85_s10 }
  0x14   :  { %s10886_s12 = smov 16  }
  0x15   :  { %91 = dma.hbm_to_vmem [thread:$0]  %s84_s29, 8192, %s86_s10, [#allocation13], %s10885_s11, %s10885_s11, %s10886_s12  }
  0x16   :  { %10865 = dma.done.wait [#allocation4], 64  }
  0x17   :  { %10866 = vsyncadd [#allocation4], 4294967232 }
  0x18   :  { %10867 = dma.done.wait [#allocation7], 6144  }
  0x19   :  { %10868 = vsyncadd [#allocation7], 4294961152 }
  0x1a   :  { %10869 = dma.done.wait [#allocation10], 96  }
  0x1b   :  { %10870 = vsyncadd [#allocation10], 4294967200 }
  0x1c   :  { %10871 = dma.done.wait [#allocation13], 8192  }
  0x1d   :  { %10872 = vsyncadd [#allocation13], 4294959104  ;;  %v6912_v0 = vld [vmem:[#allocation6 + $0xa8] sm:$0xf]  ;;  %v9792_v1 = vld [vmem:[#allocation6 + $0xb0] sm:$0xf0] }
  0x1e   :  { %v6920_v2 = vld [vmem:[#allocation6 + $0xb0] sm:$0xf]  ;;  %v6913_v3 = vor.u32 %v9792_v1, %v6912_v0  ;;  %v9793_v4 = vld [vmem:[#allocation6 + $0xb8] sm:$0xf0]  ;;  %v9791_v8 = vld [vmem:[#allocation6 + $0xac] sm:$0xf] }
  0x1f   :  { %v6900_v5 = vld [vmem:[#allocation6 + $0x90] sm:$0xf]  ;;  %v9789_v6 = vld [vmem:[#allocation6 + $0x98] sm:$0xf0]  ;;  %v6921_v7 = vor.u32 %v9793_v4, %v6920_v2  ;;  %v6914_v9 = vld [vmem:[#allocation6 + $0xb4] sm:$0xf0] }
  0x20   :  { %v6908_v10 = vld [vmem:[#allocation6 + $0x98] sm:$0xf]  ;;  %288 = vmatpush.bf16.msra.mxu0 %v6913_v3  ;;  %v6901_v11 = vor.u32 %v9789_v6, %v6900_v5  ;;  %v6917_v12 = vor.u32 %v9791_v8, %v6914_v9  ;;  %v9790_v13 = vld [vmem:[#allocation6 + $0xa0] sm:$0xf0]  ;;  %v7008_v14 = vld [vmem:[#allocation8 + $0xa8] sm:$0xf] }
  0x21   :  { %v9816_v15 = vld [vmem:[#allocation8 + $0xb0] sm:$0xf0]  ;;  %314 = vmatpush.bf16.msra.mxu2 %v6921_v7  ;;  %v6909_v16 = vor.u32 %v9790_v13, %v6908_v10  ;;  %v6888_v18 = vld [vmem:[#allocation6 + $0x78] sm:$0xf]  ;;  %v9786_v19 = vld [vmem:[#allocation6 + $0x80] sm:$0xf0] }
  0x22   :  { %v7009_v17 = vor.u32 %v9816_v15, %v7008_v14  ;;  %v9788_v20 = vld [vmem:[#allocation6 + $0x94] sm:$0xf]  ;;  %301 = vmatpush.bf16.msra.mxu1 %v6917_v12  ;;  %v6902_v21 = vld [vmem:[#allocation6 + $0x9c] sm:$0xf0]  ;;  %v9787_v23 = vld [vmem:[#allocation6 + $0x88] sm:$0xf0]  ;;  %v6889_v27 = vor.u32 %v9786_v19, %v6888_v18 }
  0x23   :  { %v6896_v22 = vld [vmem:[#allocation6 + $0x80] sm:$0xf]  ;;  %v6905_v24 = vor.u32 %v9788_v20, %v6902_v21  ;;  %v6996_v25 = vld [vmem:[#allocation8 + $0x90] sm:$0xf]  ;;  %v9813_v26 = vld [vmem:[#allocation8 + $0x98] sm:$0xf0] }
  0x24   :  { %499 = vmatpush.bf16.msra.mxu3 %v7009_v17  ;;  %289 = vmatpush.bf16.msra.mxu0 %v6901_v11  ;;  %v6997_v28 = vor.u32 %v9813_v26, %v6996_v25  ;;  %v9785_v29 = vld [vmem:[#allocation6 + $0x7c] sm:$0xf]  ;;  %v6890_v30 = vld [vmem:[#allocation6 + $0x84] sm:$0xf0]  ;;  %v6897_v31 = vor.u32 %v9787_v23, %v6896_v22  ;;  %v6876_v32 = vld [vmem:[#allocation6 + $0x60] sm:$0xf] }
  0x25   :  { %315 = vmatpush.bf16.msra.mxu2 %v6909_v16  ;;  %v9783_v33 = vld [vmem:[#allocation6 + $0x68] sm:$0xf0]  ;;  %v6984_v34 = vld [vmem:[#allocation8 + $0x78] sm:$0xf]  ;;  %v6893_v35 = vor.u32 %v9785_v29, %v6890_v30  ;;  %v6884_v36 = vld [vmem:[#allocation6 + $0x68] sm:$0xf] }
  0x26   :  { %302 = vmatpush.bf16.msra.mxu1 %v6905_v24  ;;  %v9784_v37 = vld [vmem:[#allocation6 + $0x70] sm:$0xf0]  ;;  %v9810_v38 = vld [vmem:[#allocation8 + $0x80] sm:$0xf0]  ;;  %v6878_v41 = vld [vmem:[#allocation6 + $0x6c] sm:$0xf0]  ;;  %v6877_v42 = vor.u32 %v9783_v33, %v6876_v32 }
  0x27   :  { %v6985_v39 = vor.u32 %v9810_v38, %v6984_v34  ;;  %v9782_v40 = vld [vmem:[#allocation6 + $0x64] sm:$0xf]  ;;  %v6972_v43 = vld [vmem:[#allocation8 + $0x60] sm:$0xf]  ;;  %v9807_v44 = vld [vmem:[#allocation8 + $0x68] sm:$0xf0]  ;;  %v6885_v45 = vor.u32 %v9784_v37, %v6884_v36 }
  0x28   :  { %500 = vmatpush.bf16.msra.mxu3 %v6997_v28  ;;  %290 = vmatpush.bf16.msra.mxu0 %v6889_v27  ;;  %v6864_v46 = vld [vmem:[#allocation6 + $0x48] sm:$0xf]  ;;  %v9780_v47 = vld [vmem:[#allocation6 + $0x50] sm:$0xf0]  ;;  %v6881_v48 = vor.u32 %v9782_v40, %v6878_v41  ;;  %v6872_v49 = vld [vmem:[#allocation6 + $0x50] sm:$0xf]  ;;  %v6973_v51 = vor.u32 %v9807_v44, %v6972_v43 }
  0x29   :  { %316 = vmatpush.bf16.msra.mxu2 %v6897_v31  ;;  %v9781_v50 = vld [vmem:[#allocation6 + $0x58] sm:$0xf0]  ;;  %v9779_v52 = vld [vmem:[#allocation6 + $0x4c] sm:$0xf]  ;;  %v6866_v53 = vld [vmem:[#allocation6 + $0x54] sm:$0xf0]  ;;  %v6865_v54 = vor.u32 %v9780_v47, %v6864_v46 }
  0x2a   :  { %303 = vmatpush.bf16.msra.mxu1 %v6893_v35  ;;  %v6960_v55 = vld [vmem:[#allocation8 + $0x48] sm:$0xf]  ;;  %v9804_v56 = vld [vmem:[#allocation8 + $0x50] sm:$0xf0]  ;;  %v6873_v57 = vor.u32 %v9781_v50, %v6872_v49  ;;  %v6852_v58 = vld [vmem:[#allocation6 + $0x30] sm:$0xf]  ;;  %v6869_v60 = vor.u32 %v9779_v52, %v6866_v53 }
  0x2b   :  { %v9777_v59 = vld [vmem:[#allocation6 + $0x38] sm:$0xf0]  ;;  %v6860_v61 = vld [vmem:[#allocation6 + $0x38] sm:$0xf]  ;;  %v9778_v62 = vld [vmem:[#allocation6 + $0x40] sm:$0xf0]  ;;  %v6961_v63 = vor.u32 %v9804_v56, %v6960_v55 }
  0x2c   :  { %501 = vmatpush.bf16.msra.mxu3 %v6985_v39  ;;  %291 = vmatpush.bf16.msra.mxu0 %v6877_v42  ;;  %v9776_v0 = vld [vmem:[#allocation6 + $0x34] sm:$0xf]  ;;  %v6854_v1 = vld [vmem:[#allocation6 + $0x3c] sm:$0xf0]  ;;  %v6853_v2 = vor.u32 %v9777_v59, %v6852_v58  ;;  %v6948_v3 = vld [vmem:[#allocation8 + $0x30] sm:$0xf]  ;;  %v6861_v5 = vor.u32 %v9778_v62, %v6860_v61 }
  0x2d   :  { %317 = vmatpush.bf16.msra.mxu2 %v6885_v45  ;;  %v9801_v4 = vld [vmem:[#allocation8 + $0x38] sm:$0xf0]  ;;  %v6840_v6 = vld [vmem:[#allocation6 + $0x18] sm:$0xf]  ;;  %v9774_v7 = vld [vmem:[#allocation6 + $0x20] sm:$0xf0]  ;;  %v6857_v8 = vor.u32 %v9776_v0, %v6854_v1 }
  0x2e   :  { %304 = vmatpush.bf16.msra.mxu1 %v6881_v48  ;;  %v6848_v9 = vld [vmem:[#allocation6 + $0x20] sm:$0xf]  ;;  %v9775_v10 = vld [vmem:[#allocation6 + $0x28] sm:$0xf0]  ;;  %v6949_v11 = vor.u32 %v9801_v4, %v6948_v3  ;;  %v9773_v12 = vld [vmem:[#allocation6 + $0x1c] sm:$0xf]  ;;  %v6841_v14 = vor.u32 %v9774_v7, %v6840_v6 }
  0x2f   :  { %v6842_v13 = vld [vmem:[#allocation6 + $0x24] sm:$0xf0]  ;;  %v6936_v15 = vld [vmem:[#allocation8 + $0x18] sm:$0xf]  ;;  %v9798_v16 = vld [vmem:[#allocation8 + $0x20] sm:$0xf0]  ;;  %v6849_v17 = vor.u32 %v9775_v10, %v6848_v9 }
  0x30   :  { %502 = vmatpush.bf16.msra.mxu3 %v6973_v51  ;;  %292 = vmatpush.bf16.msra.mxu0 %v6865_v54  ;;  %v6828_v18 = vld [vmem:[#allocation6] sm:$0xf]  ;;  %v9771_v19 = vld [vmem:[#allocation6 + $0x8] sm:$0xf0]  ;;  %v6836_v20 = vld [vmem:[#allocation6 + $0x8] sm:$0xf]  ;;  %v6845_v21 = vor.u32 %v9773_v12, %v6842_v13  ;;  %v6937_v25 = vor.u32 %v9798_v16, %v6936_v15 }
  0x31   :  { %318 = vmatpush.bf16.msra.mxu2 %v6873_v57  ;;  %v9772_v22 = vld [vmem:[#allocation6 + $0x10] sm:$0xf0]  ;;  %v9815_v23 = vld [vmem:[#allocation8 + $0xac] sm:$0xf]  ;;  %v7010_v24 = vld [vmem:[#allocation8 + $0xb4] sm:$0xf0]  ;;  %v6829_v28 = vor.u32 %v9771_v19, %v6828_v18 }
  0x32   :  { %305 = vmatpush.bf16.msra.mxu1 %v6869_v60  ;;  %v9770_v26 = vld [vmem:[#allocation6 + $0x4] sm:$0xf]  ;;  %v6830_v27 = vld [vmem:[#allocation6 + $0xc] sm:$0xf0]  ;;  %v6924_v29 = vld [vmem:[#allocation8] sm:$0xf]  ;;  %v6837_v31 = vor.u32 %v9772_v22, %v6836_v20  ;;  %v7013_v32 = vor.u32 %v9815_v23, %v7010_v24 }
  0x33   :  { %v9795_v30 = vld [vmem:[#allocation8 + $0x8] sm:$0xf0]  ;;  %v7016_v33 = vld [vmem:[#allocation8 + $0xb0] sm:$0xf]  ;;  %v9817_v34 = vld [vmem:[#allocation8 + $0xb8] sm:$0xf0]  ;;  %v6833_v35 = vor.u32 %v9770_v26, %v6830_v27 }
  0x34   :  { %503 = vmatpush.bf16.msra.mxu3 %v6961_v63  ;;  %293 = vmatpush.bf16.msra.mxu0 %v6853_v2  ;;  %v9812_v36 = vld [vmem:[#allocation8 + $0x94] sm:$0xf]  ;;  %v6998_v37 = vld [vmem:[#allocation8 + $0x9c] sm:$0xf0]  ;;  %v6925_v38 = vor.u32 %v9795_v30, %v6924_v29  ;;  %v7017_v39 = vor.u32 %v9817_v34, %v7016_v33  ;;  %v119_v40 = vld [vmem:[#allocation3] sm:$0xf] }
  0x35   :  { %319 = vmatpush.bf16.msra.mxu2 %v6861_v5  ;;  %v7001_v41 = vor.u32 %v9812_v36, %v6998_v37  ;;  %v7004_v42 = vld [vmem:[#allocation8 + $0x98] sm:$0xf]  ;;  %v9814_v43 = vld [vmem:[#allocation8 + $0xa0] sm:$0xf0]  ;;  %v9809_v44 = vld [vmem:[#allocation8 + $0x7c] sm:$0xf] }
  0x36   :  { %306 = vmatpush.bf16.msra.mxu1 %v6857_v8  ;;  %v6986_v45 = vld [vmem:[#allocation8 + $0x84] sm:$0xf0]  ;;  %v9880_v47 = vld [vmem:[#allocation12 + $0x1ec] sm:$0xf0]  ;;  %v7005_v48 = vor.u32 %v9814_v43, %v7004_v42  ;;  %v6992_v53 = vld [vmem:[#allocation8 + $0x80] sm:$0xf] }
  0x37   :  { %v7262_v46 = vld [vmem:[#allocation12 + $0x1e0] sm:$0xf]  ;;  %v9876_v51 = vld [vmem:[#allocation12 + $0x1cc] sm:$0xf0]  ;;  %v6989_v52 = vor.u32 %v9809_v44, %v6986_v45  ;;  %v9811_v54 = vld [vmem:[#allocation8 + $0x88] sm:$0xf0] }
  0x38   :  { %504 = vmatpush.bf16.msra.mxu3 %v6949_v11  ;;  %294 = vmatpush.bf16.msra.mxu0 %v6841_v14  ;;  %v7263_v49 = vor.u32 %v9880_v47, %v7262_v46  ;;  %v7246_v50 = vld [vmem:[#allocation12 + $0x1c0] sm:$0xf]  ;;  %v10887_v55 = vmov 0   ;;  %v9806_v56 = vld [vmem:[#allocation8 + $0x64] sm:$0xf]  ;;  %v6993_v59 = vor.u32 %v9811_v54, %v6992_v53  ;;  %s6795_s26 = sshll.u32 %s11903_s7, 4  ;;  %s6796_s26 = int_to_ptr.hbm [resolvable:$true] %s6795_s26 }
  0x39   :  { %320 = vmatpush.bf16.msra.mxu2 %v6849_v17  ;;  %v6974_v57 = vld [vmem:[#allocation8 + $0x6c] sm:$0xf0]  ;;  %v7247_v58 = vor.u32 %v9876_v51, %v7246_v50  ;;  %v7230_v60 = vld [vmem:[#allocation12 + $0x1a0] sm:$0xf]  ;;  %v9872_v61 = vld [vmem:[#allocation12 + $0x1ac] sm:$0xf0] }
  0x3a   :  { %307 = vmatpush.bf16.msra.mxu1 %v6845_v21  ;;  %v6977_v62 = vor.u32 %v9806_v56, %v6974_v57  ;;  %v6980_v63 = vld [vmem:[#allocation8 + $0x68] sm:$0xf]  ;;  %v9808_v0 = vld [vmem:[#allocation8 + $0x70] sm:$0xf0]  ;;  %v9803_v1 = vld [vmem:[#allocation8 + $0x4c] sm:$0xf]  ;;  %v7231_v3 = vor.u32 %v9872_v61, %v7230_v60 }
  0x3b   :  { %v6962_v2 = vld [vmem:[#allocation8 + $0x54] sm:$0xf0]  ;;  %v6981_v4 = vor.u32 %v9808_v0, %v6980_v63  ;;  %v7214_v5 = vld [vmem:[#allocation12 + $0x180] sm:$0xf]  ;;  %v6968_v8 = vld [vmem:[#allocation8 + $0x50] sm:$0xf] }
  0x3c   :  { %505 = vmatpush.bf16.msra.mxu3 %v6937_v25  ;;  %295 = vmatpush.bf16.msra.mxu0 %v6829_v28  ;;  %v9868_v6 = vld [vmem:[#allocation12 + $0x18c] sm:$0xf0]  ;;  %v6965_v7 = vor.u32 %v9803_v1, %v6962_v2  ;;  %v9805_v9 = vld [vmem:[#allocation8 + $0x58] sm:$0xf0]  ;;  %v9800_v10 = vld [vmem:[#allocation8 + $0x34] sm:$0xf] }
  0x3d   :  { %321 = vmatpush.bf16.msra.mxu2 %v6837_v31  ;;  %v6950_v11 = vld [vmem:[#allocation8 + $0x3c] sm:$0xf0]  ;;  %v7215_v12 = vor.u32 %v9868_v6, %v7214_v5  ;;  %v6969_v13 = vor.u32 %v9805_v9, %v6968_v8  ;;  %v7198_v14 = vld [vmem:[#allocation12 + $0x160] sm:$0xf]  ;;  %v9864_v15 = vld [vmem:[#allocation12 + $0x16c] sm:$0xf0] }
  0x3e   :  { %308 = vmatpush.bf16.msra.mxu1 %v6833_v35  ;;  %v6953_v16 = vor.u32 %v9800_v10, %v6950_v11  ;;  %v6956_v17 = vld [vmem:[#allocation8 + $0x38] sm:$0xf]  ;;  %v9802_v18 = vld [vmem:[#allocation8 + $0x40] sm:$0xf0]  ;;  %v9797_v19 = vld [vmem:[#allocation8 + $0x1c] sm:$0xf]  ;;  %v7199_v21 = vor.u32 %v9864_v15, %v7198_v14 }
  0x3f   :  { %296 = vmatmul.bf16.vlgmr.msra.gmra.mxu0 %v119_v40  ;;  %v6938_v20 = vld [vmem:[#allocation8 + $0x24] sm:$0xf0]  ;;  %v6957_v22 = vor.u32 %v9802_v18, %v6956_v17  ;;  %v9860_v24 = vld [vmem:[#allocation12 + $0x14c] sm:$0xf0]  ;;  %v6944_v26 = vld [vmem:[#allocation8 + $0x20] sm:$0xf] }
  0x40   :  { %512 = vmatpush.bf16.msrb.mxu0 %v7013_v32  ;;  %506 = vmatpush.bf16.msra.mxu3 %v6925_v38  ;;  %v7182_v23 = vld [vmem:[#allocation12 + $0x140] sm:$0xf]  ;;  %v6941_v25 = vor.u32 %v9797_v19, %v6938_v20  ;;  %v9799_v27 = vld [vmem:[#allocation8 + $0x28] sm:$0xf0]  ;;  %v9794_v28 = vld [vmem:[#allocation8 + $0x4] sm:$0xf] }
  0x41   :  { %322 = vmatmul.bf16.vlgmr.msra.gmra.mxu2 %v119_v40  ;;  %309 = vmatmul.bf16.vlgmr.msra.gmra.mxu1 %v119_v40  ;;  %v6926_v29 = vld [vmem:[#allocation8 + $0xc] sm:$0xf0]  ;;  %v7183_v30 = vor.u32 %v9860_v24, %v7182_v23  ;;  %v6945_v31 = vor.u32 %v9799_v27, %v6944_v26  ;;  %v6932_v33 = vld [vmem:[#allocation8 + $0x8] sm:$0xf]  ;;  %v9796_v34 = vld [vmem:[#allocation8 + $0x10] sm:$0xf0] }
  0x42   :  { %525 = vmatpush.bf16.msrb.mxu1 %v7017_v39  ;;  %v6929_v32 = vor.u32 %v9794_v28, %v6926_v29  ;;  %v6933_v35 = vor.u32 %v9796_v34, %v6932_v33  ;;  %v7166_v36 = vld [vmem:[#allocation12 + $0x120] sm:$0xf]  ;;  %v9856_v37 = vld [vmem:[#allocation12 + $0x12c] sm:$0xf0]  ;;  %v7270_v42 = vld [vmem:[#allocation12 + $0x1e8] sm:$0xf] }
  0x43   :  { %507 = vmatmul.bf16.vlgmr.msra.gmra.mxu3 %v10887_v55  ;;  %v7167_v38 = vor.u32 %v9856_v37, %v7166_v36  ;;  %v7150_v39 = vld [vmem:[#allocation12 + $0x100] sm:$0xf]  ;;  %v9852_v40 = vld [vmem:[#allocation12 + $0x10c] sm:$0xf0]  ;;  %v9881_v43 = vld [vmem:[#allocation12 + $0x1f4] sm:$0xf0] }
  0x44   :  { %513 = vmatpush.bf16.msrb.mxu0 %v7001_v41  ;;  %999 = vmatpush.bf16.msrb.mxu3 %v7263_v49  ;;  %v7151_v41 = vor.u32 %v9852_v40, %v7150_v39  ;;  %v7271_v44 = vor.u32 %v9881_v43, %v7270_v42  ;;  %v7134_v45 = vld [vmem:[#allocation12 + $0xe0] sm:$0xf]  ;;  %v9848_v46 = vld [vmem:[#allocation12 + $0xec] sm:$0xf0]  ;;  %v9846_v47 = vld [vmem:[#allocation12 + $0xe4] sm:$0xf] }
  0x45   :  { %v7136_v49 = vld [vmem:[#allocation12 + $0xf0] sm:$0xf0]  ;;  %v7254_v50 = vld [vmem:[#allocation12 + $0x1c8] sm:$0xf]  ;;  %v9877_v51 = vld [vmem:[#allocation12 + $0x1d4] sm:$0xf0] }
  0x46   :  { %526 = vmatpush.bf16.msrb.mxu1 %v7005_v48  ;;  %v7135_v48 = vor.u32 %v9848_v46, %v7134_v45  ;;  %v7255_v53 = vor.u32 %v9877_v51, %v7254_v50  ;;  %v7118_v54 = vld [vmem:[#allocation12 + $0xc0] sm:$0xf]  ;;  %v9842_v56 = vld [vmem:[#allocation12 + $0xc4] sm:$0xf]  ;;  %v9873_v60 = vld [vmem:[#allocation12 + $0x1b4] sm:$0xf0] }
  0x47   :  { %v7102_v63 = vld [vmem:[#allocation12 + $0xa0] sm:$0xf]  ;;  %v9840_v0 = vld [vmem:[#allocation12 + $0xac] sm:$0xf0]  ;;  %v9838_v1 = vld [vmem:[#allocation12 + $0xa4] sm:$0xf] }
  0x48   :  { %514 = vmatpush.bf16.msrb.mxu0 %v6989_v52  ;;  %1000 = vmatpush.bf16.msrb.mxu3 %v7247_v58  ;;  %v7139_v52 = vor.u32 %v9846_v47, %v7136_v49  ;;  %v7120_v58 = vld [vmem:[#allocation12 + $0xd0] sm:$0xf0]  ;;  %v7103_v2 = vor.u32 %v9840_v0, %v7102_v63  ;;  %v9869_v5 = vld [vmem:[#allocation12 + $0x194] sm:$0xf0]  ;;  %v7086_v8 = vld [vmem:[#allocation12 + $0x80] sm:$0xf] }
  0x49   :  { %986 = vmatpush.bf16.msrb.mxu2 %v7135_v48  ;;  %v7123_v61 = vor.u32 %v9842_v56, %v7120_v58  ;;  %v9836_v9 = vld [vmem:[#allocation12 + $0x8c] sm:$0xf0]  ;;  %v9834_v10 = vld [vmem:[#allocation12 + $0x84] sm:$0xf]  ;;  %v9865_v14 = vld [vmem:[#allocation12 + $0x174] sm:$0xf0] }
  0x4a   :  { %527 = vmatpush.bf16.msrb.mxu1 %v6993_v59  ;;  %v7238_v59 = vld [vmem:[#allocation12 + $0x1a8] sm:$0xf]  ;;  %v7087_v11 = vor.u32 %v9836_v9, %v7086_v8  ;;  %v10959_v17 = vld [vmem:[#allocation9] sm:$0x7]  ;;  %v9878_v18 = vld [vmem:[#allocation12 + $0x1e4] sm:$0xf] }
  0x4b   :  { %v7264_v19 = vld [vmem:[#allocation12 + $0x1f0] sm:$0xf0]  ;;  %v9830_v23 = vld [vmem:[#allocation12 + $0x64] sm:$0xf]  ;;  %v7190_v26 = vld [vmem:[#allocation12 + $0x148] sm:$0xf] }
  0x4c   :  { %515 = vmatpush.bf16.msrb.mxu0 %v6977_v62  ;;  %1001 = vmatpush.bf16.msrb.mxu3 %v7231_v3  ;;  %v7239_v62 = vor.u32 %v9873_v60, %v7238_v59  ;;  %v7104_v3 = vld [vmem:[#allocation12 + $0xb0] sm:$0xf0]  ;;  %v7267_v20 = vor.u32 %v9878_v18, %v7264_v19  ;;  %v9861_v27 = vld [vmem:[#allocation12 + $0x154] sm:$0xf0]  ;;  %v154_v28 = vperm.slane %v10959_v17, 0  ;;  %v156_v50 = vperm.slane %v10959_v17, 2 }
  0x4d   :  { %v7107_v6 = vor.u32 %v9838_v1, %v7104_v3  ;;  %v7248_v33 = vld [vmem:[#allocation12 + $0x1d0] sm:$0xf0]  ;;  %v9828_v36 = vld [vmem:[#allocation12 + $0x4c] sm:$0xf0]  ;;  %v9826_v37 = vld [vmem:[#allocation12 + $0x44] sm:$0xf] }
  0x4e   :  { %528 = vmatpush.bf16.msrb.mxu1 %v6981_v4  ;;  %v7222_v4 = vld [vmem:[#allocation12 + $0x188] sm:$0xf]  ;;  %v7056_v40 = vld [vmem:[#allocation12 + $0x50] sm:$0xf0]  ;;  %v9857_v42 = vld [vmem:[#allocation12 + $0x134] sm:$0xf0] }
  0x4f   :  { %v9870_v47 = vld [vmem:[#allocation12 + $0x1a4] sm:$0xf]  ;;  %v7232_v48 = vld [vmem:[#allocation12 + $0x1b0] sm:$0xf0]  ;;  %v10964_v58 = vld [vmem:[#allocation11] sm:$0x7] }
  0x50   :  { %516 = vmatpush.bf16.msrb.mxu0 %v6965_v7  ;;  %1002 = vmatpush.bf16.msrb.mxu3 %v7215_v12  ;;  %v7223_v7 = vor.u32 %v9869_v5, %v7222_v4  ;;  %v7088_v12 = vld [vmem:[#allocation12 + $0x90] sm:$0xf0]  ;;  %v7235_v51 = vor.u32 %v9870_v47, %v7232_v48  ;;  %v9853_v60 = vld [vmem:[#allocation12 + $0x114] sm:$0xf0]  ;;  %v7366_v63 = vld [vmem:[#allocation8 + $0xb4] sm:$0xf0] }
  0x51   :  { %v7091_v15 = vor.u32 %v9834_v10, %v7088_v12  ;;  %v7040_v56 = vld [vmem:[#allocation12 + $0x30] sm:$0xf0]  ;;  %v9866_v0 = vld [vmem:[#allocation12 + $0x184] sm:$0xf]  ;;  %v7022_v5 = vld [vmem:[#allocation12] sm:$0xf] }
  0x52   :  { %529 = vmatpush.bf16.msrb.mxu1 %v6969_v13  ;;  %v7206_v13 = vld [vmem:[#allocation12 + $0x168] sm:$0xf]  ;;  %v7216_v4 = vld [vmem:[#allocation12 + $0x190] sm:$0xf0]  ;;  %v7144_v18 = vld [vmem:[#allocation12 + $0xf8] sm:$0xf0] }
  0x53   :  { %v7219_v9 = vor.u32 %v9866_v0, %v7216_v4  ;;  %v7024_v12 = vld [vmem:[#allocation12 + $0x10] sm:$0xf0]  ;;  %v7096_v0 = vld [vmem:[#allocation12 + $0x98] sm:$0xf0]  ;;  %v7318_v4 = vld [vmem:[#allocation8 + $0x54] sm:$0xf0] }
  0x54   :  { %517 = vmatpush.bf16.msrb.mxu0 %v6953_v16  ;;  %1003 = vmatpush.bf16.msrb.mxu3 %v7199_v21  ;;  %v7207_v16 = vor.u32 %v9865_v14, %v7206_v13  ;;  %v7070_v21 = vld [vmem:[#allocation12 + $0x60] sm:$0xf]  ;;  %v7142_v13 = vld [vmem:[#allocation12 + $0xe8] sm:$0xf]  ;;  %s10889_s27 = smov [#allocation14]   ;;  %s10890_s28 = smov [#allocation15]  }
  0x55   :  { %s6793_s0 = sshll.u32 %s10889_s27, 4  ;;  %s6803_s29 = sshll.u32 %s10890_s28, 4  ;;  %s6794_s0 = int_to_ptr.vmem [resolvable:$true] %s6793_s0  ;;  %s6804_s29 = int_to_ptr.vmem [resolvable:$true] %s6803_s29 }
  0x56   :  { %530 = vmatpush.bf16.msrb.mxu1 %v6957_v22  ;;  %v9832_v22 = vld [vmem:[#allocation12 + $0x6c] sm:$0xf0]  ;;  %s6805_s9 = sshll.u32 %s11904_s8, 4  ;;  %s10891_s7 = smov 1   ;;  %s6806_s9 = int_to_ptr.hbm [resolvable:$true] %s6805_s9 }
  0x57   :  { %v7071_v24 = vor.u32 %v9832_v22, %v7070_v21 }
  0x58   :  { %518 = vmatpush.bf16.msrb.mxu0 %v6941_v25  ;;  %1004 = vmatpush.bf16.msrb.mxu3 %v7183_v30  ;;  %v7072_v25 = vld [vmem:[#allocation12 + $0x70] sm:$0xf0]  ;;  %v7191_v30 = vor.u32 %v9861_v27, %v7190_v26  ;;  %v9862_v26 = vld [vmem:[#allocation12 + $0x164] sm:$0xf] }
  0x59   :  { %v7075_v29 = vor.u32 %v9830_v23, %v7072_v25  ;;  %v9900_v23 = vld [vmem:[#allocation8 + $0x94] sm:$0xf]  ;;  %v7200_v27 = vld [vmem:[#allocation12 + $0x170] sm:$0xf0] }
  0x5a   :  { %531 = vmatpush.bf16.msrb.mxu1 %v6945_v31  ;;  %v155_v31 = vperm.slane %v10959_v17, 1  ;;  %v9847_v17 = vld [vmem:[#allocation12 + $0xec] sm:$0xf] }
  0x5b   :  { %v7147_v22 = vor.u32 %v9847_v17, %v7144_v18  ;;  %v9888_v17 = vld [vmem:[#allocation8 + $0x34] sm:$0xf]  ;;  %v7306_v18 = vld [vmem:[#allocation8 + $0x3c] sm:$0xf0] }
  0x5c   :  { %519 = vmatpush.bf16.msrb.mxu0 %v6929_v32  ;;  %1005 = vmatpush.bf16.msrb.mxu3 %v7167_v38  ;;  %v9874_v32 = vld [vmem:[#allocation12 + $0x1c4] sm:$0xf] }
  0x5d   :  { %v7251_v34 = vor.u32 %v9874_v32, %v7248_v33  ;;  %v9843_v32 = vld [vmem:[#allocation12 + $0xcc] sm:$0xf]  ;;  %v7128_v33 = vld [vmem:[#allocation12 + $0xd8] sm:$0xf0] }
  0x5e   :  { %532 = vmatpush.bf16.msrb.mxu1 %v6933_v35  ;;  %v7054_v35 = vld [vmem:[#allocation12 + $0x40] sm:$0xf] }
  0x5f   :  { %520 = vmatmul.bf16.vlgmr.msrb.gmra.mxu0 %v10887_v55  ;;  %v7055_v39 = vor.u32 %v9828_v36, %v7054_v35  ;;  %v7131_v36 = vor.u32 %v9843_v32, %v7128_v33  ;;  %v7064_v32 = vld [vmem:[#allocation12 + $0x58] sm:$0xf0]  ;;  %v9885_v33 = vld [vmem:[#allocation8 + $0x1c] sm:$0xf] }
  0x60   :  { %1006 = vmatpush.bf16.msrb.mxu3 %v7151_v41  ;;  %1012 = vmatpush.bf16.msra.mxu0 %v7139_v52  ;;  %v7174_v41 = vld [vmem:[#allocation12 + $0x128] sm:$0xf]  ;;  %v7038_v52 = vld [vmem:[#allocation12 + $0x20] sm:$0xf] }
  0x61   :  { %533 = vmatmul.bf16.vlgmr.msrb.gmra.mxu1 %v10887_v55  ;;  %v9844_v55 = vld [vmem:[#allocation12 + $0xcc] sm:$0xf0]  ;;  %v7175_v45 = vor.u32 %v9857_v42, %v7174_v41 }
  0x62   :  { %v7119_v57 = vor.u32 %v9844_v55, %v7118_v54  ;;  %1025 = vmatpush.bf16.msra.mxu1 %v7267_v20  ;;  %v9822_v55 = vld [vmem:[#allocation12 + $0x24] sm:$0xf]  ;;  %v493_v20 = vperm.slane %v10964_v58, 0 }
  0x63   :  { %v7043_v59 = vor.u32 %v9822_v55, %v7040_v56  ;;  %v9854_v55 = vld [vmem:[#allocation12 + $0x124] sm:$0xf]  ;;  %v7168_v56 = vld [vmem:[#allocation12 + $0x130] sm:$0xf0] }
  0x64   :  { %1051 = vmatpush.bf16.msra.mxu3 %v7271_v44  ;;  %987 = vmatpush.bf16.msrb.mxu2 %v7119_v57  ;;  %v7059_v44 = vor.u32 %v9826_v37, %v7056_v40  ;;  %v7158_v57 = vld [vmem:[#allocation12 + $0x108] sm:$0xf]  ;;  %v7342_v37 = vld [vmem:[#allocation8 + $0x84] sm:$0xf0] }
  0x65   :  { %1013 = vmatpush.bf16.msra.mxu0 %v7123_v61  ;;  %v9903_v61 = vld [vmem:[#allocation8 + $0xac] sm:$0xf] }
  0x66   :  { %1026 = vmatpush.bf16.msra.mxu1 %v7251_v34  ;;  %v7369_v3 = vor.u32 %v9903_v61, %v7366_v63  ;;  %v9897_v34 = vld [vmem:[#allocation8 + $0x7c] sm:$0xf]  ;;  %v9837_v61 = vld [vmem:[#allocation12 + $0x94] sm:$0xf0]  ;;  %v9835_v63 = vld [vmem:[#allocation12 + $0x8c] sm:$0xf] }
  0x67   :  { %v7345_v41 = vor.u32 %v9897_v34, %v7342_v37  ;;  %v7294_v37 = vld [vmem:[#allocation8 + $0x24] sm:$0xf0] }
  0x68   :  { %1052 = vmatpush.bf16.msra.mxu3 %v7255_v53  ;;  %988 = vmatpush.bf16.msrb.mxu2 %v7103_v2  ;;  %v9824_v53 = vld [vmem:[#allocation12 + $0x2c] sm:$0xf0]  ;;  %v10888_v2 = vmov 0.0|0.0  }
  0x69   :  { %1014 = vmatpush.bf16.msra.mxu0 %v7107_v6  ;;  %v7039_v54 = vor.u32 %v9824_v53, %v7038_v52  ;;  %1007 = vmatmul.bf16.vlgmr.msrb.gmra.mxu3 %v10888_v2  ;;  %v9820_v6 = vld [vmem:[#allocation12 + $0xc] sm:$0xf0]  ;;  %v9894_v52 = vld [vmem:[#allocation8 + $0x64] sm:$0xf]  ;;  %v7330_v53 = vld [vmem:[#allocation8 + $0x6c] sm:$0xf0] }
  0x6a   :  { %1027 = vmatpush.bf16.msra.mxu1 %v7235_v51  ;;  %v7023_v10 = vor.u32 %v9820_v6, %v7022_v5  ;;  %v9850_v5 = vld [vmem:[#allocation12 + $0x104] sm:$0xf]  ;;  %v7152_v6 = vld [vmem:[#allocation12 + $0x110] sm:$0xf0] }
  0x6c   :  { %1053 = vmatpush.bf16.msra.mxu3 %v7239_v62  ;;  %989 = vmatpush.bf16.msrb.mxu2 %v7087_v11  ;;  %v7159_v62 = vor.u32 %v9853_v60, %v7158_v57  ;;  %v9818_v11 = vld [vmem:[#allocation12 + $0x4] sm:$0xf]  ;;  %v7094_v60 = vld [vmem:[#allocation12 + $0x88] sm:$0xf] }
  0x6d   :  { %1015 = vmatpush.bf16.msra.mxu0 %v7091_v15  ;;  %v7027_v15 = vor.u32 %v9818_v11, %v7024_v12  ;;  %v7078_v12 = vld [vmem:[#allocation12 + $0x68] sm:$0xf] }
  0x6e   :  { %1028 = vmatpush.bf16.msra.mxu1 %v7219_v9  ;;  %v9879_v9 = vld [vmem:[#allocation12 + $0x1ec] sm:$0xf] }
  0x70   :  { %1054 = vmatpush.bf16.msra.mxu3 %v7223_v7  ;;  %990 = vmatpush.bf16.msrb.mxu2 %v7071_v24  ;;  %v7354_v24 = vld [vmem:[#allocation8 + $0x9c] sm:$0xf0] }
  0x71   :  { %1016 = vmatpush.bf16.msra.mxu0 %v7075_v29  ;;  %v7357_v25 = vor.u32 %v9900_v23, %v7354_v24  ;;  %v7126_v29 = vld [vmem:[#allocation12 + $0xc8] sm:$0xf]  ;;  %v7256_v23 = vld [vmem:[#allocation12 + $0x1d8] sm:$0xf0] }
  0x74   :  { %1055 = vmatpush.bf16.msra.mxu3 %v7207_v16  ;;  %991 = vmatpush.bf16.msrb.mxu2 %v7055_v39  ;;  %v9849_v16 = vld [vmem:[#allocation12 + $0xf4] sm:$0xf0]  ;;  %v7184_v39 = vld [vmem:[#allocation12 + $0x150] sm:$0xf0] }
  0x75   :  { %1017 = vmatpush.bf16.msra.mxu0 %v7059_v44  ;;  %v7143_v21 = vor.u32 %v9849_v16, %v7142_v13  ;;  %v9841_v44 = vld [vmem:[#allocation12 + $0xb4] sm:$0xf0]  ;;  %v7080_v16 = vld [vmem:[#allocation12 + $0x78] sm:$0xf0] }
  0x76   :  { %v9833_v13 = vld [vmem:[#allocation12 + $0x74] sm:$0xf0] }
  0x78   :  { %1056 = vmatpush.bf16.msra.mxu3 %v7191_v30  ;;  %992 = vmatpush.bf16.msrb.mxu2 %v7039_v54  ;;  %v9845_v30 = vld [vmem:[#allocation12 + $0xd4] sm:$0xf0]  ;;  %v7333_v54 = vor.u32 %v9894_v52, %v7330_v53  ;;  %v9882_v52 = vld [vmem:[#allocation8 + $0x4] sm:$0xf]  ;;  %v7282_v53 = vld [vmem:[#allocation8 + $0xc] sm:$0xf0] }
  0x79   :  { %1018 = vmatpush.bf16.msra.mxu0 %v7043_v59  ;;  %v7171_v59 = vor.u32 %v9854_v55, %v7168_v56  ;;  %v9867_v55 = vld [vmem:[#allocation12 + $0x18c] sm:$0xf]  ;;  %v7224_v56 = vld [vmem:[#allocation12 + $0x198] sm:$0xf0] }
  0x7c   :  { %1057 = vmatpush.bf16.msra.mxu3 %v7175_v45  ;;  %993 = vmatpush.bf16.msrb.mxu2 %v7023_v10  ;;  %v9839_v45 = vld [vmem:[#allocation12 + $0xac] sm:$0xf]  ;;  %v7272_v10 = vld [vmem:[#allocation12 + $0x1f8] sm:$0xf0] }
  0x7d   :  { %1019 = vmatpush.bf16.msra.mxu0 %v7027_v15  ;;  %v7275_v11 = vor.u32 %v9879_v9, %v7272_v10  ;;  %v7079_v15 = vor.u32 %v9833_v13, %v7078_v12  ;;  %v495_v10 = vperm.slane %v10964_v58, 2 }
  0x80   :  { %1058 = vmatpush.bf16.msra.mxu3 %v7159_v62  ;;  %1038 = vmatpush.bf16.msra.mxu2 %v7143_v21  ;;  %v7095_v62 = vor.u32 %v9837_v61, %v7094_v60  ;;  %v7309_v21 = vor.u32 %v9888_v17, %v7306_v18  ;;  %v9821_v60 = vld [vmem:[#allocation12 + $0x14] sm:$0xf0]  ;;  %v9819_v61 = vld [vmem:[#allocation12 + $0xc] sm:$0xf]  ;;  %v7192_v17 = vld [vmem:[#allocation12 + $0x158] sm:$0xf0] }
  0x81   :  { %1064 = vmatpush.bf16.msrb.mxu0 %v7147_v22  ;;  %v9875_v22 = vld [vmem:[#allocation12 + $0x1cc] sm:$0xf] }
  0x83   :  { %1059 = vmatmul.bf16.vlgmr.msra.gmra.mxu3 %v10888_v2 }
  0x84   :  { %1319 = vmatpush.bf16.msrb.mxu3 %v7369_v3  ;;  %v7099_v3 = vor.u32 %v9835_v63, %v7096_v0 }
  0x85   :  { %1065 = vmatpush.bf16.msrb.mxu0 %v7131_v36 }
  0x88   :  { %1320 = vmatpush.bf16.msrb.mxu3 %v7357_v25  ;;  %v7259_v25 = vor.u32 %v9875_v22, %v7256_v23  ;;  %v9855_v23 = vld [vmem:[#allocation12 + $0x12c] sm:$0xf] }
  0x8c   :  { %1321 = vmatpush.bf16.msrb.mxu3 %v7345_v41  ;;  %v7297_v41 = vor.u32 %v9885_v33, %v7294_v37 }
  0x90   :  { %1322 = vmatpush.bf16.msrb.mxu3 %v7333_v54  ;;  %v7285_v54 = vor.u32 %v9882_v52, %v7282_v53  ;;  %v7352_v53 = vld [vmem:[#allocation8 + $0x90] sm:$0xf] }
  0xbc   :  { %v297_v38 = vpop.f32.mrf.mxu0 }
  0xbd   :  { %v298_v43 = vadd.f32 %v297_v38, %v154_v28  ;;  %v7203_v28 = vor.u32 %v9862_v26, %v7200_v27  ;;  %v9858_v38 = vld [vmem:[#allocation12 + $0x144] sm:$0xf]  ;;  %v7062_v26 = vld [vmem:[#allocation12 + $0x48] sm:$0xf]  ;;  %v9829_v27 = vld [vmem:[#allocation12 + $0x54] sm:$0xf0] }
  0xbe   :  { %v310_v46 = vpop.f32.mrf.mxu1  ;;  %v7187_v42 = vor.u32 %v9858_v38, %v7184_v39  ;;  %v9871_v38 = vld [vmem:[#allocation12 + $0x1ac] sm:$0xf] }
  0xbf   :  { %327 = vst [vmem:[#allocation2] sm:$0xff] %v298_v43  ;;  %v311_v49 = vadd.f32 %v310_v46, %v155_v31  ;;  %v7127_v31 = vor.u32 %v9845_v30, %v7126_v29  ;;  %1029 = vmatpush.bf16.msra.mxu1 %v7203_v28  ;;  %v7110_v43 = vld [vmem:[#allocation12 + $0xa8] sm:$0xf]  ;;  %v9827_v28 = vld [vmem:[#allocation12 + $0x4c] sm:$0xf] }
  0xc0   :  { %v7111_v48 = vor.u32 %v9841_v44, %v7110_v43  ;;  %v7067_v36 = vor.u32 %v9827_v28, %v7064_v32  ;;  %v7046_v43 = vld [vmem:[#allocation12 + $0x28] sm:$0xf]  ;;  %v9825_v44 = vld [vmem:[#allocation12 + $0x34] sm:$0xf0] }
  0xc1   :  { %328 = vst [vmem:[#allocation2 + $0x8] sm:$0xff] %v311_v49  ;;  %1039 = vmatpush.bf16.msra.mxu2 %v7127_v31  ;;  %v7112_v49 = vld [vmem:[#allocation12 + $0xb8] sm:$0xf0]  ;;  %v7063_v31 = vor.u32 %v9829_v27, %v7062_v26 }
  0xc2   :  { %v7115_v51 = vor.u32 %v9839_v45, %v7112_v49 }
  0xc3   :  { %1030 = vmatpush.bf16.msra.mxu1 %v7187_v42  ;;  %v7240_v42 = vld [vmem:[#allocation12 + $0x1b8] sm:$0xf0] }
  0xc4   :  { %v323_v1 = vpop.f32.mrf.mxu2  ;;  %v299_v8 = vpop.f32.mrf.mxu0  ;;  %1066 = vmatpush.bf16.msrb.mxu0 %v7115_v51  ;;  %v7243_v45 = vor.u32 %v9871_v38, %v7240_v42 }
  0xc5   :  { %v324_v7 = vadd.f32 %v323_v1, %v156_v50  ;;  %1040 = vmatpush.bf16.msra.mxu2 %v7111_v48  ;;  %v9891_v1 = vld [vmem:[#allocation8 + $0x4c] sm:$0xf]  ;;  %v7155_v8 = vor.u32 %v9850_v5, %v7152_v6  ;;  %v7048_v48 = vld [vmem:[#allocation12 + $0x38] sm:$0xf0]  ;;  %v9863_v5 = vld [vmem:[#allocation12 + $0x16c] sm:$0xf] }
  0xc6   :  { %v508_v14 = vpop.f32.mrf.mxu3  ;;  %v312_v19 = vpop.f32.mrf.mxu1  ;;  %v7208_v6 = vld [vmem:[#allocation12 + $0x178] sm:$0xf0] }
  0xc7   :  { %329 = vst [vmem:[#allocation2 + $0x10] sm:$0xff] %v324_v7  ;;  %v509_v35 = vadd.f32 %v508_v14, %v493_v20  ;;  %1031 = vmatpush.bf16.msra.mxu1 %v7171_v59  ;;  %v7321_v7 = vor.u32 %v9891_v1, %v7318_v4  ;;  %v9831_v14 = vld [vmem:[#allocation12 + $0x6c] sm:$0xf]  ;;  %v494_v19 = vperm.slane %v10964_v58, 1  ;;  %v7030_v59 = vld [vmem:[#allocation12 + $0x8] sm:$0xf]  ;;  %v7211_v9 = vor.u32 %v9863_v5, %v7208_v6 }
  0xc8   :  { %1067 = vmatpush.bf16.msrb.mxu0 %v7099_v3  ;;  %v7083_v20 = vor.u32 %v9831_v14, %v7080_v16  ;;  %v7031_v0 = vor.u32 %v9821_v60, %v7030_v59  ;;  %v7032_v1 = vld [vmem:[#allocation12 + $0x18] sm:$0xf0]  ;;  %v9859_v16 = vld [vmem:[#allocation12 + $0x14c] sm:$0xf]  ;;  %v7340_v60 = vld [vmem:[#allocation8 + $0x78] sm:$0xf] }
  0xc9   :  { %1041 = vmatpush.bf16.msra.mxu2 %v7095_v62  ;;  %1323 = vmatpush.bf16.msrb.mxu3 %v7321_v7  ;;  %v7035_v4 = vor.u32 %v9819_v61, %v7032_v1  ;;  %v9898_v61 = vld [vmem:[#allocation8 + $0x80] sm:$0xf0]  ;;  %v7336_v5 = vld [vmem:[#allocation8 + $0x68] sm:$0xf]  ;;  %v9896_v6 = vld [vmem:[#allocation8 + $0x70] sm:$0xf0] }
  0xcb   :  { %1032 = vmatpush.bf16.msra.mxu1 %v7155_v8 }
  0xcc   :  { %v325_v40 = vpop.f32.mrf.mxu2  ;;  %1068 = vmatpush.bf16.msrb.mxu0 %v7083_v20 }
  0xcd   :  { %1042 = vmatpush.bf16.msra.mxu2 %v7079_v15  ;;  %1324 = vmatpush.bf16.msrb.mxu3 %v7309_v21 }
  0xce   :  { %v10968_v46 = vld [vmem:[#allocation2] ss:$8 sm:$0x7]  ;;  %v510_v47 = vpop.f32.mrf.mxu3  ;;  %1033 = vmatmul.bf16.vlgmr.msra.gmra.mxu1 %v10888_v2 }
  0xcf   :  { %v538_v50 = vadd.f32 %v509_v35, %v10968_v46  ;;  %1077 = vmatpush.bf16.msrb.mxu1 %v7275_v11  ;;  %v559_v35 = vrot.slane %v10968_v46, 1  ;;  %v9823_v47 = vld [vmem:[#allocation12 + $0x2c] sm:$0xf]  ;;  %v582_v28 = vrot.slane %v10968_v46, 2 }
  0xd0   :  { %1069 = vmatpush.bf16.msrb.mxu0 %v7067_v36  ;;  %v7051_v51 = vor.u32 %v9823_v47, %v7048_v48  ;;  %v9904_v47 = vld [vmem:[#allocation8 + $0xb0] sm:$0xf0]  ;;  %v7372_v48 = vld [vmem:[#allocation8 + $0xb0] sm:$0xf] }
  0xd1   :  { %v7018_v57 = vmul.f32 -1.442695, %v538_v50  ;;  %1043 = vmatpush.bf16.msra.mxu2 %v7063_v31  ;;  %1325 = vmatpush.bf16.msrb.mxu3 %v7297_v41  ;;  %v7047_v50 = vor.u32 %v9825_v44, %v7046_v43 }
  0xd3   :  { %10513 = vpow2.f32 %v7018_v57  ;;  %1078 = vmatpush.bf16.msrb.mxu1 %v7259_v25  ;;  %v7227_v57 = vor.u32 %v9867_v55, %v7224_v56  ;;  %v7360_v55 = vld [vmem:[#allocation8 + $0x98] sm:$0xf]  ;;  %v9902_v56 = vld [vmem:[#allocation8 + $0xa0] sm:$0xf0] }
  0xd4   :  { %1070 = vmatpush.bf16.msrb.mxu0 %v7051_v51  ;;  %v7361_v59 = vor.u32 %v9902_v56, %v7360_v55  ;;  %v9962_v56 = vld [vmem:[#allocation12 + $0x1c4] sm:$0xf] }
  0xd5   :  { %1044 = vmatpush.bf16.msra.mxu2 %v7047_v50  ;;  %1326 = vmatpush.bf16.msrb.mxu3 %v7285_v54  ;;  %v9901_v54 = vld [vmem:[#allocation8 + $0x98] sm:$0xf0] }
  0xd7   :  { %1079 = vmatpush.bf16.msrb.mxu1 %v7243_v45  ;;  %v7364_v45 = vld [vmem:[#allocation8 + $0xa8] sm:$0xf] }
  0xd8   :  { %1071 = vmatpush.bf16.msrb.mxu0 %v7035_v4  ;;  %v7365_v51 = vor.u32 %v9904_v47, %v7364_v45  ;;  %v9895_v4 = vld [vmem:[#allocation8 + $0x68] sm:$0xf0]  ;;  %v7570_v47 = vld [vmem:[#allocation12 + $0x180] sm:$0xf] }
  0xd9   :  { %v10514_v24 = vpop.eup %10513  ;;  %1045 = vmatpush.bf16.msra.mxu2 %v7031_v0  ;;  %v7341_v0 = vor.u32 %v9898_v61, %v7340_v60  ;;  %v7538_v60 = vld [vmem:[#allocation12 + $0x140] sm:$0xf]  ;;  %v9948_v61 = vld [vmem:[#allocation12 + $0x14c] sm:$0xf0] }
  0xda   :  { %v10973_v29 = vadd.f32 1.0, %v10514_v24  ;;  %v7176_v24 = vld [vmem:[#allocation12 + $0x138] sm:$0xf0] }
  0xdb   :  { %1080 = vmatpush.bf16.msrb.mxu1 %v7227_v57  ;;  %v7179_v25 = vor.u32 %v9855_v23, %v7176_v24  ;;  %v7353_v57 = vor.u32 %v9901_v54, %v7352_v53  ;;  %v9887_v23 = vld [vmem:[#allocation8 + $0x28] sm:$0xf0]  ;;  %v7554_v53 = vld [vmem:[#allocation12 + $0x160] sm:$0xf]  ;;  %v9952_v54 = vld [vmem:[#allocation12 + $0x16c] sm:$0xf0] }
  0xdc   :  { %v521_v30 = vpop.f32.mrf.mxu0  ;;  %10515 = vrcp.f32 %v10973_v29  ;;  %v554_v11 = vand.u32 2147483648, %v10973_v29  ;;  %vm548_vm0 = vweird.f32 %v10973_v29  ;;  %v552_v14 = vand.u32 2147483647, %v10973_v29 }
  0xdd   :  { %v522_v34 = vadd.f32 %v521_v30, %v494_v19  ;;  %v7195_v19 = vor.u32 %v9859_v16, %v7192_v17  ;;  %v7160_v30 = vld [vmem:[#allocation12 + $0x118] sm:$0xf0]  ;;  %v9889_v16 = vld [vmem:[#allocation8 + $0x38] sm:$0xf0]  ;;  %v7312_v17 = vld [vmem:[#allocation8 + $0x38] sm:$0xf]  ;;  %v7555_v55 = vor.u32 %v9952_v54, %v7554_v53 }
  0xde   :  { %v534_v40 = vpop.f32.mrf.mxu1  ;;  %v555_v21 = vor.u32 1.1754944e-38, %v554_v11  ;;  %vm553_vm3 = vcmp.eq.f32.partialorder %v552_v14, 8.507059e+37  ;;  %v7324_v11 = vld [vmem:[#allocation8 + $0x50] sm:$0xf] }
  0xdf   :  { %v561_v39 = vadd.f32 %v559_v35, %v522_v34  ;;  %1081 = vmatpush.bf16.msrb.mxu1 %v7211_v9  ;;  %v535_v20 = vadd.f32 %v534_v40, %v495_v10  ;;  %v7316_v9 = vld [vmem:[#allocation8 + $0x48] sm:$0xf]  ;;  %v9892_v10 = vld [vmem:[#allocation8 + $0x50] sm:$0xf0] }
  0xe1   :  { %v7019_v49 = vmul.f32 -1.442695, %v561_v39 }
  0xe2   :  { %v10516_v62 = vpop.eup %10515 }
  0xe3   :  { %10517 = vpow2.f32 %v7019_v49  ;;  %v544_v3 = vmul.f32 %v10516_v62, %v10973_v29  ;;  %vm549_vm1 = vweird.f32 %v10516_v62  ;;  %1082 = vmatpush.bf16.msrb.mxu1 %v7195_v19  ;;  %v9851_v29 = vld [vmem:[#allocation12 + $0x10c] sm:$0xf]  ;;  %v9905_v49 = vld [vmem:[#allocation8 + $0xb8] sm:$0xf0] }
  0xe4   :  { %v523_v63 = vpop.f32.mrf.mxu0  ;;  %vm550_vm2 = vmor %vm548_vm0, %vm549_vm1  ;;  %v7163_v32 = vor.u32 %v9851_v29, %v7160_v30  ;;  %v9884_v29 = vld [vmem:[#allocation8 + $0x10] sm:$0xf0] }
  0xe5   :  { %v545_v7 = vsub.f32 1.0, %v544_v3  ;;  %v9899_v63 = vld [vmem:[#allocation8 + $0x88] sm:$0xf0]  ;;  %v7328_v3 = vld [vmem:[#allocation8 + $0x60] sm:$0xf] }
  0xe6   :  { %v536_v8 = vpop.f32.mrf.mxu1 }
  0xe7   :  { %v546_v13 = vmul.f32 %v10516_v62, %v545_v7  ;;  %1083 = vmatpush.bf16.msrb.mxu1 %v7179_v25  ;;  %v7329_v7 = vor.u32 %v9895_v4, %v7328_v3  ;;  %v7337_v8 = vor.u32 %v9896_v6, %v7336_v5  ;;  %v7522_v4 = vld [vmem:[#allocation12 + $0x120] sm:$0xf]  ;;  %v9944_v5 = vld [vmem:[#allocation12 + $0x12c] sm:$0xf0]  ;;  %v11009_v6 = vld [vmem:[%s11902_s6] sm:$0xf] }
  0xe9   :  { %v10518_v12 = vpop.eup %10517  ;;  %v547_v18 = vadd.f32 %v10516_v62, %v546_v13  ;;  %v7317_v13 = vor.u32 %v9892_v10, %v7316_v9  ;;  %v7572_v9 = vld [vmem:[#allocation12 + $0x190] sm:$0xf0] }
  0xea   :  { %v565_v15 = vadd.f32 1.0, %v10518_v12  ;;  %v9893_v12 = vld [vmem:[#allocation8 + $0x58] sm:$0xf0] }
  0xeb   :  { %v551_v58 = vsel %vm550_vm2, %v10516_v62, %v547_v18  ;;  %1084 = vmatpush.bf16.msrb.mxu1 %v7163_v32  ;;  %v7348_v62 = vld [vmem:[#allocation8 + $0x80] sm:$0xf]  ;;  %v7325_v14 = vor.u32 %v9893_v12, %v7324_v11  ;;  %v9890_v18 = vld [vmem:[#allocation8 + $0x40] sm:$0xf0]  ;;  %v7618_v32 = vld [vmem:[#allocation12 + $0x1e0] sm:$0xf] }
  0xec   :  { %10519 = vrcp.f32 %v565_v15  ;;  %v556_v22 = vsel %vm553_vm3, %v555_v21, %v551_v58  ;;  %v577_v35 = vand.u32 2147483648, %v565_v15  ;;  %v575_v37 = vand.u32 2147483647, %v565_v15  ;;  %v7292_v21 = vld [vmem:[#allocation8 + $0x18] sm:$0xf] }
  0xed   :  { %v581_v26 = vmul.f32 %v556_v22, %v535_v20  ;;  %vm571_vm5 = vweird.f32 %v565_v15  ;;  %v7349_v1 = vor.u32 %v9899_v63, %v7348_v62  ;;  %v7313_v20 = vor.u32 %v9890_v18, %v7312_v17  ;;  %v9886_v58 = vld [vmem:[#allocation8 + $0x20] sm:$0xf0]  ;;  %v7300_v22 = vld [vmem:[#allocation8 + $0x20] sm:$0xf]  ;;  %v9958_v63 = vld [vmem:[#allocation12 + $0x1a4] sm:$0xf] }
  0xee   :  { %1085 = vmatmul.bf16.vlgmr.msrb.gmra.mxu1 %v10888_v2  ;;  %v578_v39 = vor.u32 1.1754944e-38, %v577_v35  ;;  %vm576_vm7 = vcmp.eq.f32.partialorder %v575_v37, 8.507059e+37  ;;  %v7373_v2 = vor.u32 %v9905_v49, %v7372_v48  ;;  %v7293_v24 = vor.u32 %v9886_v58, %v7292_v21  ;;  %v10998_v35 = vpop.f32.mrf.mxu3  ;;  %v9956_v48 = vld [vmem:[#allocation12 + $0x18c] sm:$0xf0]  ;;  %v7506_v12 = vld [vmem:[#allocation12 + $0x100] sm:$0xf] }
  0xef   :  { %v584_v33 = vadd.f32 %v582_v28, %v581_v26  ;;  %v7301_v25 = vor.u32 %v9887_v23, %v7300_v22  ;;  %v7280_v26 = vld [vmem:[#allocation8] sm:$0xf]  ;;  %v7288_v28 = vld [vmem:[#allocation8 + $0x8] sm:$0xf]  ;;  %v7571_v49 = vor.u32 %v9956_v48, %v7570_v47  ;;  %v7539_v62 = vor.u32 %v9948_v61, %v7538_v60  ;;  %v7626_v17 = vld [vmem:[#allocation12 + $0x1e8] sm:$0xf] }
  0xf0   :  { %v979_v11 = vperm.slane %v11009_v6, 1  ;;  %v7490_v22 = vld [vmem:[#allocation12 + $0xe0] sm:$0xf]  ;;  %v9936_v23 = vld [vmem:[#allocation12 + $0xec] sm:$0xf0] }
  0xf1   :  { %10521 = vtanh.f32 %v584_v33  ;;  %v9968_v33 = vld [vmem:[#allocation12 + $0x1ec] sm:$0xf0] }
  0xf2   :  { %v10520_v27 = vpop.eup %10519 }
  0xf3   :  { %v567_v31 = vmul.f32 %v10520_v27, %v565_v15  ;;  %vm572_vm4 = vweird.f32 %v10520_v27  ;;  %v7304_v15 = vld [vmem:[#allocation8 + $0x30] sm:$0xf] }
  0xf4   :  { %vm573_vm6 = vmor %vm571_vm5, %vm572_vm4  ;;  %v7305_v19 = vor.u32 %v9889_v16, %v7304_v15  ;;  %v9950_v15 = vld [vmem:[#allocation12 + $0x164] sm:$0xf]  ;;  %v7556_v16 = vld [vmem:[#allocation12 + $0x170] sm:$0xf0] }
  0xf5   :  { %v568_v34 = vsub.f32 1.0, %v567_v31  ;;  %v7289_v31 = vor.u32 %v9884_v29, %v7288_v28  ;;  %v7559_v18 = vor.u32 %v9950_v15, %v7556_v16  ;;  %v9946_v28 = vld [vmem:[#allocation12 + $0x144] sm:$0xf]  ;;  %v7540_v29 = vld [vmem:[#allocation12 + $0x150] sm:$0xf0] }
  0xf7   :  { %v569_v36 = vmul.f32 %v10520_v27, %v568_v34  ;;  %v10522_v42 = vpop.eup %10521  ;;  %v7619_v34 = vor.u32 %v9968_v33, %v7618_v32  ;;  %v7610_v32 = vld [vmem:[#allocation12 + $0x1c8] sm:$0xf]  ;;  %v9965_v33 = vld [vmem:[#allocation12 + $0x1d4] sm:$0xf0] }
  0xf9   :  { %v570_v38 = vadd.f32 %v10520_v27, %v569_v36  ;;  %v1010_v36 = vpop.f32.mrf.mxu3 }
  0xfa   :  { %v978_v36 = vperm.slane %v11009_v6, 0 }
  0xfb   :  { %v574_v46 = vsel %vm573_vm6, %v10520_v27, %v570_v38  ;;  %v9883_v27 = vld [vmem:[#allocation8 + $0x8] sm:$0xf0] }
  0xfc   :  { %v579_v40 = vsel %vm576_vm7, %v578_v39, %v574_v46  ;;  %v7281_v30 = vor.u32 %v9883_v27, %v7280_v26  ;;  %v7602_v46 = vld [vmem:[#allocation12 + $0x1c0] sm:$0xf]  ;;  %v7491_v26 = vor.u32 %v9936_v23, %v7490_v22  ;;  %v7492_v27 = vld [vmem:[#allocation12 + $0xf0] sm:$0xf0]  ;;  %v9953_v22 = vld [vmem:[#allocation12 + $0x174] sm:$0xf0] }
  0xfd   :  { %v586_v41 = vsub.f32 1.0, %v579_v40  ;;  %v588_v44 = vmul.f32 0.0, %v579_v40  ;;  %v9964_v40 = vld [vmem:[#allocation12 + $0x1cc] sm:$0xf0]  ;;  %v9963_v23 = vld [vmem:[#allocation12 + $0x1cc] sm:$0xf] }
  0xfe   :  { %1793 = vmatpush.bf16.msra.mxu1 %v7491_v26  ;;  %v7612_v26 = vld [vmem:[#allocation12 + $0x1d8] sm:$0xf0] }
  0xff   :  { %v587_v43 = vmul.f32 %v10522_v42, %v586_v41  ;;  %v7603_v41 = vor.u32 %v9964_v40, %v7602_v46  ;;  %v7586_v42 = vld [vmem:[#allocation12 + $0x1a0] sm:$0xf]  ;;  %v9932_v40 = vld [vmem:[#allocation12 + $0xcc] sm:$0xf0] }
 0x100   :  { %v7474_v46 = vld [vmem:[#allocation12 + $0xc0] sm:$0xf] }
 0x101   :  { %v10985_v50 = vadd.f32 %v588_v44, %v587_v43  ;;  %v9960_v43 = vld [vmem:[#allocation12 + $0x1ac] sm:$0xf0] }
 0x102   :  { %v7587_v44 = vor.u32 %v9960_v43, %v7586_v42  ;;  %v7475_v43 = vor.u32 %v9932_v40, %v7474_v46  ;;  %v7546_v46 = vld [vmem:[#allocation12 + $0x148] sm:$0xf]  ;;  %v9949_v40 = vld [vmem:[#allocation12 + $0x154] sm:$0xf0] }
 0x103   :  { %v10989_v52 = vpack.c.bf16 %v10985_v50, %v10985_v50 }
 0x104   :  { %1794 = vmatpush.bf16.msra.mxu1 %v7475_v43  ;;  %v9959_v43 = vld [vmem:[#allocation12 + $0x1ac] sm:$0xf] }
 0x105   :  { %994 = vmatmul.bf16.vlgmr.msrb.gmra.mxu2 %v10989_v52  ;;  %1020 = vmatmul.bf16.vlgmr.msra.gmra.mxu0 %v10989_v52 }
 0x106   :  { %1327 = vmatmul.bf16.vlgmr.msrb.gmra.mxu3 %v10989_v52  ;;  %1306 = vmatpush.bf16.msrb.mxu2 %v7365_v51  ;;  %v11000_v37 = vpop.f32.mrf.mxu3  ;;  %v9966_v51 = vld [vmem:[#allocation12 + $0x1e4] sm:$0xf] }
 0x107   :  { %1332 = vmatpush.bf16.msra.mxu0 %v7373_v2 }
 0x10a   :  { %1307 = vmatpush.bf16.msrb.mxu2 %v7353_v57  ;;  %v7604_v57 = vld [vmem:[#allocation12 + $0x1d0] sm:$0xf0] }
 0x10b   :  { %1333 = vmatpush.bf16.msra.mxu0 %v7361_v59  ;;  %v7607_v59 = vor.u32 %v9962_v56, %v7604_v57  ;;  %v7458_v56 = vld [vmem:[#allocation12 + $0xa0] sm:$0xf]  ;;  %v9928_v57 = vld [vmem:[#allocation12 + $0xac] sm:$0xf0] }
 0x10c   :  { %v7459_v61 = vor.u32 %v9928_v57, %v7458_v56  ;;  %v7530_v56 = vld [vmem:[#allocation12 + $0x128] sm:$0xf] }
 0x10e   :  { %1308 = vmatpush.bf16.msrb.mxu2 %v7341_v0  ;;  %v1062_v38 = vpop.f32.mrf.mxu3  ;;  %v7588_v0 = vld [vmem:[#allocation12 + $0x1b0] sm:$0xf0]  ;;  %1795 = vmatpush.bf16.msra.mxu1 %v7459_v61 }
 0x10f   :  { %1334 = vmatpush.bf16.msra.mxu0 %v7349_v1  ;;  %v7591_v3 = vor.u32 %v9958_v63, %v7588_v0  ;;  %v7611_v38 = vor.u32 %v9965_v33, %v7610_v32  ;;  %v9938_v63 = vld [vmem:[#allocation12 + $0x104] sm:$0xf]  ;;  %v9920_v32 = vld [vmem:[#allocation12 + $0x6c] sm:$0xf0] }
 0x110   :  { %v9918_v33 = vld [vmem:[#allocation12 + $0x64] sm:$0xf] }
 0x112   :  { %1309 = vmatpush.bf16.msrb.mxu2 %v7329_v7  ;;  %v7523_v7 = vor.u32 %v9944_v5, %v7522_v4  ;;  %v7578_v4 = vld [vmem:[#allocation12 + $0x188] sm:$0xf]  ;;  %v9957_v5 = vld [vmem:[#allocation12 + $0x194] sm:$0xf0] }
 0x113   :  { %1335 = vmatpush.bf16.msra.mxu0 %v7337_v8  ;;  %v9954_v8 = vld [vmem:[#allocation12 + $0x184] sm:$0xf] }
 0x114   :  { %v7575_v10 = vor.u32 %v9954_v8, %v7572_v9  ;;  %v7579_v9 = vor.u32 %v9957_v5, %v7578_v4  ;;  %v9912_v4 = vld [vmem:[#allocation12 + $0x2c] sm:$0xf0] }
 0x115   :  { %1046 = vmatmul.bf16.vlgmr.msra.gmra.mxu2 %v10989_v52  ;;  %1072 = vmatmul.bf16.vlgmr.msrb.gmra.mxu0 %v10989_v52 }
 0x116   :  { %1310 = vmatpush.bf16.msrb.mxu2 %v7317_v13  ;;  %v9940_v13 = vld [vmem:[#allocation12 + $0x10c] sm:$0xf0] }
 0x117   :  { %1336 = vmatpush.bf16.msra.mxu0 %v7325_v14  ;;  %v7507_v14 = vor.u32 %v9940_v13, %v7506_v12  ;;  %v11017_v12 = vld [vmem:[#allocation11] sm:$0x7] }
 0x11a   :  { %1311 = vmatpush.bf16.msrb.mxu2 %v7305_v19  ;;  %v9969_v19 = vld [vmem:[#allocation12 + $0x1f4] sm:$0xf0] }
 0x11b   :  { %1337 = vmatpush.bf16.msra.mxu0 %v7313_v20  ;;  %v7627_v21 = vor.u32 %v9969_v19, %v7626_v17  ;;  %v9922_v17 = vld [vmem:[#allocation12 + $0x84] sm:$0xf]  ;;  %v7562_v19 = vld [vmem:[#allocation12 + $0x168] sm:$0xf] }
 0x11e   :  { %1312 = vmatpush.bf16.msrb.mxu2 %v7293_v24  ;;  %v9934_v24 = vld [vmem:[#allocation12 + $0xe4] sm:$0xf] }
 0x11f   :  { %1338 = vmatpush.bf16.msra.mxu0 %v7301_v25 }
 0x122   :  { %1313 = vmatpush.bf16.msrb.mxu2 %v7281_v30  ;;  %v7495_v30 = vor.u32 %v9934_v24, %v7492_v27  ;;  %v11021_v27 = vld [vmem:[#allocation2 + $0x1] ss:$8 sm:$0x7] }
 0x123   :  { %1339 = vmatpush.bf16.msra.mxu0 %v7289_v31  ;;  %v7543_v31 = vor.u32 %v9946_v28, %v7540_v29  ;;  %v1301_v28 = vperm.slane %v11017_v12, 1 }
 0x124   :  { %1819 = vmatpush.bf16.msra.mxu3 %v7495_v30  ;;  %v7426_v30 = vld [vmem:[#allocation12 + $0x60] sm:$0xf] }
 0x125   :  { %1314 = vmatmul.bf16.vlgmr.msrb.gmra.mxu2 %v10989_v52 }
 0x126   :  { %1340 = vmatmul.bf16.vlgmr.msra.gmra.mxu0 %v10989_v52  ;;  %1806 = vmatpush.bf16.msra.mxu2 %v7619_v34  ;;  %v7620_v52 = vld [vmem:[#allocation12 + $0x1f0] sm:$0xf0] }
 0x127   :  { %v7623_v2 = vor.u32 %v9966_v51, %v7620_v52  ;;  %v7594_v51 = vld [vmem:[#allocation12 + $0x1a8] sm:$0xf]  ;;  %v9961_v52 = vld [vmem:[#allocation12 + $0x1b4] sm:$0xf0] }
 0x128   :  { %v7595_v54 = vor.u32 %v9961_v52, %v7594_v51  ;;  %v9916_v51 = vld [vmem:[#allocation12 + $0x4c] sm:$0xf0]  ;;  %v1366_v52 = vrot.slane %v11021_v27, 1 }
 0x129   :  { %1832 = vmatpush.bf16.msrb.mxu0 %v7623_v2 }
 0x12a   :  { %1807 = vmatpush.bf16.msra.mxu2 %v7603_v41  ;;  %v9930_v41 = vld [vmem:[#allocation12 + $0xc4] sm:$0xf] }
 0x12d   :  { %1833 = vmatpush.bf16.msrb.mxu0 %v7607_v59  ;;  %v9926_v59 = vld [vmem:[#allocation12 + $0xa4] sm:$0xf] }
 0x12e   :  { %1808 = vmatpush.bf16.msra.mxu2 %v7587_v44  ;;  %v7476_v44 = vld [vmem:[#allocation12 + $0xd0] sm:$0xf0] }
 0x12f   :  { %v7479_v48 = vor.u32 %v9930_v41, %v7476_v44  ;;  %v7596_v44 = vld [vmem:[#allocation12 + $0x1b8] sm:$0xf0] }
 0x131   :  { %1834 = vmatpush.bf16.msrb.mxu0 %v7591_v3  ;;  %1820 = vmatpush.bf16.msra.mxu3 %v7479_v48  ;;  %v7508_v3 = vld [vmem:[#allocation12 + $0x110] sm:$0xf0]  ;;  %v7599_v48 = vor.u32 %v9959_v43, %v7596_v44  ;;  %v9947_v43 = vld [vmem:[#allocation12 + $0x14c] sm:$0xf] }
 0x132   :  { %1809 = vmatpush.bf16.msra.mxu2 %v7571_v49  ;;  %v7524_v49 = vld [vmem:[#allocation12 + $0x130] sm:$0xf0]  ;;  %v7511_v8 = vor.u32 %v9938_v63, %v7508_v3  ;;  %v7394_v3 = vld [vmem:[#allocation12 + $0x20] sm:$0xf] }
 0x135   :  { %1835 = vmatpush.bf16.msrb.mxu0 %v7575_v10  ;;  %v9967_v10 = vld [vmem:[#allocation12 + $0x1ec] sm:$0xf] }
 0x136   :  { %1810 = vmatpush.bf16.msra.mxu2 %v7555_v55 }
 0x139   :  { %1836 = vmatpush.bf16.msrb.mxu0 %v7559_v18  ;;  %v7444_v18 = vld [vmem:[#allocation12 + $0x90] sm:$0xf0] }
 0x13a   :  { %1811 = vmatpush.bf16.msra.mxu2 %v7539_v62  ;;  %v7460_v62 = vld [vmem:[#allocation12 + $0xb0] sm:$0xf0] }
 0x13b   :  { %v7463_v0 = vor.u32 %v9926_v59, %v7460_v62  ;;  %v9955_v59 = vld [vmem:[#allocation12 + $0x18c] sm:$0xf] }
 0x13d   :  { %1837 = vmatpush.bf16.msrb.mxu0 %v7543_v31  ;;  %1821 = vmatpush.bf16.msra.mxu3 %v7463_v0  ;;  %v7615_v31 = vor.u32 %v9963_v23, %v7612_v26  ;;  %v7378_v23 = vld [vmem:[#allocation12] sm:$0xf] }
 0x13e   :  { %1812 = vmatpush.bf16.msra.mxu2 %v7523_v7 }
 0x142   :  { %1813 = vmatpush.bf16.msra.mxu2 %v7507_v14  ;;  %v9924_v14 = vld [vmem:[#allocation12 + $0x8c] sm:$0xf0] }
 0x146   :  { %1858 = vmatpush.bf16.msrb.mxu2 %v7627_v21 }
 0x14a   :  { %1859 = vmatpush.bf16.msrb.mxu2 %v7611_v38 }
 0x14b   :  { %v11002_v39 = vpop.f32.mrf.mxu1 }
 0x14e   :  { %1860 = vmatpush.bf16.msrb.mxu2 %v7595_v54  ;;  %v9914_v54 = vld [vmem:[#allocation12 + $0x44] sm:$0xf] }
 0x152   :  { %1861 = vmatpush.bf16.msrb.mxu2 %v7579_v9  ;;  %v7395_v9 = vor.u32 %v9912_v4, %v7394_v3  ;;  %v7532_v3 = vld [vmem:[#allocation12 + $0x138] sm:$0xf0] }
 0x153   :  { %v1036_v45 = vpop.f32.mrf.mxu1 }
 0x154   :  { %v9942_v45 = vld [vmem:[#allocation12 + $0x124] sm:$0xf] }
 0x155   :  { %v7527_v53 = vor.u32 %v9942_v45, %v7524_v49  ;;  %v7410_v49 = vld [vmem:[#allocation12 + $0x40] sm:$0xf] }
 0x157   :  { %1838 = vmatpush.bf16.msrb.mxu0 %v7527_v53 }
 0x15b   :  { %1839 = vmatpush.bf16.msrb.mxu0 %v7511_v8 }
 0x16b   :  { %v11004_v1 = vpop.f32.mrf.mxu1 }
 0x173   :  { %v1088_v20 = vpop.f32.mrf.mxu1 }
 0x182   :  { %v1021_v58 = vpop.f32.mrf.mxu0 }
 0x183   :  { %v1022_v25 = vadd.f32 %v1021_v58, %v979_v11  ;;  %v7628_v11 = vld [vmem:[#allocation12 + $0x1f8] sm:$0xf0]  ;;  %v7447_v58 = vor.u32 %v9922_v17, %v7444_v18 }
 0x184   :  { %v7631_v13 = vor.u32 %v9967_v10, %v7628_v11  ;;  %v9910_v10 = vld [vmem:[#allocation12 + $0x24] sm:$0xf]  ;;  %v7396_v11 = vld [vmem:[#allocation12 + $0x30] sm:$0xf0] }
 0x185   :  { %v1035_v34 = vadd.f32 %v11002_v39, %v1022_v25  ;;  %v7563_v25 = vor.u32 %v9953_v22, %v7562_v19  ;;  %1822 = vmatpush.bf16.msra.mxu3 %v7447_v58 }
 0x186   :  { %1884 = vmatpush.bf16.msra.mxu0 %v7631_v13  ;;  %v7399_v13 = vor.u32 %v9910_v10, %v7396_v11 }
 0x187   :  { %v7277_v42 = vmul.f32 -1.442695, %v1035_v34  ;;  %1862 = vmatpush.bf16.msrb.mxu2 %v7563_v25  ;;  %v7428_v34 = vld [vmem:[#allocation12 + $0x70] sm:$0xf0]  ;;  %v9906_v25 = vld [vmem:[#allocation12 + $0x4] sm:$0xf] }
 0x188   :  { %v995_v47 = vpop.f32.mrf.mxu2  ;;  %v7431_v38 = vor.u32 %v9918_v33, %v7428_v34  ;;  %v980_v34 = vperm.slane %v11009_v6, 2 }
 0x189   :  { %10523 = vpow2.f32 %v7277_v42  ;;  %v996_v39 = vadd.f32 %v995_v47, %v978_v36  ;;  %v11014_v2 = vpop.f32.mrf.mxu3  ;;  %v7427_v36 = vor.u32 %v9920_v32, %v7426_v30  ;;  %v7547_v42 = vor.u32 %v9949_v40, %v7546_v46  ;;  %v7498_v32 = vld [vmem:[#allocation12 + $0xe8] sm:$0xf]  ;;  %v9935_v46 = vld [vmem:[#allocation12 + $0xec] sm:$0xf] }
 0x18a   :  { %v1023_v55 = vpop.f32.mrf.mxu0  ;;  %1885 = vmatpush.bf16.msra.mxu0 %v7615_v31  ;;  %v1329_v47 = vadd.f32 %v11014_v2, %v1301_v28  ;;  %1823 = vmatpush.bf16.msra.mxu3 %v7431_v38  ;;  %v9945_v2 = vld [vmem:[#allocation12 + $0x134] sm:$0xf0]  ;;  %v7380_v31 = vld [vmem:[#allocation12 + $0x10] sm:$0xf0] }
 0x18b   :  { %v1009_v60 = vadd.f32 %v10998_v35, %v996_v39  ;;  %v7442_v35 = vld [vmem:[#allocation12 + $0x80] sm:$0xf]  ;;  %1863 = vmatpush.bf16.msrb.mxu2 %v7547_v42  ;;  %v7411_v39 = vor.u32 %v9916_v51, %v7410_v49  ;;  %v7412_v55 = vld [vmem:[#allocation12 + $0x50] sm:$0xf0]  ;;  %v7531_v0 = vor.u32 %v9945_v2, %v7530_v56  ;;  %v9937_v38 = vld [vmem:[#allocation12 + $0xf4] sm:$0xf0] }
 0x18c   :  { %v7443_v16 = vor.u32 %v9924_v14, %v7442_v35  ;;  %v1368_v61 = vadd.f32 %v1366_v52, %v1329_v47  ;;  %v7415_v63 = vor.u32 %v9914_v54, %v7412_v55  ;;  %v7514_v35 = vld [vmem:[#allocation12 + $0x108] sm:$0xf]  ;;  %v9941_v14 = vld [vmem:[#allocation12 + $0x114] sm:$0xf0]  ;;  %v7500_v42 = vld [vmem:[#allocation12 + $0xf8] sm:$0xf0] }
 0x18d   :  { %v7276_v7 = vmul.f32 -1.442695, %v1009_v60  ;;  %v7580_v60 = vld [vmem:[#allocation12 + $0x198] sm:$0xf0]  ;;  %v7515_v19 = vor.u32 %v9941_v14, %v7514_v35  ;;  %v1300_v52 = vperm.slane %v11017_v12, 0 }
 0x18e   :  { %1796 = vmatpush.bf16.msra.mxu1 %v7443_v16  ;;  %1886 = vmatpush.bf16.msra.mxu0 %v7599_v48  ;;  %v7583_v8 = vor.u32 %v9955_v59, %v7580_v60  ;;  %v7375_v17 = vmul.f32 -1.442695, %v1368_v61  ;;  %v7548_v49 = vld [vmem:[#allocation12 + $0x158] sm:$0xf0]  ;;  %v7482_v54 = vld [vmem:[#allocation12 + $0xc8] sm:$0xf] }
 0x18f   :  { %v10524_v15 = vpop.eup %10523  ;;  %10525 = vpow2.f32 %v7276_v7  ;;  %v981_v7 = vperm.slane %v11009_v6, 3  ;;  %1824 = vmatpush.bf16.msra.mxu3 %v7415_v63  ;;  %1864 = vmatpush.bf16.msrb.mxu2 %v7531_v0  ;;  %v7503_v6 = vor.u32 %v9935_v46, %v7500_v42  ;;  %v9933_v55 = vld [vmem:[#allocation12 + $0xd4] sm:$0xf0]  ;;  %v9931_v59 = vld [vmem:[#allocation12 + $0xcc] sm:$0xf] }
 0x190   :  { %v11019_v20 = vadd.f32 1.0, %v10524_v15  ;;  %v997_v21 = vpop.f32.mrf.mxu2  ;;  %v9951_v15 = vld [vmem:[#allocation12 + $0x16c] sm:$0xf]  ;;  %v7483_v2 = vor.u32 %v9933_v55, %v7482_v54  ;;  %v7484_v60 = vld [vmem:[#allocation12 + $0xd8] sm:$0xf0] }
 0x191   :  { %v1330_v24 = vpop.f32.mrf.mxu3  ;;  %v7564_v21 = vld [vmem:[#allocation12 + $0x178] sm:$0xf0]  ;;  %v9943_v61 = vld [vmem:[#allocation12 + $0x12c] sm:$0xf] }
 0x192   :  { %v11024_v29 = vpop.f32.mrf.mxu0  ;;  %10527 = vrcp.f32 %v11019_v20  ;;  %1797 = vmatpush.bf16.msra.mxu1 %v7427_v36  ;;  %1887 = vmatpush.bf16.msra.mxu0 %v7583_v8  ;;  %v7567_v22 = vor.u32 %v9951_v15, %v7564_v21  ;;  %v9908_v24 = vld [vmem:[#allocation12 + $0xc] sm:$0xf0]  ;;  %v7383_v36 = vor.u32 %v9906_v25, %v7380_v31  ;;  %v9929_v8 = vld [vmem:[#allocation12 + $0xb4] sm:$0xf0]  ;;  %v7468_v14 = vld [vmem:[#allocation12 + $0xb8] sm:$0xf0]  ;;  %vm1118_vm13 = vweird.f32 %v11019_v20 }
 0x193   :  { %v7379_v30 = vor.u32 %v9908_v24, %v7378_v23  ;;  %1825 = vmatpush.bf16.msra.mxu3 %v7399_v13  ;;  %1865 = vmatpush.bf16.msrb.mxu2 %v7515_v19  ;;  %v1074_v44 = vadd.f32 %v11024_v29, %v981_v7  ;;  %v7466_v7 = vld [vmem:[#allocation12 + $0xa8] sm:$0xf]  ;;  %v9939_v15 = vld [vmem:[#allocation12 + $0x10c] sm:$0xf]  ;;  %v7420_v54 = vld [vmem:[#allocation12 + $0x58] sm:$0xf0] }
 0x194   :  { %v7467_v35 = vor.u32 %v9929_v8, %v7466_v7  ;;  %v9919_v42 = vld [vmem:[#allocation12 + $0x6c] sm:$0xf] }
 0x195   :  { %v10526_v41 = vpop.eup %10525 }
 0x196   :  { %v11027_v45 = vadd.f32 1.0, %v10526_v41  ;;  %1798 = vmatpush.bf16.msra.mxu1 %v7411_v39  ;;  %1888 = vmatpush.bf16.msra.mxu0 %v7567_v22  ;;  %v7499_v41 = vor.u32 %v9937_v38, %v7498_v32  ;;  %v7551_v39 = vor.u32 %v9947_v43, %v7548_v49  ;;  %v9921_v38 = vld [vmem:[#allocation12 + $0x74] sm:$0xf0]  ;;  %v7436_v43 = vld [vmem:[#allocation12 + $0x78] sm:$0xf0] }
 0x197   :  { %1826 = vmatpush.bf16.msra.mxu3 %v7383_v36  ;;  %v7434_v36 = vld [vmem:[#allocation12 + $0x68] sm:$0xf] }
 0x198   :  { %10529 = vrcp.f32 %v11027_v45  ;;  %v11032_v53 = vpop.f32.mrf.mxu2  ;;  %v11034_v57 = vpop.eup %10527  ;;  %v1103_v18 = vand.u32 2147483647, %v11027_v45  ;;  %v1105_v40 = vand.u32 2147483648, %v11027_v45  ;;  %vm1099_vm9 = vweird.f32 %v11027_v45 }
 0x199   :  { %v1114_v5 = vmul.f32 %v11034_v57, %v11019_v20  ;;  %10531 = vpow2.f32 %v7375_v17  ;;  %v1048_v29 = vadd.f32 %v11032_v53, %v980_v34  ;;  %vm1119_vm12 = vweird.f32 %v11034_v57  ;;  %v7516_v17 = vld [vmem:[#allocation12 + $0x118] sm:$0xf0] }
 0x19a   :  { %v1075_v62 = vpop.f32.mrf.mxu0  ;;  %1799 = vmatpush.bf16.msra.mxu1 %v7395_v9  ;;  %vm1104_vm11 = vcmp.eq.f32.partialorder %v1103_v18, 8.507059e+37  ;;  %v1106_v0 = vor.u32 1.1754944e-38, %v1105_v40  ;;  %1889 = vmatpush.bf16.msra.mxu0 %v7551_v39  ;;  %v1087_v53 = vadd.f32 %v11004_v1, %v1074_v44  ;;  %v9927_v9 = vld [vmem:[#allocation12 + $0xac] sm:$0xf]  ;;  %vm11073_vm14 = vmor %vm1118_vm13, %vm1119_vm12  ;;  %v7519_v23 = vor.u32 %v9939_v15, %v7516_v17  ;;  %v7452_v34 = vld [vmem:[#allocation12 + $0x98] sm:$0xf0] }
 0x19b   :  { %v1115_v26 = vsub.f32 1.0, %v1114_v5  ;;  %v1124_v62 = vand.u32 2147483648, %v11019_v20  ;;  %1871 = vmatpush.bf16.msrb.mxu3 %v7503_v6  ;;  %v7535_v5 = vor.u32 %v9943_v61, %v7532_v3  ;;  %v1061_v18 = vadd.f32 %v11000_v37, %v1048_v29  ;;  %v9925_v37 = vld [vmem:[#allocation12 + $0x94] sm:$0xf0]  ;;  %v9915_v39 = vld [vmem:[#allocation12 + $0x4c] sm:$0xf] }
 0x19c   :  { %v7471_v22 = vor.u32 %v9927_v9, %v7468_v14  ;;  %v9917_v6 = vld [vmem:[#allocation12 + $0x54] sm:$0xf0]  ;;  %v9991_v29 = vld [vmem:[#allocation8 + $0xac] sm:$0xf]  ;;  %v7402_v61 = vld [vmem:[#allocation12 + $0x28] sm:$0xf] }
 0x19d   :  { %v1116_v51 = vmul.f32 %v11034_v57, %v1115_v26  ;;  %v1125_v31 = vor.u32 1.1754944e-38, %v1124_v62  ;;  %v9913_v62 = vld [vmem:[#allocation12 + $0x34] sm:$0xf0]  ;;  %v9911_v3 = vld [vmem:[#allocation12 + $0x2c] sm:$0xf] }
 0x19e   :  { %v11039_v16 = vpop.eup %10529  ;;  %1800 = vmatpush.bf16.msra.mxu1 %v7379_v30  ;;  %1890 = vmatpush.bf16.msra.mxu0 %v7535_v5  ;;  %v9923_v30 = vld [vmem:[#allocation12 + $0x8c] sm:$0xf]  ;;  %v7403_v5 = vor.u32 %v9913_v62, %v7402_v61  ;;  %v7388_v15 = vld [vmem:[#allocation12 + $0x18] sm:$0xf0] }
 0x19f   :  { %v1095_v58 = vmul.f32 %v11039_v16, %v11027_v45  ;;  %vm1100_vm8 = vweird.f32 %v11039_v16  ;;  %v7487_v45 = vor.u32 %v9931_v59, %v7484_v60  ;;  %v1117_v10 = vadd.f32 %v11034_v57, %v1116_v51  ;;  %v7722_v60 = vld [vmem:[#allocation8 + $0xb4] sm:$0xf0]  ;;  %v9988_v9 = vld [vmem:[#allocation8 + $0x94] sm:$0xf] }
 0x1a0   :  { %v1049_v28 = vpop.f32.mrf.mxu2  ;;  %vm11059_vm10 = vmor %vm1099_vm9, %vm1100_vm8  ;;  %v7455_v46 = vor.u32 %v9923_v30, %v7452_v34  ;;  %v7439_v51 = vor.u32 %v9919_v42, %v7436_v43  ;;  %v9907_v14 = vld [vmem:[#allocation12 + $0xc] sm:$0xf]  ;;  %v1302_v30 = vperm.slane %v11017_v12, 2 }
 0x1a1   :  { %v1096_v33 = vsub.f32 1.0, %v1095_v58  ;;  %v1122_v58 = vand.u32 2147483647, %v11019_v20  ;;  %1872 = vmatpush.bf16.msrb.mxu3 %v7487_v45  ;;  %v7450_v28 = vld [vmem:[#allocation12 + $0x88] sm:$0xf]  ;;  %v1121_v32 = vsel %vm11073_vm14, %v11034_v57, %v1117_v10  ;;  %v7435_v57 = vor.u32 %v9921_v38, %v7434_v36 }
 0x1a2   :  { %1845 = vmatpush.bf16.msrb.mxu1 %v7499_v41  ;;  %1891 = vmatpush.bf16.msra.mxu0 %v7519_v23  ;;  %v7423_v45 = vor.u32 %v9915_v39, %v7420_v54  ;;  %v7710_v10 = vld [vmem:[#allocation8 + $0x9c] sm:$0xf0]  ;;  %v9979_v36 = vld [vmem:[#allocation8 + $0x4c] sm:$0xf]  ;;  %v7674_v38 = vld [vmem:[#allocation8 + $0x54] sm:$0xf0] }
 0x1a3   :  { %v1097_v47 = vmul.f32 %v11039_v16, %v1096_v33  ;;  %v11049_v48 = vpop.f32.mrf.mxu0  ;;  %v7451_v33 = vor.u32 %v9925_v37, %v7450_v28  ;;  %vm1123_vm15 = vcmp.eq.f32.partialorder %v1122_v58, 8.507059e+37  ;;  %v7391_v58 = vor.u32 %v9907_v14, %v7388_v15  ;;  %v7686_v28 = vld [vmem:[#allocation8 + $0x6c] sm:$0xf0] }
 0x1a4   :  { %v1126_v41 = vsel %vm1123_vm15, %v1125_v31, %v1121_v32 }
 0x1a5   :  { %v1098_v56 = vadd.f32 %v11039_v16, %v1097_v47  ;;  %1873 = vmatpush.bf16.msrb.mxu3 %v7471_v22  ;;  %v7418_v47 = vld [vmem:[#allocation12 + $0x48] sm:$0xf]  ;;  %v1131_v49 = vsub.f32 1.0, %v1126_v41 }
 0x1a6   :  { %1846 = vmatpush.bf16.msrb.mxu1 %v7483_v2  ;;  %v7419_v2 = vor.u32 %v9917_v6, %v7418_v47  ;;  %v1389_v47 = vrot.slane %v11021_v27, 2 }
 0x1a7   :  { %v1102_v4 = vsel %vm11059_vm10, %v11039_v16, %v1098_v56  ;;  %v10532_v16 = vpop.eup %10531  ;;  %v1133_v56 = vmul.f32 0.0, %v1126_v41  ;;  %v1342_v41 = vadd.f32 %v11049_v48, %v1302_v30  ;;  %v7680_v30 = vld [vmem:[#allocation8 + $0x50] sm:$0xf] }
 0x1a8   :  { %v1107_v11 = vsel %vm1104_vm11, %v1106_v0, %v1102_v4  ;;  %v1315_v13 = vpop.f32.mrf.mxu2  ;;  %v11082_v40 = vadd.f32 1.0, %v10532_v16  ;;  %v7725_v4 = vor.u32 %v9991_v29, %v7722_v60  ;;  %v7698_v16 = vld [vmem:[#allocation8 + $0x84] sm:$0xf0]  ;;  %v7638_v60 = vld [vmem:[#allocation8 + $0xc] sm:$0xf0] }
 0x1a9   :  { %v1128_v1 = vmul.f32 %v1107_v11, %v1087_v53  ;;  %v1316_v19 = vadd.f32 %v1315_v13, %v1300_v52  ;;  %1874 = vmatpush.bf16.msrb.mxu3 %v7455_v46  ;;  %v7404_v53 = vld [vmem:[#allocation12 + $0x38] sm:$0xf0]  ;;  %v7386_v13 = vld [vmem:[#allocation12 + $0x8] sm:$0xf]  ;;  %v7650_v29 = vld [vmem:[#allocation8 + $0x24] sm:$0xf0] }
 0x1aa   :  { %1847 = vmatpush.bf16.msrb.mxu1 %v7467_v35  ;;  %v7407_v11 = vor.u32 %v9911_v3, %v7404_v53  ;;  %v9909_v35 = vld [vmem:[#allocation12 + $0x14] sm:$0xf0]  ;;  %vm1378_vm5 = vweird.f32 %v11082_v40  ;;  %v1382_v48 = vand.u32 2147483647, %v11082_v40  ;;  %v7720_v3 = vld [vmem:[#allocation8 + $0xa8] sm:$0xf] }
 0x1ab   :  { %v1129_v24 = vadd.f32 %v1128_v1, %v1061_v18  ;;  %v1345_v25 = vadd.f32 %v1316_v19, %v11021_v27  ;;  %v1343_v26 = vpop.f32.mrf.mxu0  ;;  %v7713_v1 = vor.u32 %v9988_v9, %v7710_v10  ;;  %v7387_v18 = vor.u32 %v9909_v35, %v7386_v13  ;;  %v9985_v19 = vld [vmem:[#allocation8 + $0x7c] sm:$0xf]  ;;  %v9992_v53 = vld [vmem:[#allocation8 + $0xb0] sm:$0xf0]  ;;  %v7716_v35 = vld [vmem:[#allocation8 + $0x98] sm:$0xf] }
 0x1ac   :  { %v9982_v26 = vld [vmem:[#allocation8 + $0x64] sm:$0xf]  ;;  %vm1383_vm7 = vcmp.eq.f32.partialorder %v1382_v48, 8.507059e+37  ;;  %v9989_v13 = vld [vmem:[#allocation8 + $0x98] sm:$0xf0] }
 0x1ad   :  { %10533 = vtanh.f32 %v1129_v24  ;;  %v7374_v20 = vmul.f32 -1.442695, %v1345_v25  ;;  %1875 = vmatpush.bf16.msrb.mxu3 %v7439_v51  ;;  %v7701_v24 = vor.u32 %v9985_v19, %v7698_v16  ;;  %v7689_v34 = vor.u32 %v9982_v26, %v7686_v28  ;;  %v7662_v51 = vld [vmem:[#allocation8 + $0x3c] sm:$0xf0]  ;;  %v9987_v19 = vld [vmem:[#allocation8 + $0x88] sm:$0xf0] }
 0x1ae   :  { %1848 = vmatpush.bf16.msrb.mxu1 %v7451_v33  ;;  %v7672_v28 = vld [vmem:[#allocation8 + $0x48] sm:$0xf]  ;;  %v9972_v48 = vld [vmem:[#allocation8 + $0x10] sm:$0xf0] }
 0x1af   :  { %10535 = vpow2.f32 %v7374_v20 }
 0x1b0   :  { %v1317_v44 = vpop.f32.mrf.mxu2  ;;  %10537 = vrcp.f32 %v11082_v40 }
 0x1b1   :  { %1876 = vmatpush.bf16.msrb.mxu3 %v7423_v45  ;;  %v7677_v44 = vor.u32 %v9979_v36, %v7674_v38  ;;  %v7668_v36 = vld [vmem:[#allocation8 + $0x38] sm:$0xf]  ;;  %v9978_v38 = vld [vmem:[#allocation8 + $0x40] sm:$0xf0] }
 0x1b2   :  { %1849 = vmatpush.bf16.msrb.mxu1 %v7435_v57  ;;  %v1384_v57 = vand.u32 2147483648, %v11082_v40 }
 0x1b3   :  { %v10534_v52 = vpop.eup %10533 }
 0x1b4   :  { %v1132_v55 = vmul.f32 %v10534_v52, %v1131_v49  ;;  %v9976_v49 = vld [vmem:[#allocation8 + $0x34] sm:$0xf] }
 0x1b5   :  { %v10536_v59 = vpop.eup %10535  ;;  %1877 = vmatpush.bf16.msrb.mxu3 %v7407_v11  ;;  %v7665_v54 = vor.u32 %v9976_v49, %v7662_v51  ;;  %v7708_v11 = vld [vmem:[#allocation8 + $0x90] sm:$0xf]  ;;  %v9971_v49 = vld [vmem:[#allocation8 + $0x8] sm:$0xf0]  ;;  %v7644_v51 = vld [vmem:[#allocation8 + $0x8] sm:$0xf] }
 0x1b6   :  { %v1349_v63 = vadd.f32 1.0, %v10536_v59  ;;  %v11085_v0 = vadd.f32 %v1133_v56, %v1132_v55  ;;  %1850 = vmatpush.bf16.msrb.mxu1 %v7419_v2  ;;  %v11088_v7 = vpop.eup %10537  ;;  %v1385_v55 = vor.u32 1.1754944e-38, %v1384_v57  ;;  %v9973_v56 = vld [vmem:[#allocation8 + $0x1c] sm:$0xf]  ;;  %v9970_v59 = vld [vmem:[#allocation8 + $0x4] sm:$0xf]  ;;  %v7709_v14 = vor.u32 %v9989_v13, %v7708_v11 }
 0x1b7   :  { %v1374_v17 = vmul.f32 %v11088_v7, %v11082_v40  ;;  %vm1379_vm4 = vweird.f32 %v11088_v7  ;;  %v7653_v2 = vor.u32 %v9973_v56, %v7650_v29  ;;  %v7958_v56 = vld [vmem:[#allocation12 + $0x1c0] sm:$0xf]  ;;  %v10050_v13 = vld [vmem:[#allocation12 + $0x1c4] sm:$0xf] }
 0x1b8   :  { %10539 = vrcp.f32 %v1349_v63  ;;  %1135 = vst [vmem:[#allocation14] sm:$0x1] %v11085_v0  ;;  %v1398_v8 = vpack.c.bf16 %v11085_v0, %v11085_v0  ;;  %v1361_v37 = vand.u32 2147483648, %v1349_v63  ;;  %v1359_v32 = vand.u32 2147483647, %v1349_v63  ;;  %vm1380_vm6 = vmor %vm1378_vm5, %vm1379_vm4 }
 0x1b9   :  { %v1375_v23 = vsub.f32 1.0, %v1374_v17  ;;  %1878 = vmatpush.bf16.msrb.mxu3 %v7391_v58  ;;  %vm1355_vm1 = vweird.f32 %v1349_v63  ;;  %v7696_v17 = vld [vmem:[#allocation8 + $0x78] sm:$0xf]  ;;  %v7684_v58 = vld [vmem:[#allocation8 + $0x60] sm:$0xf] }
 0x1ba   :  { %1814 = vmatmul.bf16.vlgmr.msra.gmra.mxu2 %v1398_v8  ;;  %1840 = vmatmul.bf16.vlgmr.msrb.gmra.mxu0 %v1398_v8  ;;  %v1362_v46 = vor.u32 1.1754944e-38, %v1361_v37  ;;  %vm1360_vm3 = vcmp.eq.f32.partialorder %v1359_v32, 8.507059e+37  ;;  %v9980_v37 = vld [vmem:[#allocation8 + $0x50] sm:$0xf0] }
 0x1bb   :  { %2126 = vmatpush.bf16.msra.mxu2 %v7725_v4  ;;  %1851 = vmatpush.bf16.msrb.mxu1 %v7403_v5  ;;  %v1376_v33 = vmul.f32 %v11088_v7, %v1375_v23  ;;  %v7728_v4 = vld [vmem:[#allocation8 + $0xb0] sm:$0xf]  ;;  %v9993_v5 = vld [vmem:[#allocation8 + $0xb8] sm:$0xf0]  ;;  %v7692_v23 = vld [vmem:[#allocation8 + $0x68] sm:$0xf]  ;;  %v7673_v32 = vor.u32 %v9980_v37, %v7672_v28 }
 0x1bc   :  { %v7729_v10 = vor.u32 %v9993_v5, %v7728_v4  ;;  %v10054_v4 = vld [vmem:[#allocation12 + $0x1e4] sm:$0xf]  ;;  %v7976_v5 = vld [vmem:[#allocation12 + $0x1f0] sm:$0xf0]  ;;  %v11129_v37 = vld [vmem:[%s11902_s6] sm:$0xf] }
 0x1bd   :  { %v1377_v43 = vadd.f32 %v11088_v7, %v1376_v33 }
 0x1be   :  { %v10540_v21 = vpop.eup %10539 }
 0x1bf   :  { %v1351_v22 = vmul.f32 %v10540_v21, %v1349_v63  ;;  %2127 = vmatpush.bf16.msra.mxu2 %v7713_v1  ;;  %1852 = vmatpush.bf16.msrb.mxu1 %v7387_v18  ;;  %vm1356_vm0 = vweird.f32 %v10540_v21  ;;  %v1381_v39 = vsel %vm1380_vm6, %v11088_v7, %v1377_v43  ;;  %v7641_v63 = vor.u32 %v9970_v59, %v7638_v60  ;;  %v9986_v1 = vld [vmem:[#allocation8 + $0x80] sm:$0xf0]  ;;  %v7704_v18 = vld [vmem:[#allocation8 + $0x80] sm:$0xf]  ;;  %v7942_v60 = vld [vmem:[#allocation12 + $0x1a0] sm:$0xf] }
 0x1c0   :  { %vm1357_vm2 = vmor %vm1355_vm1, %vm1356_vm0  ;;  %v1386_v27 = vsel %vm1383_vm7, %v1385_v55, %v1381_v39  ;;  %v7697_v16 = vor.u32 %v9986_v1, %v7696_v17  ;;  %v9974_v43 = vld [vmem:[#allocation8 + $0x20] sm:$0xf0]  ;;  %v7645_v39 = vor.u32 %v9972_v48, %v7644_v51  ;;  %v10056_v55 = vld [vmem:[#allocation12 + $0x1ec] sm:$0xf0] }
 0x1c1   :  { %v1352_v25 = vsub.f32 1.0, %v1351_v22  ;;  %v1393_v61 = vsub.f32 1.0, %v1386_v27  ;;  %v1395_v62 = vmul.f32 %v1386_v27, %v10985_v50  ;;  %v9990_v50 = vld [vmem:[#allocation8 + $0xa0] sm:$0xf0]  ;;  %v9983_v22 = vld [vmem:[#allocation8 + $0x68] sm:$0xf0] }
 0x1c2   :  { %v7717_v15 = vor.u32 %v9990_v50, %v7716_v35  ;;  %v10052_v27 = vld [vmem:[#allocation12 + $0x1cc] sm:$0xf0]  ;;  %v7960_v35 = vld [vmem:[#allocation12 + $0x1d0] sm:$0xf0] }
 0x1c3   :  { %v1353_v31 = vmul.f32 %v10540_v21, %v1352_v25  ;;  %2128 = vmatpush.bf16.msra.mxu2 %v7701_v24  ;;  %v9984_v24 = vld [vmem:[#allocation8 + $0x70] sm:$0xf0]  ;;  %v7685_v25 = vor.u32 %v9983_v22, %v7684_v58  ;;  %v7963_v50 = vor.u32 %v10050_v13, %v7960_v35  ;;  %v10036_v17 = vld [vmem:[#allocation12 + $0x14c] sm:$0xf0]  ;;  %v7878_v58 = vld [vmem:[#allocation12 + $0x120] sm:$0xf] }
 0x1c4   :  { %v7693_v26 = vor.u32 %v9984_v24, %v7692_v23  ;;  %v10032_v22 = vld [vmem:[#allocation12 + $0x12c] sm:$0xf0]  ;;  %v10042_v24 = vld [vmem:[#allocation12 + $0x184] sm:$0xf] }
 0x1c5   :  { %v1354_v20 = vadd.f32 %v10540_v21, %v1353_v31  ;;  %v9981_v31 = vld [vmem:[#allocation8 + $0x58] sm:$0xf0]  ;;  %v7879_v23 = vor.u32 %v10032_v22, %v7878_v58  ;;  %v10016_v13 = vld [vmem:[#allocation12 + $0xac] sm:$0xf0]  ;;  %v10014_v35 = vld [vmem:[#allocation12 + $0xa4] sm:$0xf] }
 0x1c6   :  { %v7681_v33 = vor.u32 %v9981_v31, %v7680_v30  ;;  %v7862_v30 = vld [vmem:[#allocation12 + $0x100] sm:$0xf]  ;;  %v10028_v31 = vld [vmem:[#allocation12 + $0x10c] sm:$0xf0] }
 0x1c7   :  { %v1358_v42 = vsel %vm1357_vm2, %v10540_v21, %v1354_v20  ;;  %2129 = vmatpush.bf16.msra.mxu2 %v7689_v34  ;;  %v7705_v21 = vor.u32 %v9987_v19, %v7704_v18  ;;  %v7660_v34 = vld [vmem:[#allocation8 + $0x30] sm:$0xf]  ;;  %v9977_v20 = vld [vmem:[#allocation8 + $0x38] sm:$0xf0]  ;;  %v10046_v19 = vld [vmem:[#allocation12 + $0x1a4] sm:$0xf] }
 0x1c8   :  { %v1363_v12 = vsel %vm1360_vm3, %v1362_v46, %v1358_v42  ;;  %v7661_v46 = vor.u32 %v9977_v20, %v7660_v34  ;;  %v7648_v42 = vld [vmem:[#allocation8 + $0x18] sm:$0xf]  ;;  %v10038_v34 = vld [vmem:[#allocation12 + $0x164] sm:$0xf]  ;;  %v7912_v20 = vld [vmem:[#allocation12 + $0x170] sm:$0xf0] }
 0x1c9   :  { %v1388_v6 = vmul.f32 %v1363_v12, %v1342_v41  ;;  %v7669_v41 = vor.u32 %v9978_v38, %v7668_v36  ;;  %v7656_v12 = vld [vmem:[#allocation8 + $0x20] sm:$0xf]  ;;  %v7649_v57 = vor.u32 %v9974_v43, %v7648_v42  ;;  %v7982_v36 = vld [vmem:[#allocation12 + $0x1e8] sm:$0xf]  ;;  %v7915_v38 = vor.u32 %v10038_v34, %v7912_v20  ;;  %v7846_v43 = vld [vmem:[#allocation12 + $0xe0] sm:$0xf] }
 0x1ca   :  { %1866 = vmatmul.bf16.vlgmr.msrb.gmra.mxu2 %v1398_v8  ;;  %1892 = vmatmul.bf16.vlgmr.msra.gmra.mxu0 %v1398_v8  ;;  %v7721_v8 = vor.u32 %v9992_v53, %v7720_v3  ;;  %v10010_v34 = vld [vmem:[#allocation12 + $0x84] sm:$0xf] }
 0x1cb   :  { %v1391_v52 = vadd.f32 %v1389_v47, %v1388_v6  ;;  %2130 = vmatpush.bf16.msra.mxu2 %v7677_v44  ;;  %v9975_v44 = vld [vmem:[#allocation8 + $0x28] sm:$0xf0]  ;;  %v7636_v6 = vld [vmem:[#allocation8] sm:$0xf] }
 0x1cc   :  { %v7657_v47 = vor.u32 %v9975_v44, %v7656_v12  ;;  %v10024_v12 = vld [vmem:[#allocation12 + $0xec] sm:$0xf0]  ;;  %v10022_v44 = vld [vmem:[#allocation12 + $0xe4] sm:$0xf] }
 0x1cd   :  { %10541 = vtanh.f32 %v1391_v52  ;;  %v7637_v52 = vor.u32 %v9971_v49, %v7636_v6  ;;  %v10034_v6 = vld [vmem:[#allocation12 + $0x144] sm:$0xf]  ;;  %v7896_v49 = vld [vmem:[#allocation12 + $0x150] sm:$0xf0] }
 0x1ce   :  { %v7899_v48 = vor.u32 %v10034_v6, %v7896_v49  ;;  %v7968_v6 = vld [vmem:[#allocation12 + $0x1d8] sm:$0xf0] }
 0x1cf   :  { %2131 = vmatpush.bf16.msra.mxu2 %v7665_v54  ;;  %v7974_v54 = vld [vmem:[#allocation12 + $0x1e0] sm:$0xf] }
 0x1d0   :  { %v7975_v29 = vor.u32 %v10056_v55, %v7974_v54 }
 0x1d3   :  { %v10542_v40 = vpop.eup %10541  ;;  %2132 = vmatpush.bf16.msra.mxu2 %v7653_v2  ;;  %v7959_v2 = vor.u32 %v10052_v27, %v7958_v56  ;;  %v10020_v27 = vld [vmem:[#allocation12 + $0xcc] sm:$0xf0] }
 0x1d4   :  { %v1394_v45 = vmul.f32 %v10542_v40, %v1393_v61  ;;  %v10048_v61 = vld [vmem:[#allocation12 + $0x1ac] sm:$0xf0] }
 0x1d5   :  { %v7943_v40 = vor.u32 %v10048_v61, %v7942_v60 }
 0x1d6   :  { %v11105_v7 = vadd.f32 %v1395_v62, %v1394_v45  ;;  %v7926_v62 = vld [vmem:[#allocation12 + $0x180] sm:$0xf] }
 0x1d7   :  { %2133 = vmatpush.bf16.msra.mxu2 %v7641_v63  ;;  %v10044_v63 = vld [vmem:[#allocation12 + $0x18c] sm:$0xf0] }
 0x1d8   :  { %v11109_v9 = vpack.c.bf16 %v11105_v7, %v11105_v7  ;;  %v7927_v3 = vor.u32 %v10044_v63, %v7926_v62  ;;  %v10030_v62 = vld [vmem:[#allocation12 + $0x124] sm:$0xf]  ;;  %v7880_v63 = vld [vmem:[#allocation12 + $0x130] sm:$0xf0] }
 0x1da   :  { %1801 = vmatmul.bf16.vlgmr.msra.gmra.mxu1 %v11109_v9  ;;  %1827 = vmatmul.bf16.vlgmr.msra.gmra.mxu3 %v11109_v9 }
 0x1db   :  { %2134 = vmatmul.bf16.vlgmr.msra.gmra.mxu2 %v11109_v9  ;;  %2113 = vmatpush.bf16.msra.mxu1 %v7721_v8  ;;  %v7979_v8 = vor.u32 %v10054_v4, %v7976_v5  ;;  %v7950_v4 = vld [vmem:[#allocation12 + $0x1a8] sm:$0xf]  ;;  %v10049_v5 = vld [vmem:[#allocation12 + $0x1b4] sm:$0xf0] }
 0x1dc   :  { %2139 = vmatpush.bf16.msra.mxu3 %v7729_v10  ;;  %v10040_v10 = vld [vmem:[#allocation12 + $0x16c] sm:$0xf0] }
 0x1df   :  { %2114 = vmatpush.bf16.msra.mxu1 %v7709_v14 }
 0x1e0   :  { %2140 = vmatpush.bf16.msra.mxu3 %v7717_v15  ;;  %v7894_v15 = vld [vmem:[#allocation12 + $0x140] sm:$0xf] }
 0x1e1   :  { %v7895_v18 = vor.u32 %v10036_v17, %v7894_v15  ;;  %v7816_v15 = vld [vmem:[#allocation12 + $0xb0] sm:$0xf0] }
 0x1e3   :  { %2115 = vmatpush.bf16.msra.mxu1 %v7697_v16  ;;  %v7944_v16 = vld [vmem:[#allocation12 + $0x1b0] sm:$0xf0] }
 0x1e4   :  { %2141 = vmatpush.bf16.msra.mxu3 %v7705_v21  ;;  %v7947_v21 = vor.u32 %v10046_v19, %v7944_v16  ;;  %v10026_v19 = vld [vmem:[#allocation12 + $0x104] sm:$0xf]  ;;  %v7864_v16 = vld [vmem:[#allocation12 + $0x110] sm:$0xf0] }
 0x1e5   :  { %v7867_v22 = vor.u32 %v10026_v19, %v7864_v16 }
 0x1e7   :  { %2116 = vmatpush.bf16.msra.mxu1 %v7685_v25  ;;  %v7928_v25 = vld [vmem:[#allocation12 + $0x190] sm:$0xf0] }
 0x1e8   :  { %2142 = vmatpush.bf16.msra.mxu3 %v7693_v26  ;;  %v7931_v26 = vor.u32 %v10042_v24, %v7928_v25  ;;  %v10055_v24 = vld [vmem:[#allocation12 + $0x1ec] sm:$0xf]  ;;  %v7984_v25 = vld [vmem:[#allocation12 + $0x1f8] sm:$0xf0] }
 0x1ea   :  { %1853 = vmatmul.bf16.vlgmr.msrb.gmra.mxu1 %v11109_v9  ;;  %1879 = vmatmul.bf16.vlgmr.msrb.gmra.mxu3 %v11109_v9 }
 0x1eb   :  { %2117 = vmatpush.bf16.msra.mxu1 %v7673_v32 }
 0x1ec   :  { %2143 = vmatpush.bf16.msra.mxu3 %v7681_v33  ;;  %v7863_v33 = vor.u32 %v10028_v31, %v7862_v30  ;;  %v7987_v31 = vor.u32 %v10055_v24, %v7984_v25 }
 0x1ef   :  { %2118 = vmatpush.bf16.msra.mxu1 %v7661_v46  ;;  %v10057_v46 = vld [vmem:[#allocation12 + $0x1f4] sm:$0xf0] }
 0x1f0   :  { %2144 = vmatpush.bf16.msra.mxu3 %v7669_v41  ;;  %v1785_v41 = vperm.slane %v11129_v37, 0  ;;  %v7983_v42 = vor.u32 %v10057_v46, %v7982_v36  ;;  %v11135_v36 = vld [vmem:[#allocation11] sm:$0x7]  ;;  %v7800_v46 = vld [vmem:[#allocation12 + $0x90] sm:$0xf0] }
 0x1f3   :  { %2119 = vmatpush.bf16.msra.mxu1 %v7649_v57  ;;  %v7847_v57 = vor.u32 %v10024_v12, %v7846_v43  ;;  %v10041_v43 = vld [vmem:[#allocation12 + $0x174] sm:$0xf0] }
 0x1f4   :  { %2145 = vmatpush.bf16.msra.mxu3 %v7657_v47  ;;  %v7848_v47 = vld [vmem:[#allocation12 + $0xf0] sm:$0xf0] }
 0x1f5   :  { %v7851_v51 = vor.u32 %v10022_v44, %v7848_v47  ;;  %2600 = vmatpush.bf16.msrb.mxu0 %v7847_v57  ;;  %v10051_v57 = vld [vmem:[#allocation12 + $0x1cc] sm:$0xf]  ;;  %v2108_v47 = vperm.slane %v11135_v36, 1 }
 0x1f7   :  { %2120 = vmatpush.bf16.msra.mxu1 %v7637_v52  ;;  %v7966_v52 = vld [vmem:[#allocation12 + $0x1c8] sm:$0xf]  ;;  %2626 = vmatpush.bf16.msrb.mxu2 %v7851_v51  ;;  %v7971_v51 = vor.u32 %v10051_v57, %v7968_v6 }
 0x1f8   :  { %2146 = vmatpush.bf16.msra.mxu3 %v7645_v39  ;;  %v10053_v39 = vld [vmem:[#allocation12 + $0x1d4] sm:$0xf0] }
 0x1f9   :  { %v7967_v55 = vor.u32 %v10053_v39, %v7966_v52  ;;  %v10008_v52 = vld [vmem:[#allocation12 + $0x6c] sm:$0xf0]  ;;  %v10006_v39 = vld [vmem:[#allocation12 + $0x64] sm:$0xf] }
 0x1fa   :  { %2121 = vmatmul.bf16.vlgmr.msra.gmra.mxu1 %v11109_v9 }
 0x1fb   :  { %2147 = vmatmul.bf16.vlgmr.msra.gmra.mxu3 %v11109_v9  ;;  %2613 = vmatpush.bf16.msrb.mxu1 %v7975_v29  ;;  %v7910_v9 = vld [vmem:[#allocation12 + $0x160] sm:$0xf] }
 0x1fc   :  { %2639 = vmatpush.bf16.msrb.mxu3 %v7979_v8  ;;  %v7911_v11 = vor.u32 %v10040_v10, %v7910_v9  ;;  %v7830_v29 = vld [vmem:[#allocation12 + $0xc0] sm:$0xf]  ;;  %v1786_v9 = vperm.slane %v11129_v37, 1  ;;  %v7951_v10 = vor.u32 %v10049_v5, %v7950_v4 }
 0x1fd   :  { %v7831_v61 = vor.u32 %v10020_v27, %v7830_v29  ;;  %v7784_v29 = vld [vmem:[#allocation12 + $0x70] sm:$0xf0]  ;;  %v7902_v27 = vld [vmem:[#allocation12 + $0x148] sm:$0xf]  ;;  %v7766_v5 = vld [vmem:[#allocation12 + $0x40] sm:$0xf] }
 0x1ff   :  { %2614 = vmatpush.bf16.msrb.mxu1 %v7959_v2  ;;  %v10018_v2 = vld [vmem:[#allocation12 + $0xc4] sm:$0xf]  ;;  %2601 = vmatpush.bf16.msrb.mxu0 %v7831_v61  ;;  %v10037_v61 = vld [vmem:[#allocation12 + $0x154] sm:$0xf0] }
 0x200   :  { %2640 = vmatpush.bf16.msrb.mxu3 %v7963_v50 }
 0x203   :  { %2615 = vmatpush.bf16.msrb.mxu1 %v7943_v40  ;;  %v7832_v40 = vld [vmem:[#allocation12 + $0xd0] sm:$0xf0] }
 0x204   :  { %2641 = vmatpush.bf16.msrb.mxu3 %v7947_v21  ;;  %v7934_v21 = vld [vmem:[#allocation12 + $0x188] sm:$0xf] }
 0x207   :  { %2616 = vmatpush.bf16.msrb.mxu1 %v7927_v3  ;;  %v7835_v3 = vor.u32 %v10018_v2, %v7832_v40  ;;  %v10047_v40 = vld [vmem:[#allocation12 + $0x1ac] sm:$0xf] }
 0x208   :  { %2642 = vmatpush.bf16.msrb.mxu3 %v7931_v26 }
 0x209   :  { %2627 = vmatpush.bf16.msrb.mxu2 %v7835_v3 }
 0x20b   :  { %2617 = vmatpush.bf16.msrb.mxu1 %v7911_v11  ;;  %v7814_v11 = vld [vmem:[#allocation12 + $0xa0] sm:$0xf] }
 0x20c   :  { %2643 = vmatpush.bf16.msrb.mxu3 %v7915_v38 }
 0x20f   :  { %2618 = vmatpush.bf16.msrb.mxu1 %v7895_v18  ;;  %v7819_v18 = vor.u32 %v10014_v35, %v7816_v15  ;;  %v7886_v35 = vld [vmem:[#allocation12 + $0x128] sm:$0xf]  ;;  %v10033_v15 = vld [vmem:[#allocation12 + $0x134] sm:$0xf0] }
 0x210   :  { %2644 = vmatpush.bf16.msrb.mxu3 %v7899_v48  ;;  %v7782_v48 = vld [vmem:[#allocation12 + $0x60] sm:$0xf]  ;;  %v7887_v16 = vor.u32 %v10033_v15, %v7886_v35 }
 0x211   :  { %2628 = vmatpush.bf16.msrb.mxu2 %v7819_v18  ;;  %v7936_v18 = vld [vmem:[#allocation12 + $0x198] sm:$0xf0] }
 0x213   :  { %2619 = vmatpush.bf16.msrb.mxu1 %v7879_v23  ;;  %v10045_v23 = vld [vmem:[#allocation12 + $0x194] sm:$0xf0] }
 0x214   :  { %v7935_v30 = vor.u32 %v10045_v23, %v7934_v21 }
 0x217   :  { %2620 = vmatpush.bf16.msrb.mxu1 %v7863_v33  ;;  %v10012_v33 = vld [vmem:[#allocation12 + $0x8c] sm:$0xf0] }
 0x21b   :  { %2665 = vmatpush.bf16.msra.mxu1 %v7983_v42  ;;  %v7918_v42 = vld [vmem:[#allocation12 + $0x168] sm:$0xf] }
 0x21c   :  { %v7919_v44 = vor.u32 %v10041_v43, %v7918_v42 }
 0x21f   :  { %2666 = vmatpush.bf16.msra.mxu1 %v7967_v55 }
 0x223   :  { %2667 = vmatpush.bf16.msra.mxu1 %v7951_v10 }
 0x227   :  { %2668 = vmatpush.bf16.msra.mxu1 %v7935_v30  ;;  %v7752_v30 = vld [vmem:[#allocation12 + $0x30] sm:$0xf0] }
 0x22b   :  { %2669 = vmatpush.bf16.msra.mxu1 %v7919_v44 }
 0x237   :  { %v11118_v59 = vpop.f32.mrf.mxu0 }
 0x23d   :  { %v11120_v45 = vpop.f32.mrf.mxu2 }
 0x23f   :  { %v1843_v53 = vpop.f32.mrf.mxu0 }
 0x240   :  { %v7883_v53 = vor.u32 %v10030_v62, %v7880_v63  ;;  %v7952_v62 = vld [vmem:[#allocation12 + $0x1b8] sm:$0xf0] }
 0x241   :  { %v7955_v4 = vor.u32 %v10047_v40, %v7952_v62  ;;  %v10025_v62 = vld [vmem:[#allocation12 + $0xf4] sm:$0xf0] }
 0x242   :  { %2645 = vmatpush.bf16.msrb.mxu3 %v7883_v53  ;;  %v7903_v53 = vor.u32 %v10037_v61, %v7902_v27  ;;  %v9994_v27 = vld [vmem:[#allocation12 + $0x4] sm:$0xf] }
 0x244   :  { %2670 = vmatpush.bf16.msra.mxu1 %v7903_v53 }
 0x245   :  { %v1817_v14 = vpop.f32.mrf.mxu2 }
 0x246   :  { %v7815_v14 = vor.u32 %v10016_v13, %v7814_v11  ;;  %2646 = vmatpush.bf16.msrb.mxu3 %v7867_v22  ;;  %v7768_v13 = vld [vmem:[#allocation12 + $0x50] sm:$0xf0]  ;;  %v10000_v22 = vld [vmem:[#allocation12 + $0x2c] sm:$0xf0] }
 0x247   :  { %v11122_v1 = vpop.f32.mrf.mxu0 }
 0x248   :  { %2602 = vmatpush.bf16.msrb.mxu0 %v7815_v14  ;;  %2671 = vmatpush.bf16.msra.mxu1 %v7887_v16 }
 0x24a   :  { %2691 = vmatpush.bf16.msra.mxu3 %v7987_v31  ;;  %v1787_v31 = vperm.slane %v11129_v37, 2 }
 0x24d   :  { %v11124_v28 = vpop.f32.mrf.mxu2 }
 0x24e   :  { %2692 = vmatpush.bf16.msra.mxu3 %v7971_v51 }
 0x24f   :  { %v1895_v32 = vpop.f32.mrf.mxu0 }
 0x250   :  { %v7798_v32 = vld [vmem:[#allocation12 + $0x80] sm:$0xf] }
 0x251   :  { %v7799_v38 = vor.u32 %v10012_v33, %v7798_v32  ;;  %v7870_v32 = vld [vmem:[#allocation12 + $0x108] sm:$0xf]  ;;  %v10029_v33 = vld [vmem:[#allocation12 + $0x114] sm:$0xf0] }
 0x252   :  { %2693 = vmatpush.bf16.msra.mxu3 %v7955_v4 }
 0x253   :  { %2603 = vmatpush.bf16.msrb.mxu0 %v7799_v38 }
 0x255   :  { %v1869_v54 = vpop.f32.mrf.mxu2 }
 0x257   :  { %v1802_v56 = vpop.f32.mrf.mxu1 }
 0x258   :  { %v1803_v60 = vadd.f32 %v1802_v56, %v1785_v41  ;;  %v7803_v41 = vor.u32 %v10010_v34, %v7800_v46  ;;  %v7783_v56 = vor.u32 %v10008_v52, %v7782_v48  ;;  %v1788_v34 = vperm.slane %v11129_v37, 3  ;;  %v10039_v46 = vld [vmem:[#allocation12 + $0x16c] sm:$0xf]  ;;  %v7734_v48 = vld [vmem:[#allocation12] sm:$0xf] }
 0x259   :  { %v2107_v37 = vperm.slane %v11135_v36, 0  ;;  %v9996_v52 = vld [vmem:[#allocation12 + $0xc] sm:$0xf0] }
 0x25a   :  { %v1816_v8 = vadd.f32 %v11120_v45, %v1803_v60  ;;  %2629 = vmatpush.bf16.msrb.mxu2 %v7803_v41  ;;  %v7787_v60 = vor.u32 %v10006_v39, %v7784_v29  ;;  %2604 = vmatpush.bf16.msrb.mxu0 %v7783_v56  ;;  %v7735_v29 = vor.u32 %v9996_v52, %v7734_v48  ;;  %v10013_v48 = vld [vmem:[#allocation12 + $0x94] sm:$0xf0]  ;;  %v10011_v52 = vld [vmem:[#allocation12 + $0x8c] sm:$0xf] }
 0x25c   :  { %v7632_v50 = vmul.f32 -1.442695, %v1816_v8  ;;  %v10004_v8 = vld [vmem:[#allocation12 + $0x4c] sm:$0xf0] }
 0x25d   :  { %v1828_v17 = vpop.f32.mrf.mxu3  ;;  %v7767_v11 = vor.u32 %v10004_v8, %v7766_v5 }
 0x25e   :  { %10543 = vpow2.f32 %v7632_v50  ;;  %v1829_v45 = vadd.f32 %v1828_v17, %v1786_v9  ;;  %v2135_v58 = vpop.f32.mrf.mxu2  ;;  %2630 = vmatpush.bf16.msrb.mxu2 %v7787_v60  ;;  %v10002_v9 = vld [vmem:[#allocation12 + $0x44] sm:$0xf]  ;;  %v10043_v17 = vld [vmem:[#allocation12 + $0x18c] sm:$0xf]  ;;  %v7854_v60 = vld [vmem:[#allocation12 + $0xe8] sm:$0xf] }
 0x25f   :  { %v1804_v26 = vpop.f32.mrf.mxu1  ;;  %v2136_v3 = vadd.f32 %v2135_v58, %v2108_v47  ;;  %v7771_v14 = vor.u32 %v10002_v9, %v7768_v13  ;;  %2605 = vmatpush.bf16.msrb.mxu0 %v7767_v11  ;;  %v7939_v21 = vor.u32 %v10043_v17, %v7936_v18  ;;  %v7750_v58 = vld [vmem:[#allocation12 + $0x20] sm:$0xf]  ;;  %v7871_v47 = vor.u32 %v10029_v33, %v7870_v32  ;;  %v7904_v11 = vld [vmem:[#allocation12 + $0x158] sm:$0xf0] }
 0x260   :  { %v1842_v20 = vadd.f32 %v11118_v59, %v1829_v45  ;;  %v11138_v59 = vld [vmem:[#allocation2 + $0x2] ss:$8 sm:$0x7]  ;;  %v7751_v25 = vor.u32 %v10000_v22, %v7750_v58  ;;  %v7855_v9 = vor.u32 %v10025_v62, %v7854_v60 }
 0x261   :  { %v2173_v10 = vrot.slane %v11138_v59, 1  ;;  %v9998_v26 = vld [vmem:[#allocation12 + $0x24] sm:$0xf]  ;;  %2694 = vmatpush.bf16.msra.mxu3 %v7939_v21  ;;  %2672 = vmatpush.bf16.msra.mxu1 %v7871_v47  ;;  %v7838_v21 = vld [vmem:[#allocation12 + $0xc8] sm:$0xf] }
 0x262   :  { %v7633_v12 = vmul.f32 -1.442695, %v1842_v20  ;;  %2631 = vmatpush.bf16.msrb.mxu2 %v7771_v14  ;;  %v7755_v43 = vor.u32 %v9998_v26, %v7752_v30  ;;  %v7888_v32 = vld [vmem:[#allocation12 + $0x138] sm:$0xf0]  ;;  %v10007_v62 = vld [vmem:[#allocation12 + $0x6c] sm:$0xf] }
 0x263   :  { %v2175_v45 = vadd.f32 %v2173_v10, %v2136_v3  ;;  %2606 = vmatpush.bf16.msrb.mxu0 %v7751_v25  ;;  %v7856_v3 = vld [vmem:[#allocation12 + $0xf8] sm:$0xf0]  ;;  %v10035_v10 = vld [vmem:[#allocation12 + $0x14c] sm:$0xf] }
 0x264   :  { %v10544_v49 = vpop.eup %10543  ;;  %10545 = vpow2.f32 %v7633_v12  ;;  %v7920_v12 = vld [vmem:[#allocation12 + $0x178] sm:$0xf0]  ;;  %v10031_v25 = vld [vmem:[#allocation12 + $0x12c] sm:$0xf] }
 0x265   :  { %v11140_v54 = vadd.f32 1.0, %v10544_v49  ;;  %v1830_v55 = vpop.f32.mrf.mxu3  ;;  %v7731_v41 = vmul.f32 -1.442695, %v2175_v45  ;;  %v7923_v6 = vor.u32 %v10039_v46, %v7920_v12  ;;  %v10021_v45 = vld [vmem:[#allocation12 + $0xd4] sm:$0xf0] }
 0x266   :  { %v2137_v2 = vpop.f32.mrf.mxu2  ;;  %2632 = vmatpush.bf16.msrb.mxu2 %v7755_v43  ;;  %v7839_v30 = vor.u32 %v10021_v45, %v7838_v21  ;;  %v7822_v46 = vld [vmem:[#allocation12 + $0xa8] sm:$0xf]  ;;  %v7872_v47 = vld [vmem:[#allocation12 + $0x118] sm:$0xf0]  ;;  %v10076_v45 = vld [vmem:[#allocation8 + $0x94] sm:$0xf] }
 0x267   :  { %10547 = vrcp.f32 %v11140_v54  ;;  %v1854_v63 = vpop.f32.mrf.mxu1  ;;  %v1910_v42 = vand.u32 2147483647, %v11140_v54  ;;  %v1912_v57 = vand.u32 2147483648, %v11140_v54  ;;  %2695 = vmatpush.bf16.msra.mxu3 %v7923_v6  ;;  %v7736_v2 = vld [vmem:[#allocation12 + $0x10] sm:$0xf0]  ;;  %vm1906_vm9 = vweird.f32 %v11140_v54  ;;  %2607 = vmatpush.bf16.msrb.mxu0 %v7735_v29 }
 0x268   :  { %v1855_v51 = vadd.f32 %v1854_v63, %v1787_v31  ;;  %v7739_v40 = vor.u32 %v9994_v27, %v7736_v2  ;;  %v10023_v63 = vld [vmem:[#allocation12 + $0xec] sm:$0xf]  ;;  %v7808_v29 = vld [vmem:[#allocation12 + $0x98] sm:$0xf0] }
 0x269   :  { %vm11165_vm10 = vcmp.eq.f32.partialorder %v1910_v42, 8.507059e+37  ;;  %v1913_v5 = vor.u32 1.1754944e-38, %v1912_v57  ;;  %v7859_v35 = vor.u32 %v10023_v63, %v7856_v3  ;;  %v10015_v42 = vld [vmem:[#allocation12 + $0xac] sm:$0xf]  ;;  %v7792_v3 = vld [vmem:[#allocation12 + $0x78] sm:$0xf0] }
 0x26a   :  { %v10546_v50 = vpop.eup %10545  ;;  %2633 = vmatpush.bf16.msrb.mxu2 %v7739_v40  ;;  %v1868_v15 = vadd.f32 %v11124_v28, %v1855_v51  ;;  %v7840_v28 = vld [vmem:[#allocation12 + $0xd8] sm:$0xf0]  ;;  %v10027_v57 = vld [vmem:[#allocation12 + $0x10c] sm:$0xf]  ;;  %v10009_v40 = vld [vmem:[#allocation12 + $0x74] sm:$0xf0] }
 0x26b   :  { %v11144_v19 = vadd.f32 1.0, %v10546_v50  ;;  %v7907_v50 = vor.u32 %v10035_v10, %v7904_v11  ;;  %2652 = vmatpush.bf16.msra.mxu0 %v7855_v9  ;;  %v7875_v51 = vor.u32 %v10027_v57, %v7872_v47  ;;  %v10079_v10 = vld [vmem:[#allocation8 + $0xac] sm:$0xf]  ;;  %v8078_v11 = vld [vmem:[#allocation8 + $0xb4] sm:$0xf0] }
 0x26c   :  { %v8081_v21 = vor.u32 %v10079_v10, %v8078_v11 }
 0x26d   :  { %v11146_v23 = vpop.eup %10547  ;;  %10549 = vrcp.f32 %v11144_v19  ;;  %v1880_v24 = vpop.f32.mrf.mxu3  ;;  %v1931_v49 = vand.u32 2147483648, %v11144_v19  ;;  %vm1925_vm13 = vweird.f32 %v11144_v19  ;;  %2696 = vmatpush.bf16.msra.mxu3 %v7907_v50  ;;  %v1929_v26 = vand.u32 2147483647, %v11144_v19  ;;  %v7774_v50 = vld [vmem:[#allocation12 + $0x48] sm:$0xf] }
 0x26e   :  { %v1902_v20 = vmul.f32 %v11146_v23, %v11140_v54  ;;  %v1881_v55 = vadd.f32 %v1880_v24, %v1788_v34  ;;  %vm1907_vm8 = vweird.f32 %v11146_v23  ;;  %10551 = vpow2.f32 %v7731_v41  ;;  %2678 = vmatpush.bf16.msra.mxu2 %v7859_v35  ;;  %v10019_v24 = vld [vmem:[#allocation12 + $0xcc] sm:$0xf]  ;;  %v10017_v41 = vld [vmem:[#allocation12 + $0xb4] sm:$0xf0] }
 0x26f   :  { %v1856_v38 = vpop.f32.mrf.mxu1  ;;  %vm1908_vm12 = vmor %vm1906_vm9, %vm1907_vm8  ;;  %v1932_v14 = vor.u32 1.1754944e-38, %v1931_v49  ;;  %v7843_v31 = vor.u32 %v10019_v24, %v7840_v28  ;;  %2653 = vmatpush.bf16.msra.mxu0 %v7839_v30  ;;  %v7823_v12 = vor.u32 %v10017_v41, %v7822_v46  ;;  %vm1930_vm15 = vcmp.eq.f32.partialorder %v1929_v26, 8.507059e+37  ;;  %v7758_v28 = vld [vmem:[#allocation12 + $0x28] sm:$0xf]  ;;  %v9995_v41 = vld [vmem:[#allocation12 + $0xc] sm:$0xf] }
 0x270   :  { %v1903_v44 = vsub.f32 1.0, %v1902_v20  ;;  %v1894_v17 = vadd.f32 %v11122_v1, %v1881_v55  ;;  %v7891_v38 = vor.u32 %v10031_v25, %v7888_v32  ;;  %v10001_v25 = vld [vmem:[#allocation12 + $0x34] sm:$0xf0]  ;;  %v9999_v1 = vld [vmem:[#allocation12 + $0x2c] sm:$0xf] }
 0x271   :  { %v7759_v32 = vor.u32 %v10001_v25, %v7758_v28  ;;  %v10081_v28 = vld [vmem:[#allocation8 + $0xb8] sm:$0xf0] }
 0x272   :  { %v1904_v56 = vmul.f32 %v11146_v23, %v1903_v44  ;;  %v7824_v44 = vld [vmem:[#allocation12 + $0xb8] sm:$0xf0]  ;;  %2679 = vmatpush.bf16.msra.mxu2 %v7843_v31  ;;  %2697 = vmatpush.bf16.msra.mxu3 %v7891_v38  ;;  %v10073_v31 = vld [vmem:[#allocation8 + $0x7c] sm:$0xf]  ;;  %v9997_v38 = vld [vmem:[#allocation12 + $0x14] sm:$0xf0] }
 0x273   :  { %v11157_v39 = vpop.eup %10549  ;;  %v7827_v49 = vor.u32 %v10015_v42, %v7824_v44  ;;  %2654 = vmatpush.bf16.msra.mxu0 %v7823_v12  ;;  %v7744_v42 = vld [vmem:[#allocation12 + $0x18] sm:$0xf0] }
 0x274   :  { %v1921_v61 = vmul.f32 %v11157_v39, %v11144_v19  ;;  %v1905_v53 = vadd.f32 %v11146_v23, %v1904_v56  ;;  %vm1926_vm11 = vweird.f32 %v11157_v39  ;;  %v10552_v33 = vpop.eup %10551 }
 0x275   :  { %v1882_v8 = vpop.f32.mrf.mxu3  ;;  %vm11183_vm14 = vmor %vm1925_vm13, %vm1926_vm11  ;;  %v11193_v55 = vadd.f32 1.0, %v10552_v33  ;;  %v8054_v33 = vld [vmem:[#allocation8 + $0x84] sm:$0xf0] }
 0x276   :  { %v1922_v13 = vsub.f32 1.0, %v1921_v61  ;;  %v1909_v18 = vsel %vm1908_vm12, %v11146_v23, %v1905_v53  ;;  %2680 = vmatpush.bf16.msra.mxu2 %v7827_v49  ;;  %2698 = vmatpush.bf16.msra.mxu3 %v7875_v51  ;;  %v7790_v61 = vld [vmem:[#allocation12 + $0x68] sm:$0xf]  ;;  %v8057_v44 = vor.u32 %v10073_v31, %v8054_v33  ;;  %v7747_v49 = vor.u32 %v9995_v41, %v7744_v42  ;;  %v10077_v31 = vld [vmem:[#allocation8 + $0x98] sm:$0xf0] }
 0x277   :  { %v2122_v16 = vpop.f32.mrf.mxu1  ;;  %v1914_v54 = vsel %vm11165_vm10, %v1913_v5, %v1909_v18  ;;  %v7791_v4 = vor.u32 %v10009_v40, %v7790_v61  ;;  %v10003_v18 = vld [vmem:[#allocation12 + $0x4c] sm:$0xf]  ;;  %vm2185_vm5 = vweird.f32 %v11193_v55  ;;  %v10078_v33 = vld [vmem:[#allocation8 + $0xa0] sm:$0xf0]  ;;  %v10075_v41 = vld [vmem:[#allocation8 + $0x88] sm:$0xf0] }
 0x278   :  { %v1923_v58 = vmul.f32 %v11157_v39, %v1922_v13  ;;  %v2123_v22 = vadd.f32 %v2122_v16, %v2107_v37  ;;  %v1935_v23 = vmul.f32 %v1914_v54, %v1894_v17  ;;  %v7806_v37 = vld [vmem:[#allocation12 + $0x88] sm:$0xf]  ;;  %v7795_v13 = vor.u32 %v10007_v62, %v7792_v3  ;;  %v7776_v16 = vld [vmem:[#allocation12 + $0x58] sm:$0xf0] }
 0x279   :  { %v7807_v60 = vor.u32 %v10013_v48, %v7806_v37  ;;  %v7779_v24 = vor.u32 %v10003_v18, %v7776_v16  ;;  %v2109_v37 = vperm.slane %v11135_v36, 2  ;;  %v10058_v18 = vld [vmem:[#allocation8 + $0x4] sm:$0xf] }
 0x27a   :  { %v2152_v34 = vadd.f32 %v2123_v22, %v11138_v59  ;;  %v1924_v20 = vadd.f32 %v11157_v39, %v1923_v58  ;;  %v1936_v43 = vadd.f32 %v1935_v23, %v1868_v15  ;;  %v8066_v58 = vld [vmem:[#allocation8 + $0x9c] sm:$0xf0]  ;;  %v7760_v23 = vld [vmem:[#allocation12 + $0x38] sm:$0xf0] }
 0x27b   :  { %2655 = vmatpush.bf16.msra.mxu0 %v7807_v60  ;;  %v8069_v30 = vor.u32 %v10076_v45, %v8066_v58  ;;  %v10067_v60 = vld [vmem:[#allocation8 + $0x4c] sm:$0xf] }
 0x27c   :  { %v7730_v6 = vmul.f32 -1.442695, %v2152_v34  ;;  %v1928_v19 = vsel %vm11183_vm14, %v11157_v39, %v1924_v20  ;;  %10553 = vtanh.f32 %v1936_v43  ;;  %v7811_v39 = vor.u32 %v10011_v52, %v7808_v29  ;;  %v7742_v20 = vld [vmem:[#allocation12 + $0x8] sm:$0xf] }
 0x27d   :  { %v1933_v2 = vsel %vm1930_vm15, %v1932_v14, %v1928_v19  ;;  %v10005_v14 = vld [vmem:[#allocation12 + $0x54] sm:$0xf0]  ;;  %v7763_v34 = vor.u32 %v9999_v1, %v7760_v23  ;;  %v7743_v57 = vor.u32 %v9997_v38, %v7742_v20  ;;  %v8042_v19 = vld [vmem:[#allocation8 + $0x6c] sm:$0xf0]  ;;  %v8052_v20 = vld [vmem:[#allocation8 + $0x78] sm:$0xf] }
 0x27e   :  { %10555 = vpow2.f32 %v7730_v6  ;;  %v11195_v56 = vpop.f32.mrf.mxu3  ;;  %v1938_v63 = vsub.f32 1.0, %v1933_v2  ;;  %v1940_v9 = vmul.f32 %v1933_v2, %v11085_v0  ;;  %2681 = vmatpush.bf16.msra.mxu2 %v7811_v39  ;;  %v7775_v0 = vor.u32 %v10005_v14, %v7774_v50  ;;  %v10070_v6 = vld [vmem:[#allocation8 + $0x64] sm:$0xf]  ;;  %v8030_v39 = vld [vmem:[#allocation8 + $0x54] sm:$0xf0] }
 0x27f   :  { %v2124_v27 = vpop.f32.mrf.mxu1  ;;  %10557 = vrcp.f32 %v11193_v55  ;;  %2656 = vmatpush.bf16.msra.mxu0 %v7791_v4  ;;  %v2149_v40 = vadd.f32 %v11195_v56, %v2109_v37  ;;  %v8033_v3 = vor.u32 %v10067_v60, %v8030_v39  ;;  %v2189_v56 = vand.u32 2147483647, %v11193_v55  ;;  %v10061_v50 = vld [vmem:[#allocation8 + $0x1c] sm:$0xf]  ;;  %v10074_v38 = vld [vmem:[#allocation8 + $0x80] sm:$0xf0] }
 0x280   :  { %v8045_v27 = vor.u32 %v10070_v6, %v8042_v19  ;;  %v8053_v42 = vor.u32 %v10074_v38, %v8052_v20  ;;  %v8036_v37 = vld [vmem:[#allocation8 + $0x50] sm:$0xf]  ;;  %v8024_v60 = vld [vmem:[#allocation8 + $0x38] sm:$0xf]  ;;  %v10066_v39 = vld [vmem:[#allocation8 + $0x40] sm:$0xf0] }
 0x281   :  { %vm2190_vm7 = vcmp.eq.f32.partialorder %v2189_v56, 8.507059e+37  ;;  %v10060_v56 = vld [vmem:[#allocation8 + $0x10] sm:$0xf0]  ;;  %v8250_v20 = vld [vmem:[#allocation12 + $0x140] sm:$0xf] }
 0x282   :  { %v10554_v53 = vpop.eup %10553  ;;  %2682 = vmatpush.bf16.msra.mxu2 %v7795_v13  ;;  %v10124_v38 = vld [vmem:[#allocation12 + $0x14c] sm:$0xf0] }
 0x283   :  { %v1939_v8 = vmul.f32 %v10554_v53, %v1938_v63  ;;  %2657 = vmatpush.bf16.msra.mxu0 %v7775_v0  ;;  %v2191_v53 = vand.u32 2147483648, %v11193_v55 }
 0x284   :  { %v10556_v5 = vpop.eup %10555 }
 0x285   :  { %v11199_v35 = vadd.f32 1.0, %v10556_v5  ;;  %v11201_v17 = vadd.f32 %v1940_v9, %v1939_v8  ;;  %v11204_v54 = vpop.eup %10557  ;;  %v2196_v5 = vrot.slane %v11138_v59, 2  ;;  %v10064_v8 = vld [vmem:[#allocation8 + $0x34] sm:$0xf]  ;;  %v8018_v9 = vld [vmem:[#allocation8 + $0x3c] sm:$0xf0] }
 0x286   :  { %v2150_v15 = vpop.f32.mrf.mxu3  ;;  %v2181_v26 = vmul.f32 %v11204_v54, %v11193_v55  ;;  %2683 = vmatpush.bf16.msra.mxu2 %v7779_v24  ;;  %vm2186_vm4 = vweird.f32 %v11204_v54  ;;  %v8021_v13 = vor.u32 %v10064_v8, %v8018_v9  ;;  %v8006_v59 = vld [vmem:[#allocation8 + $0x24] sm:$0xf0]  ;;  %v7994_v55 = vld [vmem:[#allocation8 + $0xc] sm:$0xf0]  ;;  %v10059_v8 = vld [vmem:[#allocation8 + $0x8] sm:$0xf0] }
 0x287   :  { %10559 = vrcp.f32 %v11199_v35  ;;  %1942 = vst [vmem:[#allocation14 + $0x1] sm:$0x1] %v11201_v17  ;;  %v11209_v22 = vpack.c.bf16 %v11201_v17, %v11201_v17  ;;  %2658 = vmatpush.bf16.msra.mxu0 %v7759_v32  ;;  %v2168_v51 = vand.u32 2147483648, %v11199_v35  ;;  %v2166_v52 = vand.u32 2147483647, %v11199_v35  ;;  %vm2187_vm6 = vmor %vm2185_vm5, %vm2186_vm4 }
 0x288   :  { %v2182_v12 = vsub.f32 1.0, %v2181_v26  ;;  %vm2162_vm1 = vweird.f32 %v11199_v35  ;;  %v8009_v15 = vor.u32 %v10061_v50, %v8006_v59  ;;  %v7997_v0 = vor.u32 %v10058_v18, %v7994_v55  ;;  %v8084_v24 = vld [vmem:[#allocation8 + $0xb0] sm:$0xf]  ;;  %v8072_v32 = vld [vmem:[#allocation8 + $0x98] sm:$0xf] }
 0x289   :  { %2621 = vmatmul.bf16.vlgmr.msrb.gmra.mxu1 %v11209_v22  ;;  %2647 = vmatmul.bf16.vlgmr.msrb.gmra.mxu3 %v11209_v22  ;;  %v2169_v61 = vor.u32 1.1754944e-38, %v2168_v51  ;;  %vm2167_vm3 = vcmp.eq.f32.partialorder %v2166_v52, 8.507059e+37  ;;  %v8085_v26 = vor.u32 %v10081_v28, %v8084_v24  ;;  %v10068_v51 = vld [vmem:[#allocation8 + $0x50] sm:$0xf0]  ;;  %v8000_v9 = vld [vmem:[#allocation8 + $0x8] sm:$0xf] }
 0x28a   :  { %2933 = vmatpush.bf16.msrb.mxu1 %v8081_v21  ;;  %2684 = vmatpush.bf16.msra.mxu2 %v7763_v34  ;;  %v2183_v29 = vmul.f32 %v11204_v54, %v2182_v12  ;;  %v8073_v34 = vor.u32 %v10078_v33, %v8072_v32  ;;  %v8040_v12 = vld [vmem:[#allocation8 + $0x60] sm:$0xf]  ;;  %v8314_v50 = vld [vmem:[#allocation12 + $0x1c0] sm:$0xf]  ;;  %v10142_v28 = vld [vmem:[#allocation12 + $0x1e4] sm:$0xf] }
 0x28b   :  { %2659 = vmatpush.bf16.msra.mxu0 %v7743_v57  ;;  %v8048_v57 = vld [vmem:[#allocation8 + $0x68] sm:$0xf]  ;;  %v10138_v33 = vld [vmem:[#allocation12 + $0x1c4] sm:$0xf] }
 0x28c   :  { %v2184_v63 = vadd.f32 %v11204_v54, %v2183_v29 }
 0x28d   :  { %v10560_v46 = vpop.eup %10559 }
 0x28e   :  { %v2158_v43 = vmul.f32 %v10560_v46, %v11199_v35  ;;  %2934 = vmatpush.bf16.msrb.mxu1 %v8069_v30  ;;  %vm2163_vm0 = vweird.f32 %v10560_v46  ;;  %2685 = vmatpush.bf16.msra.mxu2 %v7747_v49  ;;  %v2188_v11 = vsel %vm2187_vm6, %v11204_v54, %v2184_v63  ;;  %v2192_v35 = vor.u32 1.1754944e-38, %v2191_v53  ;;  %v8076_v54 = vld [vmem:[#allocation8 + $0xa8] sm:$0xf]  ;;  %v8064_v30 = vld [vmem:[#allocation8 + $0x90] sm:$0xf] }
 0x28f   :  { %vm2164_vm2 = vmor %vm2162_vm1, %vm2163_vm0  ;;  %v8028_v49 = vld [vmem:[#allocation8 + $0x48] sm:$0xf]  ;;  %v8012_v63 = vld [vmem:[#allocation8 + $0x20] sm:$0xf] }
 0x290   :  { %v2159_v47 = vsub.f32 1.0, %v2158_v43  ;;  %v2193_v14 = vsel %vm2190_vm7, %v2192_v35, %v2188_v11  ;;  %v8029_v52 = vor.u32 %v10068_v51, %v8028_v49  ;;  %v8001_v11 = vor.u32 %v10060_v56, %v8000_v9  ;;  %v10144_v35 = vld [vmem:[#allocation12 + $0x1ec] sm:$0xf0]  ;;  %v10130_v49 = vld [vmem:[#allocation12 + $0x184] sm:$0xf] }
 0x291   :  { %v2200_v16 = vsub.f32 1.0, %v2193_v14  ;;  %v2202_v58 = vmul.f32 %v2193_v14, %v11105_v7  ;;  %v8065_v7 = vor.u32 %v10077_v31, %v8064_v30  ;;  %v10140_v14 = vld [vmem:[#allocation12 + $0x1cc] sm:$0xf0]  ;;  %v8266_v30 = vld [vmem:[#allocation12 + $0x160] sm:$0xf] }
 0x292   :  { %v2160_v48 = vmul.f32 %v10560_v46, %v2159_v47  ;;  %2935 = vmatpush.bf16.msrb.mxu1 %v8057_v44  ;;  %v10071_v44 = vld [vmem:[#allocation8 + $0x68] sm:$0xf0]  ;;  %v10072_v47 = vld [vmem:[#allocation8 + $0x70] sm:$0xf0]  ;;  %v10128_v31 = vld [vmem:[#allocation12 + $0x16c] sm:$0xf0] }
 0x293   :  { %v8041_v6 = vor.u32 %v10071_v44, %v8040_v12  ;;  %v8049_v19 = vor.u32 %v10072_v47, %v8048_v57  ;;  %v8267_v32 = vor.u32 %v10128_v31, %v8266_v30  ;;  %v11256_v57 = vld [vmem:[%s11902_s6] sm:$0xf]  ;;  %v8234_v47 = vld [vmem:[#allocation12 + $0x120] sm:$0xf]  ;;  %v8284_v51 = vld [vmem:[#allocation12 + $0x190] sm:$0xf0] }
 0x294   :  { %v2161_v2 = vadd.f32 %v10560_v46, %v2160_v48  ;;  %v10069_v48 = vld [vmem:[#allocation8 + $0x58] sm:$0xf0]  ;;  %v10110_v9 = vld [vmem:[#allocation12 + $0xe4] sm:$0xf]  ;;  %v8306_v31 = vld [vmem:[#allocation12 + $0x1a8] sm:$0xf] }
 0x295   :  { %v8037_v29 = vor.u32 %v10069_v48, %v8036_v37  ;;  %v8287_v37 = vor.u32 %v10130_v49, %v8284_v51  ;;  %v2592_v48 = vperm.slane %v11256_v57, 0  ;;  %v8236_v30 = vld [vmem:[#allocation12 + $0x130] sm:$0xf0]  ;;  %v10114_v49 = vld [vmem:[#allocation12 + $0x104] sm:$0xf] }
 0x296   :  { %v2165_v36 = vsel %vm2164_vm2, %v10560_v46, %v2161_v2  ;;  %2936 = vmatpush.bf16.msrb.mxu1 %v8045_v27  ;;  %v8060_v46 = vld [vmem:[#allocation8 + $0x80] sm:$0xf]  ;;  %v8016_v27 = vld [vmem:[#allocation8 + $0x30] sm:$0xf]  ;;  %v10065_v2 = vld [vmem:[#allocation8 + $0x38] sm:$0xf0] }
 0x297   :  { %v2170_v62 = vsel %vm2167_vm3, %v2169_v61, %v2165_v36  ;;  %v8061_v43 = vor.u32 %v10075_v41, %v8060_v46  ;;  %v8017_v61 = vor.u32 %v10065_v2, %v8016_v27  ;;  %v8004_v36 = vld [vmem:[#allocation8 + $0x18] sm:$0xf]  ;;  %v8251_v41 = vor.u32 %v10124_v38, %v8250_v20 }
 0x298   :  { %v2195_v4 = vmul.f32 %v2170_v62, %v2149_v40  ;;  %v8025_v40 = vor.u32 %v10066_v39, %v8024_v60  ;;  %v10062_v62 = vld [vmem:[#allocation8 + $0x20] sm:$0xf0]  ;;  %v10126_v60 = vld [vmem:[#allocation12 + $0x164] sm:$0xf]  ;;  %v8268_v39 = vld [vmem:[#allocation12 + $0x170] sm:$0xf0] }
 0x299   :  { %2673 = vmatmul.bf16.vlgmr.msra.gmra.mxu1 %v11209_v22  ;;  %2699 = vmatmul.bf16.vlgmr.msra.gmra.mxu3 %v11209_v22  ;;  %v10080_v22 = vld [vmem:[#allocation8 + $0xb0] sm:$0xf0]  ;;  %v8005_v53 = vor.u32 %v10062_v62, %v8004_v36  ;;  %v8271_v36 = vor.u32 %v10126_v60, %v8268_v39  ;;  %v10145_v62 = vld [vmem:[#allocation12 + $0x1f4] sm:$0xf0]  ;;  %v8340_v60 = vld [vmem:[#allocation12 + $0x1f8] sm:$0xf0] }
 0x29a   :  { %v2198_v10 = vadd.f32 %v2196_v5, %v2195_v4  ;;  %2937 = vmatpush.bf16.msrb.mxu1 %v8033_v3  ;;  %v8077_v1 = vor.u32 %v10080_v22, %v8076_v54  ;;  %v10063_v3 = vld [vmem:[#allocation8 + $0x28] sm:$0xf0]  ;;  %v7992_v5 = vld [vmem:[#allocation8] sm:$0xf]  ;;  %v10132_v54 = vld [vmem:[#allocation12 + $0x18c] sm:$0xf0] }
 0x29b   :  { %v8013_v4 = vor.u32 %v10063_v3, %v8012_v63 }
 0x29c   :  { %10561 = vtanh.f32 %v2198_v10  ;;  %v7993_v10 = vor.u32 %v10059_v8, %v7992_v5  ;;  %v8202_v5 = vld [vmem:[#allocation12 + $0xe0] sm:$0xf]  ;;  %v10112_v8 = vld [vmem:[#allocation12 + $0xec] sm:$0xf0] }
 0x29e   :  { %2938 = vmatpush.bf16.msrb.mxu1 %v8021_v13  ;;  %v8330_v13 = vld [vmem:[#allocation12 + $0x1e0] sm:$0xf] }
 0x29f   :  { %v8331_v59 = vor.u32 %v10144_v35, %v8330_v13  ;;  %v10122_v13 = vld [vmem:[#allocation12 + $0x144] sm:$0xf]  ;;  %v8252_v35 = vld [vmem:[#allocation12 + $0x150] sm:$0xf0] }
 0x2a2   :  { %v10562_v21 = vpop.eup %10561  ;;  %2939 = vmatpush.bf16.msrb.mxu1 %v8009_v15  ;;  %v8315_v15 = vor.u32 %v10140_v14, %v8314_v50  ;;  %v8322_v14 = vld [vmem:[#allocation12 + $0x1c8] sm:$0xf] }
 0x2a3   :  { %v2201_v45 = vmul.f32 %v10562_v21, %v2200_v16  ;;  %v8298_v21 = vld [vmem:[#allocation12 + $0x1a0] sm:$0xf] }
 0x2a5   :  { %v11232_v25 = vadd.f32 %v2202_v58, %v2201_v45  ;;  %v10136_v45 = vld [vmem:[#allocation12 + $0x1ac] sm:$0xf0] }
 0x2a6   :  { %2940 = vmatpush.bf16.msrb.mxu1 %v7997_v0  ;;  %v8299_v58 = vor.u32 %v10136_v45, %v8298_v21  ;;  %v8282_v0 = vld [vmem:[#allocation12 + $0x180] sm:$0xf] }
 0x2a7   :  { %v11236_v23 = vpack.c.bf16 %v11232_v25, %v11232_v25  ;;  %v8283_v24 = vor.u32 %v10132_v54, %v8282_v0  ;;  %v8186_v45 = vld [vmem:[#allocation12 + $0xc0] sm:$0xf]  ;;  %v11263_v0 = vld [vmem:[#allocation11] sm:$0x7] }
 0x2a9   :  { %2608 = vmatmul.bf16.vlgmr.msrb.gmra.mxu0 %v11236_v23  ;;  %2634 = vmatmul.bf16.vlgmr.msrb.gmra.mxu2 %v11236_v23 }
 0x2aa   :  { %2941 = vmatmul.bf16.vlgmr.msrb.gmra.mxu1 %v11236_v23  ;;  %2920 = vmatpush.bf16.msrb.mxu0 %v8077_v1  ;;  %v8332_v1 = vld [vmem:[#allocation12 + $0x1f0] sm:$0xf0] }
 0x2ab   :  { %2946 = vmatpush.bf16.msrb.mxu2 %v8085_v26 }
 0x2ae   :  { %2921 = vmatpush.bf16.msrb.mxu0 %v8065_v7  ;;  %v8316_v7 = vld [vmem:[#allocation12 + $0x1d0] sm:$0xf0] }
 0x2af   :  { %2947 = vmatpush.bf16.msrb.mxu2 %v8073_v34  ;;  %v8319_v34 = vor.u32 %v10138_v33, %v8316_v7  ;;  %v10137_v7 = vld [vmem:[#allocation12 + $0x1b4] sm:$0xf0] }
 0x2b2   :  { %2922 = vmatpush.bf16.msrb.mxu0 %v8053_v42  ;;  %v10134_v42 = vld [vmem:[#allocation12 + $0x1a4] sm:$0xf] }
 0x2b3   :  { %2948 = vmatpush.bf16.msrb.mxu2 %v8061_v43  ;;  %v8300_v43 = vld [vmem:[#allocation12 + $0x1b0] sm:$0xf0] }
 0x2b4   :  { %v8303_v12 = vor.u32 %v10134_v42, %v8300_v43  ;;  %v8170_v42 = vld [vmem:[#allocation12 + $0xa0] sm:$0xf]  ;;  %v10104_v43 = vld [vmem:[#allocation12 + $0xac] sm:$0xf0] }
 0x2b6   :  { %2923 = vmatpush.bf16.msrb.mxu0 %v8041_v6  ;;  %v10120_v6 = vld [vmem:[#allocation12 + $0x12c] sm:$0xf0] }
 0x2b7   :  { %2949 = vmatpush.bf16.msrb.mxu2 %v8049_v19  ;;  %v8235_v19 = vor.u32 %v10120_v6, %v8234_v47  ;;  %v8171_v6 = vor.u32 %v10104_v43, %v8170_v42  ;;  %v10090_v43 = vld [vmem:[#allocation12 + $0x44] sm:$0xf] }
 0x2b9   :  { %2660 = vmatmul.bf16.vlgmr.msra.gmra.mxu0 %v11236_v23  ;;  %2686 = vmatmul.bf16.vlgmr.msra.gmra.mxu2 %v11236_v23 }
 0x2ba   :  { %2924 = vmatpush.bf16.msrb.mxu0 %v8029_v52  ;;  %v8218_v52 = vld [vmem:[#allocation12 + $0x100] sm:$0xf] }
 0x2bb   :  { %2950 = vmatpush.bf16.msrb.mxu2 %v8037_v29  ;;  %v10116_v29 = vld [vmem:[#allocation12 + $0x10c] sm:$0xf0] }
 0x2bc   :  { %v8219_v2 = vor.u32 %v10116_v29, %v8218_v52  ;;  %v10133_v52 = vld [vmem:[#allocation12 + $0x194] sm:$0xf0] }
 0x2be   :  { %2925 = vmatpush.bf16.msrb.mxu0 %v8017_v61  ;;  %v8338_v61 = vld [vmem:[#allocation12 + $0x1e8] sm:$0xf] }
 0x2bf   :  { %2951 = vmatpush.bf16.msrb.mxu2 %v8025_v40 }
 0x2c2   :  { %2926 = vmatpush.bf16.msrb.mxu0 %v8005_v53  ;;  %v2593_v53 = vperm.slane %v11256_v57, 1 }
 0x2c3   :  { %2952 = vmatpush.bf16.msrb.mxu2 %v8013_v4  ;;  %v8339_v4 = vor.u32 %v10145_v62, %v8338_v61  ;;  %v8154_v62 = vld [vmem:[#allocation12 + $0x80] sm:$0xf] }
 0x2c6   :  { %2927 = vmatpush.bf16.msrb.mxu0 %v7993_v10  ;;  %v8203_v10 = vor.u32 %v10112_v8, %v8202_v5  ;;  %v8156_v5 = vld [vmem:[#allocation12 + $0x90] sm:$0xf0] }
 0x2c7   :  { %2953 = vmatpush.bf16.msrb.mxu2 %v8001_v11  ;;  %v8204_v11 = vld [vmem:[#allocation12 + $0xf0] sm:$0xf0] }
 0x2c8   :  { %v8207_v50 = vor.u32 %v10110_v9, %v8204_v11  ;;  %3407 = vmatpush.bf16.msrb.mxu3 %v8203_v10  ;;  %v10139_v10 = vld [vmem:[#allocation12 + $0x1cc] sm:$0xf] }
 0x2c9   :  { %2928 = vmatmul.bf16.vlgmr.msrb.gmra.mxu0 %v11236_v23 }
 0x2ca   :  { %2954 = vmatmul.bf16.vlgmr.msrb.gmra.mxu2 %v11236_v23  ;;  %3420 = vmatpush.bf16.msra.mxu0 %v8331_v59  ;;  %v8335_v23 = vor.u32 %v10142_v28, %v8332_v1  ;;  %v8255_v59 = vor.u32 %v10122_v13, %v8252_v35  ;;  %v8324_v35 = vld [vmem:[#allocation12 + $0x1d8] sm:$0xf0] }
 0x2cb   :  { %3433 = vmatpush.bf16.msra.mxu1 %v8207_v50 }
 0x2cc   :  { %3446 = vmatpush.bf16.msra.mxu2 %v8335_v23  ;;  %v10118_v23 = vld [vmem:[#allocation12 + $0x124] sm:$0xf] }
 0x2cd   :  { %v8239_v33 = vor.u32 %v10118_v23, %v8236_v30  ;;  %v10125_v30 = vld [vmem:[#allocation12 + $0x154] sm:$0xf0] }
 0x2ce   :  { %3421 = vmatpush.bf16.msra.mxu0 %v8315_v15  ;;  %v10141_v15 = vld [vmem:[#allocation12 + $0x1d4] sm:$0xf0] }
 0x2cf   :  { %v8323_v21 = vor.u32 %v10141_v15, %v8322_v14  ;;  %v8138_v14 = vld [vmem:[#allocation12 + $0x60] sm:$0xf] }
 0x2d0   :  { %3447 = vmatpush.bf16.msra.mxu2 %v8319_v34  ;;  %v2915_v34 = vperm.slane %v11263_v0, 1 }
 0x2d2   :  { %3422 = vmatpush.bf16.msra.mxu0 %v8299_v58  ;;  %v10108_v58 = vld [vmem:[#allocation12 + $0xcc] sm:$0xf0] }
 0x2d4   :  { %3448 = vmatpush.bf16.msra.mxu2 %v8303_v12  ;;  %v10102_v12 = vld [vmem:[#allocation12 + $0xa4] sm:$0xf] }
 0x2d6   :  { %3423 = vmatpush.bf16.msra.mxu0 %v8283_v24  ;;  %v8188_v24 = vld [vmem:[#allocation12 + $0xd0] sm:$0xf0] }
 0x2d8   :  { %3449 = vmatpush.bf16.msra.mxu2 %v8287_v37  ;;  %v8220_v37 = vld [vmem:[#allocation12 + $0x110] sm:$0xf0] }
 0x2d9   :  { %v8223_v29 = vor.u32 %v10114_v49, %v8220_v37  ;;  %v10121_v37 = vld [vmem:[#allocation12 + $0x134] sm:$0xf0] }
 0x2da   :  { %3424 = vmatpush.bf16.msra.mxu0 %v8267_v32 }
 0x2dc   :  { %3450 = vmatpush.bf16.msra.mxu2 %v8271_v36 }
 0x2de   :  { %3425 = vmatpush.bf16.msra.mxu0 %v8251_v41  ;;  %v8307_v41 = vor.u32 %v10137_v7, %v8306_v31  ;;  %v10135_v31 = vld [vmem:[#allocation12 + $0x1ac] sm:$0xf]  ;;  %v8308_v7 = vld [vmem:[#allocation12 + $0x1b8] sm:$0xf0] }
 0x2df   :  { %v8311_v42 = vor.u32 %v10135_v31, %v8308_v7  ;;  %v8210_v31 = vld [vmem:[#allocation12 + $0xe8] sm:$0xf] }
 0x2e0   :  { %3451 = vmatpush.bf16.msra.mxu2 %v8255_v59 }
 0x2e2   :  { %3426 = vmatpush.bf16.msra.mxu0 %v8235_v19  ;;  %v8172_v19 = vld [vmem:[#allocation12 + $0xb0] sm:$0xf0] }
 0x2e3   :  { %v8175_v51 = vor.u32 %v10102_v12, %v8172_v19  ;;  %v8124_v12 = vld [vmem:[#allocation12 + $0x50] sm:$0xf0] }
 0x2e4   :  { %3452 = vmatpush.bf16.msra.mxu2 %v8239_v33  ;;  %v8127_v49 = vor.u32 %v10090_v43, %v8124_v12  ;;  %v10123_v12 = vld [vmem:[#allocation12 + $0x14c] sm:$0xf] }
 0x2e6   :  { %3427 = vmatpush.bf16.msra.mxu0 %v8219_v2  ;;  %v10143_v2 = vld [vmem:[#allocation12 + $0x1ec] sm:$0xf] }
 0x2e7   :  { %v8343_v36 = vor.u32 %v10143_v2, %v8340_v60 }
 0x2e8   :  { %3453 = vmatpush.bf16.msra.mxu2 %v8223_v29  ;;  %v10131_v29 = vld [vmem:[#allocation12 + $0x18c] sm:$0xf] }
 0x2ea   :  { %3472 = vmatpush.bf16.msrb.mxu0 %v8339_v4  ;;  %v10098_v4 = vld [vmem:[#allocation12 + $0x84] sm:$0xf] }
 0x2eb   :  { %v8159_v13 = vor.u32 %v10098_v4, %v8156_v5  ;;  %v8108_v4 = vld [vmem:[#allocation12 + $0x30] sm:$0xf0]  ;;  %v8226_v5 = vld [vmem:[#allocation12 + $0x108] sm:$0xf] }
 0x2ec   :  { %3498 = vmatpush.bf16.msrb.mxu2 %v8343_v36  ;;  %v10086_v36 = vld [vmem:[#allocation12 + $0x24] sm:$0xf] }
 0x2ee   :  { %3473 = vmatpush.bf16.msrb.mxu0 %v8323_v21  ;;  %v10096_v21 = vld [vmem:[#allocation12 + $0x6c] sm:$0xf0] }
 0x2f2   :  { %3474 = vmatpush.bf16.msrb.mxu0 %v8307_v41 }
 0x306   :  { %v11245_v18 = vpop.f32.mrf.mxu1 }
 0x30c   :  { %v11247_v55 = vpop.f32.mrf.mxu3 }
 0x30e   :  { %v2624_v16 = vpop.f32.mrf.mxu1 }
 0x314   :  { %v2650_v22 = vpop.f32.mrf.mxu3 }
 0x315   :  { %v10106_v22 = vld [vmem:[#allocation12 + $0xc4] sm:$0xf] }
 0x316   :  { %v11249_v26 = vpop.f32.mrf.mxu1  ;;  %v8191_v1 = vor.u32 %v10106_v22, %v8188_v24  ;;  %v8258_v22 = vld [vmem:[#allocation12 + $0x148] sm:$0xf] }
 0x317   :  { %v8259_v33 = vor.u32 %v10125_v30, %v8258_v22  ;;  %v8092_v30 = vld [vmem:[#allocation12 + $0x10] sm:$0xf0] }
 0x318   :  { %3434 = vmatpush.bf16.msra.mxu1 %v8191_v1 }
 0x31c   :  { %v11251_v46 = vpop.f32.mrf.mxu3  ;;  %3435 = vmatpush.bf16.msra.mxu1 %v8175_v51  ;;  %v8242_v51 = vld [vmem:[#allocation12 + $0x128] sm:$0xf] }
 0x31e   :  { %v2676_v44 = vpop.f32.mrf.mxu1 }
 0x31f   :  { %v11267_v44 = vld [vmem:[#allocation2 + $0x3] ss:$8 sm:$0x7] }
 0x320   :  { %v2980_v8 = vrot.slane %v11267_v44, 1  ;;  %3436 = vmatpush.bf16.msra.mxu1 %v8159_v13  ;;  %v10127_v13 = vld [vmem:[#allocation12 + $0x16c] sm:$0xf] }
 0x324   :  { %v2702_v27 = vpop.f32.mrf.mxu3 }
 0x326   :  { %v2609_v40 = vpop.f32.mrf.mxu0 }
 0x327   :  { %v2610_v63 = vadd.f32 %v2609_v40, %v2592_v48  ;;  %v11259_v3 = vpop.f32.mrf.mxu1  ;;  %v8290_v48 = vld [vmem:[#allocation12 + $0x188] sm:$0xf] }
 0x328   :  { %v8291_v27 = vor.u32 %v10133_v52, %v8290_v48  ;;  %v2943_v61 = vadd.f32 %v11259_v3, %v2915_v34  ;;  %v10129_v3 = vld [vmem:[#allocation12 + $0x174] sm:$0xf0]  ;;  %v8122_v34 = vld [vmem:[#allocation12 + $0x40] sm:$0xf] }
 0x329   :  { %v2623_v56 = vadd.f32 %v11245_v18, %v2610_v63  ;;  %v8187_v18 = vor.u32 %v10108_v58, %v8186_v45  ;;  %v10100_v63 = vld [vmem:[#allocation12 + $0x8c] sm:$0xf0]  ;;  %v10094_v45 = vld [vmem:[#allocation12 + $0x64] sm:$0xf]  ;;  %v2595_v58 = vperm.slane %v11256_v57, 3 }
 0x32a   :  { %3475 = vmatpush.bf16.msrb.mxu0 %v8291_v27  ;;  %v2982_v11 = vadd.f32 %v2980_v8, %v2943_v61  ;;  %v8292_v27 = vld [vmem:[#allocation12 + $0x198] sm:$0xf0]  ;;  %v8106_v61 = vld [vmem:[#allocation12 + $0x20] sm:$0xf] }
 0x32b   :  { %v7988_v16 = vmul.f32 -1.442695, %v2623_v56  ;;  %3408 = vmatpush.bf16.msrb.mxu3 %v8187_v18  ;;  %v8274_v56 = vld [vmem:[#allocation12 + $0x168] sm:$0xf]  ;;  %v8140_v18 = vld [vmem:[#allocation12 + $0x70] sm:$0xf0] }
 0x32c   :  { %v2635_v54 = vpop.f32.mrf.mxu2  ;;  %v8275_v59 = vor.u32 %v10129_v3, %v8274_v56  ;;  %v8143_v23 = vor.u32 %v10094_v45, %v8140_v18  ;;  %v10084_v18 = vld [vmem:[#allocation12 + $0xc] sm:$0xf0] }
 0x32d   :  { %10563 = vpow2.f32 %v7988_v16  ;;  %v2636_v28 = vadd.f32 %v2635_v54, %v2593_v53  ;;  %v8155_v53 = vor.u32 %v10100_v63, %v8154_v62  ;;  %v8327_v16 = vor.u32 %v10139_v10, %v8324_v35  ;;  %v8276_v35 = vld [vmem:[#allocation12 + $0x178] sm:$0xf0] }
 0x32e   :  { %v2611_v32 = vpop.f32.mrf.mxu0  ;;  %3476 = vmatpush.bf16.msrb.mxu0 %v8275_v59  ;;  %v8139_v54 = vor.u32 %v10096_v21, %v8138_v14  ;;  %3437 = vmatpush.bf16.msra.mxu1 %v8143_v23  ;;  %v2914_v63 = vperm.slane %v11263_v0, 0  ;;  %v8111_v10 = vor.u32 %v10086_v36, %v8108_v4  ;;  %v10082_v23 = vld [vmem:[#allocation12 + $0x4] sm:$0xf]  ;;  %v8178_v4 = vld [vmem:[#allocation12 + $0xa8] sm:$0xf] }
 0x32f   :  { %v2649_v20 = vadd.f32 %v11247_v55, %v2636_v28  ;;  %v2944_v38 = vpop.f32.mrf.mxu1  ;;  %3409 = vmatpush.bf16.msrb.mxu3 %v8171_v6  ;;  %v8087_v28 = vmul.f32 -1.442695, %v2982_v11  ;;  %3499 = vmatpush.bf16.msrb.mxu2 %v8327_v16  ;;  %v10117_v11 = vld [vmem:[#allocation12 + $0x114] sm:$0xf0]  ;;  %v8279_v16 = vor.u32 %v10127_v13, %v8276_v35  ;;  %v8228_v13 = vld [vmem:[#allocation12 + $0x118] sm:$0xf0] }
 0x330   :  { %v8227_v14 = vor.u32 %v10117_v11, %v8226_v5  ;;  %v10105_v5 = vld [vmem:[#allocation12 + $0xb4] sm:$0xf0] }
 0x331   :  { %v7989_v47 = vmul.f32 -1.442695, %v2649_v20  ;;  %v10092_v20 = vld [vmem:[#allocation12 + $0x4c] sm:$0xf0] }
 0x332   :  { %3477 = vmatpush.bf16.msrb.mxu0 %v8259_v33  ;;  %v8123_v19 = vor.u32 %v10092_v20, %v8122_v34  ;;  %3438 = vmatpush.bf16.msra.mxu1 %v8127_v49  ;;  %v10111_v34 = vld [vmem:[#allocation12 + $0xec] sm:$0xf]  ;;  %v8212_v20 = vld [vmem:[#allocation12 + $0xf8] sm:$0xf0] }
 0x333   :  { %v10564_v55 = vpop.eup %10563  ;;  %10565 = vpow2.f32 %v7989_v47  ;;  %3410 = vmatpush.bf16.msrb.mxu3 %v8155_v53  ;;  %v2594_v47 = vperm.slane %v11256_v57, 2  ;;  %3500 = vmatpush.bf16.msrb.mxu2 %v8311_v42  ;;  %v8295_v57 = vor.u32 %v10131_v29, %v8292_v27  ;;  %v8095_v42 = vor.u32 %v10082_v23, %v8092_v30 }
 0x334   :  { %v11269_v39 = vadd.f32 1.0, %v10564_v55  ;;  %v2637_v40 = vpop.f32.mrf.mxu2  ;;  %v8243_v55 = vor.u32 %v10121_v37, %v8242_v51  ;;  %v8215_v51 = vor.u32 %v10111_v34, %v8212_v20  ;;  %v8194_v37 = vld [vmem:[#allocation12 + $0xc8] sm:$0xf]  ;;  %v8422_v34 = vld [vmem:[#allocation8 + $0x9c] sm:$0xf0] }
 0x335   :  { %v10088_v40 = vld [vmem:[#allocation12 + $0x2c] sm:$0xf0] }
 0x336   :  { %10567 = vrcp.f32 %v11269_v39  ;;  %v11274_v9 = vpop.f32.mrf.mxu0  ;;  %v2717_v38 = vand.u32 2147483647, %v11269_v39  ;;  %v2719_v52 = vand.u32 2147483648, %v11269_v39  ;;  %vm2713_vm9 = vweird.f32 %v11269_v39  ;;  %3478 = vmatpush.bf16.msrb.mxu0 %v8243_v55  ;;  %3439 = vmatpush.bf16.msra.mxu1 %v8111_v10  ;;  %v8196_v55 = vld [vmem:[#allocation12 + $0xd8] sm:$0xf0] }
 0x337   :  { %3411 = vmatpush.bf16.msrb.mxu3 %v8139_v54  ;;  %v8107_v53 = vor.u32 %v10088_v40, %v8106_v61  ;;  %v2662_v56 = vadd.f32 %v11274_v9, %v2594_v47  ;;  %3501 = vmatpush.bf16.msrb.mxu2 %v8295_v57  ;;  %v8090_v54 = vld [vmem:[#allocation12] sm:$0xf]  ;;  %v8260_v47 = vld [vmem:[#allocation12 + $0x158] sm:$0xf0]  ;;  %v10115_v10 = vld [vmem:[#allocation12 + $0x10c] sm:$0xf] }
 0x338   :  { %vm2718_vm11 = vcmp.eq.f32.partialorder %v2717_v38, 8.507059e+37  ;;  %v8244_v57 = vld [vmem:[#allocation12 + $0x138] sm:$0xf0] }
 0x339   :  { %v10566_v50 = vpop.eup %10565 }
 0x33a   :  { %v11276_v15 = vadd.f32 1.0, %v10566_v50  ;;  %v2720_v50 = vor.u32 1.1754944e-38, %v2719_v52  ;;  %3479 = vmatpush.bf16.msrb.mxu0 %v8227_v14  ;;  %3440 = vmatpush.bf16.msra.mxu1 %v8095_v42  ;;  %v10107_v52 = vld [vmem:[#allocation12 + $0xcc] sm:$0xf]  ;;  %v10101_v14 = vld [vmem:[#allocation12 + $0x94] sm:$0xf0] }
 0x33b   :  { %3412 = vmatpush.bf16.msrb.mxu3 %v8123_v19  ;;  %3502 = vmatpush.bf16.msrb.mxu2 %v8279_v16  ;;  %v8199_v61 = vor.u32 %v10107_v52, %v8196_v55  ;;  %v10099_v16 = vld [vmem:[#allocation12 + $0x8c] sm:$0xf]  ;;  %v8130_v42 = vld [vmem:[#allocation12 + $0x48] sm:$0xf] }
 0x33c   :  { %v11279_v24 = vpop.eup %10567  ;;  %10569 = vrcp.f32 %v11276_v15  ;;  %v2687_v1 = vpop.f32.mrf.mxu2  ;;  %v2738_v48 = vand.u32 2147483648, %v11276_v15  ;;  %vm2732_vm13 = vweird.f32 %v11276_v15  ;;  %v10087_v55 = vld [vmem:[#allocation12 + $0x2c] sm:$0xf] }
 0x33d   :  { %v2709_v32 = vmul.f32 %v11279_v24, %v11269_v39  ;;  %v2688_v2 = vadd.f32 %v2687_v1, %v2595_v58  ;;  %vm2714_vm8 = vweird.f32 %v11279_v24  ;;  %10571 = vpow2.f32 %v8087_v28 }
 0x33e   :  { %v2663_v41 = vpop.f32.mrf.mxu0  ;;  %vm11300_vm10 = vmor %vm2713_vm9, %vm2714_vm8  ;;  %v2739_v21 = vor.u32 1.1754944e-38, %v2738_v48  ;;  %v8091_v1 = vor.u32 %v10084_v18, %v8090_v54  ;;  %v10109_v48 = vld [vmem:[#allocation12 + $0xd4] sm:$0xf0]  ;;  %3485 = vmatpush.bf16.msrb.mxu1 %v8215_v51  ;;  %v8231_v39 = vor.u32 %v10115_v10, %v8228_v13  ;;  %v10167_v18 = vld [vmem:[#allocation8 + $0xac] sm:$0xf]  ;;  %v2916_v10 = vperm.slane %v11263_v0, 2 }
 0x33f   :  { %v2710_v6 = vsub.f32 1.0, %v2709_v32  ;;  %v2701_v45 = vadd.f32 %v11251_v46, %v2688_v2  ;;  %3413 = vmatpush.bf16.msrb.mxu3 %v8107_v53  ;;  %v2675_v46 = vadd.f32 %v11249_v26, %v2662_v56  ;;  %v2736_v41 = vand.u32 2147483647, %v11276_v15  ;;  %v8410_v51 = vld [vmem:[#allocation8 + $0x84] sm:$0xf0] }
 0x340   :  { %v8195_v2 = vor.u32 %v10109_v48, %v8194_v37  ;;  %v8179_v56 = vor.u32 %v10105_v5, %v8178_v4  ;;  %v10089_v48 = vld [vmem:[#allocation12 + $0x34] sm:$0xf0]  ;;  %v8098_v5 = vld [vmem:[#allocation12 + $0x8] sm:$0xf] }
 0x341   :  { %v2711_v60 = vmul.f32 %v11279_v24, %v2710_v6  ;;  %vm2737_vm15 = vcmp.eq.f32.partialorder %v2736_v41, 8.507059e+37 }
 0x342   :  { %v11290_v62 = vpop.eup %10569  ;;  %3486 = vmatpush.bf16.msrb.mxu1 %v8199_v61  ;;  %v8398_v61 = vld [vmem:[#allocation8 + $0x6c] sm:$0xf0] }
 0x343   :  { %v2728_v8 = vmul.f32 %v11290_v62, %v11276_v15  ;;  %v2712_v3 = vadd.f32 %v11279_v24, %v2711_v60  ;;  %vm2733_vm12 = vweird.f32 %v11290_v62  ;;  %v10572_v38 = vpop.eup %10571  ;;  %3414 = vmatpush.bf16.msrb.mxu3 %v8091_v1  ;;  %v8263_v15 = vor.u32 %v10123_v12, %v8260_v47  ;;  %v10119_v60 = vld [vmem:[#allocation12 + $0x12c] sm:$0xf]  ;;  %v8132_v47 = vld [vmem:[#allocation12 + $0x58] sm:$0xf0] }
 0x344   :  { %v2689_v59 = vpop.f32.mrf.mxu2  ;;  %vm11315_vm14 = vmor %vm2732_vm13, %vm2733_vm12  ;;  %v8247_v40 = vor.u32 %v10119_v60, %v8244_v57  ;;  %v11324_v36 = vadd.f32 1.0, %v10572_v38  ;;  %v8148_v38 = vld [vmem:[#allocation12 + $0x78] sm:$0xf0]  ;;  %v10091_v12 = vld [vmem:[#allocation12 + $0x4c] sm:$0xf] }
 0x345   :  { %v2729_v9 = vsub.f32 1.0, %v2728_v8  ;;  %v2716_v58 = vsel %vm11300_vm10, %v11279_v24, %v2712_v3  ;;  %v10113_v24 = vld [vmem:[#allocation12 + $0xf4] sm:$0xf0]  ;;  %3503 = vmatpush.bf16.msrb.mxu2 %v8263_v15  ;;  %v8180_v3 = vld [vmem:[#allocation12 + $0xb8] sm:$0xf0]  ;;  %v8135_v37 = vor.u32 %v10091_v12, %v8132_v47 }
 0x346   :  { %v2721_v22 = vsel %vm2718_vm11, %v2720_v50, %v2716_v58  ;;  %v2929_v28 = vpop.f32.mrf.mxu0  ;;  %v8211_v43 = vor.u32 %v10113_v24, %v8210_v31  ;;  %v8162_v59 = vld [vmem:[#allocation12 + $0x88] sm:$0xf]  ;;  %v8164_v58 = vld [vmem:[#allocation12 + $0x98] sm:$0xf0]  ;;  %v10164_v24 = vld [vmem:[#allocation8 + $0x94] sm:$0xf]  ;;  %vm2992_vm5 = vweird.f32 %v11324_v36 }
 0x347   :  { %v2730_v32 = vmul.f32 %v11290_v62, %v2729_v9  ;;  %v2742_v33 = vmul.f32 %v2721_v22, %v2701_v45  ;;  %v2930_v7 = vadd.f32 %v2929_v28, %v2914_v63  ;;  %v8163_v45 = vor.u32 %v10101_v14, %v8162_v59  ;;  %v8434_v22 = vld [vmem:[#allocation8 + $0xb4] sm:$0xf0]  ;;  %v8146_v31 = vld [vmem:[#allocation12 + $0x68] sm:$0xf]  ;;  %v10158_v57 = vld [vmem:[#allocation8 + $0x64] sm:$0xf] }
 0x348   :  { %3459 = vmatpush.bf16.msra.mxu3 %v8211_v43  ;;  %v8167_v28 = vor.u32 %v10099_v16, %v8164_v58  ;;  %v10093_v43 = vld [vmem:[#allocation12 + $0x54] sm:$0xf0]  ;;  %v8114_v15 = vld [vmem:[#allocation12 + $0x28] sm:$0xf]  ;;  %v10155_v14 = vld [vmem:[#allocation8 + $0x4c] sm:$0xf] }
 0x349   :  { %v2743_v6 = vadd.f32 %v2742_v33, %v2675_v46  ;;  %v2959_v19 = vadd.f32 %v2930_v7, %v11267_v44  ;;  %v2731_v49 = vadd.f32 %v11290_v62, %v2730_v32  ;;  %3504 = vmatpush.bf16.msrb.mxu2 %v8247_v40  ;;  %v10097_v32 = vld [vmem:[#allocation12 + $0x74] sm:$0xf0]  ;;  %v10095_v46 = vld [vmem:[#allocation12 + $0x6c] sm:$0xf]  ;;  %v8115_v40 = vor.u32 %v10089_v48, %v8114_v15  ;;  %v8386_v16 = vld [vmem:[#allocation8 + $0x54] sm:$0xf0] }
 0x34a   :  { %v8147_v20 = vor.u32 %v10097_v32, %v8146_v31  ;;  %v8151_v41 = vor.u32 %v10095_v46, %v8148_v38  ;;  %v8374_v31 = vld [vmem:[#allocation8 + $0x3c] sm:$0xf0]  ;;  %v8420_v48 = vld [vmem:[#allocation8 + $0x90] sm:$0xf] }
 0x34b   :  { %10573 = vtanh.f32 %v2743_v6  ;;  %v8086_v29 = vmul.f32 -1.442695, %v2959_v19  ;;  %v2735_v27 = vsel %vm11315_vm14, %v11290_v62, %v2731_v49  ;;  %v10103_v62 = vld [vmem:[#allocation12 + $0xac] sm:$0xf]  ;;  %v8425_v6 = vor.u32 %v10164_v24, %v8422_v34  ;;  %v10161_v19 = vld [vmem:[#allocation8 + $0x7c] sm:$0xf] }
 0x34c   :  { %v2740_v53 = vsel %vm2737_vm15, %v2739_v21, %v2735_v27  ;;  %3460 = vmatpush.bf16.msra.mxu3 %v8195_v2  ;;  %v8183_v11 = vor.u32 %v10103_v62, %v8180_v3  ;;  %v8131_v49 = vor.u32 %v10093_v43, %v8130_v42  ;;  %v8413_v60 = vor.u32 %v10161_v19, %v8410_v51  ;;  %v10083_v62 = vld [vmem:[#allocation12 + $0xc] sm:$0xf]  ;;  %v8100_v3 = vld [vmem:[#allocation12 + $0x18] sm:$0xf0]  ;;  %v8362_v34 = vld [vmem:[#allocation8 + $0x24] sm:$0xf0] }
 0x34d   :  { %10575 = vpow2.f32 %v8086_v29  ;;  %v11326_v63 = vpop.f32.mrf.mxu2  ;;  %v2745_v35 = vsub.f32 1.0, %v2740_v53  ;;  %v2747_v21 = vmul.f32 %v2740_v53, %v11201_v17  ;;  %3505 = vmatpush.bf16.msrb.mxu2 %v8231_v39  ;;  %v8437_v17 = vor.u32 %v10167_v18, %v8434_v22  ;;  %v8116_v29 = vld [vmem:[#allocation12 + $0x38] sm:$0xf0]  ;;  %v10169_v19 = vld [vmem:[#allocation8 + $0xb8] sm:$0xf0] }
 0x34e   :  { %v2931_v8 = vpop.f32.mrf.mxu0  ;;  %10577 = vrcp.f32 %v11324_v36  ;;  %3487 = vmatpush.bf16.msrb.mxu1 %v8183_v11  ;;  %v8119_v4 = vor.u32 %v10087_v55, %v8116_v29  ;;  %v8401_v39 = vor.u32 %v10158_v57, %v8398_v61  ;;  %v2956_v0 = vadd.f32 %v11326_v63, %v2916_v10  ;;  %v8428_v55 = vld [vmem:[#allocation8 + $0x98] sm:$0xf]  ;;  %v10166_v29 = vld [vmem:[#allocation8 + $0xa0] sm:$0xf0]  ;;  %v8416_v57 = vld [vmem:[#allocation8 + $0x80] sm:$0xf] }
 0x34f   :  { %v10085_v8 = vld [vmem:[#allocation12 + $0x14] sm:$0xf0]  ;;  %v8389_v18 = vor.u32 %v10155_v14, %v8386_v16  ;;  %v2998_v22 = vand.u32 2147483648, %v11324_v36  ;;  %v2996_v63 = vand.u32 2147483647, %v11324_v36 }
 0x350   :  { %3461 = vmatpush.bf16.msra.mxu3 %v8179_v56  ;;  %v10163_v61 = vld [vmem:[#allocation8 + $0x88] sm:$0xf0]  ;;  %v8384_v10 = vld [vmem:[#allocation8 + $0x48] sm:$0xf]  ;;  %v10153_v14 = vld [vmem:[#allocation8 + $0x38] sm:$0xf0] }
 0x351   :  { %v10574_v50 = vpop.eup %10573  ;;  %v2999_v24 = vor.u32 1.1754944e-38, %v2998_v22  ;;  %vm2997_vm7 = vcmp.eq.f32.partialorder %v2996_v63, 8.507059e+37  ;;  %v8380_v16 = vld [vmem:[#allocation8 + $0x38] sm:$0xf]  ;;  %v10148_v63 = vld [vmem:[#allocation8 + $0x10] sm:$0xf0] }
 0x352   :  { %v2746_v9 = vmul.f32 %v10574_v50, %v2745_v35  ;;  %3488 = vmatpush.bf16.msrb.mxu1 %v8167_v28  ;;  %v8099_v50 = vor.u32 %v10085_v8, %v8098_v5  ;;  %v10159_v5 = vld [vmem:[#allocation8 + $0x68] sm:$0xf0]  ;;  %v8404_v8 = vld [vmem:[#allocation8 + $0x68] sm:$0xf] }
 0x353   :  { %v10576_v54 = vpop.eup %10575 }
 0x354   :  { %v11330_v1 = vadd.f32 1.0, %v10576_v54  ;;  %v11332_v23 = vadd.f32 %v2747_v21, %v2746_v9  ;;  %3462 = vmatpush.bf16.msra.mxu3 %v8163_v45  ;;  %v11336_v33 = vpop.eup %10577  ;;  %v8103_v9 = vor.u32 %v10083_v62, %v8100_v3 }
 0x355   :  { %v2957_v30 = vpop.f32.mrf.mxu2  ;;  %v2988_v26 = vmul.f32 %v11336_v33, %v11324_v36  ;;  %vm2993_vm4 = vweird.f32 %v11336_v33  ;;  %v8350_v36 = vld [vmem:[#allocation8 + $0xc] sm:$0xf0] }
 0x356   :  { %10579 = vrcp.f32 %v11330_v1  ;;  %2749 = vst [vmem:[#allocation14 + $0x2] sm:$0x1] %v11332_v23  ;;  %v11340_v7 = vpack.c.bf16 %v11332_v23, %v11332_v23  ;;  %3489 = vmatpush.bf16.msrb.mxu1 %v8151_v41  ;;  %v2975_v56 = vand.u32 2147483648, %v11330_v1  ;;  %v2973_v13 = vand.u32 2147483647, %v11330_v1  ;;  %vm2994_vm6 = vmor %vm2992_vm5, %vm2993_vm4 }
 0x357   :  { %v2989_v2 = vsub.f32 1.0, %v2988_v26  ;;  %vm2969_vm1 = vweird.f32 %v11330_v1  ;;  %v10152_v30 = vld [vmem:[#allocation8 + $0x34] sm:$0xf]  ;;  %v10146_v41 = vld [vmem:[#allocation8 + $0x4] sm:$0xf] }
 0x358   :  { %3428 = vmatmul.bf16.vlgmr.msra.gmra.mxu0 %v11340_v7  ;;  %3454 = vmatmul.bf16.vlgmr.msra.gmra.mxu2 %v11340_v7  ;;  %v2976_v21 = vor.u32 1.1754944e-38, %v2975_v56  ;;  %vm2974_vm3 = vcmp.eq.f32.partialorder %v2973_v13, 8.507059e+37  ;;  %v10168_v26 = vld [vmem:[#allocation8 + $0xb0] sm:$0xf0]  ;;  %v8392_v13 = vld [vmem:[#allocation8 + $0x50] sm:$0xf] }
 0x359   :  { %3740 = vmatpush.bf16.msra.mxu0 %v8437_v17  ;;  %3463 = vmatpush.bf16.msra.mxu3 %v8147_v20  ;;  %v2990_v35 = vmul.f32 %v11336_v33, %v2989_v2  ;;  %v8377_v17 = vor.u32 %v10152_v30, %v8374_v31  ;;  %v8408_v2 = vld [vmem:[#allocation8 + $0x78] sm:$0xf]  ;;  %v10160_v56 = vld [vmem:[#allocation8 + $0x70] sm:$0xf0]  ;;  %v10147_v30 = vld [vmem:[#allocation8 + $0x8] sm:$0xf0] }
 0x35a   :  { %3490 = vmatpush.bf16.msrb.mxu1 %v8135_v37  ;;  %v8405_v3 = vor.u32 %v10160_v56, %v8404_v8  ;;  %v8356_v31 = vld [vmem:[#allocation8 + $0x8] sm:$0xf] }
 0x35b   :  { %v2991_v54 = vadd.f32 %v11336_v33, %v2990_v35  ;;  %v10157_v35 = vld [vmem:[#allocation8 + $0x58] sm:$0xf0] }
 0x35c   :  { %v10580_v52 = vpop.eup %10579 }
 0x35d   :  { %v2965_v27 = vmul.f32 %v10580_v52, %v11330_v1  ;;  %3741 = vmatpush.bf16.msra.mxu0 %v8425_v6  ;;  %3464 = vmatpush.bf16.msra.mxu3 %v8131_v49  ;;  %vm2970_vm0 = vweird.f32 %v10580_v52  ;;  %v3003_v1 = vrot.slane %v11267_v44, 2  ;;  %v2995_v46 = vsel %vm2994_vm6, %v11336_v33, %v2991_v54  ;;  %v10149_v44 = vld [vmem:[#allocation8 + $0x1c] sm:$0xf]  ;;  %v8432_v33 = vld [vmem:[#allocation8 + $0xa8] sm:$0xf] }
 0x35e   :  { %3491 = vmatpush.bf16.msrb.mxu1 %v8119_v4  ;;  %vm2971_vm2 = vmor %vm2969_vm1, %vm2970_vm0  ;;  %v3000_v20 = vsel %vm2997_vm7, %v2999_v24, %v2995_v46  ;;  %v8365_v38 = vor.u32 %v10149_v44, %v8362_v34  ;;  %v8440_v6 = vld [vmem:[#allocation8 + $0xb0] sm:$0xf]  ;;  %v8433_v51 = vor.u32 %v10168_v26, %v8432_v33  ;;  %v8396_v4 = vld [vmem:[#allocation8 + $0x60] sm:$0xf]  ;;  %v8357_v46 = vor.u32 %v10148_v63, %v8356_v31 }
 0x35f   :  { %v2966_v53 = vsub.f32 1.0, %v2965_v27  ;;  %v3007_v42 = vsub.f32 1.0, %v3000_v20  ;;  %v3009_v47 = vmul.f32 %v3000_v20, %v11232_v25  ;;  %v8441_v15 = vor.u32 %v10169_v19, %v8440_v6  ;;  %v8368_v54 = vld [vmem:[#allocation8 + $0x20] sm:$0xf]  ;;  %v10232_v24 = vld [vmem:[#allocation12 + $0x1ec] sm:$0xf0] }
 0x360   :  { %v8429_v27 = vor.u32 %v10166_v29, %v8428_v55  ;;  %v8397_v62 = vor.u32 %v10159_v5, %v8396_v4  ;;  %v8654_v33 = vld [vmem:[#allocation12 + $0x1a0] sm:$0xf]  ;;  %v10224_v26 = vld [vmem:[#allocation12 + $0x1ac] sm:$0xf0]  ;;  %v11383_v6 = vld [vmem:[%s11902_s6] sm:$0xf] }
 0x361   :  { %v2967_v11 = vmul.f32 %v10580_v52, %v2966_v53  ;;  %3742 = vmatpush.bf16.msra.mxu0 %v8413_v60  ;;  %3465 = vmatpush.bf16.msra.mxu3 %v8115_v40  ;;  %v10162_v60 = vld [vmem:[#allocation8 + $0x80] sm:$0xf0]  ;;  %v8417_v53 = vor.u32 %v10163_v61, %v8416_v57  ;;  %v8655_v19 = vor.u32 %v10224_v26, %v8654_v33  ;;  %v8688_v55 = vld [vmem:[#allocation12 + $0x1f0] sm:$0xf0]  ;;  %v8622_v57 = vld [vmem:[#allocation12 + $0x160] sm:$0xf] }
 0x362   :  { %3492 = vmatpush.bf16.msrb.mxu1 %v8103_v9  ;;  %v8409_v40 = vor.u32 %v10162_v60, %v8408_v2  ;;  %v10154_v9 = vld [vmem:[#allocation8 + $0x40] sm:$0xf0]  ;;  %v10216_v61 = vld [vmem:[#allocation12 + $0x16c] sm:$0xf0]  ;;  %v8672_v4 = vld [vmem:[#allocation12 + $0x1d0] sm:$0xf0] }
 0x363   :  { %v2968_v59 = vadd.f32 %v10580_v52, %v2967_v11  ;;  %v10156_v11 = vld [vmem:[#allocation8 + $0x50] sm:$0xf0]  ;;  %v3399_v8 = vperm.slane %v11383_v6, 0  ;;  %v10204_v31 = vld [vmem:[#allocation12 + $0x10c] sm:$0xf0] }
 0x364   :  { %v10200_v33 = vld [vmem:[#allocation12 + $0xec] sm:$0xf0]  ;;  %v10198_v26 = vld [vmem:[#allocation12 + $0xe4] sm:$0xf] }
 0x365   :  { %v2972_v45 = vsel %vm2971_vm2, %v10580_v52, %v2968_v59  ;;  %3743 = vmatpush.bf16.msra.mxu0 %v8401_v39  ;;  %3466 = vmatpush.bf16.msra.mxu3 %v8099_v50  ;;  %v10165_v52 = vld [vmem:[#allocation8 + $0x98] sm:$0xf0]  ;;  %v8385_v39 = vor.u32 %v10156_v11, %v8384_v10  ;;  %v8393_v50 = vor.u32 %v10157_v35, %v8392_v13  ;;  %v8372_v59 = vld [vmem:[#allocation8 + $0x30] sm:$0xf]  ;;  %v10212_v10 = vld [vmem:[#allocation12 + $0x14c] sm:$0xf0] }
 0x366   :  { %v2977_v58 = vsel %vm2974_vm3, %v2976_v21, %v2972_v45  ;;  %v8421_v25 = vor.u32 %v10165_v52, %v8420_v48  ;;  %v8373_v21 = vor.u32 %v10153_v14, %v8372_v59  ;;  %v8360_v45 = vld [vmem:[#allocation8 + $0x18] sm:$0xf]  ;;  %v10230_v52 = vld [vmem:[#allocation12 + $0x1e4] sm:$0xf] }
 0x367   :  { %v3002_v28 = vmul.f32 %v2977_v58, %v2956_v0  ;;  %v8381_v0 = vor.u32 %v10154_v9, %v8380_v16  ;;  %v10150_v58 = vld [vmem:[#allocation8 + $0x20] sm:$0xf0]  ;;  %v10222_v35 = vld [vmem:[#allocation12 + $0x1a4] sm:$0xf] }
 0x368   :  { %3480 = vmatmul.bf16.vlgmr.msrb.gmra.mxu0 %v11340_v7  ;;  %3506 = vmatmul.bf16.vlgmr.msrb.gmra.mxu2 %v11340_v7  ;;  %v8353_v7 = vor.u32 %v10146_v41, %v8350_v36  ;;  %v8361_v22 = vor.u32 %v10150_v58, %v8360_v45  ;;  %v10218_v58 = vld [vmem:[#allocation12 + $0x184] sm:$0xf] }
 0x369   :  { %v3005_v32 = vadd.f32 %v3003_v1, %v3002_v28  ;;  %3744 = vmatpush.bf16.msra.mxu0 %v8389_v18  ;;  %v10151_v18 = vld [vmem:[#allocation8 + $0x28] sm:$0xf0]  ;;  %v8348_v1 = vld [vmem:[#allocation8] sm:$0xf] }
 0x36a   :  { %v8369_v28 = vor.u32 %v10151_v18, %v8368_v54  ;;  %v8640_v54 = vld [vmem:[#allocation12 + $0x190] sm:$0xf0]  ;;  %v11387_v18 = vld [vmem:[#allocation11] sm:$0x7] }
 0x36b   :  { %10581 = vtanh.f32 %v3005_v32  ;;  %v8349_v32 = vor.u32 %v10147_v30, %v8348_v1  ;;  %v8574_v30 = vld [vmem:[#allocation12 + $0x100] sm:$0xf] }
 0x36d   :  { %3745 = vmatpush.bf16.msra.mxu0 %v8377_v17  ;;  %v8686_v17 = vld [vmem:[#allocation12 + $0x1e0] sm:$0xf] }
 0x36e   :  { %v8687_v44 = vor.u32 %v10232_v24, %v8686_v17  ;;  %v8575_v17 = vor.u32 %v10204_v31, %v8574_v30  ;;  %v10214_v24 = vld [vmem:[#allocation12 + $0x164] sm:$0xf] }
 0x371   :  { %v10582_v43 = vpop.eup %10581  ;;  %3746 = vmatpush.bf16.msra.mxu0 %v8365_v38 }
 0x372   :  { %v3008_v12 = vmul.f32 %v10582_v43, %v3007_v42  ;;  %v8670_v42 = vld [vmem:[#allocation12 + $0x1c0] sm:$0xf]  ;;  %v10228_v43 = vld [vmem:[#allocation12 + $0x1cc] sm:$0xf0] }
 0x374   :  { %v11363_v49 = vadd.f32 %v3009_v47, %v3008_v12  ;;  %v8671_v12 = vor.u32 %v10228_v43, %v8670_v42  ;;  %v11395_v42 = vld [vmem:[#allocation2 + $0x4] ss:$8 sm:$0x7] }
 0x375   :  { %3747 = vmatpush.bf16.msra.mxu0 %v8353_v7  ;;  %v8558_v43 = vld [vmem:[#allocation12 + $0xe0] sm:$0xf] }
 0x376   :  { %v11367_v37 = vpack.c.bf16 %v11363_v49, %v11363_v49 }
 0x378   :  { %3415 = vmatmul.bf16.vlgmr.msrb.gmra.mxu3 %v11367_v37  ;;  %3441 = vmatmul.bf16.vlgmr.msra.gmra.mxu1 %v11367_v37 }
 0x379   :  { %3748 = vmatmul.bf16.vlgmr.msra.gmra.mxu0 %v11367_v37  ;;  %3727 = vmatpush.bf16.msrb.mxu3 %v8433_v51  ;;  %v3400_v51 = vperm.slane %v11383_v6, 1 }
 0x37a   :  { %3753 = vmatpush.bf16.msra.mxu1 %v8441_v15  ;;  %v10220_v15 = vld [vmem:[#allocation12 + $0x18c] sm:$0xf0] }
 0x37d   :  { %3728 = vmatpush.bf16.msrb.mxu3 %v8421_v25  ;;  %v8691_v25 = vor.u32 %v10230_v52, %v8688_v55 }
 0x37e   :  { %3754 = vmatpush.bf16.msra.mxu1 %v8429_v27 }
 0x381   :  { %3729 = vmatpush.bf16.msrb.mxu3 %v8409_v40  ;;  %v8623_v40 = vor.u32 %v10216_v61, %v8622_v57  ;;  %v8542_v61 = vld [vmem:[#allocation12 + $0xc0] sm:$0xf] }
 0x382   :  { %3755 = vmatpush.bf16.msra.mxu1 %v8417_v53  ;;  %v10226_v53 = vld [vmem:[#allocation12 + $0x1c4] sm:$0xf] }
 0x383   :  { %v8675_v56 = vor.u32 %v10226_v53, %v8672_v4  ;;  %v10194_v53 = vld [vmem:[#allocation12 + $0xc4] sm:$0xf] }
 0x385   :  { %3730 = vmatpush.bf16.msrb.mxu3 %v8397_v62 }
 0x386   :  { %3756 = vmatpush.bf16.msra.mxu1 %v8405_v3  ;;  %v8606_v3 = vld [vmem:[#allocation12 + $0x140] sm:$0xf] }
 0x387   :  { %v8607_v13 = vor.u32 %v10212_v10, %v8606_v3  ;;  %v8662_v10 = vld [vmem:[#allocation12 + $0x1a8] sm:$0xf] }
 0x388   :  { %3467 = vmatmul.bf16.vlgmr.msra.gmra.mxu3 %v11367_v37  ;;  %3493 = vmatmul.bf16.vlgmr.msrb.gmra.mxu1 %v11367_v37 }
 0x389   :  { %3731 = vmatpush.bf16.msrb.mxu3 %v8385_v39  ;;  %v8656_v39 = vld [vmem:[#allocation12 + $0x1b0] sm:$0xf0] }
 0x38a   :  { %3757 = vmatpush.bf16.msra.mxu1 %v8393_v50  ;;  %v8659_v59 = vor.u32 %v10222_v35, %v8656_v39 }
 0x38d   :  { %3732 = vmatpush.bf16.msrb.mxu3 %v8373_v21  ;;  %v8590_v21 = vld [vmem:[#allocation12 + $0x120] sm:$0xf] }
 0x38e   :  { %3758 = vmatpush.bf16.msra.mxu1 %v8381_v0  ;;  %v10208_v0 = vld [vmem:[#allocation12 + $0x12c] sm:$0xf0] }
 0x38f   :  { %v8591_v45 = vor.u32 %v10208_v0, %v8590_v21  ;;  %v10190_v0 = vld [vmem:[#allocation12 + $0xa4] sm:$0xf] }
 0x391   :  { %3733 = vmatpush.bf16.msrb.mxu3 %v8361_v22 }
 0x392   :  { %3759 = vmatpush.bf16.msra.mxu1 %v8369_v28  ;;  %v8643_v28 = vor.u32 %v10218_v58, %v8640_v54 }
 0x395   :  { %3734 = vmatpush.bf16.msrb.mxu3 %v8349_v32  ;;  %v3722_v32 = vperm.slane %v11387_v18, 1 }
 0x396   :  { %3760 = vmatpush.bf16.msra.mxu1 %v8357_v46 }
 0x398   :  { %3735 = vmatmul.bf16.vlgmr.msrb.gmra.mxu3 %v11367_v37 }
 0x399   :  { %3761 = vmatmul.bf16.vlgmr.msra.gmra.mxu1 %v11367_v37  ;;  %4227 = vmatpush.bf16.msra.mxu3 %v8687_v44  ;;  %v8638_v37 = vld [vmem:[#allocation12 + $0x180] sm:$0xf]  ;;  %v8624_v44 = vld [vmem:[#allocation12 + $0x170] sm:$0xf0] }
 0x39a   :  { %v8639_v48 = vor.u32 %v10220_v15, %v8638_v37  ;;  %4253 = vmatpush.bf16.msrb.mxu1 %v8691_v25  ;;  %v8560_v37 = vld [vmem:[#allocation12 + $0xf0] sm:$0xf0]  ;;  %v10210_v15 = vld [vmem:[#allocation12 + $0x144] sm:$0xf]  ;;  %v8678_v25 = vld [vmem:[#allocation12 + $0x1c8] sm:$0xf] }
 0x39b   :  { %v8563_v55 = vor.u32 %v10198_v26, %v8560_v37  ;;  %v8512_v26 = vld [vmem:[#allocation12 + $0x90] sm:$0xf0] }
 0x39d   :  { %4228 = vmatpush.bf16.msra.mxu3 %v8671_v12  ;;  %4240 = vmatpush.bf16.msrb.mxu0 %v8563_v55  ;;  %v10227_v55 = vld [vmem:[#allocation12 + $0x1cc] sm:$0xf] }
 0x39e   :  { %4254 = vmatpush.bf16.msrb.mxu1 %v8675_v56  ;;  %v10206_v56 = vld [vmem:[#allocation12 + $0x124] sm:$0xf] }
 0x3a1   :  { %4229 = vmatpush.bf16.msra.mxu3 %v8655_v19 }
 0x3a2   :  { %4255 = vmatpush.bf16.msrb.mxu1 %v8659_v59  ;;  %v10192_v59 = vld [vmem:[#allocation12 + $0xac] sm:$0xf0] }
 0x3a5   :  { %4230 = vmatpush.bf16.msra.mxu3 %v8639_v48  ;;  %v3787_v48 = vrot.slane %v11395_v42, 1 }
 0x3a6   :  { %4256 = vmatpush.bf16.msrb.mxu1 %v8643_v28  ;;  %v8576_v28 = vld [vmem:[#allocation12 + $0x110] sm:$0xf0] }
 0x3a9   :  { %4231 = vmatpush.bf16.msra.mxu3 %v8623_v40  ;;  %v10196_v40 = vld [vmem:[#allocation12 + $0xcc] sm:$0xf0] }
 0x3aa   :  { %v8543_v35 = vor.u32 %v10196_v40, %v8542_v61  ;;  %v8494_v40 = vld [vmem:[#allocation12 + $0x60] sm:$0xf] }
 0x3ad   :  { %4232 = vmatpush.bf16.msra.mxu3 %v8607_v13  ;;  %v3402_v13 = vperm.slane %v11383_v6, 3 }
 0x3b1   :  { %4233 = vmatpush.bf16.msra.mxu3 %v8591_v45  ;;  %v8528_v45 = vld [vmem:[#allocation12 + $0xb0] sm:$0xf0] }
 0x3b2   :  { %v8531_v54 = vor.u32 %v10190_v0, %v8528_v45  ;;  %v8478_v0 = vld [vmem:[#allocation12 + $0x40] sm:$0xf]  ;;  %v10180_v45 = vld [vmem:[#allocation12 + $0x4c] sm:$0xf0] }
 0x3b5   :  { %4234 = vmatpush.bf16.msra.mxu3 %v8575_v17  ;;  %v8696_v17 = vld [vmem:[#allocation12 + $0x1f8] sm:$0xf0] }
 0x3d5   :  { %v3429_v34 = vpop.f32.mrf.mxu0 }
 0x3db   :  { %v3455_v20 = vpop.f32.mrf.mxu2 }
 0x3dd   :  { %v3431_v38 = vpop.f32.mrf.mxu0 }
 0x3de   :  { %v10233_v38 = vld [vmem:[#allocation12 + $0x1f4] sm:$0xf0] }
 0x3e3   :  { %v3457_v41 = vpop.f32.mrf.mxu2 }
 0x3e5   :  { %v11376_v36 = vpop.f32.mrf.mxu0 }
 0x3eb   :  { %v11378_v47 = vpop.f32.mrf.mxu2 }
 0x3ed   :  { %v3483_v7 = vpop.f32.mrf.mxu0 }
 0x3f3   :  { %v3509_v29 = vpop.f32.mrf.mxu2 }
 0x3f4   :  { %v8608_v29 = vld [vmem:[#allocation12 + $0x150] sm:$0xf0] }
 0x3f5   :  { %v3442_v27 = vpop.f32.mrf.mxu1 }
 0x3f6   :  { %v3443_v2 = vadd.f32 %v3442_v27, %v3400_v51  ;;  %v3749_v60 = vpop.f32.mrf.mxu0  ;;  %v8559_v51 = vor.u32 %v10200_v33, %v8558_v43  ;;  %v8611_v27 = vor.u32 %v10210_v15, %v8608_v29 }
 0x3f7   :  { %v3750_v12 = vadd.f32 %v3749_v60, %v3722_v32  ;;  %v10221_v32 = vld [vmem:[#allocation12 + $0x194] sm:$0xf0] }
 0x3f8   :  { %v3456_v5 = vadd.f32 %v3455_v20, %v3443_v2  ;;  %v8694_v20 = vld [vmem:[#allocation12 + $0x1e8] sm:$0xf]  ;;  %4214 = vmatpush.bf16.msra.mxu2 %v8559_v51  ;;  %v10229_v2 = vld [vmem:[#allocation12 + $0x1d4] sm:$0xf0] }
 0x3f9   :  { %v8695_v7 = vor.u32 %v10233_v38, %v8694_v20  ;;  %v3789_v57 = vadd.f32 %v3787_v48, %v3750_v12  ;;  %v10188_v20 = vld [vmem:[#allocation12 + $0x8c] sm:$0xf0]  ;;  %v10186_v38 = vld [vmem:[#allocation12 + $0x84] sm:$0xf]  ;;  %v3401_v12 = vperm.slane %v11383_v6, 2 }
 0x3fa   :  { %v8345_v62 = vmul.f32 -1.442695, %v3456_v5  ;;  %v8679_v5 = vor.u32 %v10229_v2, %v8678_v25  ;;  %v8515_v15 = vor.u32 %v10186_v38, %v8512_v26  ;;  %v10217_v48 = vld [vmem:[#allocation12 + $0x174] sm:$0xf0]  ;;  %v8680_v2 = vld [vmem:[#allocation12 + $0x1d8] sm:$0xf0] }
 0x3fb   :  { %v3416_v11 = vpop.f32.mrf.mxu3  ;;  %4279 = vmatpush.bf16.msrb.mxu3 %v8695_v7 }
 0x3fc   :  { %10583 = vpow2.f32 %v8345_v62  ;;  %v3417_v50 = vadd.f32 %v3416_v11, %v3399_v8  ;;  %v8544_v8 = vld [vmem:[#allocation12 + $0xd0] sm:$0xf0]  ;;  %v10225_v11 = vld [vmem:[#allocation12 + $0x1b4] sm:$0xf0]  ;;  %4215 = vmatpush.bf16.msra.mxu2 %v8543_v35  ;;  %v8614_v35 = vld [vmem:[#allocation12 + $0x148] sm:$0xf] }
 0x3fd   :  { %v3444_v14 = vpop.f32.mrf.mxu1  ;;  %v8592_v62 = vld [vmem:[#allocation12 + $0x130] sm:$0xf0]  ;;  %v8547_v39 = vor.u32 %v10194_v53, %v8544_v8  ;;  %v8663_v21 = vor.u32 %v10225_v11, %v8662_v10  ;;  %v10184_v53 = vld [vmem:[#allocation12 + $0x6c] sm:$0xf0]  ;;  %v3721_v8 = vperm.slane %v11387_v18, 0 }
 0x3fe   :  { %v3430_v16 = vadd.f32 %v3429_v34, %v3417_v50  ;;  %v3751_v9 = vpop.f32.mrf.mxu0  ;;  %v8627_v34 = vor.u32 %v10214_v24, %v8624_v44  ;;  %v8526_v50 = vld [vmem:[#allocation12 + $0xa0] sm:$0xf]  ;;  %v8495_v11 = vor.u32 %v10184_v53, %v8494_v40 }
 0x3ff   :  { %4280 = vmatpush.bf16.msrb.mxu3 %v8679_v5  ;;  %v8595_v9 = vor.u32 %v10206_v56, %v8592_v62  ;;  %4241 = vmatpush.bf16.msrb.mxu0 %v8547_v39  ;;  %v8527_v58 = vor.u32 %v10192_v59, %v8526_v50  ;;  %v8683_v56 = vor.u32 %v10227_v55, %v8680_v2  ;;  %v10182_v62 = vld [vmem:[#allocation12 + $0x64] sm:$0xf]  ;;  %v10213_v39 = vld [vmem:[#allocation12 + $0x154] sm:$0xf0]  ;;  %v10223_v50 = vld [vmem:[#allocation12 + $0x1ac] sm:$0xf] }
 0x400   :  { %v8344_v22 = vmul.f32 -1.442695, %v3430_v16  ;;  %4257 = vmatpush.bf16.msrb.mxu1 %v8627_v34  ;;  %v8443_v16 = vmul.f32 -1.442695, %v3789_v57  ;;  %v8510_v34 = vld [vmem:[#allocation12 + $0x80] sm:$0xf] }
 0x401   :  { %4216 = vmatpush.bf16.msra.mxu2 %v8527_v58  ;;  %v8511_v37 = vor.u32 %v10188_v20, %v8510_v34  ;;  %v10178_v58 = vld [vmem:[#allocation12 + $0x44] sm:$0xf]  ;;  %v10219_v34 = vld [vmem:[#allocation12 + $0x18c] sm:$0xf]  ;;  %v8648_v20 = vld [vmem:[#allocation12 + $0x198] sm:$0xf0] }
 0x402   :  { %v10584_v1 = vpop.eup %10583  ;;  %10585 = vpow2.f32 %v8344_v22  ;;  %v10202_v22 = vld [vmem:[#allocation12 + $0x104] sm:$0xf]  ;;  %v8464_v55 = vld [vmem:[#allocation12 + $0x30] sm:$0xf0]  ;;  %v8446_v53 = vld [vmem:[#allocation12] sm:$0xf] }
 0x403   :  { %v11389_v63 = vadd.f32 1.0, %v10584_v1  ;;  %v3418_v46 = vpop.f32.mrf.mxu3  ;;  %v8646_v1 = vld [vmem:[#allocation12 + $0x188] sm:$0xf]  ;;  %v8579_v31 = vor.u32 %v10202_v22, %v8576_v28  ;;  %4281 = vmatpush.bf16.msrb.mxu3 %v8663_v21  ;;  %4242 = vmatpush.bf16.msrb.mxu0 %v8531_v54 }
 0x404   :  { %4258 = vmatpush.bf16.msrb.mxu1 %v8611_v27  ;;  %v10231_v46 = vld [vmem:[#allocation12 + $0x1ec] sm:$0xf]  ;;  %v8647_v44 = vor.u32 %v10221_v32, %v8646_v1  ;;  %v8479_v1 = vor.u32 %v10180_v45, %v8478_v0  ;;  %v8598_v32 = vld [vmem:[#allocation12 + $0x128] sm:$0xf]  ;;  %v10197_v45 = vld [vmem:[#allocation12 + $0xd4] sm:$0xf0] }
 0x405   :  { %v11392_v41 = vpop.f32.mrf.mxu1  ;;  %10587 = vrcp.f32 %v11389_v63  ;;  %v8699_v33 = vor.u32 %v10231_v46, %v8696_v17  ;;  %4217 = vmatpush.bf16.msra.mxu2 %v8511_v37  ;;  %v3545_v59 = vand.u32 2147483648, %v11389_v63  ;;  %v10209_v46 = vld [vmem:[#allocation12 + $0x134] sm:$0xf0]  ;;  %vm3539_vm13 = vweird.f32 %v11389_v63  ;;  %v10176_v37 = vld [vmem:[#allocation12 + $0x2c] sm:$0xf0] }
 0x406   :  { %v3495_v29 = vadd.f32 %v11392_v41, %v3402_v13 }
 0x407   :  { %4282 = vmatpush.bf16.msrb.mxu3 %v8647_v44  ;;  %4243 = vmatpush.bf16.msrb.mxu0 %v8515_v15  ;;  %v3546_v38 = vor.u32 1.1754944e-38, %v3545_v59  ;;  %v10174_v15 = vld [vmem:[#allocation12 + $0x24] sm:$0xf]  ;;  %v10211_v59 = vld [vmem:[#allocation12 + $0x14c] sm:$0xf] }
 0x408   :  { %v10586_v19 = vpop.eup %10585  ;;  %4259 = vmatpush.bf16.msrb.mxu1 %v8595_v9  ;;  %v8615_v9 = vor.u32 %v10213_v39, %v8614_v35  ;;  %v8467_v2 = vor.u32 %v10174_v15, %v8464_v55  ;;  %v10189_v55 = vld [vmem:[#allocation12 + $0x94] sm:$0xf0] }
 0x409   :  { %v11398_v52 = vadd.f32 1.0, %v10586_v19  ;;  %v8630_v19 = vld [vmem:[#allocation12 + $0x168] sm:$0xf]  ;;  %4218 = vmatpush.bf16.msra.mxu2 %v8495_v11  ;;  %v10201_v11 = vld [vmem:[#allocation12 + $0xf4] sm:$0xf0] }
 0x40a   :  { %v8631_v61 = vor.u32 %v10217_v48, %v8630_v19  ;;  %v8651_v19 = vor.u32 %v10219_v34, %v8648_v20  ;;  %v8534_v34 = vld [vmem:[#allocation12 + $0xa8] sm:$0xf]  ;;  %v10193_v20 = vld [vmem:[#allocation12 + $0xb4] sm:$0xf0] }
 0x40b   :  { %10589 = vrcp.f32 %v11398_v52  ;;  %v11401_v60 = vpop.f32.mrf.mxu3  ;;  %v11403_v4 = vpop.eup %10587  ;;  %v3524_v25 = vand.u32 2147483647, %v11398_v52  ;;  %v3526_v27 = vand.u32 2147483648, %v11398_v52  ;;  %vm3520_vm9 = vweird.f32 %v11398_v52 }
 0x40c   :  { %v3535_v14 = vmul.f32 %v11403_v4, %v11389_v63  ;;  %4260 = vmatpush.bf16.msrb.mxu1 %v8579_v31  ;;  %10591 = vpow2.f32 %v8443_v16  ;;  %v3469_v5 = vadd.f32 %v11401_v60, %v3401_v12  ;;  %v3508_v60 = vadd.f32 %v11378_v47, %v3495_v29  ;;  %v8664_v16 = vld [vmem:[#allocation12 + $0x1b8] sm:$0xf0]  ;;  %4283 = vmatpush.bf16.msrb.mxu3 %v8631_v61  ;;  %v8480_v31 = vld [vmem:[#allocation12 + $0x50] sm:$0xf0]  ;;  %v8582_v29 = vld [vmem:[#allocation12 + $0x108] sm:$0xf] }
 0x40d   :  { %v3496_v3 = vpop.f32.mrf.mxu1  ;;  %vm3525_vm11 = vcmp.eq.f32.partialorder %v3524_v25, 8.507059e+37  ;;  %vm3540_vm12 = vweird.f32 %v11403_v4  ;;  %v8667_v21 = vor.u32 %v10223_v50, %v8664_v16  ;;  %v8483_v44 = vor.u32 %v10178_v58, %v8480_v31  ;;  %v10205_v25 = vld [vmem:[#allocation12 + $0x114] sm:$0xf0]  ;;  %4219 = vmatpush.bf16.msra.mxu2 %v8479_v1  ;;  %v8632_v61 = vld [vmem:[#allocation12 + $0x178] sm:$0xf0] }
 0x40e   :  { %v3536_v43 = vsub.f32 1.0, %v3535_v14  ;;  %v8496_v3 = vld [vmem:[#allocation12 + $0x70] sm:$0xf0]  ;;  %v3527_v14 = vor.u32 1.1754944e-38, %v3526_v27  ;;  %v3482_v47 = vadd.f32 %v11376_v36, %v3469_v5  ;;  %vm11436_vm14 = vmor %vm3539_vm13, %vm3540_vm12  ;;  %v8599_v12 = vor.u32 %v10209_v46, %v8598_v32  ;;  %v8568_v50 = vld [vmem:[#allocation12 + $0xf8] sm:$0xf0] }
 0x40f   :  { %v8499_v13 = vor.u32 %v10182_v62, %v8496_v3  ;;  %v8448_v62 = vld [vmem:[#allocation12 + $0x10] sm:$0xf0]  ;;  %v10195_v58 = vld [vmem:[#allocation12 + $0xcc] sm:$0xf]  ;;  %v8790_v31 = vld [vmem:[#allocation8 + $0xb4] sm:$0xf0] }
 0x410   :  { %4305 = vmatpush.bf16.msra.mxu1 %v8699_v33  ;;  %v3537_v41 = vmul.f32 %v11403_v4, %v3536_v43  ;;  %v3543_v43 = vand.u32 2147483647, %v11389_v63  ;;  %4284 = vmatpush.bf16.msrb.mxu3 %v8615_v9  ;;  %v8550_v9 = vld [vmem:[#allocation12 + $0xc8] sm:$0xf]  ;;  %v10207_v32 = vld [vmem:[#allocation12 + $0x12c] sm:$0xf] }
 0x411   :  { %v11408_v30 = vpop.eup %10589  ;;  %4244 = vmatpush.bf16.msrb.mxu0 %v8499_v13  ;;  %v10199_v13 = vld [vmem:[#allocation12 + $0xec] sm:$0xf]  ;;  %v8600_v46 = vld [vmem:[#allocation12 + $0x138] sm:$0xf0] }
 0x412   :  { %v3516_v24 = vmul.f32 %v11408_v30, %v11398_v52  ;;  %vm3521_vm8 = vweird.f32 %v11408_v30  ;;  %v3538_v22 = vadd.f32 %v11403_v4, %v3537_v41  ;;  %v10592_v17 = vpop.eup %10591  ;;  %vm3544_vm15 = vcmp.eq.f32.partialorder %v3543_v43, 8.507059e+37  ;;  %v10191_v36 = vld [vmem:[#allocation12 + $0xac] sm:$0xf] }
 0x413   :  { %v3470_v7 = vpop.f32.mrf.mxu3  ;;  %vm3522_vm10 = vmor %vm3520_vm9, %vm3521_vm8  ;;  %v11445_v40 = vadd.f32 1.0, %v10592_v17  ;;  %v10252_v43 = vld [vmem:[#allocation8 + $0x94] sm:$0xf] }
 0x414   :  { %v3517_v51 = vsub.f32 1.0, %v3516_v24  ;;  %4306 = vmatpush.bf16.msra.mxu1 %v8683_v56  ;;  %v3542_v48 = vsel %vm11436_vm14, %v11403_v4, %v3538_v22  ;;  %4285 = vmatpush.bf16.msrb.mxu3 %v8599_v12  ;;  %v8583_v4 = vor.u32 %v10205_v25, %v8582_v29  ;;  %v10170_v56 = vld [vmem:[#allocation12 + $0x4] sm:$0xf]  ;;  %v8603_v12 = vor.u32 %v10207_v32, %v8600_v46  ;;  %v10187_v29 = vld [vmem:[#allocation12 + $0x8c] sm:$0xf] }
 0x415   :  { %4245 = vmatpush.bf16.msrb.mxu0 %v8483_v44  ;;  %v3547_v41 = vsel %vm3544_vm15, %v3546_v38, %v3542_v48  ;;  %v8451_v39 = vor.u32 %v10170_v56, %v8448_v62  ;;  %v8518_v48 = vld [vmem:[#allocation12 + $0x88] sm:$0xf]  ;;  %v8520_v25 = vld [vmem:[#allocation12 + $0x98] sm:$0xf0]  ;;  %v10185_v56 = vld [vmem:[#allocation12 + $0x74] sm:$0xf0]  ;;  %vm3799_vm5 = vweird.f32 %v11445_v40 }
 0x416   :  { %v3518_v6 = vmul.f32 %v11408_v30, %v3517_v51  ;;  %v11418_v57 = vpop.f32.mrf.mxu1  ;;  %v8462_v51 = vld [vmem:[#allocation12 + $0x20] sm:$0xf]  ;;  %v3554_v22 = vmul.f32 %v3547_v41, %v11332_v23  ;;  %v8536_v23 = vld [vmem:[#allocation12 + $0xb8] sm:$0xf0]  ;;  %v10183_v62 = vld [vmem:[#allocation12 + $0x6c] sm:$0xf] }
 0x417   :  { %v8463_v27 = vor.u32 %v10176_v37, %v8462_v51  ;;  %v8584_v51 = vld [vmem:[#allocation12 + $0x118] sm:$0xf0]  ;;  %v8535_v37 = vor.u32 %v10193_v20, %v8534_v34  ;;  %v8539_v15 = vor.u32 %v10191_v36, %v8536_v23  ;;  %v8470_v46 = vld [vmem:[#allocation12 + $0x28] sm:$0xf]  ;;  %v10175_v34 = vld [vmem:[#allocation12 + $0x2c] sm:$0xf] }
 0x418   :  { %v3519_v10 = vadd.f32 %v11408_v30, %v3518_v6  ;;  %4307 = vmatpush.bf16.msra.mxu1 %v8667_v21  ;;  %v10215_v6 = vld [vmem:[#allocation12 + $0x16c] sm:$0xf]  ;;  %4286 = vmatpush.bf16.msrb.mxu3 %v8583_v4  ;;  %v8523_v4 = vor.u32 %v10187_v29, %v8520_v25  ;;  %v8472_v20 = vld [vmem:[#allocation12 + $0x38] sm:$0xf0] }
 0x419   :  { %v8635_v5 = vor.u32 %v10215_v6, %v8632_v61  ;;  %4220 = vmatpush.bf16.msra.mxu2 %v8463_v27  ;;  %4246 = vmatpush.bf16.msrb.mxu0 %v8467_v2  ;;  %v10249_v6 = vld [vmem:[#allocation8 + $0x7c] sm:$0xf]  ;;  %v8766_v61 = vld [vmem:[#allocation8 + $0x84] sm:$0xf0]  ;;  %v10171_v25 = vld [vmem:[#allocation12 + $0xc] sm:$0xf] }
 0x41a   :  { %v3523_v52 = vsel %vm3522_vm10, %v11408_v30, %v3519_v10  ;;  %v8566_v10 = vld [vmem:[#allocation12 + $0xe8] sm:$0xf] }
 0x41b   :  { %v3528_v54 = vsel %vm3525_vm11, %v3527_v14, %v3523_v52  ;;  %v3736_v28 = vpop.f32.mrf.mxu3  ;;  %v3552_v14 = vsub.f32 1.0, %v3547_v41  ;;  %v8567_v16 = vor.u32 %v10201_v11, %v8566_v10  ;;  %v8571_v52 = vor.u32 %v10199_v13, %v8568_v50  ;;  %v8754_v50 = vld [vmem:[#allocation8 + $0x6c] sm:$0xf0] }
 0x41c   :  { %v3549_v30 = vmul.f32 %v3528_v54, %v3508_v60  ;;  %v3737_v24 = vadd.f32 %v3736_v28, %v3721_v8  ;;  %4308 = vmatpush.bf16.msra.mxu1 %v8651_v19  ;;  %v10172_v8 = vld [vmem:[#allocation12 + $0xc] sm:$0xf0]  ;;  %v8616_v60 = vld [vmem:[#allocation12 + $0x158] sm:$0xf0]  ;;  %v10255_v28 = vld [vmem:[#allocation8 + $0xac] sm:$0xf]  ;;  %v8519_v41 = vor.u32 %v10189_v55, %v8518_v48  ;;  %v8769_v11 = vor.u32 %v10249_v6, %v8766_v61 }
 0x41d   :  { %v8447_v35 = vor.u32 %v10172_v8, %v8446_v53  ;;  %v8619_v0 = vor.u32 %v10211_v59, %v8616_v60  ;;  %v8552_v54 = vld [vmem:[#allocation12 + $0xd8] sm:$0xf0]  ;;  %4247 = vmatpush.bf16.msrb.mxu0 %v8451_v39  ;;  %v8793_v38 = vor.u32 %v10255_v28, %v8790_v31  ;;  %v10203_v19 = vld [vmem:[#allocation12 + $0x10c] sm:$0xf]  ;;  %v3723_v13 = vperm.slane %v11387_v18, 2 }
 0x41e   :  { %v3550_v7 = vadd.f32 %v3549_v30, %v3482_v47  ;;  %v3766_v33 = vadd.f32 %v3737_v24, %v11395_v42  ;;  %v3764_v26 = vpop.f32.mrf.mxu1  ;;  %v8551_v24 = vor.u32 %v10197_v45, %v8550_v9  ;;  %v8555_v44 = vor.u32 %v10195_v58, %v8552_v54  ;;  %v10246_v39 = vld [vmem:[#allocation8 + $0x64] sm:$0xf]  ;;  %v8454_v55 = vld [vmem:[#allocation12 + $0x8] sm:$0xf]  ;;  %v10237_v6 = vld [vmem:[#allocation8 + $0x1c] sm:$0xf] }
 0x41f   :  { %4221 = vmatpush.bf16.msra.mxu2 %v8447_v35  ;;  %v8778_v26 = vld [vmem:[#allocation8 + $0x9c] sm:$0xf0]  ;;  %v8587_v2 = vor.u32 %v10203_v19, %v8584_v51  ;;  %v8488_v45 = vld [vmem:[#allocation12 + $0x58] sm:$0xf0]  ;;  %v8757_v18 = vor.u32 %v10246_v39, %v8754_v50  ;;  %v10240_v19 = vld [vmem:[#allocation8 + $0x34] sm:$0xf]  ;;  %v8475_v48 = vor.u32 %v10175_v34, %v8472_v20 }
 0x420   :  { %10593 = vtanh.f32 %v3550_v7  ;;  %v8442_v63 = vmul.f32 -1.442695, %v3766_v33  ;;  %4309 = vmatpush.bf16.msra.mxu1 %v8635_v5  ;;  %v8781_v27 = vor.u32 %v10252_v43, %v8778_v26  ;;  %v8502_v5 = vld [vmem:[#allocation12 + $0x68] sm:$0xf]  ;;  %v3805_v43 = vand.u32 2147483648, %v11445_v40 }
 0x421   :  { %4292 = vmatpush.bf16.msra.mxu0 %v8571_v52  ;;  %v8486_v52 = vld [vmem:[#allocation12 + $0x48] sm:$0xf]  ;;  %v8718_v61 = vld [vmem:[#allocation8 + $0x24] sm:$0xf0]  ;;  %v10257_v39 = vld [vmem:[#allocation8 + $0xb8] sm:$0xf0] }
 0x422   :  { %10595 = vpow2.f32 %v8442_v63  ;;  %v8752_v28 = vld [vmem:[#allocation8 + $0x60] sm:$0xf]  ;;  %v8748_v34 = vld [vmem:[#allocation8 + $0x50] sm:$0xf]  ;;  %v10245_v20 = vld [vmem:[#allocation8 + $0x58] sm:$0xf0] }
 0x423   :  { %v3738_v3 = vpop.f32.mrf.mxu3  ;;  %10597 = vrcp.f32 %v11445_v40  ;;  %4266 = vmatpush.bf16.msrb.mxu2 %v8567_v16  ;;  %v8716_v51 = vld [vmem:[#allocation8 + $0x18] sm:$0xf] }
 0x424   :  { %4310 = vmatpush.bf16.msra.mxu1 %v8619_v0  ;;  %v8504_v3 = vld [vmem:[#allocation12 + $0x78] sm:$0xf0]  ;;  %v10179_v0 = vld [vmem:[#allocation12 + $0x4c] sm:$0xf] }
 0x425   :  { %4293 = vmatpush.bf16.msra.mxu0 %v8555_v44  ;;  %v8507_v16 = vor.u32 %v10183_v62, %v8504_v3  ;;  %v8491_v32 = vor.u32 %v10179_v0, %v8488_v45  ;;  %v10177_v44 = vld [vmem:[#allocation12 + $0x34] sm:$0xf0]  ;;  %v8764_v45 = vld [vmem:[#allocation8 + $0x78] sm:$0xf] }
 0x426   :  { %v10594_v21 = vpop.eup %10593 }
 0x427   :  { %v3553_v47 = vmul.f32 %v10594_v21, %v3552_v14  ;;  %4267 = vmatpush.bf16.msrb.mxu2 %v8551_v24  ;;  %v8503_v14 = vor.u32 %v10185_v56, %v8502_v5  ;;  %v10181_v21 = vld [vmem:[#allocation12 + $0x54] sm:$0xf0]  ;;  %v3763_v24 = vadd.f32 %v11418_v57, %v3723_v13  ;;  %v10234_v5 = vld [vmem:[#allocation8 + $0x4] sm:$0xf]  ;;  %v10256_v13 = vld [vmem:[#allocation8 + $0xb0] sm:$0xf0] }
 0x428   :  { %v10596_v1 = vpop.eup %10595  ;;  %4311 = vmatpush.bf16.msra.mxu1 %v8603_v12  ;;  %v8487_v31 = vor.u32 %v10181_v21, %v8486_v52  ;;  %v3810_v12 = vrot.slane %v11395_v42, 2  ;;  %v8730_v57 = vld [vmem:[#allocation8 + $0x3c] sm:$0xf0]  ;;  %v10253_v52 = vld [vmem:[#allocation8 + $0x98] sm:$0xf0] }
 0x429   :  { %v11449_v17 = vadd.f32 %v3554_v22, %v3553_v47  ;;  %v11451_v30 = vadd.f32 1.0, %v10596_v1  ;;  %v11455_v7 = vpop.eup %10597  ;;  %4294 = vmatpush.bf16.msra.mxu0 %v8539_v15  ;;  %v10243_v47 = vld [vmem:[#allocation8 + $0x4c] sm:$0xf]  ;;  %v8742_v22 = vld [vmem:[#allocation8 + $0x54] sm:$0xf0]  ;;  %v8471_v15 = vor.u32 %v10177_v44, %v8470_v46 }
 0x42a   :  { %v3795_v63 = vmul.f32 %v11455_v7, %v11445_v40  ;;  %vm3800_vm4 = vweird.f32 %v11455_v7  ;;  %v10173_v42 = vld [vmem:[#allocation12 + $0x14] sm:$0xf0]  ;;  %v10244_v44 = vld [vmem:[#allocation8 + $0x50] sm:$0xf0] }
 0x42b   :  { %3556 = vst [vmem:[#allocation14 + $0x3] sm:$0x1] %v11449_v17  ;;  %10599 = vrcp.f32 %v11451_v30  ;;  %v11459_v33 = vpack.c.bf16 %v11449_v17, %v11449_v17  ;;  %4268 = vmatpush.bf16.msrb.mxu2 %v8535_v37  ;;  %v3780_v59 = vand.u32 2147483647, %v11451_v30  ;;  %v3782_v60 = vand.u32 2147483648, %v11451_v30  ;;  %vm11485_vm6 = vmor %vm3799_vm5, %vm3800_vm4 }
 0x42c   :  { %v3796_v10 = vsub.f32 1.0, %v3795_v63  ;;  %4312 = vmatpush.bf16.msra.mxu1 %v8587_v2  ;;  %vm3776_vm1 = vweird.f32 %v11451_v30  ;;  %v3803_v37 = vand.u32 2147483647, %v11445_v40  ;;  %v8456_v63 = vld [vmem:[#allocation12 + $0x18] sm:$0xf0]  ;;  %v8733_v2 = vor.u32 %v10240_v19, %v8730_v57 }
 0x42d   :  { %4235 = vmatmul.bf16.vlgmr.msra.gmra.mxu3 %v11459_v33  ;;  %4261 = vmatmul.bf16.vlgmr.msrb.gmra.mxu1 %v11459_v33  ;;  %vm3781_vm3 = vcmp.eq.f32.partialorder %v3780_v59, 8.507059e+37  ;;  %v3783_v1 = vor.u32 1.1754944e-38, %v3782_v60  ;;  %v3806_v40 = vor.u32 1.1754944e-38, %v3805_v43  ;;  %v10241_v43 = vld [vmem:[#allocation8 + $0x38] sm:$0xf0] }
 0x42e   :  { %4547 = vmatpush.bf16.msra.mxu3 %v8793_v38  ;;  %4295 = vmatpush.bf16.msra.mxu0 %v8523_v4  ;;  %v3797_v58 = vmul.f32 %v11455_v7, %v3796_v10  ;;  %v8745_v38 = vor.u32 %v10243_v47, %v8742_v22  ;;  %vm3804_vm7 = vcmp.eq.f32.partialorder %v3803_v37, 8.507059e+37  ;;  %v10238_v37 = vld [vmem:[#allocation8 + $0x20] sm:$0xf0] }
 0x42f   :  { %4269 = vmatpush.bf16.msrb.mxu2 %v8519_v41  ;;  %v8459_v41 = vor.u32 %v10171_v25, %v8456_v63  ;;  %v10235_v25 = vld [vmem:[#allocation8 + $0x8] sm:$0xf0]  ;;  %v8712_v63 = vld [vmem:[#allocation8 + $0x8] sm:$0xf] }
 0x430   :  { %v3798_v36 = vadd.f32 %v11455_v7, %v3797_v58  ;;  %v10250_v58 = vld [vmem:[#allocation8 + $0x80] sm:$0xf0] }
 0x431   :  { %v10600_v53 = vpop.eup %10599  ;;  %v8765_v47 = vor.u32 %v10250_v58, %v8764_v45 }
 0x432   :  { %v3772_v8 = vmul.f32 %v10600_v53, %v11451_v30  ;;  %4548 = vmatpush.bf16.msra.mxu3 %v8781_v27  ;;  %vm3777_vm0 = vweird.f32 %v10600_v53  ;;  %4296 = vmatpush.bf16.msra.mxu0 %v8507_v16  ;;  %v3802_v27 = vsel %vm11485_vm6, %v11455_v7, %v3798_v36  ;;  %v8776_v16 = vld [vmem:[#allocation8 + $0x90] sm:$0xf] }
 0x433   :  { %vm11471_vm2 = vmor %vm3776_vm1, %vm3777_vm0  ;;  %4270 = vmatpush.bf16.msrb.mxu2 %v8503_v14  ;;  %v3807_v4 = vsel %vm3804_vm7, %v3806_v40, %v3802_v27  ;;  %v8777_v21 = vor.u32 %v10253_v52, %v8776_v16  ;;  %v10236_v27 = vld [vmem:[#allocation8 + $0x10] sm:$0xf0]  ;;  %v10308_v16 = vld [vmem:[#allocation12 + $0x18c] sm:$0xf0] }
 0x434   :  { %v3773_v35 = vsub.f32 1.0, %v3772_v8  ;;  %v8706_v8 = vld [vmem:[#allocation8 + $0xc] sm:$0xf0]  ;;  %v3814_v56 = vsub.f32 1.0, %v3807_v4  ;;  %v3816_v62 = vmul.f32 %v3807_v4, %v11363_v49  ;;  %v10254_v49 = vld [vmem:[#allocation8 + $0xa0] sm:$0xf0]  ;;  %v8713_v40 = vor.u32 %v10236_v27, %v8712_v63 }
 0x435   :  { %v8709_v3 = vor.u32 %v10234_v5, %v8706_v8  ;;  %v11525_v63 = vld [vmem:[#allocation2 + $0x5] ss:$8 sm:$0x7] }
 0x436   :  { %v3774_v9 = vmul.f32 %v10600_v53, %v3773_v35  ;;  %4549 = vmatpush.bf16.msra.mxu3 %v8769_v11  ;;  %4297 = vmatpush.bf16.msra.mxu0 %v8491_v32  ;;  %v8788_v11 = vld [vmem:[#allocation8 + $0xa8] sm:$0xf]  ;;  %v8796_v35 = vld [vmem:[#allocation8 + $0xb0] sm:$0xf]  ;;  %v10248_v32 = vld [vmem:[#allocation8 + $0x70] sm:$0xf0] }
 0x437   :  { %4271 = vmatpush.bf16.msrb.mxu2 %v8487_v31  ;;  %v8789_v59 = vor.u32 %v10256_v13, %v8788_v11  ;;  %v8797_v14 = vor.u32 %v10257_v39, %v8796_v35  ;;  %v8760_v31 = vld [vmem:[#allocation8 + $0x68] sm:$0xf]  ;;  %v11516_v11 = vld [vmem:[%s11902_s6] sm:$0xf]  ;;  %v10312_v35 = vld [vmem:[#allocation12 + $0x1ac] sm:$0xf0] }
 0x438   :  { %v3775_v54 = vadd.f32 %v10600_v53, %v3774_v9  ;;  %v8784_v9 = vld [vmem:[#allocation8 + $0x98] sm:$0xf]  ;;  %v9010_v13 = vld [vmem:[#allocation12 + $0x1a0] sm:$0xf] }
 0x439   :  { %v8785_v0 = vor.u32 %v10254_v49, %v8784_v9  ;;  %v9011_v39 = vor.u32 %v10312_v35, %v9010_v13  ;;  %v10318_v49 = vld [vmem:[#allocation12 + $0x1e4] sm:$0xf]  ;;  %v8914_v35 = vld [vmem:[#allocation12 + $0xe0] sm:$0xf] }
 0x43a   :  { %v3779_v30 = vsel %vm11471_vm2, %v10600_v53, %v3775_v54  ;;  %4550 = vmatpush.bf16.msra.mxu3 %v8757_v18  ;;  %4298 = vmatpush.bf16.msra.mxu0 %v8475_v48  ;;  %v8455_v53 = vor.u32 %v10173_v42, %v8454_v55  ;;  %v8772_v18 = vld [vmem:[#allocation8 + $0x80] sm:$0xf]  ;;  %v10251_v54 = vld [vmem:[#allocation8 + $0x88] sm:$0xf0]  ;;  %v8717_v55 = vor.u32 %v10238_v37, %v8716_v51  ;;  %v10296_v51 = vld [vmem:[#allocation12 + $0x12c] sm:$0xf0] }
 0x43b   :  { %v3784_v23 = vsel %vm3781_vm3, %v3783_v1, %v3779_v30  ;;  %4272 = vmatpush.bf16.msrb.mxu2 %v8471_v15  ;;  %v8773_v22 = vor.u32 %v10251_v54, %v8772_v18  ;;  %v10247_v1 = vld [vmem:[#allocation8 + $0x68] sm:$0xf0]  ;;  %v8740_v30 = vld [vmem:[#allocation8 + $0x48] sm:$0xf]  ;;  %v8724_v15 = vld [vmem:[#allocation8 + $0x20] sm:$0xf] }
 0x43c   :  { %v3809_v26 = vmul.f32 %v3784_v23, %v3763_v24  ;;  %v8753_v46 = vor.u32 %v10247_v1, %v8752_v28  ;;  %v8761_v24 = vor.u32 %v10248_v32, %v8760_v31  ;;  %v8741_v36 = vor.u32 %v10244_v44, %v8740_v30  ;;  %v10239_v48 = vld [vmem:[#allocation8 + $0x28] sm:$0xf0]  ;;  %v8704_v42 = vld [vmem:[#allocation8] sm:$0xf]  ;;  %v8978_v54 = vld [vmem:[#allocation12 + $0x160] sm:$0xf] }
 0x43d   :  { %4287 = vmatmul.bf16.vlgmr.msrb.gmra.mxu3 %v11459_v33  ;;  %4313 = vmatmul.bf16.vlgmr.msra.gmra.mxu1 %v11459_v33  ;;  %v8721_v33 = vor.u32 %v10237_v6, %v8718_v61  ;;  %v8749_v23 = vor.u32 %v10245_v20, %v8748_v34  ;;  %v9042_v6 = vld [vmem:[#allocation12 + $0x1e0] sm:$0xf]  ;;  %v10320_v61 = vld [vmem:[#allocation12 + $0x1ec] sm:$0xf0]  ;;  %v4206_v18 = vperm.slane %v11516_v11, 0 }
 0x43e   :  { %v3812_v29 = vadd.f32 %v3810_v12, %v3809_v26  ;;  %4551 = vmatpush.bf16.msra.mxu3 %v8745_v38  ;;  %4299 = vmatpush.bf16.msra.mxu0 %v8459_v41  ;;  %v8728_v38 = vld [vmem:[#allocation8 + $0x30] sm:$0xf]  ;;  %v8736_v12 = vld [vmem:[#allocation8 + $0x38] sm:$0xf]  ;;  %v10242_v26 = vld [vmem:[#allocation8 + $0x40] sm:$0xf0] }
 0x43f   :  { %4273 = vmatpush.bf16.msrb.mxu2 %v8455_v53  ;;  %v8729_v19 = vor.u32 %v10241_v43, %v8728_v38  ;;  %v8737_v57 = vor.u32 %v10242_v26, %v8736_v12  ;;  %v9043_v53 = vor.u32 %v10320_v61, %v9042_v6  ;;  %v10314_v28 = vld [vmem:[#allocation12 + $0x1c4] sm:$0xf]  ;;  %v9028_v1 = vld [vmem:[#allocation12 + $0x1d0] sm:$0xf0]  ;;  %v8962_v44 = vld [vmem:[#allocation12 + $0x140] sm:$0xf] }
 0x440   :  { %10601 = vtanh.f32 %v3812_v29  ;;  %v8725_v29 = vor.u32 %v10239_v48, %v8724_v15  ;;  %v9031_v32 = vor.u32 %v10314_v28, %v9028_v1  ;;  %v10300_v34 = vld [vmem:[#allocation12 + $0x14c] sm:$0xf0]  ;;  %v9012_v38 = vld [vmem:[#allocation12 + $0x1b0] sm:$0xf0]  ;;  %v11520_v26 = vld [vmem:[#allocation11] sm:$0x7] }
 0x441   :  { %v10306_v15 = vld [vmem:[#allocation12 + $0x184] sm:$0xf]  ;;  %v8996_v48 = vld [vmem:[#allocation12 + $0x190] sm:$0xf0]  ;;  %v10292_v6 = vld [vmem:[#allocation12 + $0x10c] sm:$0xf0] }
 0x442   :  { %4552 = vmatpush.bf16.msra.mxu3 %v8733_v2  ;;  %v8705_v2 = vor.u32 %v10235_v25, %v8704_v42  ;;  %v8999_v42 = vor.u32 %v10306_v15, %v8996_v48  ;;  %v10282_v1 = vld [vmem:[#allocation12 + $0xc4] sm:$0xf] }
 0x446   :  { %v10602_v7 = vpop.eup %10601  ;;  %4553 = vmatpush.bf16.msra.mxu3 %v8721_v33 }
 0x447   :  { %v3815_v10 = vmul.f32 %v10602_v7, %v3814_v56  ;;  %v9026_v56 = vld [vmem:[#allocation12 + $0x1c0] sm:$0xf]  ;;  %v10316_v7 = vld [vmem:[#allocation12 + $0x1cc] sm:$0xf0] }
 0x449   :  { %v11496_v50 = vadd.f32 %v3816_v62, %v3815_v10  ;;  %v9027_v62 = vor.u32 %v10316_v7, %v9026_v56  ;;  %v10321_v56 = vld [vmem:[#allocation12 + $0x1f4] sm:$0xf0]  ;;  %v4594_v7 = vrot.slane %v11525_v63, 1 }
 0x44a   :  { %4554 = vmatpush.bf16.msra.mxu3 %v8709_v3 }
 0x44b   :  { %v11500_v60 = vpack.c.bf16 %v11496_v50, %v11496_v50 }
 0x44d   :  { %4222 = vmatmul.bf16.vlgmr.msra.gmra.mxu2 %v11500_v60  ;;  %4248 = vmatmul.bf16.vlgmr.msrb.gmra.mxu0 %v11500_v60 }
 0x44e   :  { %4555 = vmatmul.bf16.vlgmr.msra.gmra.mxu3 %v11500_v60  ;;  %4534 = vmatpush.bf16.msra.mxu2 %v8789_v59  ;;  %v4207_v59 = vperm.slane %v11516_v11, 1 }
 0x44f   :  { %4560 = vmatpush.bf16.msrb.mxu0 %v8797_v14  ;;  %v8994_v14 = vld [vmem:[#allocation12 + $0x180] sm:$0xf] }
 0x450   :  { %v8995_v9 = vor.u32 %v10308_v16, %v8994_v14  ;;  %v8916_v16 = vld [vmem:[#allocation12 + $0xf0] sm:$0xf0] }
 0x452   :  { %4535 = vmatpush.bf16.msra.mxu2 %v8777_v21  ;;  %v9044_v21 = vld [vmem:[#allocation12 + $0x1f0] sm:$0xf0] }
 0x453   :  { %4561 = vmatpush.bf16.msrb.mxu0 %v8785_v0  ;;  %v9047_v45 = vor.u32 %v10318_v49, %v9044_v21 }
 0x456   :  { %4536 = vmatpush.bf16.msra.mxu2 %v8765_v47  ;;  %v10304_v47 = vld [vmem:[#allocation12 + $0x16c] sm:$0xf0] }
 0x457   :  { %4562 = vmatpush.bf16.msrb.mxu0 %v8773_v22  ;;  %v8979_v22 = vor.u32 %v10304_v47, %v8978_v54  ;;  %v10317_v54 = vld [vmem:[#allocation12 + $0x1d4] sm:$0xf0]  ;;  %v8898_v47 = vld [vmem:[#allocation12 + $0xc0] sm:$0xf] }
 0x45a   :  { %4537 = vmatpush.bf16.msra.mxu2 %v8753_v46 }
 0x45b   :  { %4563 = vmatpush.bf16.msrb.mxu0 %v8761_v24 }
 0x45d   :  { %4274 = vmatmul.bf16.vlgmr.msrb.gmra.mxu2 %v11500_v60  ;;  %4300 = vmatmul.bf16.vlgmr.msra.gmra.mxu0 %v11500_v60 }
 0x45e   :  { %4538 = vmatpush.bf16.msra.mxu2 %v8741_v36  ;;  %v8963_v36 = vor.u32 %v10300_v34, %v8962_v44  ;;  %v4209_v44 = vperm.slane %v11516_v11, 3 }
 0x45f   :  { %4564 = vmatpush.bf16.msrb.mxu0 %v8749_v23  ;;  %v10310_v23 = vld [vmem:[#allocation12 + $0x1a4] sm:$0xf] }
 0x460   :  { %v9015_v12 = vor.u32 %v10310_v23, %v9012_v38  ;;  %v9018_v23 = vld [vmem:[#allocation12 + $0x1a8] sm:$0xf] }
 0x462   :  { %4539 = vmatpush.bf16.msra.mxu2 %v8729_v19 }
 0x463   :  { %4565 = vmatpush.bf16.msrb.mxu0 %v8737_v57  ;;  %v8946_v57 = vld [vmem:[#allocation12 + $0x120] sm:$0xf] }
 0x464   :  { %v8947_v37 = vor.u32 %v10296_v51, %v8946_v57  ;;  %v10280_v57 = vld [vmem:[#allocation12 + $0xac] sm:$0xf0] }
 0x466   :  { %4540 = vmatpush.bf16.msra.mxu2 %v8717_v55 }
 0x467   :  { %4566 = vmatpush.bf16.msrb.mxu0 %v8725_v29  ;;  %v4529_v29 = vperm.slane %v11520_v26, 1 }
 0x46a   :  { %4541 = vmatpush.bf16.msra.mxu2 %v8705_v2 }
 0x46b   :  { %4567 = vmatpush.bf16.msrb.mxu0 %v8713_v40  ;;  %v8930_v40 = vld [vmem:[#allocation12 + $0x100] sm:$0xf] }
 0x46d   :  { %4542 = vmatmul.bf16.vlgmr.msra.gmra.mxu2 %v11500_v60 }
 0x46e   :  { %4568 = vmatmul.bf16.vlgmr.msrb.gmra.mxu0 %v11500_v60  ;;  %5034 = vmatpush.bf16.msrb.mxu2 %v9043_v53  ;;  %v10302_v53 = vld [vmem:[#allocation12 + $0x164] sm:$0xf] }
 0x46f   :  { %5060 = vmatpush.bf16.msra.mxu0 %v9047_v45  ;;  %v8964_v45 = vld [vmem:[#allocation12 + $0x150] sm:$0xf0] }
 0x472   :  { %5035 = vmatpush.bf16.msrb.mxu2 %v9027_v62 }
 0x473   :  { %5061 = vmatpush.bf16.msra.mxu0 %v9031_v32 }
 0x476   :  { %5036 = vmatpush.bf16.msrb.mxu2 %v9011_v39  ;;  %v10288_v39 = vld [vmem:[#allocation12 + $0xec] sm:$0xf0] }
 0x477   :  { %5062 = vmatpush.bf16.msra.mxu0 %v9015_v12  ;;  %v8915_v14 = vor.u32 %v10288_v39, %v8914_v35  ;;  %v10313_v12 = vld [vmem:[#allocation12 + $0x1b4] sm:$0xf0] }
 0x478   :  { %v9019_v15 = vor.u32 %v10313_v12, %v9018_v23 }
 0x479   :  { %5021 = vmatpush.bf16.msrb.mxu1 %v8915_v14  ;;  %v10274_v14 = vld [vmem:[#allocation12 + $0x84] sm:$0xf] }
 0x47a   :  { %5037 = vmatpush.bf16.msrb.mxu2 %v8995_v9 }
 0x47b   :  { %5063 = vmatpush.bf16.msra.mxu0 %v8999_v42 }
 0x47e   :  { %5038 = vmatpush.bf16.msrb.mxu2 %v8979_v22  ;;  %v10284_v22 = vld [vmem:[#allocation12 + $0xcc] sm:$0xf0] }
 0x482   :  { %5039 = vmatpush.bf16.msrb.mxu2 %v8963_v36  ;;  %v8948_v36 = vld [vmem:[#allocation12 + $0x130] sm:$0xf0] }
 0x486   :  { %5040 = vmatpush.bf16.msrb.mxu2 %v8947_v37  ;;  %v4208_v37 = vperm.slane %v11516_v11, 2  ;;  %v10309_v11 = vld [vmem:[#allocation12 + $0x194] sm:$0xf0] }
 0x4aa   :  { %v4262_v41 = vpop.f32.mrf.mxu1 }
 0x4b0   :  { %v4236_v4 = vpop.f32.mrf.mxu3 }
 0x4b2   :  { %v4264_v33 = vpop.f32.mrf.mxu1 }
 0x4b3   :  { %v8980_v33 = vld [vmem:[#allocation12 + $0x170] sm:$0xf0] }
 0x4b4   :  { %v8983_v62 = vor.u32 %v10302_v53, %v8980_v33  ;;  %v10319_v33 = vld [vmem:[#allocation12 + $0x1ec] sm:$0xf] }
 0x4b6   :  { %5064 = vmatpush.bf16.msra.mxu0 %v8983_v62  ;;  %v9052_v62 = vld [vmem:[#allocation12 + $0x1f8] sm:$0xf0] }
 0x4b7   :  { %v9055_v39 = vor.u32 %v10319_v33, %v9052_v62 }
 0x4b8   :  { %v4238_v5 = vpop.f32.mrf.mxu3 }
 0x4b9   :  { %v9050_v5 = vld [vmem:[#allocation12 + $0x1e8] sm:$0xf] }
 0x4ba   :  { %v11509_v8 = vpop.f32.mrf.mxu1 }
 0x4c0   :  { %v11511_v3 = vpop.f32.mrf.mxu3 }
 0x4c2   :  { %v4316_v10 = vpop.f32.mrf.mxu1 }
 0x4c3   :  { %v9051_v10 = vor.u32 %v10321_v56, %v9050_v5 }
 0x4c8   :  { %v4290_v60 = vpop.f32.mrf.mxu3 }
 0x4ca   :  { %v4249_v52 = vpop.f32.mrf.mxu0 }
 0x4cb   :  { %v4250_v0 = vadd.f32 %v4249_v52, %v4207_v59  ;;  %v10286_v59 = vld [vmem:[#allocation12 + $0xe4] sm:$0xf] }
 0x4cc   :  { %v8919_v9 = vor.u32 %v10286_v59, %v8916_v16  ;;  %v10276_v59 = vld [vmem:[#allocation12 + $0x8c] sm:$0xf0] }
 0x4cd   :  { %v4263_v58 = vadd.f32 %v4262_v41, %v4250_v0  ;;  %v10298_v0 = vld [vmem:[#allocation12 + $0x144] sm:$0xf] }
 0x4ce   :  { %5047 = vmatpush.bf16.msrb.mxu3 %v8919_v9  ;;  %v8967_v32 = vor.u32 %v10298_v0, %v8964_v45  ;;  %v4528_v9 = vperm.slane %v11520_v26, 0  ;;  %v8868_v45 = vld [vmem:[#allocation12 + $0x90] sm:$0xf0] }
 0x4cf   :  { %v8701_v31 = vmul.f32 -1.442695, %v4263_v58  ;;  %v9034_v58 = vld [vmem:[#allocation12 + $0x1c8] sm:$0xf] }
 0x4d0   :  { %v4223_v46 = vpop.f32.mrf.mxu2  ;;  %v9035_v34 = vor.u32 %v10317_v54, %v9034_v58  ;;  %5065 = vmatpush.bf16.msra.mxu0 %v8967_v32  ;;  %v8986_v58 = vld [vmem:[#allocation12 + $0x168] sm:$0xf]  ;;  %v8871_v54 = vor.u32 %v10274_v14, %v8868_v45  ;;  %v10264_v14 = vld [vmem:[#allocation12 + $0x2c] sm:$0xf0]  ;;  %v8820_v45 = vld [vmem:[#allocation12 + $0x30] sm:$0xf0] }
 0x4d1   :  { %10603 = vpow2.f32 %v8701_v31  ;;  %v4224_v24 = vadd.f32 %v4223_v46, %v4206_v18  ;;  %v4556_v30 = vpop.f32.mrf.mxu3  ;;  %v8900_v46 = vld [vmem:[#allocation12 + $0xd0] sm:$0xf0] }
 0x4d2   :  { %v4251_v20 = vpop.f32.mrf.mxu0  ;;  %v4557_v41 = vadd.f32 %v4556_v30, %v4529_v29  ;;  %v8903_v38 = vor.u32 %v10282_v1, %v8900_v46  ;;  %v8884_v29 = vld [vmem:[#allocation12 + $0xb0] sm:$0xf0]  ;;  %v8850_v46 = vld [vmem:[#allocation12 + $0x60] sm:$0xf] }
 0x4d3   :  { %v4237_v43 = vadd.f32 %v4236_v4, %v4224_v24  ;;  %v8931_v4 = vor.u32 %v10292_v6, %v8930_v40  ;;  %v10294_v24 = vld [vmem:[#allocation12 + $0x124] sm:$0xf]  ;;  %v8899_v20 = vor.u32 %v10284_v22, %v8898_v47  ;;  %v8932_v40 = vld [vmem:[#allocation12 + $0x110] sm:$0xf0]  ;;  %v9002_v6 = vld [vmem:[#allocation12 + $0x188] sm:$0xf] }
 0x4d4   :  { %v4596_v52 = vadd.f32 %v4594_v7, %v4557_v41  ;;  %5048 = vmatpush.bf16.msrb.mxu3 %v8903_v38  ;;  %v10305_v47 = vld [vmem:[#allocation12 + $0x174] sm:$0xf0]  ;;  %v10315_v22 = vld [vmem:[#allocation12 + $0x1cc] sm:$0xf] }
 0x4d5   :  { %v8700_v19 = vmul.f32 -1.442695, %v4237_v43  ;;  %5041 = vmatpush.bf16.msrb.mxu2 %v8931_v4  ;;  %v8951_v43 = vor.u32 %v10294_v24, %v8948_v36  ;;  %5022 = vmatpush.bf16.msrb.mxu1 %v8899_v20  ;;  %v10272_v24 = vld [vmem:[#allocation12 + $0x6c] sm:$0xf0]  ;;  %v8852_v20 = vld [vmem:[#allocation12 + $0x70] sm:$0xf0] }
 0x4d6   :  { %v8799_v31 = vmul.f32 -1.442695, %v4596_v52  ;;  %v8970_v36 = vld [vmem:[#allocation12 + $0x148] sm:$0xf] }
 0x4d7   :  { %v10604_v55 = vpop.eup %10603  ;;  %10605 = vpow2.f32 %v8700_v19  ;;  %v8882_v19 = vld [vmem:[#allocation12 + $0xa0] sm:$0xf]  ;;  %5066 = vmatpush.bf16.msra.mxu0 %v8951_v43  ;;  %v8851_v43 = vor.u32 %v10272_v24, %v8850_v46  ;;  %v10260_v46 = vld [vmem:[#allocation12 + $0xc] sm:$0xf0]  ;;  %v10258_v24 = vld [vmem:[#allocation12 + $0x4] sm:$0xf] }
 0x4d8   :  { %v11523_v25 = vadd.f32 1.0, %v10604_v55  ;;  %v4225_v27 = vpop.f32.mrf.mxu2  ;;  %v8883_v48 = vor.u32 %v10280_v57, %v8882_v19  ;;  %v10278_v55 = vld [vmem:[#allocation12 + $0xa4] sm:$0xf]  ;;  %v10301_v19 = vld [vmem:[#allocation12 + $0x154] sm:$0xf0] }
 0x4d9   :  { %v4558_v2 = vpop.f32.mrf.mxu3  ;;  %5086 = vmatpush.bf16.msra.mxu2 %v9051_v10  ;;  %v8887_v27 = vor.u32 %v10278_v55, %v8884_v29  ;;  %v8866_v10 = vld [vmem:[#allocation12 + $0x80] sm:$0xf]  ;;  %v10311_v57 = vld [vmem:[#allocation12 + $0x1ac] sm:$0xf] }
 0x4da   :  { %10607 = vrcp.f32 %v11523_v25  ;;  %v11528_v61 = vpop.f32.mrf.mxu0  ;;  %v10290_v2 = vld [vmem:[#allocation12 + $0x104] sm:$0xf]  ;;  %5023 = vmatpush.bf16.msrb.mxu1 %v8883_v48  ;;  %v8867_v0 = vor.u32 %v10276_v59, %v8866_v10  ;;  %vm4346_vm13 = vweird.f32 %v11523_v25  ;;  %v4350_v55 = vand.u32 2147483647, %v11523_v25  ;;  %v10307_v10 = vld [vmem:[#allocation12 + $0x18c] sm:$0xf] }
 0x4db   :  { %v4302_v53 = vadd.f32 %v11528_v61, %v4209_v44  ;;  %v8935_v7 = vor.u32 %v10290_v2, %v8932_v40  ;;  %v9003_v61 = vor.u32 %v10309_v11, %v9002_v6  ;;  %5049 = vmatpush.bf16.msrb.mxu3 %v8887_v27  ;;  %v8834_v40 = vld [vmem:[#allocation12 + $0x40] sm:$0xf]  ;;  %v10268_v6 = vld [vmem:[#allocation12 + $0x4c] sm:$0xf0] }
 0x4dc   :  { %v8835_v33 = vor.u32 %v10268_v6, %v8834_v40  ;;  %vm4351_vm15 = vcmp.eq.f32.partialorder %v4350_v55, 8.507059e+37  ;;  %v8818_v59 = vld [vmem:[#allocation12 + $0x20] sm:$0xf]  ;;  %v10283_v6 = vld [vmem:[#allocation12 + $0xcc] sm:$0xf] }
 0x4dd   :  { %v10606_v13 = vpop.eup %10605  ;;  %5087 = vmatpush.bf16.msra.mxu2 %v9035_v34  ;;  %5067 = vmatpush.bf16.msra.mxu0 %v8935_v7 }
 0x4de   :  { %v11531_v60 = vadd.f32 1.0, %v10606_v13  ;;  %v4352_v13 = vand.u32 2147483648, %v11523_v25  ;;  %5024 = vmatpush.bf16.msrb.mxu1 %v8867_v0  ;;  %v10262_v0 = vld [vmem:[#allocation12 + $0x24] sm:$0xf] }
 0x4df   :  { %5050 = vmatpush.bf16.msrb.mxu3 %v8871_v54  ;;  %v8823_v54 = vor.u32 %v10262_v0, %v8820_v45  ;;  %v9122_v0 = vld [vmem:[#allocation8 + $0x84] sm:$0xf0] }
 0x4e0   :  { %v11533_v49 = vpop.eup %10607  ;;  %10609 = vrcp.f32 %v11531_v60  ;;  %v11536_v21 = vpop.f32.mrf.mxu2  ;;  %v4331_v41 = vand.u32 2147483647, %v11531_v60  ;;  %v4333_v35 = vand.u32 2147483648, %v11531_v60  ;;  %vm4327_vm9 = vweird.f32 %v11531_v60 }
 0x4e1   :  { %v4342_v18 = vmul.f32 %v11533_v49, %v11523_v25  ;;  %10611 = vpow2.f32 %v8799_v31  ;;  %5088 = vmatpush.bf16.msra.mxu2 %v9019_v15  ;;  %vm4347_vm10 = vweird.f32 %v11533_v49  ;;  %v4276_v31 = vadd.f32 %v11536_v21, %v4208_v37  ;;  %5112 = vmatpush.bf16.msrb.mxu0 %v9055_v39  ;;  %v9020_v37 = vld [vmem:[#allocation12 + $0x1b8] sm:$0xf0]  ;;  %v8954_v25 = vld [vmem:[#allocation12 + $0x128] sm:$0xf] }
 0x4e2   :  { %v4303_v28 = vpop.f32.mrf.mxu0  ;;  %vm11568_vm12 = vcmp.eq.f32.partialorder %v4331_v41, 8.507059e+37  ;;  %v4334_v44 = vor.u32 1.1754944e-38, %v4333_v35  ;;  %v8987_v21 = vor.u32 %v10305_v47, %v8986_v58  ;;  %vm11578_vm14 = vmor %vm4346_vm13, %vm4347_vm10  ;;  %v4353_v41 = vor.u32 1.1754944e-38, %v4352_v13  ;;  %5025 = vmatpush.bf16.msrb.mxu1 %v8851_v43  ;;  %v9004_v35 = vld [vmem:[#allocation12 + $0x198] sm:$0xf0] }
 0x4e3   :  { %v4343_v30 = vsub.f32 1.0, %v4342_v18  ;;  %v4315_v18 = vadd.f32 %v11509_v8, %v4302_v53  ;;  %v9036_v28 = vld [vmem:[#allocation12 + $0x1d8] sm:$0xf0]  ;;  %v10266_v53 = vld [vmem:[#allocation12 + $0x44] sm:$0xf]  ;;  %v9023_v11 = vor.u32 %v10311_v57, %v9020_v37 }
 0x4e4   :  { %v9039_v34 = vor.u32 %v10315_v22, %v9036_v28  ;;  %v8938_v58 = vld [vmem:[#allocation12 + $0x108] sm:$0xf]  ;;  %v10293_v47 = vld [vmem:[#allocation12 + $0x114] sm:$0xf0]  ;;  %v10303_v22 = vld [vmem:[#allocation12 + $0x16c] sm:$0xf] }
 0x4e5   :  { %v4344_v5 = vmul.f32 %v11533_v49, %v4343_v30  ;;  %v10270_v30 = vld [vmem:[#allocation12 + $0x64] sm:$0xf]  ;;  %5089 = vmatpush.bf16.msra.mxu2 %v9003_v61  ;;  %v8988_v28 = vld [vmem:[#allocation12 + $0x178] sm:$0xf0]  ;;  %v8939_v8 = vor.u32 %v10293_v47, %v8938_v58  ;;  %v10299_v43 = vld [vmem:[#allocation12 + $0x14c] sm:$0xf] }
 0x4e6   :  { %v11541_v51 = vpop.eup %10609  ;;  %v8855_v12 = vor.u32 %v10270_v30, %v8852_v20  ;;  %5113 = vmatpush.bf16.msrb.mxu0 %v9039_v34  ;;  %5026 = vmatpush.bf16.msrb.mxu1 %v8835_v33  ;;  %v8804_v30 = vld [vmem:[#allocation12 + $0x10] sm:$0xf0]  ;;  %v10287_v34 = vld [vmem:[#allocation12 + $0xec] sm:$0xf]  ;;  %v10343_v37 = vld [vmem:[#allocation8 + $0xac] sm:$0xf] }
 0x4e7   :  { %v4323_v42 = vmul.f32 %v11541_v51, %v11531_v60  ;;  %vm4328_vm8 = vweird.f32 %v11541_v51  ;;  %v4345_v32 = vadd.f32 %v11533_v49, %v4344_v5  ;;  %v10612_v23 = vpop.eup %10611  ;;  %v8836_v5 = vld [vmem:[#allocation12 + $0x50] sm:$0xf0]  ;;  %v8991_v60 = vor.u32 %v10303_v22, %v8988_v28  ;;  %v10340_v33 = vld [vmem:[#allocation8 + $0x94] sm:$0xf]  ;;  %v8874_v58 = vld [vmem:[#allocation12 + $0x88] sm:$0xf] }
 0x4e8   :  { %v4277_v4 = vpop.f32.mrf.mxu2  ;;  %vm11564_vm11 = vmor %vm4327_vm9, %vm4328_vm8  ;;  %5051 = vmatpush.bf16.msrb.mxu3 %v8855_v12  ;;  %v8839_v62 = vor.u32 %v10266_v53, %v8836_v5  ;;  %v11590_v61 = vadd.f32 1.0, %v10612_v23  ;;  %v8807_v23 = vor.u32 %v10258_v24, %v8804_v30  ;;  %v8972_v12 = vld [vmem:[#allocation12 + $0x158] sm:$0xf0]  ;;  %v10275_v22 = vld [vmem:[#allocation12 + $0x8c] sm:$0xf] }
 0x4e9   :  { %v4324_v56 = vsub.f32 1.0, %v4323_v42  ;;  %v4289_v42 = vadd.f32 %v11511_v3, %v4276_v31  ;;  %v4349_v27 = vsel %vm11578_vm14, %v11533_v49, %v4345_v32  ;;  %5090 = vmatpush.bf16.msra.mxu2 %v8987_v21  ;;  %v8971_v4 = vor.u32 %v10301_v19, %v8970_v36  ;;  %v10297_v49 = vld [vmem:[#allocation12 + $0x134] sm:$0xf0]  ;;  %v8802_v32 = vld [vmem:[#allocation12] sm:$0xf] }
 0x4ea   :  { %v4354_v13 = vsel %vm4351_vm15, %v4353_v41, %v4349_v27  ;;  %5114 = vmatpush.bf16.msrb.mxu0 %v9023_v11  ;;  %v10289_v21 = vld [vmem:[#allocation12 + $0xf4] sm:$0xf0]  ;;  %v8803_v36 = vor.u32 %v10260_v46, %v8802_v32  ;;  %v8975_v40 = vor.u32 %v10299_v43, %v8972_v12  ;;  %v8908_v53 = vld [vmem:[#allocation12 + $0xd8] sm:$0xf0]  ;;  %v10295_v41 = vld [vmem:[#allocation12 + $0x12c] sm:$0xf]  ;;  %vm4606_vm5 = vweird.f32 %v11590_v61 }
 0x4eb   :  { %v4325_v16 = vmul.f32 %v11541_v51, %v4324_v56  ;;  %v11553_v52 = vpop.f32.mrf.mxu0  ;;  %v4361_v57 = vmul.f32 %v4354_v13, %v11449_v17  ;;  %v8956_v17 = vld [vmem:[#allocation12 + $0x138] sm:$0xf0]  ;;  %v9110_v24 = vld [vmem:[#allocation8 + $0x6c] sm:$0xf0] }
 0x4ec   :  { %5052 = vmatpush.bf16.msrb.mxu3 %v8839_v62  ;;  %v10281_v62 = vld [vmem:[#allocation12 + $0xb4] sm:$0xf0]  ;;  %v8876_v28 = vld [vmem:[#allocation12 + $0x98] sm:$0xf0] }
 0x4ed   :  { %v4326_v1 = vadd.f32 %v11541_v51, %v4325_v16  ;;  %5091 = vmatpush.bf16.msra.mxu2 %v8971_v4  ;;  %v8955_v16 = vor.u32 %v10297_v49, %v8954_v25  ;;  %v8959_v49 = vor.u32 %v10295_v41, %v8956_v17  ;;  %v10334_v46 = vld [vmem:[#allocation8 + $0x64] sm:$0xf] }
 0x4ef   :  { %v4330_v38 = vsel %vm11564_vm11, %v11541_v51, %v4326_v1  ;;  %v4359_v1 = vsub.f32 1.0, %v4354_v13 }
 0x4f0   :  { %v4335_v48 = vsel %vm11568_vm12, %v4334_v44, %v4330_v38  ;;  %v4543_v29 = vpop.f32.mrf.mxu2  ;;  %v8922_v44 = vld [vmem:[#allocation12 + $0xe8] sm:$0xf]  ;;  %5053 = vmatpush.bf16.msrb.mxu3 %v8823_v54  ;;  %v8924_v38 = vld [vmem:[#allocation12 + $0xf8] sm:$0xf0] }
 0x4f1   :  { %v4356_v51 = vmul.f32 %v4335_v48, %v4315_v18  ;;  %v4544_v2 = vadd.f32 %v4543_v29, %v4528_v9  ;;  %v9007_v9 = vor.u32 %v10307_v10, %v9004_v35  ;;  %v8819_v18 = vor.u32 %v10264_v14, %v8818_v59  ;;  %5092 = vmatpush.bf16.msra.mxu2 %v8955_v16  ;;  %v9146_v29 = vld [vmem:[#allocation8 + $0xb4] sm:$0xf0]  ;;  %v10279_v10 = vld [vmem:[#allocation12 + $0xac] sm:$0xf]  ;;  %v8892_v35 = vld [vmem:[#allocation12 + $0xb8] sm:$0xf0] }
 0x4f2   :  { %v8923_v15 = vor.u32 %v10289_v21, %v8922_v44  ;;  %v8927_v48 = vor.u32 %v10287_v34, %v8924_v38  ;;  %v9149_v11 = vor.u32 %v10343_v37, %v9146_v29  ;;  %v8940_v59 = vld [vmem:[#allocation12 + $0x118] sm:$0xf0]  ;;  %v10337_v16 = vld [vmem:[#allocation8 + $0x7c] sm:$0xf]  ;;  %v8895_v45 = vor.u32 %v10279_v10, %v8892_v35  ;;  %v8858_v44 = vld [vmem:[#allocation12 + $0x68] sm:$0xf] }
 0x4f3   :  { %v4357_v56 = vadd.f32 %v4356_v51, %v4289_v42  ;;  %v4573_v7 = vadd.f32 %v4544_v2, %v11525_v63  ;;  %v4571_v3 = vpop.f32.mrf.mxu0  ;;  %5115 = vmatpush.bf16.msrb.mxu0 %v9007_v9  ;;  %5027 = vmatpush.bf16.msrb.mxu1 %v8819_v18  ;;  %v8906_v51 = vld [vmem:[#allocation12 + $0xc8] sm:$0xf]  ;;  %v10285_v42 = vld [vmem:[#allocation12 + $0xd4] sm:$0xf0]  ;;  %v9125_v32 = vor.u32 %v10337_v16, %v9122_v0  ;;  %v4530_v34 = vperm.slane %v11520_v26, 2 }
 0x4f4   :  { %5054 = vmatpush.bf16.msrb.mxu3 %v8807_v23  ;;  %v8907_v5 = vor.u32 %v10285_v42, %v8906_v51  ;;  %v8890_v3 = vld [vmem:[#allocation12 + $0xa8] sm:$0xf]  ;;  %v10277_v18 = vld [vmem:[#allocation12 + $0x94] sm:$0xf0]  ;;  %v8860_v23 = vld [vmem:[#allocation12 + $0x78] sm:$0xf0] }
 0x4f5   :  { %10613 = vtanh.f32 %v4357_v56  ;;  %v8798_v39 = vmul.f32 -1.442695, %v4573_v7  ;;  %5093 = vmatpush.bf16.msra.mxu2 %v8939_v8  ;;  %v9134_v56 = vld [vmem:[#allocation8 + $0x9c] sm:$0xf0]  ;;  %v8911_v7 = vor.u32 %v10283_v6, %v8908_v53  ;;  %v8891_v9 = vor.u32 %v10281_v62, %v8890_v3  ;;  %v10331_v37 = vld [vmem:[#allocation8 + $0x4c] sm:$0xf] }
 0x4f6   :  { %v9137_v14 = vor.u32 %v10340_v33, %v9134_v56  ;;  %v8875_v30 = vor.u32 %v10277_v18, %v8874_v58  ;;  %v10273_v21 = vld [vmem:[#allocation12 + $0x74] sm:$0xf0]  ;;  %v9098_v26 = vld [vmem:[#allocation8 + $0x54] sm:$0xf0]  ;;  %v8842_v29 = vld [vmem:[#allocation12 + $0x48] sm:$0xf]  ;;  %v4570_v41 = vadd.f32 %v11553_v52, %v4530_v34 }
 0x4f7   :  { %10615 = vpow2.f32 %v8798_v39  ;;  %5116 = vmatpush.bf16.msrb.mxu0 %v8991_v60  ;;  %5028 = vmatpush.bf16.msrb.mxu1 %v8803_v36  ;;  %v10291_v39 = vld [vmem:[#allocation12 + $0x10c] sm:$0xf]  ;;  %v8879_v60 = vor.u32 %v10275_v22, %v8876_v28  ;;  %v10269_v51 = vld [vmem:[#allocation12 + $0x54] sm:$0xf0]  ;;  %v4612_v42 = vand.u32 2147483648, %v11590_v61 }
 0x4f8   :  { %v4545_v31 = vpop.f32.mrf.mxu2  ;;  %10617 = vrcp.f32 %v11590_v61  ;;  %5099 = vmatpush.bf16.msra.mxu3 %v8927_v48  ;;  %v8943_v47 = vor.u32 %v10291_v39, %v8940_v59  ;;  %v10271_v36 = vld [vmem:[#allocation12 + $0x6c] sm:$0xf]  ;;  %v8826_v62 = vld [vmem:[#allocation12 + $0x28] sm:$0xf]  ;;  %v4610_v52 = vand.u32 2147483647, %v11590_v61 }
 0x4f9   :  { %v10267_v6 = vld [vmem:[#allocation12 + $0x4c] sm:$0xf]  ;;  %v8828_v35 = vld [vmem:[#allocation12 + $0x38] sm:$0xf0]  ;;  %v10325_v16 = vld [vmem:[#allocation8 + $0x1c] sm:$0xf] }
 0x4fa   :  { %v10328_v33 = vld [vmem:[#allocation8 + $0x34] sm:$0xf]  ;;  %v9074_v0 = vld [vmem:[#allocation8 + $0x24] sm:$0xf0]  ;;  %v8810_v58 = vld [vmem:[#allocation12 + $0x8] sm:$0xf] }
 0x4fb   :  { %v10614_v20 = vpop.eup %10613  ;;  %5073 = vmatpush.bf16.msra.mxu1 %v8923_v15  ;;  %5117 = vmatpush.bf16.msrb.mxu0 %v8975_v40  ;;  %v8859_v15 = vor.u32 %v10273_v21, %v8858_v44  ;;  %v10263_v10 = vld [vmem:[#allocation12 + $0x2c] sm:$0xf]  ;;  %v10261_v18 = vld [vmem:[#allocation12 + $0x14] sm:$0xf0]  ;;  %vm4611_vm7 = vcmp.eq.f32.partialorder %v4610_v52, 8.507059e+37  ;;  %v9077_v22 = vor.u32 %v10325_v16, %v9074_v0 }
 0x4fc   :  { %v4360_v19 = vmul.f32 %v10614_v20, %v4359_v1  ;;  %5100 = vmatpush.bf16.msra.mxu3 %v8911_v7  ;;  %v9086_v7 = vld [vmem:[#allocation8 + $0x3c] sm:$0xf0]  ;;  %v10322_v28 = vld [vmem:[#allocation8 + $0x4] sm:$0xf]  ;;  %v10344_v44 = vld [vmem:[#allocation8 + $0xb0] sm:$0xf0] }
 0x4fd   :  { %v10616_v55 = vpop.eup %10615  ;;  %v9152_v21 = vld [vmem:[#allocation8 + $0xb0] sm:$0xf]  ;;  %v10345_v34 = vld [vmem:[#allocation8 + $0xb8] sm:$0xf0]  ;;  %v9060_v16 = vld [vmem:[#allocation8] sm:$0xf] }
 0x4fe   :  { %v11594_v27 = vadd.f32 %v4361_v57, %v4360_v19  ;;  %v11596_v2 = vadd.f32 1.0, %v10616_v55  ;;  %v11598_v4 = vpop.eup %10617  ;;  %v4617_v19 = vrot.slane %v11525_v63, 2  ;;  %v9113_v57 = vor.u32 %v10334_v46, %v9110_v24  ;;  %v8844_v63 = vld [vmem:[#allocation12 + $0x58] sm:$0xf0]  ;;  %v9068_v0 = vld [vmem:[#allocation8 + $0x8] sm:$0xf] }
 0x4ff   :  { %v4602_v13 = vmul.f32 %v11598_v4, %v11590_v61  ;;  %5074 = vmatpush.bf16.msra.mxu1 %v8907_v5  ;;  %5118 = vmatpush.bf16.msrb.mxu0 %v8959_v49  ;;  %v8863_v55 = vor.u32 %v10271_v36, %v8860_v23  ;;  %vm4607_vm4 = vweird.f32 %v11598_v4  ;;  %v8843_v5 = vor.u32 %v10269_v51, %v8842_v29  ;;  %v10265_v49 = vld [vmem:[#allocation12 + $0x34] sm:$0xf0] }
 0x500   :  { %4363 = vst [vmem:[#allocation14 + $0x4] sm:$0x1] %v11594_v27  ;;  %10619 = vrcp.f32 %v11596_v2  ;;  %v11604_v25 = vpack.c.bf16 %v11594_v27, %v11594_v27  ;;  %5101 = vmatpush.bf16.msra.mxu3 %v8895_v45  ;;  %v4589_v20 = vand.u32 2147483648, %v11596_v2  ;;  %v4587_v12 = vand.u32 2147483647, %v11596_v2  ;;  %vm11626_vm6 = vmor %vm4606_vm5, %vm4607_vm4 }
 0x501   :  { %v4603_v1 = vsub.f32 1.0, %v4602_v13  ;;  %vm4583_vm1 = vweird.f32 %v11596_v2  ;;  %v8847_v3 = vor.u32 %v10267_v6, %v8844_v63  ;;  %v9089_v61 = vor.u32 %v10328_v33, %v9086_v7  ;;  %v9116_v6 = vld [vmem:[#allocation8 + $0x68] sm:$0xf]  ;;  %v10336_v63 = vld [vmem:[#allocation8 + $0x70] sm:$0xf0] }
 0x502   :  { %5042 = vmatmul.bf16.vlgmr.msrb.gmra.mxu2 %v11604_v25  ;;  %5068 = vmatmul.bf16.vlgmr.msra.gmra.mxu0 %v11604_v25  ;;  %v4590_v40 = vor.u32 1.1754944e-38, %v4589_v20  ;;  %vm4588_vm3 = vcmp.eq.f32.partialorder %v4587_v12, 8.507059e+37  ;;  %v8831_v45 = vor.u32 %v10263_v10, %v8828_v35  ;;  %v9140_v12 = vld [vmem:[#allocation8 + $0x98] sm:$0xf]  ;;  %v10333_v33 = vld [vmem:[#allocation8 + $0x58] sm:$0xf0] }
 0x503   :  { %5354 = vmatpush.bf16.msrb.mxu2 %v9149_v11  ;;  %5075 = vmatpush.bf16.msra.mxu1 %v8891_v9  ;;  %v4604_v38 = vmul.f32 %v11598_v4, %v4603_v1  ;;  %v9101_v11 = vor.u32 %v10331_v37, %v9098_v26  ;;  %v8827_v9 = vor.u32 %v10265_v49, %v8826_v62  ;;  %v9062_v1 = vld [vmem:[#allocation8 + $0xc] sm:$0xf0]  ;;  %v9128_v26 = vld [vmem:[#allocation8 + $0x80] sm:$0xf]  ;;  %v9092_v62 = vld [vmem:[#allocation8 + $0x38] sm:$0xf] }
 0x504   :  { %5119 = vmatpush.bf16.msrb.mxu0 %v8943_v47  ;;  %5102 = vmatpush.bf16.msra.mxu3 %v8879_v60  ;;  %v8812_v47 = vld [vmem:[#allocation12 + $0x18] sm:$0xf0]  ;;  %v9144_v60 = vld [vmem:[#allocation8 + $0xa8] sm:$0xf]  ;;  %v9084_v7 = vld [vmem:[#allocation8 + $0x30] sm:$0xf] }
 0x505   :  { %v4605_v53 = vadd.f32 %v11598_v4, %v4604_v38  ;;  %v9145_v36 = vor.u32 %v10344_v44, %v9144_v60  ;;  %v9153_v38 = vor.u32 %v10345_v34, %v9152_v21  ;;  %v10330_v49 = vld [vmem:[#allocation8 + $0x40] sm:$0xf0]  ;;  %v9072_v35 = vld [vmem:[#allocation8 + $0x18] sm:$0xf] }
 0x506   :  { %v10620_v54 = vpop.eup %10619  ;;  %v9093_v10 = vor.u32 %v10330_v49, %v9092_v62  ;;  %v10326_v13 = vld [vmem:[#allocation8 + $0x20] sm:$0xf0]  ;;  %v10396_v21 = vld [vmem:[#allocation12 + $0x18c] sm:$0xf0]  ;;  %v10394_v62 = vld [vmem:[#allocation12 + $0x184] sm:$0xf] }
 0x507   :  { %v4579_v31 = vmul.f32 %v10620_v54, %v11596_v2  ;;  %5355 = vmatpush.bf16.msrb.mxu2 %v9137_v14  ;;  %vm4584_vm0 = vweird.f32 %v10620_v54  ;;  %5076 = vmatpush.bf16.msra.mxu1 %v8875_v30  ;;  %v4609_v59 = vsel %vm11626_vm6, %v11598_v4, %v4605_v53  ;;  %v4613_v14 = vor.u32 1.1754944e-38, %v4612_v42  ;;  %v9108_v42 = vld [vmem:[#allocation8 + $0x60] sm:$0xf] }
 0x508   :  { %vm4585_vm2 = vmor %vm4583_vm1, %vm4584_vm0  ;;  %5103 = vmatpush.bf16.msra.mxu3 %v8863_v55  ;;  %v8811_v4 = vor.u32 %v10261_v18, %v8810_v58  ;;  %v9065_v30 = vor.u32 %v10322_v28, %v9062_v1  ;;  %v10339_v55 = vld [vmem:[#allocation8 + $0x88] sm:$0xf0] }
 0x509   :  { %v4580_v8 = vsub.f32 1.0, %v4579_v31  ;;  %v9129_v51 = vor.u32 %v10339_v55, %v9128_v26  ;;  %v10402_v55 = vld [vmem:[#allocation12 + $0x1c4] sm:$0xf] }
 0x50b   :  { %v4581_v43 = vmul.f32 %v10620_v54, %v4580_v8  ;;  %5356 = vmatpush.bf16.msrb.mxu2 %v9125_v32  ;;  %5077 = vmatpush.bf16.msra.mxu1 %v8859_v15  ;;  %v9120_v15 = vld [vmem:[#allocation8 + $0x78] sm:$0xf] }
 0x50c   :  { %5104 = vmatpush.bf16.msra.mxu3 %v8847_v3  ;;  %v10329_v3 = vld [vmem:[#allocation8 + $0x38] sm:$0xf0] }
 0x50d   :  { %v4582_v48 = vadd.f32 %v10620_v54, %v4581_v43  ;;  %v9132_v43 = vld [vmem:[#allocation8 + $0x90] sm:$0xf]  ;;  %v9085_v52 = vor.u32 %v10329_v3, %v9084_v7  ;;  %v10384_v3 = vld [vmem:[#allocation12 + $0x12c] sm:$0xf0] }
 0x50f   :  { %v4586_v17 = vsel %vm4585_vm2, %v10620_v54, %v4582_v48  ;;  %5357 = vmatpush.bf16.msrb.mxu2 %v9113_v57  ;;  %5078 = vmatpush.bf16.msra.mxu1 %v8843_v5  ;;  %v10259_v54 = vld [vmem:[#allocation12 + $0xc] sm:$0xf]  ;;  %v10338_v48 = vld [vmem:[#allocation8 + $0x80] sm:$0xf0] }
 0x510   :  { %v4591_v2 = vsel %vm4588_vm3, %v4590_v40, %v4586_v17  ;;  %5105 = vmatpush.bf16.msra.mxu3 %v8831_v45  ;;  %v8815_v31 = vor.u32 %v10259_v54, %v8812_v47  ;;  %v9121_v29 = vor.u32 %v10338_v48, %v9120_v15  ;;  %v10335_v40 = vld [vmem:[#allocation8 + $0x68] sm:$0xf0]  ;;  %v9096_v17 = vld [vmem:[#allocation8 + $0x48] sm:$0xf]  ;;  %v10324_v45 = vld [vmem:[#allocation8 + $0x10] sm:$0xf0] }
 0x511   :  { %v4616_v56 = vmul.f32 %v4591_v2, %v4570_v41  ;;  %v9109_v53 = vor.u32 %v10335_v40, %v9108_v42  ;;  %v9117_v41 = vor.u32 %v10336_v63, %v9116_v6  ;;  %v10332_v2 = vld [vmem:[#allocation8 + $0x50] sm:$0xf0]  ;;  %v9069_v18 = vor.u32 %v10324_v45, %v9068_v0  ;;  %v9398_v54 = vld [vmem:[#allocation12 + $0x1e0] sm:$0xf]  ;;  %v10408_v47 = vld [vmem:[#allocation12 + $0x1ec] sm:$0xf0] }
 0x512   :  { %5094 = vmatmul.bf16.vlgmr.msra.gmra.mxu2 %v11604_v25  ;;  %5120 = vmatmul.bf16.vlgmr.msrb.gmra.mxu0 %v11604_v25  ;;  %v4614_v25 = vsel %vm4611_vm7, %v4613_v14, %v4609_v59  ;;  %v9097_v5 = vor.u32 %v10332_v2, %v9096_v17  ;;  %v10327_v59 = vld [vmem:[#allocation8 + $0x28] sm:$0xf0]  ;;  %v9073_v14 = vor.u32 %v10326_v13, %v9072_v35  ;;  %v10392_v15 = vld [vmem:[#allocation12 + $0x16c] sm:$0xf0]  ;;  %v11659_v42 = vld [vmem:[#allocation11] sm:$0x7] }
 0x513   :  { %v4619_v39 = vadd.f32 %v4617_v19, %v4616_v56  ;;  %5358 = vmatpush.bf16.msrb.mxu2 %v9101_v11  ;;  %5079 = vmatpush.bf16.msra.mxu1 %v8827_v9  ;;  %v4621_v32 = vsub.f32 1.0, %v4614_v25  ;;  %v4623_v24 = vmul.f32 %v4614_v25, %v11496_v50  ;;  %v10341_v50 = vld [vmem:[#allocation8 + $0x98] sm:$0xf0]  ;;  %v10342_v19 = vld [vmem:[#allocation8 + $0xa0] sm:$0xf0]  ;;  %v5336_v2 = vperm.slane %v11659_v42, 1 }
 0x514   :  { %5106 = vmatpush.bf16.msra.mxu3 %v8815_v31  ;;  %v9133_v57 = vor.u32 %v10341_v50, %v9132_v43  ;;  %v9141_v37 = vor.u32 %v10342_v19, %v9140_v12  ;;  %v9104_v11 = vld [vmem:[#allocation8 + $0x50] sm:$0xf]  ;;  %v10323_v9 = vld [vmem:[#allocation8 + $0x8] sm:$0xf0]  ;;  %v9382_v25 = vld [vmem:[#allocation12 + $0x1c0] sm:$0xf] }
 0x515   :  { %10621 = vtanh.f32 %v4619_v39  ;;  %v9105_v56 = vor.u32 %v10333_v33, %v9104_v11  ;;  %v9080_v39 = vld [vmem:[#allocation8 + $0x20] sm:$0xf]  ;;  %v9061_v58 = vor.u32 %v10323_v9, %v9060_v16  ;;  %v10406_v43 = vld [vmem:[#allocation12 + $0x1e4] sm:$0xf]  ;;  %v9400_v50 = vld [vmem:[#allocation12 + $0x1f0] sm:$0xf0] }
 0x516   :  { %v9403_v19 = vor.u32 %v10406_v43, %v9400_v50  ;;  %v10398_v17 = vld [vmem:[#allocation12 + $0x1a4] sm:$0xf]  ;;  %v9368_v33 = vld [vmem:[#allocation12 + $0x1b0] sm:$0xf0] }
 0x517   :  { %5359 = vmatpush.bf16.msrb.mxu2 %v9089_v61  ;;  %5080 = vmatpush.bf16.msra.mxu1 %v8811_v4  ;;  %v9081_v61 = vor.u32 %v10327_v59, %v9080_v39  ;;  %v10404_v4 = vld [vmem:[#allocation12 + $0x1cc] sm:$0xf0]  ;;  %v9371_v7 = vor.u32 %v10398_v17, %v9368_v33  ;;  %v9352_v35 = vld [vmem:[#allocation12 + $0x190] sm:$0xf0]  ;;  %v10382_v17 = vld [vmem:[#allocation12 + $0x124] sm:$0xf] }
 0x518   :  { %v9383_v28 = vor.u32 %v10404_v4, %v9382_v25  ;;  %v9355_v59 = vor.u32 %v10394_v62, %v9352_v35  ;;  %v9336_v25 = vld [vmem:[#allocation12 + $0x170] sm:$0xf0]  ;;  %v10401_v62 = vld [vmem:[#allocation12 + $0x1b4] sm:$0xf0]  ;;  %v10368_v35 = vld [vmem:[#allocation12 + $0xac] sm:$0xf0] }
 0x51b   :  { %v10622_v46 = vpop.eup %10621  ;;  %5360 = vmatpush.bf16.msrb.mxu2 %v9077_v22  ;;  %v9399_v22 = vor.u32 %v10408_v47, %v9398_v54  ;;  %v10390_v47 = vld [vmem:[#allocation12 + $0x164] sm:$0xf] }
 0x51c   :  { %v4622_v8 = vmul.f32 %v10622_v46, %v4621_v32  ;;  %v9339_v4 = vor.u32 %v10390_v47, %v9336_v25  ;;  %v5335_v47 = vperm.slane %v11659_v42, 0 }
 0x51e   :  { %v11636_v20 = vadd.f32 %v4623_v24, %v4622_v8  ;;  %v9366_v24 = vld [vmem:[#allocation12 + $0x1a0] sm:$0xf] }
 0x51f   :  { %5361 = vmatpush.bf16.msrb.mxu2 %v9065_v30  ;;  %v10400_v30 = vld [vmem:[#allocation12 + $0x1ac] sm:$0xf0]  ;;  %v9350_v8 = vld [vmem:[#allocation12 + $0x180] sm:$0xf] }
 0x520   :  { %v11640_v23 = vpack.c.bf16 %v11636_v20, %v11636_v20  ;;  %v9367_v44 = vor.u32 %v10400_v30, %v9366_v24  ;;  %v9351_v34 = vor.u32 %v10396_v21, %v9350_v8  ;;  %v9270_v30 = vld [vmem:[#allocation12 + $0xe0] sm:$0xf]  ;;  %v10376_v8 = vld [vmem:[#allocation12 + $0xec] sm:$0xf0] }
 0x521   :  { %v9271_v43 = vor.u32 %v10376_v8, %v9270_v30  ;;  %v9222_v30 = vld [vmem:[#allocation12 + $0x80] sm:$0xf]  ;;  %v10364_v8 = vld [vmem:[#allocation12 + $0x8c] sm:$0xf0] }
 0x522   :  { %5029 = vmatmul.bf16.vlgmr.msrb.gmra.mxu1 %v11640_v23  ;;  %5055 = vmatmul.bf16.vlgmr.msrb.gmra.mxu3 %v11640_v23 }
 0x523   :  { %5362 = vmatmul.bf16.vlgmr.msrb.gmra.mxu2 %v11640_v23  ;;  %5341 = vmatpush.bf16.msrb.mxu1 %v9145_v36 }
 0x524   :  { %5367 = vmatpush.bf16.msrb.mxu3 %v9153_v38  ;;  %v11656_v38 = vld [vmem:[%s11902_s6] sm:$0xf]  ;;  %5828 = vmatpush.bf16.msra.mxu0 %v9271_v43  ;;  %v10362_v43 = vld [vmem:[#allocation12 + $0x84] sm:$0xf] }
 0x525   :  { %v5013_v12 = vperm.slane %v11656_v38, 0  ;;  %v5014_v6 = vperm.slane %v11656_v38, 1 }
 0x527   :  { %5342 = vmatpush.bf16.msrb.mxu1 %v9133_v57 }
 0x528   :  { %5368 = vmatpush.bf16.msrb.mxu3 %v9141_v37  ;;  %v9334_v37 = vld [vmem:[#allocation12 + $0x160] sm:$0xf] }
 0x529   :  { %v9335_v26 = vor.u32 %v10392_v15, %v9334_v37  ;;  %v10405_v15 = vld [vmem:[#allocation12 + $0x1d4] sm:$0xf0] }
 0x52b   :  { %5343 = vmatpush.bf16.msrb.mxu1 %v9121_v29  ;;  %v9384_v29 = vld [vmem:[#allocation12 + $0x1d0] sm:$0xf0] }
 0x52c   :  { %5369 = vmatpush.bf16.msrb.mxu3 %v9129_v51  ;;  %v9387_v40 = vor.u32 %v10402_v55, %v9384_v29  ;;  %v10372_v29 = vld [vmem:[#allocation12 + $0xcc] sm:$0xf0] }
 0x52f   :  { %5344 = vmatpush.bf16.msrb.mxu1 %v9109_v53  ;;  %v9318_v53 = vld [vmem:[#allocation12 + $0x140] sm:$0xf] }
 0x530   :  { %5370 = vmatpush.bf16.msrb.mxu3 %v9117_v41  ;;  %v10388_v41 = vld [vmem:[#allocation12 + $0x14c] sm:$0xf0] }
 0x531   :  { %v9319_v11 = vor.u32 %v10388_v41, %v9318_v53 }
 0x532   :  { %5081 = vmatmul.bf16.vlgmr.msra.gmra.mxu1 %v11640_v23  ;;  %5107 = vmatmul.bf16.vlgmr.msra.gmra.mxu3 %v11640_v23 }
 0x533   :  { %5345 = vmatpush.bf16.msrb.mxu1 %v9097_v5  ;;  %v9302_v5 = vld [vmem:[#allocation12 + $0x120] sm:$0xf] }
 0x534   :  { %5371 = vmatpush.bf16.msrb.mxu3 %v9105_v56 }
 0x537   :  { %5346 = vmatpush.bf16.msrb.mxu1 %v9085_v52  ;;  %v11663_v52 = vld [vmem:[#allocation2 + $0x6] ss:$8 sm:$0x7] }
 0x538   :  { %5372 = vmatpush.bf16.msrb.mxu3 %v9093_v10  ;;  %v9303_v10 = vor.u32 %v10384_v3, %v9302_v5  ;;  %v5401_v45 = vrot.slane %v11663_v52, 1  ;;  %v9374_v3 = vld [vmem:[#allocation12 + $0x1a8] sm:$0xf] }
 0x53b   :  { %5347 = vmatpush.bf16.msrb.mxu1 %v9073_v14  ;;  %v9286_v14 = vld [vmem:[#allocation12 + $0x100] sm:$0xf] }
 0x53c   :  { %5373 = vmatpush.bf16.msrb.mxu3 %v9081_v61  ;;  %v10380_v61 = vld [vmem:[#allocation12 + $0x10c] sm:$0xf0] }
 0x53f   :  { %5348 = vmatpush.bf16.msrb.mxu1 %v9061_v58  ;;  %v9287_v58 = vor.u32 %v10380_v61, %v9286_v14  ;;  %v9240_v61 = vld [vmem:[#allocation12 + $0xb0] sm:$0xf0] }
 0x540   :  { %5374 = vmatpush.bf16.msrb.mxu3 %v9069_v18 }
 0x542   :  { %5349 = vmatmul.bf16.vlgmr.msrb.gmra.mxu1 %v11640_v23 }
 0x543   :  { %5375 = vmatmul.bf16.vlgmr.msrb.gmra.mxu3 %v11640_v23  ;;  %5841 = vmatpush.bf16.msra.mxu1 %v9399_v22 }
 0x544   :  { %5867 = vmatpush.bf16.msra.mxu3 %v9403_v19  ;;  %v9320_v19 = vld [vmem:[#allocation12 + $0x150] sm:$0xf0] }
 0x547   :  { %5842 = vmatpush.bf16.msra.mxu1 %v9383_v28  ;;  %v9406_v28 = vld [vmem:[#allocation12 + $0x1e8] sm:$0xf] }
 0x548   :  { %5868 = vmatpush.bf16.msra.mxu3 %v9387_v40  ;;  %v9256_v40 = vld [vmem:[#allocation12 + $0xd0] sm:$0xf0] }
 0x54b   :  { %5843 = vmatpush.bf16.msra.mxu1 %v9367_v44  ;;  %v10374_v44 = vld [vmem:[#allocation12 + $0xe4] sm:$0xf] }
 0x54c   :  { %5869 = vmatpush.bf16.msra.mxu3 %v9371_v7 }
 0x54f   :  { %5844 = vmatpush.bf16.msra.mxu1 %v9351_v34 }
 0x550   :  { %5870 = vmatpush.bf16.msra.mxu3 %v9355_v59 }
 0x553   :  { %5845 = vmatpush.bf16.msra.mxu1 %v9335_v26 }
 0x554   :  { %5871 = vmatpush.bf16.msra.mxu3 %v9339_v4  ;;  %v10397_v4 = vld [vmem:[#allocation12 + $0x194] sm:$0xf0] }
 0x557   :  { %5846 = vmatpush.bf16.msra.mxu1 %v9319_v11 }
 0x55b   :  { %5847 = vmatpush.bf16.msra.mxu1 %v9303_v10  ;;  %v5016_v10 = vperm.slane %v11656_v38, 3 }
 0x55f   :  { %5848 = vmatpush.bf16.msra.mxu1 %v9287_v58 }
 0x57f   :  { %v5069_v1 = vpop.f32.mrf.mxu0 }
 0x585   :  { %v5043_v31 = vpop.f32.mrf.mxu2 }
 0x587   :  { %v5071_v32 = vpop.f32.mrf.mxu0 }
 0x58d   :  { %v5045_v46 = vpop.f32.mrf.mxu2 }
 0x58f   :  { %v11649_v60 = vpop.f32.mrf.mxu0 }
 0x595   :  { %v11651_v36 = vpop.f32.mrf.mxu2 }
 0x597   :  { %v5123_v23 = vpop.f32.mrf.mxu0 }
 0x598   :  { %v9272_v23 = vld [vmem:[#allocation12 + $0xf0] sm:$0xf0] }
 0x599   :  { %v9275_v50 = vor.u32 %v10374_v44, %v9272_v23  ;;  %v9223_v23 = vor.u32 %v10364_v8, %v9222_v30 }
 0x59b   :  { %5854 = vmatpush.bf16.msra.mxu2 %v9275_v50  ;;  %v9224_v50 = vld [vmem:[#allocation12 + $0x90] sm:$0xf0] }
 0x59d   :  { %v5097_v57 = vpop.f32.mrf.mxu2 }
 0x59e   :  { %v9390_v57 = vld [vmem:[#allocation12 + $0x1c8] sm:$0xf] }
 0x59f   :  { %v5030_v48 = vpop.f32.mrf.mxu1  ;;  %v9391_v55 = vor.u32 %v10405_v15, %v9390_v57  ;;  %v9342_v57 = vld [vmem:[#allocation12 + $0x168] sm:$0xf]  ;;  %v10403_v15 = vld [vmem:[#allocation12 + $0x1cc] sm:$0xf] }
 0x5a0   :  { %v5031_v51 = vadd.f32 %v5030_v48, %v5013_v12  ;;  %v10386_v12 = vld [vmem:[#allocation12 + $0x144] sm:$0xf]  ;;  %v9254_v48 = vld [vmem:[#allocation12 + $0xc0] sm:$0xf] }
 0x5a1   :  { %v9323_v37 = vor.u32 %v10386_v12, %v9320_v19  ;;  %v9255_v53 = vor.u32 %v10372_v29, %v9254_v48  ;;  %v9227_v19 = vor.u32 %v10362_v43, %v9224_v50  ;;  %v10352_v43 = vld [vmem:[#allocation12 + $0x2c] sm:$0xf0] }
 0x5a2   :  { %v5044_v63 = vadd.f32 %v5043_v31, %v5031_v51  ;;  %v10409_v31 = vld [vmem:[#allocation12 + $0x1f4] sm:$0xf0]  ;;  %v10370_v51 = vld [vmem:[#allocation12 + $0xc4] sm:$0xf] }
 0x5a3   :  { %v9407_v24 = vor.u32 %v10409_v31, %v9406_v28  ;;  %5872 = vmatpush.bf16.msra.mxu3 %v9323_v37  ;;  %v9259_v41 = vor.u32 %v10370_v51, %v9256_v40  ;;  %5829 = vmatpush.bf16.msra.mxu0 %v9255_v53  ;;  %v10407_v28 = vld [vmem:[#allocation12 + $0x1ec] sm:$0xf]  ;;  %v10393_v37 = vld [vmem:[#allocation12 + $0x174] sm:$0xf0]  ;;  %v9392_v40 = vld [vmem:[#allocation12 + $0x1d8] sm:$0xf0] }
 0x5a4   :  { %v9056_v56 = vmul.f32 -1.442695, %v5044_v63  ;;  %v5015_v63 = vperm.slane %v11656_v38, 2  ;;  %v9288_v38 = vld [vmem:[#allocation12 + $0x110] sm:$0xf0]  ;;  %v9343_v53 = vor.u32 %v10393_v37, %v9342_v57 }
 0x5a5   :  { %v5056_v49 = vpop.f32.mrf.mxu3  ;;  %5893 = vmatpush.bf16.msrb.mxu1 %v9407_v24  ;;  %5855 = vmatpush.bf16.msra.mxu2 %v9259_v41  ;;  %v9395_v41 = vor.u32 %v10403_v15, %v9392_v40  ;;  %v9294_v37 = vld [vmem:[#allocation12 + $0x108] sm:$0xf]  ;;  %v10381_v15 = vld [vmem:[#allocation12 + $0x114] sm:$0xf0] }
 0x5a6   :  { %10623 = vpow2.f32 %v9056_v56  ;;  %v5057_v13 = vadd.f32 %v5056_v49, %v5014_v6  ;;  %v5363_v39 = vpop.f32.mrf.mxu2  ;;  %v9238_v49 = vld [vmem:[#allocation12 + $0xa0] sm:$0xf] }
 0x5a7   :  { %v5364_v16 = vadd.f32 %v5363_v39, %v5336_v2  ;;  %v5032_v9 = vpop.f32.mrf.mxu1  ;;  %v9304_v2 = vld [vmem:[#allocation12 + $0x130] sm:$0xf0]  ;;  %v9239_v58 = vor.u32 %v10368_v35, %v9238_v49 }
 0x5a8   :  { %v5070_v0 = vadd.f32 %v5069_v1, %v5057_v13  ;;  %v9307_v5 = vor.u32 %v10382_v17, %v9304_v2  ;;  %v10366_v13 = vld [vmem:[#allocation12 + $0xa4] sm:$0xf]  ;;  %v9206_v17 = vld [vmem:[#allocation12 + $0x60] sm:$0xf]  ;;  %v9376_v9 = vld [vmem:[#allocation12 + $0x1b8] sm:$0xf0] }
 0x5a9   :  { %v5403_v54 = vadd.f32 %v5401_v45, %v5364_v16  ;;  %5894 = vmatpush.bf16.msrb.mxu1 %v9391_v55  ;;  %v10378_v16 = vld [vmem:[#allocation12 + $0x104] sm:$0xf]  ;;  %v9375_v45 = vor.u32 %v10401_v62, %v9374_v3  ;;  %v9243_v25 = vor.u32 %v10366_v13, %v9240_v61  ;;  %5830 = vmatpush.bf16.msra.mxu0 %v9239_v58  ;;  %v9208_v3 = vld [vmem:[#allocation12 + $0x70] sm:$0xf0]  ;;  %v9326_v13 = vld [vmem:[#allocation12 + $0x148] sm:$0xf] }
 0x5aa   :  { %v9057_v18 = vmul.f32 -1.442695, %v5070_v0  ;;  %5873 = vmatpush.bf16.msra.mxu3 %v9307_v5 }
 0x5ab   :  { %v9155_v21 = vmul.f32 -1.442695, %v5403_v54  ;;  %5856 = vmatpush.bf16.msra.mxu2 %v9243_v25 }
 0x5ac   :  { %v10624_v22 = vpop.eup %10623  ;;  %10625 = vpow2.f32 %v9057_v18  ;;  %v9358_v18 = vld [vmem:[#allocation12 + $0x188] sm:$0xf] }
 0x5ad   :  { %v11666_v32 = vadd.f32 1.0, %v10624_v22  ;;  %v5058_v46 = vpop.f32.mrf.mxu3  ;;  %v9291_v22 = vor.u32 %v10378_v16, %v9288_v38  ;;  %5895 = vmatpush.bf16.msrb.mxu1 %v9375_v45  ;;  %v9359_v24 = vor.u32 %v10397_v4, %v9358_v18  ;;  %5831 = vmatpush.bf16.msra.mxu0 %v9223_v23  ;;  %v9190_v38 = vld [vmem:[#allocation12 + $0x40] sm:$0xf]  ;;  %v10356_v18 = vld [vmem:[#allocation12 + $0x4c] sm:$0xf0] }
 0x5ae   :  { %v5365_v1 = vpop.f32.mrf.mxu2  ;;  %v9191_v25 = vor.u32 %v10356_v18, %v9190_v38  ;;  %v10385_v4 = vld [vmem:[#allocation12 + $0x134] sm:$0xf0]  ;;  %v9174_v23 = vld [vmem:[#allocation12 + $0x20] sm:$0xf] }
 0x5af   :  { %10627 = vrcp.f32 %v11666_v32  ;;  %v5082_v34 = vpop.f32.mrf.mxu1  ;;  %v5138_v11 = vand.u32 2147483647, %v11666_v32  ;;  %v5140_v33 = vand.u32 2147483648, %v11666_v32  ;;  %v9408_v1 = vld [vmem:[#allocation12 + $0x1f8] sm:$0xf0]  ;;  %5874 = vmatpush.bf16.msra.mxu3 %v9291_v22  ;;  %vm5134_vm10 = vweird.f32 %v11666_v32  ;;  %5857 = vmatpush.bf16.msra.mxu2 %v9227_v19 }
 0x5b0   :  { %10629 = vpow2.f32 %v9155_v21  ;;  %v5083_v39 = vadd.f32 %v5082_v34, %v5015_v63  ;;  %v9411_v34 = vor.u32 %v10407_v28, %v9408_v1  ;;  %v9192_v22 = vld [vmem:[#allocation12 + $0x50] sm:$0xf0]  ;;  %v9360_v1 = vld [vmem:[#allocation12 + $0x198] sm:$0xf0]  ;;  %v10373_v18 = vld [vmem:[#allocation12 + $0xd4] sm:$0xf0] }
 0x5b1   :  { %vm11680_vm8 = vcmp.eq.f32.partialorder %v5138_v11, 8.507059e+37  ;;  %v5141_v0 = vor.u32 1.1754944e-38, %v5140_v33  ;;  %5896 = vmatpush.bf16.msrb.mxu1 %v9359_v24  ;;  %v10395_v24 = vld [vmem:[#allocation12 + $0x18c] sm:$0xf]  ;;  %v9176_v19 = vld [vmem:[#allocation12 + $0x30] sm:$0xf0] }
 0x5b2   :  { %v10626_v26 = vpop.eup %10625  ;;  %v5096_v55 = vadd.f32 %v11651_v36, %v5083_v39  ;;  %v10360_v36 = vld [vmem:[#allocation12 + $0x6c] sm:$0xf0]  ;;  %v10389_v39 = vld [vmem:[#allocation12 + $0x154] sm:$0xf0]  ;;  %v9363_v30 = vor.u32 %v10395_v24, %v9360_v1 }
 0x5b3   :  { %v11669_v6 = vadd.f32 1.0, %v10626_v26  ;;  %5919 = vmatpush.bf16.msrb.mxu3 %v9411_v34  ;;  %v9207_v5 = vor.u32 %v10360_v36, %v9206_v17  ;;  %v9327_v16 = vor.u32 %v10389_v39, %v9326_v13  ;;  %v10346_v17 = vld [vmem:[#allocation12 + $0x4] sm:$0xf]  ;;  %v9280_v13 = vld [vmem:[#allocation12 + $0xf8] sm:$0xf0] }
 0x5b4   :  { %v10387_v39 = vld [vmem:[#allocation12 + $0x14c] sm:$0xf] }
 0x5b5   :  { %v11674_v56 = vpop.eup %10627  ;;  %10631 = vrcp.f32 %v11669_v6  ;;  %v5108_v7 = vpop.f32.mrf.mxu3  ;;  %v5159_v48 = vand.u32 2147483648, %v11669_v6  ;;  %vm5153_vm13 = vweird.f32 %v11669_v6  ;;  %5897 = vmatpush.bf16.msrb.mxu1 %v9343_v53  ;;  %5832 = vmatpush.bf16.msra.mxu0 %v9207_v5  ;;  %v9158_v53 = vld [vmem:[#allocation12] sm:$0xf]  ;;  %v10377_v5 = vld [vmem:[#allocation12 + $0xf4] sm:$0xf0] }
 0x5b6   :  { %v5130_v59 = vmul.f32 %v11674_v56, %v11666_v32  ;;  %v10630_v31 = vpop.eup %10629  ;;  %v5109_v46 = vadd.f32 %v5108_v7, %v5016_v10  ;;  %vm5135_vm9 = vweird.f32 %v11674_v56  ;;  %v10358_v7 = vld [vmem:[#allocation12 + $0x64] sm:$0xf]  ;;  %v9502_v32 = vld [vmem:[#allocation8 + $0xb4] sm:$0xf0] }
 0x5b7   :  { %v5084_v14 = vpop.f32.mrf.mxu1  ;;  %v11693_v26 = vadd.f32 1.0, %v10630_v31  ;;  %vm11700_vm12 = vmor %vm5134_vm10, %vm5135_vm9  ;;  %v9211_v35 = vor.u32 %v10358_v7, %v9208_v3  ;;  %5920 = vmatpush.bf16.msrb.mxu3 %v9395_v41  ;;  %v10348_v41 = vld [vmem:[#allocation12 + $0xc] sm:$0xf0] }
 0x5b8   :  { %v5131_v54 = vsub.f32 1.0, %v5130_v59  ;;  %v5122_v2 = vadd.f32 %v11649_v60, %v5109_v46  ;;  %v10399_v59 = vld [vmem:[#allocation12 + $0x1ac] sm:$0xf]  ;;  %v5160_v14 = vor.u32 1.1754944e-38, %v5159_v48 }
 0x5b9   :  { %v9379_v58 = vor.u32 %v10399_v59, %v9376_v9  ;;  %5858 = vmatpush.bf16.msra.mxu2 %v9211_v35  ;;  %5898 = vmatpush.bf16.msrb.mxu1 %v9327_v16  ;;  %v10391_v48 = vld [vmem:[#allocation12 + $0x16c] sm:$0xf]  ;;  %vm5413_vm5 = vweird.f32 %v11693_v26 }
 0x5ba   :  { %v5132_v21 = vmul.f32 %v11674_v56, %v5131_v54  ;;  %v10354_v54 = vld [vmem:[#allocation12 + $0x44] sm:$0xf]  ;;  %5833 = vmatpush.bf16.msra.mxu0 %v9191_v25  ;;  %v10375_v35 = vld [vmem:[#allocation12 + $0xec] sm:$0xf] }
 0x5bb   :  { %v11685_v44 = vpop.eup %10631  ;;  %v9195_v46 = vor.u32 %v10354_v54, %v9192_v22  ;;  %5921 = vmatpush.bf16.msrb.mxu3 %v9379_v58  ;;  %v9283_v60 = vor.u32 %v10375_v35, %v9280_v13  ;;  %v9262_v58 = vld [vmem:[#allocation12 + $0xc8] sm:$0xf]  ;;  %v10371_v54 = vld [vmem:[#allocation12 + $0xcc] sm:$0xf]  ;;  %v9264_v22 = vld [vmem:[#allocation12 + $0xd8] sm:$0xf0] }
 0x5bc   :  { %v5149_v12 = vmul.f32 %v11685_v44, %v11669_v6  ;;  %v5133_v29 = vadd.f32 %v11674_v56, %v5132_v21  ;;  %vm5154_vm11 = vweird.f32 %v11685_v44  ;;  %v9263_v25 = vor.u32 %v10373_v18, %v9262_v58  ;;  %v10419_v13 = vld [vmem:[#allocation8 + $0x4c] sm:$0xf] }
 0x5bd   :  { %v5110_v51 = vpop.f32.mrf.mxu3  ;;  %vm11716_vm14 = vmor %vm5153_vm13, %vm5154_vm11  ;;  %5859 = vmatpush.bf16.msra.mxu2 %v9195_v46  ;;  %v9478_v46 = vld [vmem:[#allocation8 + $0x84] sm:$0xf0] }
 0x5be   :  { %v5150_v63 = vsub.f32 1.0, %v5149_v12  ;;  %v5137_v11 = vsel %vm11700_vm12, %v11674_v56, %v5133_v29  ;;  %v5157_v56 = vand.u32 2147483647, %v11669_v6  ;;  %v9310_v6 = vld [vmem:[#allocation12 + $0x128] sm:$0xf]  ;;  %v9295_v51 = vor.u32 %v10381_v15, %v9294_v37 }
 0x5bf   :  { %v5350_v33 = vpop.f32.mrf.mxu1  ;;  %v5142_v49 = vsel %vm11680_vm8, %v5141_v0, %v5137_v11  ;;  %v9311_v34 = vor.u32 %v10385_v4, %v9310_v6  ;;  %v10350_v12 = vld [vmem:[#allocation12 + $0x24] sm:$0xf]  ;;  %5922 = vmatpush.bf16.msrb.mxu3 %v9363_v30  ;;  %v9344_v29 = vld [vmem:[#allocation12 + $0x178] sm:$0xf0]  ;;  %v9160_v11 = vld [vmem:[#allocation12 + $0x10] sm:$0xf0]  ;;  %v9267_v4 = vor.u32 %v10371_v54, %v9264_v22 }
 0x5c0   :  { %v5151_v62 = vmul.f32 %v11685_v44, %v5150_v63  ;;  %v5351_v10 = vadd.f32 %v5350_v33, %v5335_v47  ;;  %v5163_v61 = vmul.f32 %v5142_v49, %v5122_v2  ;;  %vm5158_vm15 = vcmp.eq.f32.partialorder %v5157_v56, 8.507059e+37  ;;  %v10431_v63 = vld [vmem:[#allocation8 + $0xac] sm:$0xf]  ;;  %v9278_v33 = vld [vmem:[#allocation12 + $0xe8] sm:$0xf] }
 0x5c1   :  { %v9179_v57 = vor.u32 %v10350_v12, %v9176_v19  ;;  %5899 = vmatpush.bf16.msrb.mxu1 %v9311_v34  ;;  %v9347_v40 = vor.u32 %v10391_v48, %v9344_v29  ;;  %v9159_v2 = vor.u32 %v10348_v41, %v9158_v53  ;;  %v9163_v49 = vor.u32 %v10346_v17, %v9160_v11  ;;  %v9328_v56 = vld [vmem:[#allocation12 + $0x158] sm:$0xf0]  ;;  %v10383_v6 = vld [vmem:[#allocation12 + $0x12c] sm:$0xf]  ;;  %v9246_v30 = vld [vmem:[#allocation12 + $0xa8] sm:$0xf] }
 0x5c2   :  { %v5152_v0 = vadd.f32 %v11685_v44, %v5151_v62  ;;  %v5380_v45 = vadd.f32 %v5351_v10, %v11663_v52  ;;  %v5164_v47 = vadd.f32 %v5163_v61, %v5096_v55  ;;  %v9279_v10 = vor.u32 %v10377_v5, %v9278_v33  ;;  %v10367_v34 = vld [vmem:[#allocation12 + $0xac] sm:$0xf]  ;;  %v9230_v15 = vld [vmem:[#allocation12 + $0x88] sm:$0xf] }
 0x5c3   :  { %5860 = vmatpush.bf16.msra.mxu2 %v9179_v57  ;;  %5923 = vmatpush.bf16.msrb.mxu3 %v9347_v40  ;;  %v9331_v9 = vor.u32 %v10387_v39, %v9328_v56  ;;  %v10363_v29 = vld [vmem:[#allocation12 + $0x8c] sm:$0xf]  ;;  %v5337_v11 = vperm.slane %v11659_v42, 2  ;;  %v9454_v42 = vld [vmem:[#allocation8 + $0x54] sm:$0xf0] }
 0x5c4   :  { %v5156_v28 = vsel %vm11716_vm14, %v11685_v44, %v5152_v0  ;;  %v9154_v31 = vmul.f32 -1.442695, %v5380_v45  ;;  %10633 = vtanh.f32 %v5164_v47  ;;  %v9175_v44 = vor.u32 %v10352_v43, %v9174_v23  ;;  %v10428_v0 = vld [vmem:[#allocation8 + $0x94] sm:$0xf]  ;;  %v9490_v45 = vld [vmem:[#allocation8 + $0x9c] sm:$0xf0] }
 0x5c5   :  { %v5161_v8 = vsel %vm5158_vm15, %v5160_v14, %v5156_v28  ;;  %5900 = vmatpush.bf16.msrb.mxu1 %v9295_v51  ;;  %v9312_v28 = vld [vmem:[#allocation12 + $0x138] sm:$0xf0]  ;;  %v9493_v24 = vor.u32 %v10428_v0, %v9490_v45  ;;  %v10359_v5 = vld [vmem:[#allocation12 + $0x6c] sm:$0xf] }
 0x5c6   :  { %10635 = vpow2.f32 %v9154_v31  ;;  %v11726_v21 = vpop.f32.mrf.mxu3  ;;  %v5166_v55 = vsub.f32 1.0, %v5161_v8  ;;  %5834 = vmatpush.bf16.msra.mxu0 %v9175_v44  ;;  %v5168_v62 = vmul.f32 %v5161_v8, %v11594_v27  ;;  %v9505_v27 = vor.u32 %v10431_v63, %v9502_v32  ;;  %v10425_v31 = vld [vmem:[#allocation8 + $0x7c] sm:$0xf]  ;;  %v10369_v8 = vld [vmem:[#allocation12 + $0xb4] sm:$0xf0] }
 0x5c7   :  { %v5352_v50 = vpop.f32.mrf.mxu1  ;;  %10637 = vrcp.f32 %v11693_v26  ;;  %5861 = vmatpush.bf16.msra.mxu2 %v9163_v49  ;;  %5924 = vmatpush.bf16.msrb.mxu3 %v9331_v9  ;;  %v9315_v1 = vor.u32 %v10383_v6, %v9312_v28  ;;  %v9247_v23 = vor.u32 %v10369_v8, %v9246_v30  ;;  %v9248_v43 = vld [vmem:[#allocation12 + $0xb8] sm:$0xf0]  ;;  %v9481_v40 = vor.u32 %v10425_v31, %v9478_v46  ;;  %v9466_v32 = vld [vmem:[#allocation8 + $0x6c] sm:$0xf0]  ;;  %v10357_v9 = vld [vmem:[#allocation12 + $0x54] sm:$0xf0] }
 0x5c8   :  { %v10379_v50 = vld [vmem:[#allocation12 + $0x10c] sm:$0xf]  ;;  %v9296_v44 = vld [vmem:[#allocation12 + $0x118] sm:$0xf0]  ;;  %v9251_v57 = vor.u32 %v10367_v34, %v9248_v43  ;;  %v5377_v58 = vadd.f32 %v11726_v21, %v5337_v11  ;;  %v9182_v31 = vld [vmem:[#allocation12 + $0x28] sm:$0xf] }
 0x5c9   :  { %v9299_v37 = vor.u32 %v10379_v50, %v9296_v44  ;;  %v9232_v51 = vld [vmem:[#allocation12 + $0x98] sm:$0xf0]  ;;  %v10355_v45 = vld [vmem:[#allocation12 + $0x4c] sm:$0xf]  ;;  %v10353_v46 = vld [vmem:[#allocation12 + $0x34] sm:$0xf0] }
 0x5ca   :  { %v10634_v36 = vpop.eup %10633  ;;  %5835 = vmatpush.bf16.msra.mxu0 %v9159_v2  ;;  %v10422_v63 = vld [vmem:[#allocation8 + $0x64] sm:$0xf]  ;;  %v9235_v17 = vor.u32 %v10363_v29, %v9232_v51  ;;  %v10361_v2 = vld [vmem:[#allocation12 + $0x74] sm:$0xf0]  ;;  %v5417_v21 = vand.u32 2147483647, %v11693_v26  ;;  %v9183_v50 = vor.u32 %v10353_v46, %v9182_v31 }
 0x5cb   :  { %v5167_v3 = vmul.f32 %v10634_v36, %v5166_v55  ;;  %5906 = vmatpush.bf16.msrb.mxu2 %v9283_v60  ;;  %5925 = vmatpush.bf16.msrb.mxu3 %v9315_v1  ;;  %v10365_v55 = vld [vmem:[#allocation12 + $0x94] sm:$0xf0]  ;;  %v9214_v36 = vld [vmem:[#allocation12 + $0x68] sm:$0xf]  ;;  %v9469_v35 = vor.u32 %v10422_v63, %v9466_v32  ;;  %v9184_v1 = vld [vmem:[#allocation12 + $0x38] sm:$0xf0] }
 0x5cc   :  { %v10636_v7 = vpop.eup %10635  ;;  %v9231_v53 = vor.u32 %v10365_v55, %v9230_v15  ;;  %v9215_v39 = vor.u32 %v10361_v2, %v9214_v36  ;;  %v10413_v43 = vld [vmem:[#allocation8 + $0x1c] sm:$0xf]  ;;  %v9430_v44 = vld [vmem:[#allocation8 + $0x24] sm:$0xf0]  ;;  %vm5418_vm7 = vcmp.eq.f32.partialorder %v5417_v21, 8.507059e+37 }
 0x5cd   :  { %v11730_v59 = vadd.f32 1.0, %v10636_v7  ;;  %v11732_v14 = vpop.eup %10637  ;;  %v11734_v61 = vadd.f32 %v5168_v62, %v5167_v3  ;;  %v9216_v7 = vld [vmem:[#allocation12 + $0x78] sm:$0xf0]  ;;  %v9418_v29 = vld [vmem:[#allocation8 + $0xc] sm:$0xf0] }
 0x5ce   :  { %v5378_v16 = vpop.f32.mrf.mxu3  ;;  %5880 = vmatpush.bf16.msrb.mxu0 %v9279_v10  ;;  %v5409_v47 = vmul.f32 %v11732_v14, %v11693_v26  ;;  %v5424_v10 = vrot.slane %v11663_v52, 2  ;;  %v9219_v56 = vor.u32 %v10359_v5, %v9216_v7  ;;  %v9200_v52 = vld [vmem:[#allocation12 + $0x58] sm:$0xf0]  ;;  %vm5414_vm4 = vweird.f32 %v11732_v14  ;;  %v10432_v36 = vld [vmem:[#allocation8 + $0xb0] sm:$0xf0] }
 0x5cf   :  { %10639 = vrcp.f32 %v11730_v59  ;;  %5170 = vst [vmem:[#allocation14 + $0x5] sm:$0x1] %v11734_v61  ;;  %v11740_v38 = vpack.c.bf16 %v11734_v61, %v11734_v61  ;;  %5907 = vmatpush.bf16.msrb.mxu2 %v9267_v4  ;;  %v5396_v33 = vand.u32 2147483648, %v11730_v59  ;;  %5926 = vmatpush.bf16.msrb.mxu3 %v9299_v37  ;;  %v5394_v49 = vand.u32 2147483647, %v11730_v59  ;;  %vm11762_vm6 = vmor %vm5413_vm5, %vm5414_vm4 }
 0x5d0   :  { %v5410_v19 = vsub.f32 1.0, %v5409_v47  ;;  %vm5390_vm1 = vweird.f32 %v11730_v59  ;;  %v9198_v16 = vld [vmem:[#allocation12 + $0x48] sm:$0xf]  ;;  %v9457_v47 = vor.u32 %v10419_v13, %v9454_v42  ;;  %v9442_v4 = vld [vmem:[#allocation8 + $0x3c] sm:$0xf0]  ;;  %v9203_v28 = vor.u32 %v10355_v45, %v9200_v52 }
 0x5d1   :  { %5849 = vmatmul.bf16.vlgmr.msra.gmra.mxu1 %v11740_v38  ;;  %5875 = vmatmul.bf16.vlgmr.msra.gmra.mxu3 %v11740_v38  ;;  %v5397_v0 = vor.u32 1.1754944e-38, %v5396_v33  ;;  %vm5395_vm3 = vcmp.eq.f32.partialorder %v5394_v49, 8.507059e+37  ;;  %v9199_v22 = vor.u32 %v10357_v9, %v9198_v16  ;;  %v10347_v37 = vld [vmem:[#allocation12 + $0xc] sm:$0xf]  ;;  %v9168_v15 = vld [vmem:[#allocation12 + $0x18] sm:$0xf0] }
 0x5d2   :  { %6161 = vmatpush.bf16.msra.mxu1 %v9505_v27  ;;  %5881 = vmatpush.bf16.msrb.mxu0 %v9263_v25  ;;  %v5411_v3 = vmul.f32 %v11732_v14, %v5410_v19  ;;  %v5419_v27 = vand.u32 2147483648, %v11693_v26  ;;  %v10416_v25 = vld [vmem:[#allocation8 + $0x34] sm:$0xf]  ;;  %v9166_v19 = vld [vmem:[#allocation12 + $0x8] sm:$0xf]  ;;  %v9171_v51 = vor.u32 %v10347_v37, %v9168_v15 }
 0x5d3   :  { %5908 = vmatpush.bf16.msrb.mxu2 %v9251_v57  ;;  %v9445_v26 = vor.u32 %v10416_v25, %v9442_v4  ;;  %v10349_v57 = vld [vmem:[#allocation12 + $0x14] sm:$0xf0]  ;;  %v9508_v2 = vld [vmem:[#allocation8 + $0xb0] sm:$0xf]  ;;  %v10433_v11 = vld [vmem:[#allocation8 + $0xb8] sm:$0xf0] }
 0x5d4   :  { %v5412_v54 = vadd.f32 %v11732_v14, %v5411_v3  ;;  %v5420_v34 = vor.u32 1.1754944e-38, %v5419_v27  ;;  %v9167_v55 = vor.u32 %v10349_v57, %v9166_v19  ;;  %v9509_v3 = vor.u32 %v10433_v11, %v9508_v2  ;;  %v10429_v49 = vld [vmem:[#allocation8 + $0x98] sm:$0xf0]  ;;  %v9484_v42 = vld [vmem:[#allocation8 + $0x80] sm:$0xf] }
 0x5d5   :  { %v10640_v12 = vpop.eup %10639  ;;  %v9464_v27 = vld [vmem:[#allocation8 + $0x60] sm:$0xf]  ;;  %v9472_v45 = vld [vmem:[#allocation8 + $0x68] sm:$0xf]  ;;  %v10424_v52 = vld [vmem:[#allocation8 + $0x70] sm:$0xf0] }
 0x5d6   :  { %v5386_v48 = vmul.f32 %v10640_v12, %v11730_v59  ;;  %6162 = vmatpush.bf16.msra.mxu1 %v9493_v24  ;;  %5882 = vmatpush.bf16.msrb.mxu0 %v9247_v23  ;;  %vm5391_vm0 = vweird.f32 %v10640_v12  ;;  %v10351_v24 = vld [vmem:[#allocation12 + $0x2c] sm:$0xf]  ;;  %v5416_v23 = vsel %vm11762_vm6, %v11732_v14, %v5412_v54  ;;  %v10410_v14 = vld [vmem:[#allocation8 + $0x4] sm:$0xf]  ;;  %v9452_v54 = vld [vmem:[#allocation8 + $0x48] sm:$0xf] }
 0x5d7   :  { %5909 = vmatpush.bf16.msrb.mxu2 %v9235_v17  ;;  %vm5392_vm2 = vmor %vm5390_vm1, %vm5391_vm0  ;;  %v9500_v17 = vld [vmem:[#allocation8 + $0xa8] sm:$0xf]  ;;  %v10421_v25 = vld [vmem:[#allocation8 + $0x58] sm:$0xf0] }
 0x5d8   :  { %v5387_v41 = vsub.f32 1.0, %v5386_v48  ;;  %v9433_v48 = vor.u32 %v10413_v43, %v9430_v44  ;;  %v9501_v5 = vor.u32 %v10432_v36, %v9500_v17  ;;  %v9440_v4 = vld [vmem:[#allocation8 + $0x30] sm:$0xf]  ;;  %v9448_v31 = vld [vmem:[#allocation8 + $0x38] sm:$0xf] }
 0x5d9   :  { %v10418_v46 = vld [vmem:[#allocation8 + $0x40] sm:$0xf0]  ;;  %v9416_v43 = vld [vmem:[#allocation8] sm:$0xf]  ;;  %v9424_v44 = vld [vmem:[#allocation8 + $0x8] sm:$0xf] }
 0x5da   :  { %v5388_v62 = vmul.f32 %v10640_v12, %v5387_v41  ;;  %6163 = vmatpush.bf16.msra.mxu1 %v9481_v40  ;;  %5883 = vmatpush.bf16.msrb.mxu0 %v9231_v53  ;;  %v9421_v41 = vor.u32 %v10410_v14, %v9418_v29  ;;  %v10414_v30 = vld [vmem:[#allocation8 + $0x20] sm:$0xf0]  ;;  %v9756_v2 = vld [vmem:[#allocation12 + $0x1f0] sm:$0xf0] }
 0x5db   :  { %5910 = vmatpush.bf16.msrb.mxu2 %v9219_v56  ;;  %v10427_v56 = vld [vmem:[#allocation8 + $0x88] sm:$0xf0] }
 0x5dc   :  { %v5389_v60 = vadd.f32 %v10640_v12, %v5388_v62  ;;  %v9488_v62 = vld [vmem:[#allocation8 + $0x90] sm:$0xf]  ;;  %v9485_v9 = vor.u32 %v10427_v56, %v9484_v42 }
 0x5de   :  { %v5393_v18 = vsel %vm5392_vm2, %v10640_v12, %v5389_v60  ;;  %6164 = vmatpush.bf16.msra.mxu1 %v9469_v35  ;;  %5884 = vmatpush.bf16.msrb.mxu0 %v9215_v39  ;;  %v9187_v12 = vor.u32 %v10351_v24, %v9184_v1  ;;  %v9489_v35 = vor.u32 %v10429_v49, %v9488_v62  ;;  %v9476_v39 = vld [vmem:[#allocation8 + $0x78] sm:$0xf]  ;;  %v10426_v60 = vld [vmem:[#allocation8 + $0x80] sm:$0xf0]  ;;  %v9738_v49 = vld [vmem:[#allocation12 + $0x1c0] sm:$0xf] }
 0x5df   :  { %v5398_v59 = vsel %vm5395_vm3, %v5397_v0, %v5393_v18  ;;  %5911 = vmatpush.bf16.msrb.mxu2 %v9203_v28  ;;  %v9477_v16 = vor.u32 %v10426_v60, %v9476_v39  ;;  %v10423_v0 = vld [vmem:[#allocation8 + $0x68] sm:$0xf0]  ;;  %v9473_v18 = vor.u32 %v10424_v52, %v9472_v45  ;;  %v10417_v28 = vld [vmem:[#allocation8 + $0x38] sm:$0xf0]  ;;  %v9449_v24 = vor.u32 %v10418_v46, %v9448_v31  ;;  %v9428_v1 = vld [vmem:[#allocation8 + $0x18] sm:$0xf] }
 0x5e0   :  { %v5423_v6 = vmul.f32 %v5398_v59, %v5377_v58  ;;  %v9465_v58 = vor.u32 %v10423_v0, %v9464_v27  ;;  %v10420_v59 = vld [vmem:[#allocation8 + $0x50] sm:$0xf0]  ;;  %v9441_v21 = vor.u32 %v10417_v28, %v9440_v4  ;;  %v9722_v39 = vld [vmem:[#allocation12 + $0x1a0] sm:$0xf]  ;;  %v10488_v60 = vld [vmem:[#allocation12 + $0x1ac] sm:$0xf0] }
 0x5e1   :  { %5901 = vmatmul.bf16.vlgmr.msrb.gmra.mxu1 %v11740_v38  ;;  %5927 = vmatmul.bf16.vlgmr.msrb.gmra.mxu3 %v11740_v38  ;;  %v5421_v38 = vsel %vm5418_vm7, %v5420_v34, %v5416_v23  ;;  %v10415_v34 = vld [vmem:[#allocation8 + $0x28] sm:$0xf0]  ;;  %v9429_v23 = vor.u32 %v10414_v30, %v9428_v1  ;;  %v9723_v0 = vor.u32 %v10488_v60, %v9722_v39  ;;  %v11796_v45 = vld [vmem:[#allocation11] sm:$0x7]  ;;  %v10468_v39 = vld [vmem:[#allocation12 + $0x10c] sm:$0xf0] }
 0x5e2   :  { %v5426_v8 = vadd.f32 %v5424_v10, %v5423_v6  ;;  %6165 = vmatpush.bf16.msra.mxu1 %v9457_v47  ;;  %5885 = vmatpush.bf16.msrb.mxu0 %v9199_v22  ;;  %v5428_v40 = vsub.f32 1.0, %v5421_v38  ;;  %v5430_v53 = vmul.f32 %v5421_v38, %v11636_v20  ;;  %v9496_v20 = vld [vmem:[#allocation8 + $0x98] sm:$0xf]  ;;  %v10430_v10 = vld [vmem:[#allocation8 + $0xa0] sm:$0xf0]  ;;  %v9453_v22 = vor.u32 %v10420_v59, %v9452_v54 }
 0x5e3   :  { %5912 = vmatpush.bf16.msrb.mxu2 %v9187_v12  ;;  %v9497_v13 = vor.u32 %v10430_v10, %v9496_v20  ;;  %v9460_v47 = vld [vmem:[#allocation8 + $0x50] sm:$0xf]  ;;  %v10412_v12 = vld [vmem:[#allocation8 + $0x10] sm:$0xf0]  ;;  %v10492_v20 = vld [vmem:[#allocation12 + $0x1cc] sm:$0xf0] }
 0x5e4   :  { %10641 = vtanh.f32 %v5426_v8  ;;  %v9461_v6 = vor.u32 %v10421_v25, %v9460_v47  ;;  %v9436_v8 = vld [vmem:[#allocation8 + $0x20] sm:$0xf]  ;;  %v9425_v57 = vor.u32 %v10412_v12, %v9424_v44  ;;  %v10490_v10 = vld [vmem:[#allocation12 + $0x1c4] sm:$0xf]  ;;  %v10484_v54 = vld [vmem:[#allocation12 + $0x18c] sm:$0xf0] }
 0x5e5   :  { %v10482_v47 = vld [vmem:[#allocation12 + $0x184] sm:$0xf]  ;;  %v9708_v25 = vld [vmem:[#allocation12 + $0x190] sm:$0xf0]  ;;  %v6143_v4 = vperm.slane %v11796_v45, 1 }
 0x5e6   :  { %6166 = vmatpush.bf16.msra.mxu1 %v9445_v26  ;;  %5886 = vmatpush.bf16.msrb.mxu0 %v9183_v50  ;;  %v9437_v26 = vor.u32 %v10415_v34, %v9436_v8  ;;  %v10411_v50 = vld [vmem:[#allocation8 + $0x8] sm:$0xf0]  ;;  %v9711_v46 = vor.u32 %v10482_v47, %v9708_v25  ;;  %v9690_v34 = vld [vmem:[#allocation12 + $0x160] sm:$0xf]  ;;  %v9692_v44 = vld [vmem:[#allocation12 + $0x170] sm:$0xf0] }
 0x5e7   :  { %5913 = vmatpush.bf16.msrb.mxu2 %v9171_v51  ;;  %v9417_v19 = vor.u32 %v10411_v50, %v9416_v43  ;;  %v11792_v51 = vld [vmem:[%s11902_s6] sm:$0xf]  ;;  %v10478_v50 = vld [vmem:[#allocation12 + $0x164] sm:$0xf]  ;;  %v9674_v12 = vld [vmem:[#allocation12 + $0x140] sm:$0xf] }
 0x5e8   :  { %v10466_v60 = vld [vmem:[#allocation12 + $0x104] sm:$0xf] }
 0x5ea   :  { %v10642_v63 = vpop.eup %10641  ;;  %6167 = vmatpush.bf16.msra.mxu1 %v9433_v48  ;;  %5887 = vmatpush.bf16.msrb.mxu0 %v9167_v55 }
 0x5eb   :  { %v5429_v32 = vmul.f32 %v10642_v63, %v5428_v40  ;;  %v5820_v40 = vperm.slane %v11792_v51, 0 }
 0x5ed   :  { %v11772_v33 = vadd.f32 %v5430_v53, %v5429_v32  ;;  %v9754_v32 = vld [vmem:[#allocation12 + $0x1e0] sm:$0xf]  ;;  %v10496_v53 = vld [vmem:[#allocation12 + $0x1ec] sm:$0xf0] }
 0x5ee   :  { %6168 = vmatpush.bf16.msra.mxu1 %v9421_v41  ;;  %v10494_v41 = vld [vmem:[#allocation12 + $0x1e4] sm:$0xf]  ;;  %v9755_v36 = vor.u32 %v10496_v53, %v9754_v32  ;;  %v9658_v53 = vld [vmem:[#allocation12 + $0x120] sm:$0xf] }
 0x5ef   :  { %v11776_v7 = vpack.c.bf16 %v11772_v33, %v11772_v33 }
 0x5f1   :  { %5836 = vmatmul.bf16.vlgmr.msra.gmra.mxu0 %v11776_v7  ;;  %5862 = vmatmul.bf16.vlgmr.msra.gmra.mxu2 %v11776_v7 }
 0x5f2   :  { %6169 = vmatmul.bf16.vlgmr.msra.gmra.mxu1 %v11776_v7  ;;  %6148 = vmatpush.bf16.msra.mxu0 %v9501_v5 }
 0x5f3   :  { %6174 = vmatpush.bf16.msra.mxu2 %v9509_v3  ;;  %v5821_v3 = vperm.slane %v11792_v51, 1 }
 0x5f6   :  { %6149 = vmatpush.bf16.msra.mxu0 %v9489_v35  ;;  %v9739_v35 = vor.u32 %v10492_v20, %v9738_v49 }
 0x5f7   :  { %6175 = vmatpush.bf16.msra.mxu2 %v9497_v13  ;;  %v9740_v13 = vld [vmem:[#allocation12 + $0x1d0] sm:$0xf0] }
 0x5f8   :  { %v9743_v56 = vor.u32 %v10490_v10, %v9740_v13  ;;  %v9642_v13 = vld [vmem:[#allocation12 + $0x100] sm:$0xf] }
 0x5f9   :  { %v9643_v47 = vor.u32 %v10468_v39, %v9642_v13  ;;  %v10489_v39 = vld [vmem:[#allocation12 + $0x1b4] sm:$0xf0] }
 0x5fa   :  { %6150 = vmatpush.bf16.msra.mxu0 %v9477_v16  ;;  %v10486_v16 = vld [vmem:[#allocation12 + $0x1a4] sm:$0xf] }
 0x5fb   :  { %6176 = vmatpush.bf16.msra.mxu2 %v9485_v9  ;;  %v9724_v9 = vld [vmem:[#allocation12 + $0x1b0] sm:$0xf0] }
 0x5fe   :  { %6151 = vmatpush.bf16.msra.mxu0 %v9465_v58  ;;  %v9727_v58 = vor.u32 %v10486_v16, %v9724_v9  ;;  %v9644_v16 = vld [vmem:[#allocation12 + $0x110] sm:$0xf0]  ;;  %v9762_v9 = vld [vmem:[#allocation12 + $0x1e8] sm:$0xf] }
 0x5ff   :  { %6177 = vmatpush.bf16.msra.mxu2 %v9473_v18  ;;  %v9706_v18 = vld [vmem:[#allocation12 + $0x180] sm:$0xf]  ;;  %v9647_v25 = vor.u32 %v10466_v60, %v9644_v16  ;;  %v10487_v60 = vld [vmem:[#allocation12 + $0x1ac] sm:$0xf] }
 0x600   :  { %v9707_v28 = vor.u32 %v10484_v54, %v9706_v18 }
 0x601   :  { %5888 = vmatmul.bf16.vlgmr.msrb.gmra.mxu0 %v11776_v7  ;;  %5914 = vmatmul.bf16.vlgmr.msrb.gmra.mxu2 %v11776_v7 }
 0x602   :  { %6152 = vmatpush.bf16.msra.mxu0 %v9453_v22 }
 0x603   :  { %6178 = vmatpush.bf16.msra.mxu2 %v9461_v6 }
 0x606   :  { %6153 = vmatpush.bf16.msra.mxu0 %v9441_v21 }
 0x607   :  { %6179 = vmatpush.bf16.msra.mxu2 %v9449_v24  ;;  %v11799_v24 = vld [vmem:[#allocation2 + $0x7] ss:$8 sm:$0x7] }
 0x60a   :  { %6154 = vmatpush.bf16.msra.mxu0 %v9429_v23  ;;  %v10480_v23 = vld [vmem:[#allocation12 + $0x16c] sm:$0xf0] }
 0x60b   :  { %6180 = vmatpush.bf16.msra.mxu2 %v9437_v26  ;;  %v6208_v26 = vrot.slane %v11799_v24, 1 }
 0x60e   :  { %6155 = vmatpush.bf16.msra.mxu0 %v9417_v19 }
 0x60f   :  { %6181 = vmatpush.bf16.msra.mxu2 %v9425_v57  ;;  %v9691_v57 = vor.u32 %v10480_v23, %v9690_v34  ;;  %v9626_v34 = vld [vmem:[#allocation12 + $0xe0] sm:$0xf]  ;;  %v10464_v23 = vld [vmem:[#allocation12 + $0xec] sm:$0xf0] }
 0x611   :  { %6156 = vmatmul.bf16.vlgmr.msra.gmra.mxu0 %v11776_v7 }
 0x612   :  { %6182 = vmatmul.bf16.vlgmr.msra.gmra.mxu2 %v11776_v7  ;;  %v9759_v7 = vor.u32 %v10494_v41, %v9756_v2  ;;  %6648 = vmatpush.bf16.msrb.mxu0 %v9755_v36  ;;  %v10472_v41 = vld [vmem:[#allocation12 + $0x12c] sm:$0xf0]  ;;  %v9660_v36 = vld [vmem:[#allocation12 + $0x130] sm:$0xf0] }
 0x613   :  { %v9659_v10 = vor.u32 %v10472_v41, %v9658_v53 }
 0x614   :  { %6674 = vmatpush.bf16.msrb.mxu2 %v9759_v7  ;;  %v5822_v7 = vperm.slane %v11792_v51, 2 }
 0x616   :  { %6649 = vmatpush.bf16.msrb.mxu0 %v9739_v35 }
 0x618   :  { %6675 = vmatpush.bf16.msrb.mxu2 %v9743_v56 }
 0x61a   :  { %6650 = vmatpush.bf16.msrb.mxu0 %v9723_v0  ;;  %v10495_v0 = vld [vmem:[#allocation12 + $0x1ec] sm:$0xf] }
 0x61c   :  { %6676 = vmatpush.bf16.msrb.mxu2 %v9727_v58 }
 0x61e   :  { %6651 = vmatpush.bf16.msrb.mxu0 %v9707_v28 }
 0x620   :  { %6677 = vmatpush.bf16.msrb.mxu2 %v9711_v46 }
 0x622   :  { %6652 = vmatpush.bf16.msrb.mxu0 %v9691_v57  ;;  %v9746_v57 = vld [vmem:[#allocation12 + $0x1c8] sm:$0xf] }
 0x64e   :  { %v5850_v37 = vpop.f32.mrf.mxu1 }
 0x654   :  { %v5876_v15 = vpop.f32.mrf.mxu3 }
 0x656   :  { %v5852_v38 = vpop.f32.mrf.mxu1 }
 0x657   :  { %v10474_v38 = vld [vmem:[#allocation12 + $0x144] sm:$0xf] }
 0x65c   :  { %v5878_v48 = vpop.f32.mrf.mxu3 }
 0x65e   :  { %v11785_v55 = vpop.f32.mrf.mxu1 }
 0x664   :  { %v11787_v14 = vpop.f32.mrf.mxu3 }
 0x666   :  { %v5904_v29 = vpop.f32.mrf.mxu1 }
 0x667   :  { %v9676_v29 = vld [vmem:[#allocation12 + $0x150] sm:$0xf0] }
 0x668   :  { %v9679_v32 = vor.u32 %v10474_v38, %v9676_v29  ;;  %v10493_v38 = vld [vmem:[#allocation12 + $0x1d4] sm:$0xf0]  ;;  %v9748_v29 = vld [vmem:[#allocation12 + $0x1d8] sm:$0xf0] }
 0x66c   :  { %v5930_v63 = vpop.f32.mrf.mxu3 }
 0x66e   :  { %v5837_v17 = vpop.f32.mrf.mxu0 }
 0x66f   :  { %v5838_v11 = vadd.f32 %v5837_v17, %v5820_v40  ;;  %v6170_v5 = vpop.f32.mrf.mxu1  ;;  %v10470_v17 = vld [vmem:[#allocation12 + $0x124] sm:$0xf] }
 0x670   :  { %v6171_v30 = vadd.f32 %v6170_v5, %v6143_v4  ;;  %v9663_v35 = vor.u32 %v10470_v17, %v9660_v36  ;;  %v10477_v17 = vld [vmem:[#allocation12 + $0x154] sm:$0xf0] }
 0x671   :  { %v5851_v62 = vadd.f32 %v5850_v37, %v5838_v11  ;;  %v9695_v37 = vor.u32 %v10478_v50, %v9692_v44  ;;  %v9627_v44 = vor.u32 %v10464_v23, %v9626_v34 }
 0x672   :  { %v6210_v19 = vadd.f32 %v6208_v26, %v6171_v30 }
 0x673   :  { %v9412_v42 = vmul.f32 -1.442695, %v5851_v62  ;;  %6678 = vmatpush.bf16.msrb.mxu2 %v9695_v37  ;;  %6635 = vmatpush.bf16.msra.mxu3 %v9627_v44  ;;  %v10481_v44 = vld [vmem:[#allocation12 + $0x174] sm:$0xf0] }
 0x674   :  { %v5863_v27 = vpop.f32.mrf.mxu2  ;;  %v9511_v11 = vmul.f32 -1.442695, %v6210_v19  ;;  %v9628_v19 = vld [vmem:[#allocation12 + $0xf0] sm:$0xf0] }
 0x675   :  { %10643 = vpow2.f32 %v9412_v42  ;;  %v5864_v52 = vadd.f32 %v5863_v27, %v5821_v3  ;;  %v5823_v3 = vperm.slane %v11792_v51, 3  ;;  %v10497_v27 = vld [vmem:[#allocation12 + $0x1f4] sm:$0xf0]  ;;  %v9764_v51 = vld [vmem:[#allocation12 + $0x1f8] sm:$0xf0] }
 0x676   :  { %v5839_v59 = vpop.f32.mrf.mxu0  ;;  %v9763_v4 = vor.u32 %v10497_v27, %v9762_v9  ;;  %v9767_v28 = vor.u32 %v10495_v0, %v9764_v51  ;;  %v9594_v51 = vld [vmem:[#allocation12 + $0xa0] sm:$0xf] }
 0x677   :  { %v5877_v22 = vadd.f32 %v5876_v15, %v5864_v52  ;;  %v6172_v6 = vpop.f32.mrf.mxu1  ;;  %v10476_v15 = vld [vmem:[#allocation12 + $0x14c] sm:$0xf0]  ;;  %6679 = vmatpush.bf16.msrb.mxu2 %v9679_v32  ;;  %v6142_v59 = vperm.slane %v11796_v45, 0  ;;  %v9747_v32 = vor.u32 %v10493_v38, %v9746_v57 }
 0x678   :  { %v9675_v63 = vor.u32 %v10476_v15, %v9674_v12  ;;  %v10462_v12 = vld [vmem:[#allocation12 + $0xe4] sm:$0xf] }
 0x679   :  { %v9413_v31 = vmul.f32 -1.442695, %v5877_v22 }
 0x67a   :  { %6653 = vmatpush.bf16.msrb.mxu0 %v9675_v63  ;;  %v9631_v63 = vor.u32 %v10462_v12, %v9628_v19 }
 0x67b   :  { %v10644_v21 = vpop.eup %10643  ;;  %10645 = vpow2.f32 %v9413_v31  ;;  %6680 = vmatpush.bf16.msrb.mxu2 %v9663_v35 }
 0x67c   :  { %v11801_v1 = vadd.f32 1.0, %v10644_v21  ;;  %v5865_v8 = vpop.f32.mrf.mxu2  ;;  %6661 = vmatpush.bf16.msrb.mxu1 %v9631_v63 }
 0x67e   :  { %10647 = vrcp.f32 %v11801_v1  ;;  %v5889_v43 = vpop.f32.mrf.mxu0  ;;  %v5945_v49 = vand.u32 2147483647, %v11801_v1  ;;  %v5947_v56 = vand.u32 2147483648, %v11801_v1  ;;  %vm5941_vm8 = vweird.f32 %v11801_v1  ;;  %6654 = vmatpush.bf16.msrb.mxu0 %v9659_v10 }
 0x67f   :  { %v5890_v54 = vadd.f32 %v5889_v43, %v5822_v7  ;;  %6681 = vmatpush.bf16.msrb.mxu2 %v9647_v25  ;;  %v10460_v7 = vld [vmem:[#allocation12 + $0xcc] sm:$0xf0] }
 0x680   :  { %vm5946_vm11 = vcmp.eq.f32.partialorder %v5945_v49, 8.507059e+37  ;;  %v5948_v31 = vor.u32 1.1754944e-38, %v5947_v56  ;;  %v9612_v49 = vld [vmem:[#allocation12 + $0xd0] sm:$0xf0]  ;;  %v9732_v56 = vld [vmem:[#allocation12 + $0x1b8] sm:$0xf0] }
 0x681   :  { %v10646_v48 = vpop.eup %10645  ;;  %v5903_v26 = vadd.f32 %v11785_v55, %v5890_v54  ;;  %v9735_v0 = vor.u32 %v10487_v60, %v9732_v56  ;;  %v10454_v54 = vld [vmem:[#allocation12 + $0xa4] sm:$0xf]  ;;  %v10471_v56 = vld [vmem:[#allocation12 + $0x12c] sm:$0xf] }
 0x682   :  { %v11805_v40 = vadd.f32 1.0, %v10646_v48  ;;  %6655 = vmatpush.bf16.msrb.mxu0 %v9643_v47  ;;  %v10491_v48 = vld [vmem:[#allocation12 + $0x1cc] sm:$0xf]  ;;  %v9714_v47 = vld [vmem:[#allocation12 + $0x188] sm:$0xf] }
 0x683   :  { %6726 = vmatpush.bf16.msra.mxu2 %v9767_v28  ;;  %v9751_v53 = vor.u32 %v10491_v48, %v9748_v29 }
 0x684   :  { %v10648_v2 = vpop.eup %10647  ;;  %10649 = vrcp.f32 %v11805_v40  ;;  %v5915_v5 = vpop.f32.mrf.mxu2  ;;  %vm5960_vm13 = vweird.f32 %v11805_v40  ;;  %v5964_v55 = vand.u32 2147483647, %v11805_v40 }
 0x685   :  { %v5937_v62 = vmul.f32 %v10648_v2, %v11801_v1  ;;  %v5916_v52 = vadd.f32 %v5915_v5, %v5823_v3  ;;  %vm5942_vm9 = vweird.f32 %v10648_v2  ;;  %10651 = vpow2.f32 %v9511_v11  ;;  %v9610_v5 = vld [vmem:[#allocation12 + $0xc0] sm:$0xf] }
 0x686   :  { %v5891_v20 = vpop.f32.mrf.mxu0  ;;  %vm5943_vm10 = vmor %vm5941_vm8, %vm5942_vm9  ;;  %v5966_v1 = vand.u32 2147483648, %v11805_v40  ;;  %6700 = vmatpush.bf16.msra.mxu0 %v9763_v4  ;;  %vm5965_vm15 = vcmp.eq.f32.partialorder %v5964_v55, 8.507059e+37  ;;  %v9716_v4 = vld [vmem:[#allocation12 + $0x198] sm:$0xf0]  ;;  %v10446_v55 = vld [vmem:[#allocation12 + $0x64] sm:$0xf] }
 0x687   :  { %v5938_v42 = vsub.f32 1.0, %v5937_v62  ;;  %v5929_v30 = vadd.f32 %v11787_v14, %v5916_v52  ;;  %v10458_v62 = vld [vmem:[#allocation12 + $0xc4] sm:$0xf]  ;;  %v9730_v20 = vld [vmem:[#allocation12 + $0x1a8] sm:$0xf]  ;;  %6727 = vmatpush.bf16.msra.mxu2 %v9751_v53 }
 0x688   :  { %v5967_v36 = vor.u32 1.1754944e-38, %v5966_v1  ;;  %v9615_v13 = vor.u32 %v10458_v62, %v9612_v49  ;;  %v10456_v52 = vld [vmem:[#allocation12 + $0xac] sm:$0xf0]  ;;  %v9578_v1 = vld [vmem:[#allocation12 + $0x80] sm:$0xf] }
 0x689   :  { %v5939_v58 = vmul.f32 %v10648_v2, %v5938_v42  ;;  %v9731_v42 = vor.u32 %v10489_v39, %v9730_v20  ;;  %v9564_v53 = vld [vmem:[#allocation12 + $0x70] sm:$0xf0]  ;;  %v10444_v49 = vld [vmem:[#allocation12 + $0x4c] sm:$0xf0]  ;;  %v10442_v20 = vld [vmem:[#allocation12 + $0x44] sm:$0xf] }
 0x68a   :  { %v11814_v18 = vpop.eup %10649  ;;  %6701 = vmatpush.bf16.msra.mxu0 %v9747_v32  ;;  %6662 = vmatpush.bf16.msrb.mxu1 %v9615_v13  ;;  %v9666_v13 = vld [vmem:[#allocation12 + $0x128] sm:$0xf]  ;;  %v10473_v39 = vld [vmem:[#allocation12 + $0x134] sm:$0xf0] }
 0x68b   :  { %v5956_v22 = vmul.f32 %v11814_v18, %v11805_v40  ;;  %v5940_v6 = vadd.f32 %v10648_v2, %v5939_v58  ;;  %vm5961_vm12 = vweird.f32 %v11814_v18  ;;  %v10652_v3 = vpop.eup %10651  ;;  %v9611_v40 = vor.u32 %v10460_v7, %v9610_v5  ;;  %6728 = vmatpush.bf16.msra.mxu2 %v9735_v0  ;;  %v10475_v7 = vld [vmem:[#allocation12 + $0x14c] sm:$0xf]  ;;  %v9530_v0 = vld [vmem:[#allocation12 + $0x20] sm:$0xf] }
 0x68c   :  { %v5917_v46 = vpop.f32.mrf.mxu2  ;;  %vm11829_vm14 = vmor %vm5960_vm13, %vm5961_vm12  ;;  %v11837_v16 = vadd.f32 1.0, %v10652_v3  ;;  %v9684_v3 = vld [vmem:[#allocation12 + $0x158] sm:$0xf0] }
 0x68d   :  { %v5957_v21 = vsub.f32 1.0, %v5956_v22  ;;  %v5944_v8 = vsel %vm5943_vm10, %v10648_v2, %v5940_v6  ;;  %6636 = vmatpush.bf16.msra.mxu3 %v9611_v40  ;;  %v10485_v22 = vld [vmem:[#allocation12 + $0x194] sm:$0xf0]  ;;  %v10483_v6 = vld [vmem:[#allocation12 + $0x18c] sm:$0xf]  ;;  %v9687_v62 = vor.u32 %v10475_v7, %v9684_v3 }
 0x68e   :  { %v5949_v43 = vsel %vm5946_vm11, %v5948_v31, %v5944_v8  ;;  %v6157_v50 = vpop.f32.mrf.mxu0  ;;  %6702 = vmatpush.bf16.msra.mxu0 %v9731_v42  ;;  %v9715_v31 = vor.u32 %v10485_v22, %v9714_v47  ;;  %v9719_v46 = vor.u32 %v10483_v6, %v9716_v4  ;;  %v10450_v8 = vld [vmem:[#allocation12 + $0x84] sm:$0xf]  ;;  %v9546_v40 = vld [vmem:[#allocation12 + $0x40] sm:$0xf]  ;;  %v10469_v22 = vld [vmem:[#allocation12 + $0x114] sm:$0xf0]  ;;  %vm6220_vm5 = vweird.f32 %v11837_v16 }
 0x68f   :  { %v5958_v37 = vmul.f32 %v11814_v18, %v5957_v21  ;;  %v5970_v14 = vmul.f32 %v5949_v43, %v5929_v30  ;;  %v6158_v15 = vadd.f32 %v6157_v50, %v6142_v59  ;;  %v9596_v59 = vld [vmem:[#allocation12 + $0xb0] sm:$0xf0]  ;;  %v10452_v30 = vld [vmem:[#allocation12 + $0x8c] sm:$0xf0]  ;;  %v9698_v50 = vld [vmem:[#allocation12 + $0x168] sm:$0xf] }
 0x690   :  { %v9599_v25 = vor.u32 %v10454_v54, %v9596_v59  ;;  %v9580_v43 = vld [vmem:[#allocation12 + $0x90] sm:$0xf0]  ;;  %6729 = vmatpush.bf16.msra.mxu2 %v9719_v46  ;;  %v9699_v57 = vor.u32 %v10481_v44, %v9698_v50  ;;  %v10467_v6 = vld [vmem:[#allocation12 + $0x10c] sm:$0xf]  ;;  %v10436_v46 = vld [vmem:[#allocation12 + $0xc] sm:$0xf0] }
 0x691   :  { %v5959_v41 = vadd.f32 %v11814_v18, %v5958_v37  ;;  %v5971_v2 = vadd.f32 %v5970_v14, %v5903_v26  ;;  %v6187_v11 = vadd.f32 %v6158_v15, %v11799_v24  ;;  %v9579_v26 = vor.u32 %v10452_v30, %v9578_v1  ;;  %v10479_v37 = vld [vmem:[#allocation12 + $0x16c] sm:$0xf]  ;;  %v9700_v14 = vld [vmem:[#allocation12 + $0x178] sm:$0xf0]  ;;  %v9562_v15 = vld [vmem:[#allocation12 + $0x60] sm:$0xf] }
 0x692   :  { %6663 = vmatpush.bf16.msrb.mxu1 %v9599_v25  ;;  %6703 = vmatpush.bf16.msra.mxu0 %v9715_v31  ;;  %v9583_v19 = vor.u32 %v10450_v8, %v9580_v43  ;;  %v9703_v29 = vor.u32 %v10479_v37, %v9700_v14  ;;  %v9532_v54 = vld [vmem:[#allocation12 + $0x30] sm:$0xf0]  ;;  %v9650_v25 = vld [vmem:[#allocation12 + $0x108] sm:$0xf]  ;;  %v9514_v31 = vld [vmem:[#allocation12] sm:$0xf] }
 0x693   :  { %v5963_v10 = vsel %vm11829_vm14, %v11814_v18, %v5959_v41  ;;  %10653 = vtanh.f32 %v5971_v2  ;;  %v9510_v35 = vmul.f32 -1.442695, %v6187_v11  ;;  %v9595_v18 = vor.u32 %v10456_v52, %v9594_v51  ;;  %v9682_v41 = vld [vmem:[#allocation12 + $0x148] sm:$0xf]  ;;  %v10434_v30 = vld [vmem:[#allocation12 + $0x4] sm:$0xf] }
 0x694   :  { %v5968_v9 = vsel %vm5965_vm15, %v5967_v36, %v5963_v10  ;;  %6730 = vmatpush.bf16.msra.mxu2 %v9703_v29  ;;  %v9567_v11 = vor.u32 %v10446_v55, %v9564_v53  ;;  %v9683_v5 = vor.u32 %v10477_v17, %v9682_v41  ;;  %v9547_v10 = vor.u32 %v10444_v49, %v9546_v40  ;;  %v9516_v8 = vld [vmem:[#allocation12 + $0x10] sm:$0xf0]  ;;  %v9634_v43 = vld [vmem:[#allocation12 + $0xe8] sm:$0xf]  ;;  %v10465_v50 = vld [vmem:[#allocation12 + $0xf4] sm:$0xf0] }
 0x695   :  { %10655 = vpow2.f32 %v9510_v35  ;;  %v11839_v27 = vpop.f32.mrf.mxu2  ;;  %v5973_v28 = vsub.f32 1.0, %v5968_v9  ;;  %6637 = vmatpush.bf16.msra.mxu3 %v9595_v18  ;;  %v5975_v23 = vmul.f32 %v5968_v9, %v11734_v61  ;;  %v10448_v61 = vld [vmem:[#allocation12 + $0x6c] sm:$0xf0]  ;;  %v9548_v35 = vld [vmem:[#allocation12 + $0x50] sm:$0xf0]  ;;  %v9667_v51 = vor.u32 %v10473_v39, %v9666_v13 }
 0x696   :  { %v6159_v58 = vpop.f32.mrf.mxu0  ;;  %10657 = vrcp.f32 %v11837_v16  ;;  %v9563_v32 = vor.u32 %v10448_v61, %v9562_v15  ;;  %6664 = vmatpush.bf16.msrb.mxu1 %v9583_v19  ;;  %6704 = vmatpush.bf16.msra.mxu0 %v9699_v57  ;;  %v9551_v42 = vor.u32 %v10442_v20, %v9548_v35  ;;  %v9668_v9 = vld [vmem:[#allocation12 + $0x138] sm:$0xf0]  ;;  %v10438_v18 = vld [vmem:[#allocation12 + $0x24] sm:$0xf]  ;;  %v6144_v44 = vperm.slane %v11796_v45, 2 }
 0x697   :  { %v9671_v52 = vor.u32 %v10471_v56, %v9668_v9  ;;  %v10440_v58 = vld [vmem:[#allocation12 + $0x2c] sm:$0xf0]  ;;  %v9535_v1 = vor.u32 %v10438_v18, %v9532_v54  ;;  %v9515_v19 = vor.u32 %v10436_v46, %v9514_v31  ;;  %v10463_v57 = vld [vmem:[#allocation12 + $0xec] sm:$0xf]  ;;  %v9636_v37 = vld [vmem:[#allocation12 + $0xf8] sm:$0xf0]  ;;  %v9635_v29 = vor.u32 %v10465_v50, %v9634_v43 }
 0x698   :  { %6731 = vmatpush.bf16.msra.mxu2 %v9687_v62  ;;  %v9531_v47 = vor.u32 %v10440_v58, %v9530_v0  ;;  %v9519_v55 = vor.u32 %v10434_v30, %v9516_v8  ;;  %v9639_v45 = vor.u32 %v10463_v57, %v9636_v37  ;;  %v10461_v53 = vld [vmem:[#allocation12 + $0xd4] sm:$0xf0]  ;;  %v10459_v17 = vld [vmem:[#allocation12 + $0xcc] sm:$0xf]  ;;  %v6226_v62 = vand.u32 2147483648, %v11837_v16 }
 0x699   :  { %v10654_v21 = vpop.eup %10653  ;;  %6638 = vmatpush.bf16.msra.mxu3 %v9579_v26  ;;  %v6231_v20 = vrot.slane %v11799_v24, 2  ;;  %v9602_v35 = vld [vmem:[#allocation12 + $0xa8] sm:$0xf]  ;;  %v10457_v13 = vld [vmem:[#allocation12 + $0xb4] sm:$0xf0] }
 0x69a   :  { %v5974_v34 = vmul.f32 %v10654_v21, %v5973_v28  ;;  %6665 = vmatpush.bf16.msrb.mxu1 %v9567_v11  ;;  %6705 = vmatpush.bf16.msra.mxu0 %v9683_v5  ;;  %v9652_v28 = vld [vmem:[#allocation12 + $0x118] sm:$0xf0]  ;;  %v6184_v5 = vadd.f32 %v11839_v27, %v6144_v44  ;;  %v6224_v27 = vand.u32 2147483647, %v11837_v16  ;;  %v10455_v39 = vld [vmem:[#allocation12 + $0xac] sm:$0xf]  ;;  %v9603_v9 = vor.u32 %v10457_v13, %v9602_v35 }
 0x69b   :  { %v10656_v12 = vpop.eup %10655  ;;  %v9655_v26 = vor.u32 %v10467_v6, %v9652_v28  ;;  %v9620_v11 = vld [vmem:[#allocation12 + $0xd8] sm:$0xf0]  ;;  %v10451_v58 = vld [vmem:[#allocation12 + $0x8c] sm:$0xf]  ;;  %v10445_v30 = vld [vmem:[#allocation12 + $0x54] sm:$0xf0] }
 0x69c   :  { %v11843_v38 = vadd.f32 %v5975_v23, %v5974_v34  ;;  %v11845_v48 = vadd.f32 1.0, %v10656_v12  ;;  %v11849_v36 = vpop.eup %10657  ;;  %6732 = vmatpush.bf16.msra.mxu2 %v9671_v52  ;;  %v9651_v23 = vor.u32 %v10469_v22, %v9650_v25  ;;  %v10453_v52 = vld [vmem:[#allocation12 + $0x94] sm:$0xf0]  ;;  %vm6225_vm7 = vcmp.eq.f32.partialorder %v6224_v27, 8.507059e+37  ;;  %v9588_v18 = vld [vmem:[#allocation12 + $0x98] sm:$0xf0] }
 0x69d   :  { %v6185_v63 = vpop.f32.mrf.mxu2  ;;  %6639 = vmatpush.bf16.msra.mxu3 %v9563_v32  ;;  %v6216_v60 = vmul.f32 %v11849_v36, %v11837_v16  ;;  %v9618_v32 = vld [vmem:[#allocation12 + $0xc8] sm:$0xf]  ;;  %vm6221_vm4 = vweird.f32 %v11849_v36  ;;  %v6227_v16 = vor.u32 1.1754944e-38, %v6226_v62  ;;  %v10449_v25 = vld [vmem:[#allocation12 + $0x74] sm:$0xf0] }
 0x69e   :  { %5977 = vst [vmem:[#allocation14 + $0x6] sm:$0x1] %v11843_v38  ;;  %10659 = vrcp.f32 %v11845_v48  ;;  %v11853_v2 = vpack.c.bf16 %v11843_v38, %v11843_v38  ;;  %6666 = vmatpush.bf16.msrb.mxu1 %v9551_v42  ;;  %6706 = vmatpush.bf16.msra.mxu0 %v9667_v51  ;;  %v6203_v12 = vand.u32 2147483648, %v11845_v48  ;;  %v6201_v15 = vand.u32 2147483647, %v11845_v48  ;;  %vm11874_vm6 = vmor %vm6220_vm5, %vm6221_vm4 }
 0x69f   :  { %v6217_v21 = vsub.f32 1.0, %v6216_v60  ;;  %vm6197_vm1 = vweird.f32 %v11845_v48  ;;  %v9619_v40 = vor.u32 %v10461_v53, %v9618_v32  ;;  %v9604_v60 = vld [vmem:[#allocation12 + $0xb8] sm:$0xf0]  ;;  %v9586_v51 = vld [vmem:[#allocation12 + $0x88] sm:$0xf] }
 0x6a0   :  { %6656 = vmatmul.bf16.vlgmr.msrb.gmra.mxu0 %v11853_v2  ;;  %6682 = vmatmul.bf16.vlgmr.msrb.gmra.mxu2 %v11853_v2  ;;  %v6204_v41 = vor.u32 1.1754944e-38, %v6203_v12  ;;  %vm6202_vm3 = vcmp.eq.f32.partialorder %v6201_v15, 8.507059e+37  ;;  %v9607_v0 = vor.u32 %v10455_v39, %v9604_v60  ;;  %v9572_v6 = vld [vmem:[#allocation12 + $0x78] sm:$0xf0]  ;;  %v9538_v44 = vld [vmem:[#allocation12 + $0x28] sm:$0xf] }
 0x6a1   :  { %6640 = vmatpush.bf16.msra.mxu3 %v9547_v10  ;;  %v6218_v61 = vmul.f32 %v11849_v36, %v6217_v21  ;;  %6733 = vmatpush.bf16.msra.mxu2 %v9655_v26  ;;  %v9623_v10 = vor.u32 %v10459_v17, %v9620_v11  ;;  %v10441_v12 = vld [vmem:[#allocation12 + $0x34] sm:$0xf0] }
 0x6a2   :  { %6667 = vmatpush.bf16.msrb.mxu1 %v9535_v1  ;;  %6707 = vmatpush.bf16.msra.mxu0 %v9651_v23  ;;  %v9554_v1 = vld [vmem:[#allocation12 + $0x48] sm:$0xf]  ;;  %v9556_v23 = vld [vmem:[#allocation12 + $0x58] sm:$0xf0]  ;;  %v9539_v57 = vor.u32 %v10441_v12, %v9538_v44  ;;  %v10437_v15 = vld [vmem:[#allocation12 + $0x14] sm:$0xf0] }
 0x6a3   :  { %v9555_v43 = vor.u32 %v10445_v30, %v9554_v1 }
 0x6a4   :  { %v10660_v59 = vpop.eup %10659 }
 0x6a5   :  { %v6193_v4 = vmul.f32 %v10660_v59, %v11845_v48  ;;  %6641 = vmatpush.bf16.msra.mxu3 %v9531_v47  ;;  %vm6198_vm0 = vweird.f32 %v10660_v59  ;;  %v6219_v48 = vadd.f32 %v11849_v36, %v6218_v61  ;;  %v9570_v47 = vld [vmem:[#allocation12 + $0x68] sm:$0xf]  ;;  %v9524_v61 = vld [vmem:[#allocation12 + $0x18] sm:$0xf0] }
 0x6a6   :  { %vm6199_vm2 = vmor %vm6197_vm1, %vm6198_vm0  ;;  %6668 = vmatpush.bf16.msrb.mxu1 %v9519_v55  ;;  %v9571_v46 = vor.u32 %v10449_v25, %v9570_v47 }
 0x6a7   :  { %v6194_v34 = vsub.f32 1.0, %v6193_v4  ;;  %v6223_v24 = vsel %vm11874_vm6, %v11849_v36, %v6219_v48  ;;  %v10447_v36 = vld [vmem:[#allocation12 + $0x6c] sm:$0xf] }
 0x6a8   :  { %v6228_v54 = vsel %vm6225_vm7, %v6227_v16, %v6223_v24  ;;  %v9575_v21 = vor.u32 %v10447_v36, %v9572_v6 }
 0x6a9   :  { %v6195_v14 = vmul.f32 %v10660_v59, %v6194_v34  ;;  %6642 = vmatpush.bf16.msra.mxu3 %v9515_v19  ;;  %v6235_v22 = vsub.f32 1.0, %v6228_v54  ;;  %v6237_v31 = vmul.f32 %v6228_v54, %v11772_v33  ;;  %v10443_v34 = vld [vmem:[#allocation12 + $0x4c] sm:$0xf]  ;;  %v9540_v33 = vld [vmem:[#allocation12 + $0x38] sm:$0xf0] }
 0x6aa   :  { %6713 = vmatpush.bf16.msra.mxu1 %v9639_v45  ;;  %v9559_v50 = vor.u32 %v10443_v34, %v9556_v23  ;;  %v10439_v19 = vld [vmem:[#allocation12 + $0x2c] sm:$0xf] }
 0x6ab   :  { %v6196_v63 = vadd.f32 %v10660_v59, %v6195_v14  ;;  %v9543_v37 = vor.u32 %v10439_v19, %v9540_v33  ;;  %v9522_v14 = vld [vmem:[#allocation12 + $0x8] sm:$0xf] }
 0x6ac   :  { %v9523_v55 = vor.u32 %v10437_v15, %v9522_v14 }
 0x6ad   :  { %v6200_v7 = vsel %vm6199_vm2, %v10660_v59, %v6196_v63  ;;  %6687 = vmatpush.bf16.msrb.mxu3 %v9635_v29  ;;  %v9587_v59 = vor.u32 %v10453_v52, %v9586_v51  ;;  %v10435_v29 = vld [vmem:[#allocation12 + $0xc] sm:$0xf] }
 0x6ae   :  { %v6205_v3 = vsel %vm6202_vm3, %v6204_v41, %v6200_v7  ;;  %6714 = vmatpush.bf16.msra.mxu1 %v9623_v10  ;;  %v9527_v63 = vor.u32 %v10435_v29, %v9524_v61  ;;  %v6305_v7 = vld [vmem:[%s11902_s6] sm:$0xf] }
 0x6af   :  { %v6230_v49 = vmul.f32 %v6205_v3, %v6184_v5  ;;  %v6628_v3 = vperm.slane %v6305_v7, 1  ;;  %v6629_v36 = vperm.slane %v6305_v7, 2 }
 0x6b0   :  { %6708 = vmatmul.bf16.vlgmr.msra.gmra.mxu0 %v11853_v2  ;;  %6734 = vmatmul.bf16.vlgmr.msra.gmra.mxu2 %v11853_v2  ;;  %v9591_v2 = vor.u32 %v10451_v58, %v9588_v18 }
 0x6b1   :  { %v6233_v56 = vadd.f32 %v6231_v20, %v6230_v49  ;;  %6688 = vmatpush.bf16.msrb.mxu3 %v9619_v40  ;;  %v6627_v20 = vperm.slane %v6305_v7, 0 }
 0x6b2   :  { %6715 = vmatpush.bf16.msra.mxu1 %v9607_v0 }
 0x6b3   :  { %10661 = vtanh.f32 %v6233_v56 }
 0x6b5   :  { %6689 = vmatpush.bf16.msrb.mxu3 %v9603_v9 }
 0x6b6   :  { %6716 = vmatpush.bf16.msra.mxu1 %v9591_v2 }
 0x6b9   :  { %v10662_v4 = vpop.eup %10661  ;;  %6690 = vmatpush.bf16.msrb.mxu3 %v9587_v59  ;;  %v6630_v59 = vperm.slane %v6305_v7, 3 }
 0x6ba   :  { %v6236_v28 = vmul.f32 %v10662_v4, %v6235_v22  ;;  %6717 = vmatpush.bf16.msra.mxu1 %v9575_v21 }
 0x6bc   :  { %v6238_v8 = vadd.f32 %v6237_v31, %v6236_v28 }
 0x6bd   :  { %6691 = vmatpush.bf16.msrb.mxu3 %v9571_v46 }
 0x6be   :  { %v6239_v26 = vpack.c.bf16 %v6238_v8, %v6238_v8  ;;  %6785 = vst [vmem:[#allocation15] sm:$0x1] %v6238_v8  ;;  %6718 = vmatpush.bf16.msra.mxu1 %v9559_v50 }
 0x6c0   :  { %6643 = vmatmul.bf16.vlgmr.msra.gmra.mxu3 %v6239_v26  ;;  %6669 = vmatmul.bf16.vlgmr.msrb.gmra.mxu1 %v6239_v26 }
 0x6c1   :  { %6692 = vmatpush.bf16.msrb.mxu3 %v9555_v43 }
 0x6c2   :  { %6719 = vmatpush.bf16.msra.mxu1 %v9543_v37 }
 0x6c5   :  { %6693 = vmatpush.bf16.msrb.mxu3 %v9539_v57 }
 0x6c6   :  { %6720 = vmatpush.bf16.msra.mxu1 %v9527_v63 }
 0x6c9   :  { %6694 = vmatpush.bf16.msrb.mxu3 %v9523_v55 }
 0x6d0   :  { %6695 = vmatmul.bf16.vlgmr.msrb.gmra.mxu3 %v6239_v26  ;;  %6721 = vmatmul.bf16.vlgmr.msra.gmra.mxu1 %v6239_v26 }
 0x71d   :  { %v6657_v45 = vpop.f32.mrf.mxu0 }
 0x723   :  { %v6683_v32 = vpop.f32.mrf.mxu2 }
 0x725   :  { %v6659_v53 = vpop.f32.mrf.mxu0 }
 0x72b   :  { %v6685_v41 = vpop.f32.mrf.mxu2 }
 0x72d   :  { %v6709_v17 = vpop.f32.mrf.mxu0 }
 0x733   :  { %v6735_v11 = vpop.f32.mrf.mxu2 }
 0x735   :  { %v6711_v5 = vpop.f32.mrf.mxu0 }
 0x73b   :  { %v6737_v48 = vpop.f32.mrf.mxu2 }
 0x73d   :  { %v6670_v40 = vpop.f32.mrf.mxu1 }
 0x73e   :  { %v6671_v62 = vadd.f32 %v6670_v40, %v6628_v3 }
 0x740   :  { %v6684_v49 = vadd.f32 %v6683_v32, %v6671_v62 }
 0x742   :  { %v9769_v10 = vmul.f32 -1.442695, %v6684_v49 }
 0x743   :  { %v6644_v35 = vpop.f32.mrf.mxu3 }
 0x744   :  { %10663 = vpow2.f32 %v9769_v10  ;;  %v6645_v13 = vadd.f32 %v6644_v35, %v6627_v20 }
 0x745   :  { %v6672_v27 = vpop.f32.mrf.mxu1 }
 0x746   :  { %v6658_v39 = vadd.f32 %v6657_v45, %v6645_v13 }
 0x748   :  { %v9768_v60 = vmul.f32 -1.442695, %v6658_v39 }
 0x74a   :  { %v10664_v42 = vpop.eup %10663  ;;  %10665 = vpow2.f32 %v9768_v60 }
 0x74b   :  { %v6761_v56 = vadd.f32 1.0, %v10664_v42  ;;  %v6646_v24 = vpop.f32.mrf.mxu3 }
 0x74d   :  { %v6722_v9 = vpop.f32.mrf.mxu1  ;;  %10667 = vrcp.f32 %v6761_v56  ;;  %v6773_v43 = vand.u32 2147483648, %v6761_v56  ;;  %vm6767_vm13 = vweird.f32 %v6761_v56  ;;  %v6771_v12 = vand.u32 2147483647, %v6761_v56 }
 0x74e   :  { %v6723_v4 = vadd.f32 %v6722_v9, %v6630_v59 }
 0x74f   :  { %v6774_v57 = vor.u32 1.1754944e-38, %v6773_v43  ;;  %vm6772_vm15 = vcmp.eq.f32.partialorder %v6771_v12, 8.507059e+37 }
 0x750   :  { %v10666_v16 = vpop.eup %10665  ;;  %v6736_v8 = vadd.f32 %v6735_v11, %v6723_v4 }
 0x751   :  { %v6742_v0 = vadd.f32 1.0, %v10666_v16 }
 0x753   :  { %10669 = vrcp.f32 %v6742_v0  ;;  %v6696_v51 = vpop.f32.mrf.mxu3  ;;  %v10668_v52 = vpop.eup %10667  ;;  %v6754_v6 = vand.u32 2147483648, %v6742_v0  ;;  %v6752_v31 = vand.u32 2147483647, %v6742_v0  ;;  %vm6748_vm9 = vweird.f32 %v6742_v0 }
 0x754   :  { %v6763_v18 = vmul.f32 %v10668_v52, %v6761_v56  ;;  %v6697_v1 = vadd.f32 %v6696_v51, %v6629_v36  ;;  %vm6768_vm12 = vweird.f32 %v10668_v52 }
 0x755   :  { %v6724_v58 = vpop.f32.mrf.mxu1  ;;  %v6755_v30 = vor.u32 1.1754944e-38, %v6754_v6  ;;  %vm6753_vm11 = vcmp.eq.f32.partialorder %v6752_v31, 8.507059e+37  ;;  %vm6769_vm14 = vmor %vm6767_vm13, %vm6768_vm12 }
 0x756   :  { %v6764_v47 = vsub.f32 1.0, %v6763_v18  ;;  %v6710_v44 = vadd.f32 %v6709_v17, %v6697_v1 }
 0x758   :  { %v6765_v46 = vmul.f32 %v10668_v52, %v6764_v47 }
 0x759   :  { %v10670_v54 = vpop.eup %10669 }
 0x75a   :  { %v6744_v2 = vmul.f32 %v10670_v54, %v6742_v0  ;;  %vm6749_vm8 = vweird.f32 %v10670_v54  ;;  %v6766_v26 = vadd.f32 %v10668_v52, %v6765_v46 }
 0x75b   :  { %v6698_v25 = vpop.f32.mrf.mxu3  ;;  %vm6750_vm10 = vmor %vm6748_vm9, %vm6749_vm8 }
 0x75c   :  { %v6745_v22 = vsub.f32 1.0, %v6744_v2  ;;  %v6770_v33 = vsel %vm6769_vm14, %v10668_v52, %v6766_v26 }
 0x75d   :  { %v6775_v37 = vsel %vm6772_vm15, %v6774_v57, %v6770_v33 }
 0x75e   :  { %v6746_v28 = vmul.f32 %v10670_v54, %v6745_v22  ;;  %v6780_v14 = vsub.f32 1.0, %v6775_v37  ;;  %v6782_v61 = vmul.f32 %v6775_v37, %v11843_v38 }
 0x760   :  { %v6747_v21 = vadd.f32 %v10670_v54, %v6746_v28 }
 0x762   :  { %v6751_v34 = vsel %vm6750_vm10, %v10670_v54, %v6747_v21 }
 0x763   :  { %v6756_v23 = vsel %vm6753_vm11, %v6755_v30, %v6751_v34 }
 0x764   :  { %v6777_v50 = vmul.f32 %v6756_v23, %v6736_v8 }
 0x766   :  { %v6778_v19 = vadd.f32 %v6777_v50, %v6710_v44 }
 0x768   :  { %10671 = vtanh.f32 %v6778_v19 }
 0x76e   :  { %v10672_v15 = vpop.eup %10671 }
 0x76f   :  { %v6781_v29 = vmul.f32 %v10672_v15, %v6780_v14 }
 0x771   :  { %v6783_v55 = vadd.f32 %v6782_v61, %v6781_v29 }
 0x773   :  { %6784 = vst [vmem:[#allocation14 + $0x7] sm:$0x1] %v6783_v55 }
 0x774   :  { %6787 = vst [vmem:[#allocation15 + $0x1] sm:$0x1] %v6783_v55  ;;  %6798 = dma.vmem_to_hbm [thread:$0]  %s6794_s0, 128, %s6796_s26, [#allocation5]  }
 0x775   :  { %6811 = dma.vmem_to_hbm [thread:$0]  %s6804_s29, 32, %s6806_s9, [#allocation16], %s10886_s12, %s10886_s12, %s10891_s7  }
 0x776   :  { %10873 = dma.done.wait [#allocation5], 128  }
 0x777   :  { %10874 = vsyncadd [#allocation5], 4294967168 }
 0x778   :  { %10875 = dma.done.wait [#allocation16], 32  }
 0x779   :  { %10876 = vsyncadd [#allocation16], 4294967264 }
 0x77a   :  { %6820 = vsyncpa [#allocation4], 1 }
 0x77b   :  { %6821 = vsyncpa [#allocation7], 1 }
 0x77c   :  { %6822 = vsyncpa [#allocation10], 1 }
 0x77d   :  { %6823 = vsyncpa [#allocation13], 1 }
 0x77e   :  { %6824 = vsyncpa [#allocation5], 1 }
 0x77f   :  { %6825 = vsyncpa [#allocation16], 1 }

</bundles_post_ra>
